<compile_context>
chip_gen: v5e
topology: v5e:2x2
jax: 0.10.0
libtpu: 0.0.40
codegen_flags: <defaults>
</compile_context>

<pallas_src>
import jax
import jax.numpy as jnp
from jax.experimental import pallas as pl
from jax.experimental.pallas import tpu as pltpu


# ---------------------------------------------------------------------------
# Fused forward kernel (one batch block per grid step).
# ---------------------------------------------------------------------------
def _digit_cnn_kernel(x_ref, t1_ref, s1_ref, o1_ref, t2_ref, s2_ref, o2_ref,
                      fw1_ref, fb1_ref, fw2_ref, fb2_ref, out_ref, xp2_ref):
    B = x_ref.shape[0]

    # ---- conv1 (3x3, pad=1) + bn1 + relu: 3 MXU matmuls over kernel rows (dy) ----
    acc1 = None
    for dy in range(3):
        rows = x_ref[:, dy:dy + 28, :].reshape(B * 28, 28).astype(jnp.bfloat16)
        d = jnp.dot(rows, t1_ref[dy], preferred_element_type=jnp.float32)
        acc1 = d if acc1 is None else acc1 + d
    acc1 = jnp.maximum(acc1 * s1_ref[...] + o1_ref[...], 0.0)      # (B*28,896) cols=w*32+c

    # ---- maxpool 2x2 / stride 2 on the 28x28x32 map ----
    wcols = [jnp.maximum(acc1[:, 64 * w:64 * w + 32], acc1[:, 64 * w + 32:64 * w + 64])
             for w in range(14)]
    p1 = jnp.concatenate(wcols, axis=-1)                           # (B*28, 448)
    p1 = p1.reshape(B, 14, 2, 448)
    p1 = jnp.maximum(p1[:, :, 0, :], p1[:, :, 1, :])               # (B, 14, 448)

    # ---- zero-pad h only for conv2 via a VMEM scratch: (B, 16, 14*32) ----
    # (w padding is baked into the Toeplitz weight t2, so the store is full-lane.)
    xp2_ref[...] = jnp.zeros(xp2_ref.shape, xp2_ref.dtype)
    xp2_ref[:, 1:15, :] = p1

    # ---- conv2 (3x3, pad=1) + bn2 + relu ----
    acc2 = None
    for dy in range(3):
        rows = xp2_ref[:, dy:dy + 14, :].reshape(B * 14, 448).astype(jnp.bfloat16)
        d = jnp.dot(rows, t2_ref[dy], preferred_element_type=jnp.float32)
        acc2 = d if acc2 is None else acc2 + d
    acc2 = jnp.maximum(acc2 * s2_ref[...] + o2_ref[...], 0.0)      # (B*14,896) cols=w*64+c

    # ---- maxpool 2x2 / stride 2 on the 14x14x64 map ----
    wcols = [jnp.maximum(acc2[:, 128 * w:128 * w + 64], acc2[:, 128 * w + 64:128 * w + 128])
             for w in range(7)]
    p2 = jnp.concatenate(wcols, axis=-1)                           # (B*14, 448)
    p2 = p2.reshape(B, 7, 2, 448)
    p2 = jnp.maximum(p2[:, :, 0, :], p2[:, :, 1, :])               # (B, 7, 448)

    # ---- flatten in (h, w, c) order (fc1 weight rows pre-permuted) + fc head ----
    flat = jnp.concatenate([p2[:, h, :] for h in range(7)], axis=-1)   # (B, 3136)
    flat = flat.astype(jnp.bfloat16)
    h1 = jnp.dot(flat, fw1_ref[...], preferred_element_type=jnp.float32) + fb1_ref[...]
    h1 = jnp.maximum(h1, 0.0)
    # Dropout(0.25) is identity in eval mode.
    h1 = h1.astype(jnp.bfloat16)
    out_ref[...] = jnp.dot(h1, fw2_ref[...],
                           preferred_element_type=jnp.float32) + fb2_ref[...]


# ---------------------------------------------------------------------------
# Trace-time parameter transforms.
# ---------------------------------------------------------------------------
def bn_fold(gamma, beta, mean, var, eps=1e-5):
    scale = gamma / jnp.sqrt(var + eps)
    shift = beta - mean * scale
    return scale, shift


def _toeplitz_conv_weight(w_hwio, length):
    """w_hwio: (3, 3, Cin, Cout) -> (3, length*Cin, length*Cout) bf16.

    'same' (pad=1) convolution along w is baked in:
      T[dy, j*Cin+ci, w*Cout+co] = w[dy, j-w+1, ci, co] if 0 <= j-w+1 <= 2 else 0,
    so the conv over an h-padded (w-unpadded) input becomes
      out[(b,h), w*Cout+co] = sum_dy rows_dy[(b,h), :] @ T[dy]
    with rows_dy[(b,h), j*Cin+ci] = x_hpad[b, h+dy, j, ci].
    """
    kh, kw, cin, cout = w_hwio.shape
    j = jnp.arange(length)
    o = jnp.arange(length)
    dx = jnp.arange(kw)
    sel = (j[None, :, None] - o[None, None, :] == dx[:, None, None] - 1).astype(w_hwio.dtype)
    t = jnp.einsum('xjw,yxic->yjiwc', sel, w_hwio)          # (dy, j, ci, w, co)
    return t.reshape(kh, length * cin, length * cout).astype(jnp.bfloat16)


# ---------------------------------------------------------------------------
# Full forward.
# ---------------------------------------------------------------------------
def digit_cnn_forward(x_nchw, p, *, block_b=16):
    """Eval-mode forward of DigitCNN. x_nchw: (N, 1, 28, 28) f32 -> (N, 10) f32."""
    N = x_nchw.shape[0]
    if N <= block_b:
        bb, Np = N, N
    else:
        assert block_b % 8 == 0, "block_b must be a multiple of 8"
        bb = block_b
        Np = pl.cdiv(N, bb) * bb

    # --- BatchNorm(eval) folded with conv bias, tiled to the (w, c) lane layout ---
    s1, o1 = bn_fold(p["bn1_gamma"], p["bn1_beta"], p["bn1_mean"], p["bn1_var"])
    o1 = o1 + p["conv1_b"] * s1
    s2, o2 = bn_fold(p["bn2_gamma"], p["bn2_beta"], p["bn2_mean"], p["bn2_var"])
    o2 = o2 + p["conv2_b"] * s2
    s1t = jnp.tile(s1, 28).reshape(1, 896).astype(jnp.float32)
    o1t = jnp.tile(o1, 28).reshape(1, 896).astype(jnp.float32)
    s2t = jnp.tile(s2, 14).reshape(1, 896).astype(jnp.float32)
    o2t = jnp.tile(o2, 14).reshape(1, 896).astype(jnp.float32)

    # --- Toeplitz-expanded conv weights (dx shifts + w zero-padding absorbed), bf16 ---
    t1 = _toeplitz_conv_weight(p["conv1_w"], 28)             # (3, 28, 896)
    t2 = _toeplitz_conv_weight(p["conv2_w"], 14)             # (3, 448, 896)

    # --- fc1 rows permuted from PyTorch (c,h,w) flatten order to kernel (h,w,c);
    #     fc2 zero-padded to 128 lanes ---
    fw1 = jnp.transpose(p["fc1_w"].reshape(64, 7, 7, 128), (1, 2, 0, 3))
    fw1 = fw1.reshape(3136, 128).astype(jnp.bfloat16)
    fb1 = p["fc1_b"].reshape(1, 128).astype(jnp.float32)
    fw2 = jnp.pad(p["fc2_w"], ((0, 0), (0, 118))).astype(jnp.bfloat16)   # (128, 128)
    fb2 = jnp.pad(p["fc2_b"], (0, 118)).reshape(1, 128).astype(jnp.float32)

    # --- input: drop singleton channel, zero-pad h only (+ batch remainder) ---
    x = x_nchw.reshape(N, 28, 28).astype(jnp.float32)
    x = jnp.pad(x, ((0, Np - N), (1, 1), (0, 0)))            # (Np, 30, 28)

    const2 = lambda i: (0, 0)
    const3 = lambda i: (0, 0, 0)
    out = pl.pallas_call(
        _digit_cnn_kernel,
        out_shape=jax.ShapeDtypeStruct((Np, 128), jnp.float32),
        grid=(Np // bb,),
        in_specs=[
            pl.BlockSpec((bb, 30, 28), lambda i: (i, 0, 0)),   # images (h-padded)
            pl.BlockSpec((3, 28, 896), const3),                # conv1 Toeplitz weight
            pl.BlockSpec((1, 896), const2),                    # bn1 scale (tiled)
            pl.BlockSpec((1, 896), const2),                    # bn1 shift (+bias, tiled)
            pl.BlockSpec((3, 448, 896), const3),               # conv2 Toeplitz weight
            pl.BlockSpec((1, 896), const2),                    # bn2 scale (tiled)
            pl.BlockSpec((1, 896), const2),                    # bn2 shift (+bias, tiled)
            pl.BlockSpec((3136, 128), const2),                 # fc1 weight (permuted)
            pl.BlockSpec((1, 128), const2),                    # fc1 bias
            pl.BlockSpec((128, 128), const2),                  # fc2 weight (padded)
            pl.BlockSpec((1, 128), const2),                    # fc2 bias (padded)
        ],
        out_specs=pl.BlockSpec((bb, 128), lambda i: (i, 0)),
        scratch_shapes=[pltpu.VMEM((bb, 16, 448), jnp.float32)],  # h-padded conv2 input
        compiler_params=pltpu.CompilerParams(
            dimension_semantics=("parallel",),
            vmem_limit_bytes=32 * 1024 * 1024,
        ),
    )(x, t1, s1t, o1t, t2, s2t, o2t, fw1, fb1, fw2, fb2)
    return out[:N, :10]


# ---------------------------------------------------------------------------
# Pure-JAX f32 reference (mirrors the PyTorch module, eval mode).
# ---------------------------------------------------------------------------
def reference_forward(x_nchw, p):
    def bn(x, g, b, m, v, eps=1e-5):
        inv = g / jnp.sqrt(v + eps)
        return (x - m[None, :, None, None]) * inv[None, :, None, None] + b[None, :, None, None]

    def conv(x, w_hwio, b):
        out = jax.lax.conv_general_dilated(
            x, w_hwio, window_strides=(1, 1), padding=((1, 1), (1, 1)),
            dimension_numbers=("NCHW", "HWIO", "NCHW"))
        return out + b[None, :, None, None]

    def pool(x):
        return jax.lax.reduce_window(x, -jnp.inf, jax.lax.max,
                                     (1, 1, 2, 2), (1, 1, 2, 2), "VALID")

    x = pool(jax.nn.relu(bn(conv(x_nchw, p["conv1_w"], p["conv1_b"]),
                            p["bn1_gamma"], p["bn1_beta"], p["bn1_mean"], p["bn1_var"])))
    x = pool(jax.nn.relu(bn(conv(x, p["conv2_w"], p["conv2_b"]),
                            p["bn2_gamma"], p["bn2_beta"], p["bn2_mean"], p["bn2_var"])))
    x = x.reshape(x.shape[0], -1)                     # NCHW flatten: (c, h, w) order
    x = jax.nn.relu(x @ p["fc1_w"] + p["fc1_b"])      # dropout = identity (eval)
    return x @ p["fc2_w"] + p["fc2_b"]


# ---------------------------------------------------------------------------
# Parameters (PyTorch-equivalent layouts, eval-mode BN stats).
# ---------------------------------------------------------------------------
def init_params(key):
    ks = jax.random.split(key, 8)
    p = {}
    w1 = jax.random.normal(ks[0], (32, 1, 3, 3), jnp.float32) * 0.1    # (Cout,Cin,kh,kw)
    w2 = jax.random.normal(ks[1], (64, 32, 3, 3), jnp.float32) * 0.05
    p["conv1_w"] = jnp.transpose(w1, (2, 3, 1, 0))                     # (kh,kw,Cin,Cout)
    p["conv1_b"] = jax.random.normal(ks[2], (32,), jnp.float32) * 0.1
    p["conv2_w"] = jnp.transpose(w2, (2, 3, 1, 0))
    p["conv2_b"] = jax.random.normal(ks[3], (64,), jnp.float32) * 0.05
    p["bn1_gamma"] = jnp.ones((32,), jnp.float32)
    p["bn1_beta"] = jnp.zeros((32,), jnp.float32)
    p["bn1_mean"] = jnp.zeros((32,), jnp.float32)
    p["bn1_var"] = jnp.ones((32,), jnp.float32)
    p["bn2_gamma"] = jnp.ones((64,), jnp.float32)
    p["bn2_beta"] = jnp.zeros((64,), jnp.float32)
    p["bn2_mean"] = jnp.zeros((64,), jnp.float32)
    p["bn2_var"] = jnp.ones((64,), jnp.float32)
    # FC weights stored as (in, out) == PyTorch weight.T, input index order (c, h, w).
    p["fc1_w"] = jax.random.normal(ks[4], (64 * 7 * 7, 128), jnp.float32) * 0.02
    p["fc1_b"] = jax.random.normal(ks[5], (128,), jnp.float32) * 0.02
    p["fc2_w"] = jax.random.normal(ks[6], (128, 10), jnp.float32) * 0.1
    p["fc2_b"] = jax.random.normal(ks[7], (10,), jnp.float32) * 0.1
    return p


if __name__ == "__main__":
    key = jax.random.PRNGKey(0)
    k_x, k_p = jax.random.split(key)

    N = 2  # input must be 28x28 single-channel so the flatten is 64*7*7
    x = jax.random.normal(k_x, (N, 1, 28, 28), jnp.float32)  # NCHW, as in PyTorch
    params = init_params(k_p)

    fwd = jax.jit(digit_cnn_forward)
    out = jax.block_until_ready(fwd(x, params))
    assert out.shape == (N, 10) and out.dtype == jnp.float32
    assert bool(jnp.all(jnp.isfinite(out)))

    ref = reference_forward(x, params)
    err = float(jnp.max(jnp.abs(out - ref)))
    assert err < 1e-1, f"mismatch vs f32 reference: max abs err = {err}"
    print("KERNEL_OK")
</pallas_src>

<mosaic_0001>
module attributes {stable_mosaic.version = 11 : i64} {
  func.func @_digit_cnn_kernel(%arg0: i32, %arg1: memref<2x30x28xf32, #tpu.memory_space<vmem>>, %arg2: memref<3x28x896xbf16, #tpu.memory_space<vmem>>, %arg3: memref<1x896xf32, #tpu.memory_space<vmem>>, %arg4: memref<1x896xf32, #tpu.memory_space<vmem>>, %arg5: memref<3x448x896xbf16, #tpu.memory_space<vmem>>, %arg6: memref<1x896xf32, #tpu.memory_space<vmem>>, %arg7: memref<1x896xf32, #tpu.memory_space<vmem>>, %arg8: memref<3136x128xbf16, #tpu.memory_space<vmem>>, %arg9: memref<1x128xf32, #tpu.memory_space<vmem>>, %arg10: memref<128x128xbf16, #tpu.memory_space<vmem>>, %arg11: memref<1x128xf32, #tpu.memory_space<vmem>>, %arg12: memref<2x128xf32, #tpu.memory_space<vmem>>, %arg13: memref<2x16x448xf32, #tpu.memory_space<vmem>>) attributes {dimension_semantics = [#tpu.dimension_semantics<parallel>], iteration_bounds = array<i64: 1>, scalar_prefetch = 0 : i64, scratch_operands = 1 : i64, tpu.core_type = #tpu.core_type<tc>, window_params = [{transform_indices = @transform_0, window_bounds = array<i64: 2, 30, 28>}, {pipeline_mode = #tpu.pipeline_mode<synchronous>, transform_indices = @transform_1, window_bounds = array<i64: 3, 28, 896>}, {pipeline_mode = #tpu.pipeline_mode<synchronous>, transform_indices = @transform_2, window_bounds = array<i64: 1, 896>}, {pipeline_mode = #tpu.pipeline_mode<synchronous>, transform_indices = @transform_3, window_bounds = array<i64: 1, 896>}, {pipeline_mode = #tpu.pipeline_mode<synchronous>, transform_indices = @transform_4, window_bounds = array<i64: 3, 448, 896>}, {pipeline_mode = #tpu.pipeline_mode<synchronous>, transform_indices = @transform_5, window_bounds = array<i64: 1, 896>}, {pipeline_mode = #tpu.pipeline_mode<synchronous>, transform_indices = @transform_6, window_bounds = array<i64: 1, 896>}, {pipeline_mode = #tpu.pipeline_mode<synchronous>, transform_indices = @transform_7, window_bounds = array<i64: 3136, 128>}, {pipeline_mode = #tpu.pipeline_mode<synchronous>, transform_indices = @transform_8, window_bounds = array<i64: 1, 128>}, {pipeline_mode = #tpu.pipeline_mode<synchronous>, transform_indices = @transform_9, window_bounds = array<i64: 128, 128>}, {pipeline_mode = #tpu.pipeline_mode<synchronous>, transform_indices = @transform_10, window_bounds = array<i64: 1, 128>}, {transform_indices = @transform_11, window_bounds = array<i64: 2, 128>}]} {
    %c0 = arith.constant 0 : index
    %c0_0 = arith.constant 0 : index
    %c0_1 = arith.constant 0 : index
    %0 = vector.load %arg1[%c0, %c0_0, %c0_1] : memref<2x30x28xf32, #tpu.memory_space<vmem>>, vector<2x28x28xf32>
    %1 = vector.shape_cast %0 : vector<2x28x28xf32> to vector<56x28xf32>
    %2 = arith.truncf %1 : vector<56x28xf32> to vector<56x28xbf16>
    %c0_2 = arith.constant 0 : index
    %c0_3 = arith.constant 0 : index
    %c0_4 = arith.constant 0 : index
    %3 = vector.load %arg2[%c0_2, %c0_3, %c0_4] : memref<3x28x896xbf16, #tpu.memory_space<vmem>>, vector<1x28x896xbf16>
    %4 = vector.shape_cast %3 : vector<1x28x896xbf16> to vector<28x896xbf16>
    %cst = arith.constant dense<0.000000e+00> : vector<56x896xf32>
    %5 = tpu.matmul %2, %4, %cst {dimension_numbers = #tpu.dot_dimension_numbers<[1], [0], [0], [1], [0, 0, 1, 1], [], []>} : vector<56x28xbf16>, vector<28x896xbf16>, vector<56x896xf32> -> vector<56x896xf32>
    %c0_5 = arith.constant 0 : index
    %c1 = arith.constant 1 : index
    %c0_6 = arith.constant 0 : index
    %6 = vector.load %arg1[%c0_5, %c1, %c0_6] : memref<2x30x28xf32, #tpu.memory_space<vmem>>, vector<2x28x28xf32>
    %7 = vector.shape_cast %6 : vector<2x28x28xf32> to vector<56x28xf32>
    %8 = arith.truncf %7 : vector<56x28xf32> to vector<56x28xbf16>
    %c1_7 = arith.constant 1 : index
    %c0_8 = arith.constant 0 : index
    %c0_9 = arith.constant 0 : index
    %9 = vector.load %arg2[%c1_7, %c0_8, %c0_9] : memref<3x28x896xbf16, #tpu.memory_space<vmem>>, vector<1x28x896xbf16>
    %10 = vector.shape_cast %9 : vector<1x28x896xbf16> to vector<28x896xbf16>
    %cst_10 = arith.constant dense<0.000000e+00> : vector<56x896xf32>
    %11 = tpu.matmul %8, %10, %cst_10 {dimension_numbers = #tpu.dot_dimension_numbers<[1], [0], [0], [1], [0, 0, 1, 1], [], []>} : vector<56x28xbf16>, vector<28x896xbf16>, vector<56x896xf32> -> vector<56x896xf32>
    %12 = arith.addf %5, %11 : vector<56x896xf32>
    %c0_11 = arith.constant 0 : index
    %c2 = arith.constant 2 : index
    %c0_12 = arith.constant 0 : index
    %13 = vector.load %arg1[%c0_11, %c2, %c0_12] : memref<2x30x28xf32, #tpu.memory_space<vmem>>, vector<2x28x28xf32>
    %14 = vector.shape_cast %13 : vector<2x28x28xf32> to vector<56x28xf32>
    %15 = arith.truncf %14 : vector<56x28xf32> to vector<56x28xbf16>
    %c2_13 = arith.constant 2 : index
    %c0_14 = arith.constant 0 : index
    %c0_15 = arith.constant 0 : index
    %16 = vector.load %arg2[%c2_13, %c0_14, %c0_15] : memref<3x28x896xbf16, #tpu.memory_space<vmem>>, vector<1x28x896xbf16>
    %17 = vector.shape_cast %16 : vector<1x28x896xbf16> to vector<28x896xbf16>
    %cst_16 = arith.constant dense<0.000000e+00> : vector<56x896xf32>
    %18 = tpu.matmul %15, %17, %cst_16 {dimension_numbers = #tpu.dot_dimension_numbers<[1], [0], [0], [1], [0, 0, 1, 1], [], []>} : vector<56x28xbf16>, vector<28x896xbf16>, vector<56x896xf32> -> vector<56x896xf32>
    %19 = arith.addf %12, %18 : vector<56x896xf32>
    %c0_17 = arith.constant 0 : index
    %c0_18 = arith.constant 0 : index
    %20 = vector.load %arg3[%c0_17, %c0_18] : memref<1x896xf32, #tpu.memory_space<vmem>>, vector<1x896xf32>
    %21 = vector.broadcast %20 : vector<1x896xf32> to vector<56x896xf32>
    %22 = arith.mulf %19, %21 : vector<56x896xf32>
    %c0_19 = arith.constant 0 : index
    %c0_20 = arith.constant 0 : index
    %23 = vector.load %arg4[%c0_19, %c0_20] : memref<1x896xf32, #tpu.memory_space<vmem>>, vector<1x896xf32>
    %24 = vector.broadcast %23 : vector<1x896xf32> to vector<56x896xf32>
    %25 = arith.addf %22, %24 : vector<56x896xf32>
    %cst_21 = arith.constant 0.000000e+00 : f32
    %26 = vector.broadcast %cst_21 : f32 to vector<56x896xf32>
    %27 = arith.maximumf %25, %26 : vector<56x896xf32>
    %28 = vector.extract_strided_slice %27 {offsets = [0, 0], sizes = [56, 32], strides = [1, 1]} : vector<56x896xf32> to vector<56x32xf32>
    %29 = vector.extract_strided_slice %27 {offsets = [0, 32], sizes = [56, 32], strides = [1, 1]} : vector<56x896xf32> to vector<56x32xf32>
    %30 = arith.maximumf %28, %29 : vector<56x32xf32>
    %31 = vector.extract_strided_slice %27 {offsets = [0, 64], sizes = [56, 32], strides = [1, 1]} : vector<56x896xf32> to vector<56x32xf32>
    %32 = vector.extract_strided_slice %27 {offsets = [0, 96], sizes = [56, 32], strides = [1, 1]} : vector<56x896xf32> to vector<56x32xf32>
    %33 = arith.maximumf %31, %32 : vector<56x32xf32>
    %34 = vector.extract_strided_slice %27 {offsets = [0, 128], sizes = [56, 32], strides = [1, 1]} : vector<56x896xf32> to vector<56x32xf32>
    %35 = vector.extract_strided_slice %27 {offsets = [0, 160], sizes = [56, 32], strides = [1, 1]} : vector<56x896xf32> to vector<56x32xf32>
    %36 = arith.maximumf %34, %35 : vector<56x32xf32>
    %37 = vector.extract_strided_slice %27 {offsets = [0, 192], sizes = [56, 32], strides = [1, 1]} : vector<56x896xf32> to vector<56x32xf32>
    %38 = vector.extract_strided_slice %27 {offsets = [0, 224], sizes = [56, 32], strides = [1, 1]} : vector<56x896xf32> to vector<56x32xf32>
    %39 = arith.maximumf %37, %38 : vector<56x32xf32>
    %40 = vector.extract_strided_slice %27 {offsets = [0, 256], sizes = [56, 32], strides = [1, 1]} : vector<56x896xf32> to vector<56x32xf32>
    %41 = vector.extract_strided_slice %27 {offsets = [0, 288], sizes = [56, 32], strides = [1, 1]} : vector<56x896xf32> to vector<56x32xf32>
    %42 = arith.maximumf %40, %41 : vector<56x32xf32>
    %43 = vector.extract_strided_slice %27 {offsets = [0, 320], sizes = [56, 32], strides = [1, 1]} : vector<56x896xf32> to vector<56x32xf32>
    %44 = vector.extract_strided_slice %27 {offsets = [0, 352], sizes = [56, 32], strides = [1, 1]} : vector<56x896xf32> to vector<56x32xf32>
    %45 = arith.maximumf %43, %44 : vector<56x32xf32>
    %46 = vector.extract_strided_slice %27 {offsets = [0, 384], sizes = [56, 32], strides = [1, 1]} : vector<56x896xf32> to vector<56x32xf32>
    %47 = vector.extract_strided_slice %27 {offsets = [0, 416], sizes = [56, 32], strides = [1, 1]} : vector<56x896xf32> to vector<56x32xf32>
    %48 = arith.maximumf %46, %47 : vector<56x32xf32>
    %49 = vector.extract_strided_slice %27 {offsets = [0, 448], sizes = [56, 32], strides = [1, 1]} : vector<56x896xf32> to vector<56x32xf32>
    %50 = vector.extract_strided_slice %27 {offsets = [0, 480], sizes = [56, 32], strides = [1, 1]} : vector<56x896xf32> to vector<56x32xf32>
    %51 = arith.maximumf %49, %50 : vector<56x32xf32>
    %52 = vector.extract_strided_slice %27 {offsets = [0, 512], sizes = [56, 32], strides = [1, 1]} : vector<56x896xf32> to vector<56x32xf32>
    %53 = vector.extract_strided_slice %27 {offsets = [0, 544], sizes = [56, 32], strides = [1, 1]} : vector<56x896xf32> to vector<56x32xf32>
    %54 = arith.maximumf %52, %53 : vector<56x32xf32>
    %55 = vector.extract_strided_slice %27 {offsets = [0, 576], sizes = [56, 32], strides = [1, 1]} : vector<56x896xf32> to vector<56x32xf32>
    %56 = vector.extract_strided_slice %27 {offsets = [0, 608], sizes = [56, 32], strides = [1, 1]} : vector<56x896xf32> to vector<56x32xf32>
    %57 = arith.maximumf %55, %56 : vector<56x32xf32>
    %58 = vector.extract_strided_slice %27 {offsets = [0, 640], sizes = [56, 32], strides = [1, 1]} : vector<56x896xf32> to vector<56x32xf32>
    %59 = vector.extract_strided_slice %27 {offsets = [0, 672], sizes = [56, 32], strides = [1, 1]} : vector<56x896xf32> to vector<56x32xf32>
    %60 = arith.maximumf %58, %59 : vector<56x32xf32>
    %61 = vector.extract_strided_slice %27 {offsets = [0, 704], sizes = [56, 32], strides = [1, 1]} : vector<56x896xf32> to vector<56x32xf32>
    %62 = vector.extract_strided_slice %27 {offsets = [0, 736], sizes = [56, 32], strides = [1, 1]} : vector<56x896xf32> to vector<56x32xf32>
    %63 = arith.maximumf %61, %62 : vector<56x32xf32>
    %64 = vector.extract_strided_slice %27 {offsets = [0, 768], sizes = [56, 32], strides = [1, 1]} : vector<56x896xf32> to vector<56x32xf32>
    %65 = vector.extract_strided_slice %27 {offsets = [0, 800], sizes = [56, 32], strides = [1, 1]} : vector<56x896xf32> to vector<56x32xf32>
    %66 = arith.maximumf %64, %65 : vector<56x32xf32>
    %67 = vector.extract_strided_slice %27 {offsets = [0, 832], sizes = [56, 32], strides = [1, 1]} : vector<56x896xf32> to vector<56x32xf32>
    %68 = vector.extract_strided_slice %27 {offsets = [0, 864], sizes = [56, 32], strides = [1, 1]} : vector<56x896xf32> to vector<56x32xf32>
    %69 = arith.maximumf %67, %68 : vector<56x32xf32>
    %70 = tpu.concatenate %30, %33, %36, %39, %42, %45, %48, %51, %54, %57, %60, %63, %66, %69 in 1 : vector<56x32xf32>, vector<56x32xf32>, vector<56x32xf32>, vector<56x32xf32>, vector<56x32xf32>, vector<56x32xf32>, vector<56x32xf32>, vector<56x32xf32>, vector<56x32xf32>, vector<56x32xf32>, vector<56x32xf32>, vector<56x32xf32>, vector<56x32xf32>, vector<56x32xf32> -> vector<56x448xf32>
    %71 = vector.shape_cast %70 : vector<56x448xf32> to vector<2x14x2x448xf32>
    %72 = vector.extract_strided_slice %71 {offsets = [0, 0, 0, 0], sizes = [2, 14, 1, 448], strides = [1, 1, 1, 1]} : vector<2x14x2x448xf32> to vector<2x14x1x448xf32>
    %73 = vector.shape_cast %72 : vector<2x14x1x448xf32> to vector<2x14x448xf32>
    %74 = vector.extract_strided_slice %71 {offsets = [0, 0, 1, 0], sizes = [2, 14, 1, 448], strides = [1, 1, 1, 1]} : vector<2x14x2x448xf32> to vector<2x14x1x448xf32>
    %75 = vector.shape_cast %74 : vector<2x14x1x448xf32> to vector<2x14x448xf32>
    %76 = arith.maximumf %73, %75 : vector<2x14x448xf32>
    %cst_22 = arith.constant 0.000000e+00 : f32
    %77 = vector.broadcast %cst_22 : f32 to vector<2x16x448xf32>
    %c0_23 = arith.constant 0 : index
    %c0_24 = arith.constant 0 : index
    %c0_25 = arith.constant 0 : index
    %78 = vector.load %arg13[%c0_23, %c0_24, %c0_25] : memref<2x16x448xf32, #tpu.memory_space<vmem>>, vector<2x16x448xf32>
    tpu.vector_store %arg13[%c0_23, %c0_24, %c0_25], %77 {strides = array<i32>} : memref<2x16x448xf32, #tpu.memory_space<vmem>>, vector<2x16x448xf32>,
    %c0_26 = arith.constant 0 : index
    %c1_27 = arith.constant 1 : index
    %c0_28 = arith.constant 0 : index
    %79 = vector.load %arg13[%c0_26, %c1_27, %c0_28] : memref<2x16x448xf32, #tpu.memory_space<vmem>>, vector<2x14x448xf32>
    tpu.vector_store %arg13[%c0_26, %c1_27, %c0_28], %76 {strides = array<i32>} : memref<2x16x448xf32, #tpu.memory_space<vmem>>, vector<2x14x448xf32>,
    %c0_29 = arith.constant 0 : index
    %c0_30 = arith.constant 0 : index
    %c0_31 = arith.constant 0 : index
    %80 = vector.load %arg13[%c0_29, %c0_30, %c0_31] : memref<2x16x448xf32, #tpu.memory_space<vmem>>, vector<2x14x448xf32>
    %81 = vector.shape_cast %80 : vector<2x14x448xf32> to vector<28x448xf32>
    %82 = arith.truncf %81 : vector<28x448xf32> to vector<28x448xbf16>
    %c0_32 = arith.constant 0 : index
    %c0_33 = arith.constant 0 : index
    %c0_34 = arith.constant 0 : index
    %83 = vector.load %arg5[%c0_32, %c0_33, %c0_34] : memref<3x448x896xbf16, #tpu.memory_space<vmem>>, vector<1x448x896xbf16>
    %84 = vector.shape_cast %83 : vector<1x448x896xbf16> to vector<448x896xbf16>
    %cst_35 = arith.constant dense<0.000000e+00> : vector<28x896xf32>
    %85 = tpu.matmul %82, %84, %cst_35 {dimension_numbers = #tpu.dot_dimension_numbers<[1], [0], [0], [1], [0, 0, 1, 1], [], []>} : vector<28x448xbf16>, vector<448x896xbf16>, vector<28x896xf32> -> vector<28x896xf32>
    %c0_36 = arith.constant 0 : index
    %c1_37 = arith.constant 1 : index
    %c0_38 = arith.constant 0 : index
    %86 = vector.load %arg13[%c0_36, %c1_37, %c0_38] : memref<2x16x448xf32, #tpu.memory_space<vmem>>, vector<2x14x448xf32>
    %87 = vector.shape_cast %86 : vector<2x14x448xf32> to vector<28x448xf32>
    %88 = arith.truncf %87 : vector<28x448xf32> to vector<28x448xbf16>
    %c1_39 = arith.constant 1 : index
    %c0_40 = arith.constant 0 : index
    %c0_41 = arith.constant 0 : index
    %89 = vector.load %arg5[%c1_39, %c0_40, %c0_41] : memref<3x448x896xbf16, #tpu.memory_space<vmem>>, vector<1x448x896xbf16>
    %90 = vector.shape_cast %89 : vector<1x448x896xbf16> to vector<448x896xbf16>
    %cst_42 = arith.constant dense<0.000000e+00> : vector<28x896xf32>
    %91 = tpu.matmul %88, %90, %cst_42 {dimension_numbers = #tpu.dot_dimension_numbers<[1], [0], [0], [1], [0, 0, 1, 1], [], []>} : vector<28x448xbf16>, vector<448x896xbf16>, vector<28x896xf32> -> vector<28x896xf32>
    %92 = arith.addf %85, %91 : vector<28x896xf32>
    %c0_43 = arith.constant 0 : index
    %c2_44 = arith.constant 2 : index
    %c0_45 = arith.constant 0 : index
    %93 = vector.load %arg13[%c0_43, %c2_44, %c0_45] : memref<2x16x448xf32, #tpu.memory_space<vmem>>, vector<2x14x448xf32>
    %94 = vector.shape_cast %93 : vector<2x14x448xf32> to vector<28x448xf32>
    %95 = arith.truncf %94 : vector<28x448xf32> to vector<28x448xbf16>
    %c2_46 = arith.constant 2 : index
    %c0_47 = arith.constant 0 : index
    %c0_48 = arith.constant 0 : index
    %96 = vector.load %arg5[%c2_46, %c0_47, %c0_48] : memref<3x448x896xbf16, #tpu.memory_space<vmem>>, vector<1x448x896xbf16>
    %97 = vector.shape_cast %96 : vector<1x448x896xbf16> to vector<448x896xbf16>
    %cst_49 = arith.constant dense<0.000000e+00> : vector<28x896xf32>
    %98 = tpu.matmul %95, %97, %cst_49 {dimension_numbers = #tpu.dot_dimension_numbers<[1], [0], [0], [1], [0, 0, 1, 1], [], []>} : vector<28x448xbf16>, vector<448x896xbf16>, vector<28x896xf32> -> vector<28x896xf32>
    %99 = arith.addf %92, %98 : vector<28x896xf32>
    %c0_50 = arith.constant 0 : index
    %c0_51 = arith.constant 0 : index
    %100 = vector.load %arg6[%c0_50, %c0_51] : memref<1x896xf32, #tpu.memory_space<vmem>>, vector<1x896xf32>
    %101 = vector.broadcast %100 : vector<1x896xf32> to vector<28x896xf32>
    %102 = arith.mulf %99, %101 : vector<28x896xf32>
    %c0_52 = arith.constant 0 : index
    %c0_53 = arith.constant 0 : index
    %103 = vector.load %arg7[%c0_52, %c0_53] : memref<1x896xf32, #tpu.memory_space<vmem>>, vector<1x896xf32>
    %104 = vector.broadcast %103 : vector<1x896xf32> to vector<28x896xf32>
    %105 = arith.addf %102, %104 : vector<28x896xf32>
    %cst_54 = arith.constant 0.000000e+00 : f32
    %106 = vector.broadcast %cst_54 : f32 to vector<28x896xf32>
    %107 = arith.maximumf %105, %106 : vector<28x896xf32>
    %108 = vector.extract_strided_slice %107 {offsets = [0, 0], sizes = [28, 64], strides = [1, 1]} : vector<28x896xf32> to vector<28x64xf32>
    %109 = vector.extract_strided_slice %107 {offsets = [0, 64], sizes = [28, 64], strides = [1, 1]} : vector<28x896xf32> to vector<28x64xf32>
    %110 = arith.maximumf %108, %109 : vector<28x64xf32>
    %111 = vector.extract_strided_slice %107 {offsets = [0, 128], sizes = [28, 64], strides = [1, 1]} : vector<28x896xf32> to vector<28x64xf32>
    %112 = vector.extract_strided_slice %107 {offsets = [0, 192], sizes = [28, 64], strides = [1, 1]} : vector<28x896xf32> to vector<28x64xf32>
    %113 = arith.maximumf %111, %112 : vector<28x64xf32>
    %114 = vector.extract_strided_slice %107 {offsets = [0, 256], sizes = [28, 64], strides = [1, 1]} : vector<28x896xf32> to vector<28x64xf32>
    %115 = vector.extract_strided_slice %107 {offsets = [0, 320], sizes = [28, 64], strides = [1, 1]} : vector<28x896xf32> to vector<28x64xf32>
    %116 = arith.maximumf %114, %115 : vector<28x64xf32>
    %117 = vector.extract_strided_slice %107 {offsets = [0, 384], sizes = [28, 64], strides = [1, 1]} : vector<28x896xf32> to vector<28x64xf32>
    %118 = vector.extract_strided_slice %107 {offsets = [0, 448], sizes = [28, 64], strides = [1, 1]} : vector<28x896xf32> to vector<28x64xf32>
    %119 = arith.maximumf %117, %118 : vector<28x64xf32>
    %120 = vector.extract_strided_slice %107 {offsets = [0, 512], sizes = [28, 64], strides = [1, 1]} : vector<28x896xf32> to vector<28x64xf32>
    %121 = vector.extract_strided_slice %107 {offsets = [0, 576], sizes = [28, 64], strides = [1, 1]} : vector<28x896xf32> to vector<28x64xf32>
    %122 = arith.maximumf %120, %121 : vector<28x64xf32>
    %123 = vector.extract_strided_slice %107 {offsets = [0, 640], sizes = [28, 64], strides = [1, 1]} : vector<28x896xf32> to vector<28x64xf32>
    %124 = vector.extract_strided_slice %107 {offsets = [0, 704], sizes = [28, 64], strides = [1, 1]} : vector<28x896xf32> to vector<28x64xf32>
    %125 = arith.maximumf %123, %124 : vector<28x64xf32>
    %126 = vector.extract_strided_slice %107 {offsets = [0, 768], sizes = [28, 64], strides = [1, 1]} : vector<28x896xf32> to vector<28x64xf32>
    %127 = vector.extract_strided_slice %107 {offsets = [0, 832], sizes = [28, 64], strides = [1, 1]} : vector<28x896xf32> to vector<28x64xf32>
    %128 = arith.maximumf %126, %127 : vector<28x64xf32>
    %129 = tpu.concatenate %110, %113, %116, %119, %122, %125, %128 in 1 : vector<28x64xf32>, vector<28x64xf32>, vector<28x64xf32>, vector<28x64xf32>, vector<28x64xf32>, vector<28x64xf32>, vector<28x64xf32> -> vector<28x448xf32>
    %130 = vector.shape_cast %129 : vector<28x448xf32> to vector<2x7x2x448xf32>
    %131 = vector.extract_strided_slice %130 {offsets = [0, 0, 0, 0], sizes = [2, 7, 1, 448], strides = [1, 1, 1, 1]} : vector<2x7x2x448xf32> to vector<2x7x1x448xf32>
    %132 = vector.shape_cast %131 : vector<2x7x1x448xf32> to vector<2x7x448xf32>
    %133 = vector.extract_strided_slice %130 {offsets = [0, 0, 1, 0], sizes = [2, 7, 1, 448], strides = [1, 1, 1, 1]} : vector<2x7x2x448xf32> to vector<2x7x1x448xf32>
    %134 = vector.shape_cast %133 : vector<2x7x1x448xf32> to vector<2x7x448xf32>
    %135 = arith.maximumf %132, %134 : vector<2x7x448xf32>
    %136 = vector.extract_strided_slice %135 {offsets = [0, 0, 0], sizes = [2, 1, 448], strides = [1, 1, 1]} : vector<2x7x448xf32> to vector<2x1x448xf32>
    %137 = vector.shape_cast %136 : vector<2x1x448xf32> to vector<2x448xf32>
    %138 = vector.extract_strided_slice %135 {offsets = [0, 1, 0], sizes = [2, 1, 448], strides = [1, 1, 1]} : vector<2x7x448xf32> to vector<2x1x448xf32>
    %139 = vector.shape_cast %138 : vector<2x1x448xf32> to vector<2x448xf32>
    %140 = vector.extract_strided_slice %135 {offsets = [0, 2, 0], sizes = [2, 1, 448], strides = [1, 1, 1]} : vector<2x7x448xf32> to vector<2x1x448xf32>
    %141 = vector.shape_cast %140 : vector<2x1x448xf32> to vector<2x448xf32>
    %142 = vector.extract_strided_slice %135 {offsets = [0, 3, 0], sizes = [2, 1, 448], strides = [1, 1, 1]} : vector<2x7x448xf32> to vector<2x1x448xf32>
    %143 = vector.shape_cast %142 : vector<2x1x448xf32> to vector<2x448xf32>
    %144 = vector.extract_strided_slice %135 {offsets = [0, 4, 0], sizes = [2, 1, 448], strides = [1, 1, 1]} : vector<2x7x448xf32> to vector<2x1x448xf32>
    %145 = vector.shape_cast %144 : vector<2x1x448xf32> to vector<2x448xf32>
    %146 = vector.extract_strided_slice %135 {offsets = [0, 5, 0], sizes = [2, 1, 448], strides = [1, 1, 1]} : vector<2x7x448xf32> to vector<2x1x448xf32>
    %147 = vector.shape_cast %146 : vector<2x1x448xf32> to vector<2x448xf32>
    %148 = vector.extract_strided_slice %135 {offsets = [0, 6, 0], sizes = [2, 1, 448], strides = [1, 1, 1]} : vector<2x7x448xf32> to vector<2x1x448xf32>
    %149 = vector.shape_cast %148 : vector<2x1x448xf32> to vector<2x448xf32>
    %150 = tpu.concatenate %137, %139, %141, %143, %145, %147, %149 in 1 : vector<2x448xf32>, vector<2x448xf32>, vector<2x448xf32>, vector<2x448xf32>, vector<2x448xf32>, vector<2x448xf32>, vector<2x448xf32> -> vector<2x3136xf32>
    %151 = arith.truncf %150 : vector<2x3136xf32> to vector<2x3136xbf16>
    %c0_55 = arith.constant 0 : index
    %c0_56 = arith.constant 0 : index
    %152 = vector.load %arg8[%c0_55, %c0_56] : memref<3136x128xbf16, #tpu.memory_space<vmem>>, vector<3136x128xbf16>
    %cst_57 = arith.constant dense<0.000000e+00> : vector<2x128xf32>
    %153 = tpu.matmul %151, %152, %cst_57 {dimension_numbers = #tpu.dot_dimension_numbers<[1], [0], [0], [1], [0, 0, 1, 1], [], []>} : vector<2x3136xbf16>, vector<3136x128xbf16>, vector<2x128xf32> -> vector<2x128xf32>
    %c0_58 = arith.constant 0 : index
    %c0_59 = arith.constant 0 : index
    %154 = vector.load %arg9[%c0_58, %c0_59] : memref<1x128xf32, #tpu.memory_space<vmem>>, vector<1x128xf32>
    %155 = vector.broadcast %154 : vector<1x128xf32> to vector<2x128xf32>
    %156 = arith.addf %153, %155 : vector<2x128xf32>
    %cst_60 = arith.constant 0.000000e+00 : f32
    %157 = vector.broadcast %cst_60 : f32 to vector<2x128xf32>
    %158 = arith.maximumf %156, %157 : vector<2x128xf32>
    %159 = arith.truncf %158 : vector<2x128xf32> to vector<2x128xbf16>
    %c0_61 = arith.constant 0 : index
    %c0_62 = arith.constant 0 : index
    %160 = vector.load %arg10[%c0_61, %c0_62] : memref<128x128xbf16, #tpu.memory_space<vmem>>, vector<128x128xbf16>
    %cst_63 = arith.constant dense<0.000000e+00> : vector<2x128xf32>
    %161 = tpu.matmul %159, %160, %cst_63 {dimension_numbers = #tpu.dot_dimension_numbers<[1], [0], [0], [1], [0, 0, 1, 1], [], []>} : vector<2x128xbf16>, vector<128x128xbf16>, vector<2x128xf32> -> vector<2x128xf32>
    %c0_64 = arith.constant 0 : index
    %c0_65 = arith.constant 0 : index
    %162 = vector.load %arg11[%c0_64, %c0_65] : memref<1x128xf32, #tpu.memory_space<vmem>>, vector<1x128xf32>
    %163 = vector.broadcast %162 : vector<1x128xf32> to vector<2x128xf32>
    %164 = arith.addf %161, %163 : vector<2x128xf32>
    %c0_66 = arith.constant 0 : index
    %c0_67 = arith.constant 0 : index
    %165 = vector.load %arg12[%c0_66, %c0_67] : memref<2x128xf32, #tpu.memory_space<vmem>>, vector<2x128xf32>
    tpu.vector_store %arg12[%c0_66, %c0_67], %164 {strides = array<i32>} : memref<2x128xf32, #tpu.memory_space<vmem>>, vector<2x128xf32>,
    return
  }
  func.func @transform_0(%arg0: i32) -> (i32, i32, i32) {
    %c0_i32 = arith.constant 0 : i32
    %c0_i32_0 = arith.constant 0 : i32
    %c0_i32_1 = arith.constant 0 : i32
    return %arg0, %c0_i32, %c0_i32_0 : i32, i32, i32
  }
  func.func @transform_1(%arg0: i32) -> (i32, i32, i32) {
    %c0_i32 = arith.constant 0 : i32
    %c0_i32_0 = arith.constant 0 : i32
    %c0_i32_1 = arith.constant 0 : i32
    %c0_i32_2 = arith.constant 0 : i32
    return %c0_i32, %c0_i32_0, %c0_i32_1 : i32, i32, i32
  }
  func.func @transform_2(%arg0: i32) -> (i32, i32) {
    %c0_i32 = arith.constant 0 : i32
    %c0_i32_0 = arith.constant 0 : i32
    %c0_i32_1 = arith.constant 0 : i32
    return %c0_i32, %c0_i32_0 : i32, i32
  }
  func.func @transform_3(%arg0: i32) -> (i32, i32) {
    %c0_i32 = arith.constant 0 : i32
    %c0_i32_0 = arith.constant 0 : i32
    %c0_i32_1 = arith.constant 0 : i32
    return %c0_i32, %c0_i32_0 : i32, i32
  }
  func.func @transform_4(%arg0: i32) -> (i32, i32, i32) {
    %c0_i32 = arith.constant 0 : i32
    %c0_i32_0 = arith.constant 0 : i32
    %c0_i32_1 = arith.constant 0 : i32
    %c0_i32_2 = arith.constant 0 : i32
    return %c0_i32, %c0_i32_0, %c0_i32_1 : i32, i32, i32
  }
  func.func @transform_5(%arg0: i32) -> (i32, i32) {
    %c0_i32 = arith.constant 0 : i32
    %c0_i32_0 = arith.constant 0 : i32
    %c0_i32_1 = arith.constant 0 : i32
    return %c0_i32, %c0_i32_0 : i32, i32
  }
  func.func @transform_6(%arg0: i32) -> (i32, i32) {
    %c0_i32 = arith.constant 0 : i32
    %c0_i32_0 = arith.constant 0 : i32
    %c0_i32_1 = arith.constant 0 : i32
    return %c0_i32, %c0_i32_0 : i32, i32
  }
  func.func @transform_7(%arg0: i32) -> (i32, i32) {
    %c0_i32 = arith.constant 0 : i32
    %c0_i32_0 = arith.constant 0 : i32
    %c0_i32_1 = arith.constant 0 : i32
    return %c0_i32, %c0_i32_0 : i32, i32
  }
  func.func @transform_8(%arg0: i32) -> (i32, i32) {
    %c0_i32 = arith.constant 0 : i32
    %c0_i32_0 = arith.constant 0 : i32
    %c0_i32_1 = arith.constant 0 : i32
    return %c0_i32, %c0_i32_0 : i32, i32
  }
  func.func @transform_9(%arg0: i32) -> (i32, i32) {
    %c0_i32 = arith.constant 0 : i32
    %c0_i32_0 = arith.constant 0 : i32
    %c0_i32_1 = arith.constant 0 : i32
    return %c0_i32, %c0_i32_0 : i32, i32
  }
  func.func @transform_10(%arg0: i32) -> (i32, i32) {
    %c0_i32 = arith.constant 0 : i32
    %c0_i32_0 = arith.constant 0 : i32
    %c0_i32_1 = arith.constant 0 : i32
    return %c0_i32, %c0_i32_0 : i32, i32
  }
  func.func @transform_11(%arg0: i32) -> (i32, i32) {
    %c0_i32 = arith.constant 0 : i32
    %c0_i32_0 = arith.constant 0 : i32
    return %arg0, %c0_i32 : i32, i32
  }
}

</mosaic_0001>

<bundles_post_ra>
// kernel: tile.23
= control target key start
LH: loop header
LB: loop body
LE: loop exit
PB: predicated region body
PF: predicated region fallthrough
CT: control target
= control target key end

     0   :  { %s40_s0 = inlined_call_operand.vmem [shape: f32[32], index: 0, kind: input, shape index: {}]   ;;  %s41_s1 = inlined_call_operand.vmem [shape: f32[28,32], index: 1, kind: output, shape index: {}]  }
   0x1   :  { %v4_v0 = vld [vmem:[%s40_s0] ss:$0 sm:$0xff] }
   0x2   :  { %5 = vst [vmem:[%s41_s1] sm:$0xff] %v4_v0 }
   0x3   :  { %12 = vst [vmem:[%s41_s1 + $0x8] sm:$0xff] %v4_v0 }
   0x4   :  { %13 = vst [vmem:[%s41_s1 + $0x10] sm:$0xff] %v4_v0 }
   0x5   :  { %14 = vst [vmem:[%s41_s1 + $0x18] sm:$0xff] %v4_v0 }

// kernel: tile.24
= control target key start
LH: loop header
LB: loop body
LE: loop exit
PB: predicated region body
PF: predicated region fallthrough
CT: control target
= control target key end

     0   :  { %s81_s8 = smov 96   ;;  %s82_s11 = smov 32   ;;  %vm3_vm0 = vcmask 261120   ;;  %vm10_vm1 = vcmask 1048320   ;;  %vm17_vm2 = vcmask 785920   ;;  %vm24_vm3 = vcmask 523520   ;;  %s127_s0 = inlined_call_operand.vmem [shape: f32[28,32], index: 0, kind: input, shape index: {}]   ;;  %s128_s1 = inlined_call_operand.vmem [shape: f32[1,896], index: 1, kind: output, shape index: {}]  }
   0x1   :  { %v69_v0 = vld [vmem:[%s127_s0 + $0x3] ss:$4 sm:$0x7f]   ;;  %v71_v1 = vld [vmem:[%s127_s0 + $0x1] ss:$4 sm:$0x7f]  }
   0x2   :  { %8 = vrot.lane.b32.xlu0 %v69_v0, %s81_s8  ;;  %22 = vrot.lane.b32.xlu1 %v71_v1, %s82_s11  ;;  %v70_v2 = vld [vmem:[%s127_s0 + $0x2] ss:$4 sm:$0x7f]   ;;  %s83_s14 = smov 64  }
   0x3   :  { %v2_v3 = vld [vmem:[%s127_s0] ss:$4 sm:$0x7f]  }
   0x4   :  { %4 = vst.msk [vmem:[#allocation0] ss:$8 sm:$0xf] %vm3_vm0, %v2_v3  }
   0x5   :  { %5 = vst.msk [vmem:[#allocation0] ss:$8 sm:$0x70] %vm3_vm0, %v2_v3  }
   0xa   :  { %15 = vrot.lane.b32.xlu0 %v70_v2, %s83_s14 }
  0x74   :  { %v9_v4 = vpop.permute.xlu0 %8   ;;  %v23_v5 = vpop.permute.xlu1 %22  }
  0x75   :  { %11 = vst.msk [vmem:[#allocation0] ss:$8 sm:$0xf] %vm10_vm1, %v9_v4  }
  0x76   :  { %12 = vst.msk [vmem:[#allocation0] ss:$8 sm:$0x70] %vm10_vm1, %v9_v4  }
  0x7c   :  { %v16_v6 = vpop.permute.xlu0 %15  }
  0x7d   :  { %18 = vst.msk [vmem:[#allocation0] ss:$8 sm:$0xf] %vm17_vm2, %v16_v6  }
  0x7e   :  { %19 = vst.msk [vmem:[#allocation0] ss:$8 sm:$0x70] %vm17_vm2, %v16_v6  }
  0x7f   :  { %25 = vst.msk [vmem:[#allocation0] ss:$8 sm:$0xf] %vm24_vm3, %v23_v5  }
  0x80   :  { %26 = vst.msk [vmem:[#allocation0] ss:$8 sm:$0x70] %vm24_vm3, %v23_v5  }
  0x86   :  { %v29_v7 = vld [vmem:[#allocation0] sm:$0x1]  ;;  %v34_v8 = vld [vmem:[#allocation0 + $0x8] sm:$0x1]  ;;  %v40_v9 = vld [vmem:[#allocation0 + $0x10] sm:$0x1] }
  0x87   :  { %32 = vst [vmem:[%s128_s1] sm:$0x1] %v29_v7  ;;  %v46_v10 = vld [vmem:[#allocation0 + $0x18] sm:$0x1]  ;;  %v52_v11 = vld [vmem:[#allocation0 + $0x20] sm:$0x1] }
  0x88   :  { %72 = vst [vmem:[%s128_s1 + $0x1] sm:$0x1] %v34_v8  ;;  %v58_v12 = vld [vmem:[#allocation0 + $0x28] sm:$0x1]  ;;  %v64_v13 = vld [vmem:[#allocation0 + $0x30] sm:$0x1] }
  0x89   :  { %73 = vst [vmem:[%s128_s1 + $0x2] sm:$0x1] %v40_v9 }
  0x8a   :  { %74 = vst [vmem:[%s128_s1 + $0x3] sm:$0x1] %v46_v10 }
  0x8b   :  { %75 = vst [vmem:[%s128_s1 + $0x4] sm:$0x1] %v52_v11 }
  0x8c   :  { %76 = vst [vmem:[%s128_s1 + $0x5] sm:$0x1] %v58_v12 }
  0x8d   :  { %77 = vst [vmem:[%s128_s1 + $0x6] sm:$0x1] %v64_v13 }

// kernel: tile.33
= control target key start
LH: loop header
LB: loop body
LE: loop exit
PB: predicated region body
PF: predicated region fallthrough
CT: control target
= control target key end

     0   :  { %s28_s0 = inlined_call_operand.vmem [shape: f32[64], index: 0, kind: input, shape index: {}]   ;;  %s29_s1 = inlined_call_operand.vmem [shape: f32[14,64], index: 1, kind: output, shape index: {}]  }
   0x1   :  { %v4_v0 = vld [vmem:[%s28_s0] ss:$0 sm:$0xff] }
   0x2   :  { %5 = vst [vmem:[%s29_s1] sm:$0xff] %v4_v0 }
   0x3   :  { %8 = vst [vmem:[%s29_s1 + $0x8] sm:$0xff] %v4_v0 }

// kernel: tile.34
= control target key start
LH: loop header
LB: loop body
LE: loop exit
PB: predicated region body
PF: predicated region fallthrough
CT: control target
= control target key end

     0   :  { %vm3_vm0 = vcmask 523264   ;;  %s63_s8 = smov 64   ;;  %vm10_vm1 = vcmask 1048064   ;;  %s101_s0 = inlined_call_operand.vmem [shape: f32[14,64], index: 0, kind: input, shape index: {}]   ;;  %s102_s1 = inlined_call_operand.vmem [shape: f32[1,896], index: 1, kind: output, shape index: {}]  }
   0x1   :  { %v55_v0 = vld [vmem:[%s101_s0 + $0x1] ss:$2 sm:$0x7f]   ;;  %v2_v1 = vld [vmem:[%s101_s0] ss:$2 sm:$0x7f]  }
   0x2   :  { %8 = vrot.lane.b32.xlu0 %v55_v0, %s63_s8  ;;  %4 = vst.msk [vmem:[#allocation0] ss:$8 sm:$0xf] %vm3_vm0, %v2_v1  }
   0x3   :  { %5 = vst.msk [vmem:[#allocation0] ss:$8 sm:$0x70] %vm3_vm0, %v2_v1  }
  0x74   :  { %v9_v2 = vpop.permute.xlu0 %8  }
  0x75   :  { %11 = vst.msk [vmem:[#allocation0] ss:$8 sm:$0xf] %vm10_vm1, %v9_v2  }
  0x76   :  { %12 = vst.msk [vmem:[#allocation0] ss:$8 sm:$0x70] %vm10_vm1, %v9_v2  }
  0x7c   :  { %v15_v3 = vld [vmem:[#allocation0] sm:$0x1]  ;;  %v20_v4 = vld [vmem:[#allocation0 + $0x8] sm:$0x1]  ;;  %v26_v5 = vld [vmem:[#allocation0 + $0x10] sm:$0x1] }
  0x7d   :  { %18 = vst [vmem:[%s102_s1] sm:$0x1] %v15_v3  ;;  %v32_v6 = vld [vmem:[#allocation0 + $0x18] sm:$0x1]  ;;  %v38_v7 = vld [vmem:[#allocation0 + $0x20] sm:$0x1] }
  0x7e   :  { %56 = vst [vmem:[%s102_s1 + $0x1] sm:$0x1] %v20_v4  ;;  %v44_v8 = vld [vmem:[#allocation0 + $0x28] sm:$0x1]  ;;  %v50_v9 = vld [vmem:[#allocation0 + $0x30] sm:$0x1] }
  0x7f   :  { %57 = vst [vmem:[%s102_s1 + $0x2] sm:$0x1] %v26_v5 }
  0x80   :  { %58 = vst [vmem:[%s102_s1 + $0x3] sm:$0x1] %v32_v6 }
  0x81   :  { %59 = vst [vmem:[%s102_s1 + $0x4] sm:$0x1] %v38_v7 }
  0x82   :  { %60 = vst [vmem:[%s102_s1 + $0x5] sm:$0x1] %v44_v8 }
  0x83   :  { %61 = vst [vmem:[%s102_s1 + $0x6] sm:$0x1] %v50_v9 }

// kernel: digit_cnn_forward.1
= control target key start
LH: loop header
LB: loop body
LE: loop exit
PB: predicated region body
PF: predicated region fallthrough
CT: control target
= control target key end

     0   :  { %vm273_vm0 = vcmask 1045504   ;;  %s24319_s0 = inlined_call_operand.vmem [shape: f32[2,30,28], index: 0, kind: input, shape index: {}]   ;;  %s24320_s1 = inlined_call_operand.vmem [shape: bf16[3,28,896], index: 1, kind: input, shape index: {}]   ;;  %s24321_s2 = inlined_call_operand.vmem [shape: f32[1,896], index: 2, kind: input, shape index: {}]   ;;  %s24322_s3 = inlined_call_operand.vmem [shape: f32[1,896], index: 3, kind: input, shape index: {}]   ;;  %s24323_s4 = inlined_call_operand.vmem [shape: bf16[3,448,896], index: 4, kind: input, shape index: {}]   ;;  %s24324_s5 = inlined_call_operand.vmem [shape: f32[1,896], index: 5, kind: input, shape index: {}]   ;;  %s24325_s6 = inlined_call_operand.vmem [shape: f32[1,896], index: 6, kind: input, shape index: {}]   ;;  %s24326_s7 = inlined_call_operand.vmem [shape: bf16[3136,128], index: 7, kind: input, shape index: {}]   ;;  %s24327_s8 = inlined_call_operand.vmem [shape: f32[1,128], index: 8, kind: input, shape index: {}]   ;;  %s24328_s9 = inlined_call_operand.vmem [shape: bf16[128,128], index: 9, kind: input, shape index: {}]   ;;  %s24329_s10 = inlined_call_operand.vmem [shape: f32[1,128], index: 10, kind: input, shape index: {}]   ;;  %s24330_s11 = inlined_call_operand.hbm [shape: f32[2,128], index: 11, kind: output, shape index: {}]  }
   0x1   :  { %v11093_v0 = vld [vmem:[%s24320_s1 + $0xa8] sm:$0xf]  ;;  %v15060_v1 = vld [vmem:[%s24320_s1 + $0xc0] sm:$0x30]  ;;  %v15057_v3 = vld [vmem:[%s24320_s1 + $0xac] sm:$0xf] }
   0x2   :  { %v11094_v2 = vor.u32 %v15060_v1, %v11093_v0  ;;  %v11095_v4 = vld [vmem:[%s24320_s1 + $0xc4] sm:$0x30]  ;;  %v11101_v5 = vld [vmem:[%s24320_s1 + $0xb0] sm:$0xf]  ;;  %v15061_v7 = vld [vmem:[%s24320_s1 + $0xc8] sm:$0x30] }
   0x3   :  { %v11098_v6 = vor.u32 %v15057_v3, %v11095_v4  ;;  %v15058_v8 = vld [vmem:[%s24320_s1 + $0xb4] sm:$0xf]  ;;  %v11103_v9 = vld [vmem:[%s24320_s1 + $0xcc] sm:$0x30]  ;;  %v11102_v11 = vor.u32 %v15061_v7, %v11101_v5  ;;  %v15053_v14 = vld [vmem:[%s24320_s1 + $0x88] sm:$0xf0] }
   0x4   :  { %v275_v10 = vsel %vm273_vm0, %v11094_v2, 0  ;;  %v11106_v12 = vor.u32 %v15058_v8, %v11103_v9  ;;  %v11065_v13 = vld [vmem:[%s24320_s1 + $0x70] sm:$0xf]  ;;  %v40_v15 = vld [vmem:[%s24319_s0] sm:$0xff]  ;;  %v15050_v18 = vld [vmem:[%s24320_s1 + $0x74] sm:$0xf] }
   0x5   :  { %301 = vmatpush.bf16.msra.mxu0 %v275_v10  ;;  %v278_v16 = vsel %vm273_vm0, %v11098_v6, 0  ;;  %v11066_v17 = vor.u32 %v15053_v14, %v11065_v13  ;;  %v11067_v19 = vld [vmem:[%s24320_s1 + $0x8c] sm:$0xf0]  ;;  %v41_v20 = vld [vmem:[%s24319_s0 + $0x8] sm:$0xff]  ;;  %v281_v21 = vsel %vm273_vm0, %v11102_v11, 0  ;;  %v44_v29 = vld [vmem:[%s24319_s0 + $0x20] sm:$0xff] }
   0x6   :  { %329 = vmatpush.bf16.msra.mxu1 %v278_v16  ;;  %v284_v22 = vsel %vm273_vm0, %v11106_v12, 0  ;;  %v11070_v23 = vor.u32 %v15050_v18, %v11067_v19  ;;  %v11073_v24 = vld [vmem:[%s24320_s1 + $0x78] sm:$0xf]  ;;  %v15054_v25 = vld [vmem:[%s24320_s1 + $0x90] sm:$0xf0]  ;;  %357 = vmatpush.bf16.msra.mxu2 %v281_v21  ;;  %v56_v30 = vrot.slane %v40_v15, 4 }
   0x7   :  { %385 = vmatpush.bf16.msra.mxu3 %v284_v22  ;;  %v11074_v26 = vor.u32 %v15054_v25, %v11073_v24  ;;  %v15051_v27 = vld [vmem:[%s24320_s1 + $0x7c] sm:$0xf]  ;;  %v11075_v28 = vld [vmem:[%s24320_s1 + $0x94] sm:$0xf0]  ;;  %v57_v32 = vrot.slane %v41_v20, 4  ;;  %v45_v33 = vld [vmem:[%s24319_s0 + $0x28] sm:$0xff] }
   0x8   :  { %v11078_v31 = vor.u32 %v15051_v27, %v11075_v28  ;;  %62 = vst [vmem:[#allocation1] ss:$2 sm:$0xff] %v40_v15  ;;  %v59_v34 = vrot.slane %v44_v29, 4  ;;  %v11109_v35 = vld [vmem:[%s24320_s1 + $0xb8] sm:$0xf]  ;;  %v42_v48 = vld [vmem:[%s24319_s0 + $0x10] sm:$0xff] }
   0x9   :  { %302 = vmatpush.bf16.msra.mxu0 %v11066_v17  ;;  %64 = vst [vmem:[#allocation1 + $0x1] ss:$2 sm:$0xff] %v56_v30  ;;  %v15062_v36 = vld [vmem:[%s24320_s1 + $0xd0] sm:$0x30]  ;;  %v11117_v37 = vld [vmem:[%s24320_s1 + $0xc0] sm:$0xf] }
   0xa   :  { %330 = vmatpush.bf16.msra.mxu1 %v11070_v23  ;;  %66 = vst [vmem:[#allocation1 + $0x10] ss:$2 sm:$0xff] %v41_v20  ;;  %358 = vmatpush.bf16.msra.mxu2 %v11074_v26  ;;  %v11110_v38 = vor.u32 %v15062_v36, %v11109_v35  ;;  %v15063_v39 = vld [vmem:[%s24320_s1 + $0xd8] sm:$0x30]  ;;  %v11177_v40 = vld [vmem:[%s24320_s1 + $0x38] sm:$0xf] }
   0xb   :  { %386 = vmatpush.bf16.msra.mxu3 %v11078_v31  ;;  %68 = vst [vmem:[#allocation1 + $0x11] ss:$2 sm:$0xff] %v57_v32  ;;  %v11118_v41 = vor.u32 %v15063_v39, %v11117_v37  ;;  %v15046_v42 = vld [vmem:[%s24320_s1 + $0x50] sm:$0x30]  ;;  %v15059_v43 = vld [vmem:[%s24320_s1 + $0xbc] sm:$0xf] }
   0xc   :  { %76 = vst [vmem:[#allocation1 + $0x31] ss:$2 sm:$0xff] %v44_v29  ;;  %v11111_v44 = vld [vmem:[%s24320_s1 + $0xd4] sm:$0x30]  ;;  %v287_v45 = vsel %vm273_vm0, %v11110_v38, 0  ;;  %v11178_v46 = vor.u32 %v15046_v42, %v11177_v40  ;;  %v60_v49 = vrot.slane %v45_v33, 4 }
   0xd   :  { %v11114_v47 = vor.u32 %v15059_v43, %v11111_v44  ;;  %413 = vmatpush.bf16.msrb.mxu0 %v287_v45  ;;  %v293_v50 = vsel %vm273_vm0, %v11118_v41, 0  ;;  %70 = vst [vmem:[#allocation1 + $0x20] ss:$2 sm:$0xff] %v42_v48  ;;  %v46_v54 = vld [vmem:[%s24319_s0 + $0x30] sm:$0xff]  ;;  %v43_v55 = vld [vmem:[%s24319_s0 + $0x18] sm:$0xf] }
   0xe   :  { %469 = vmatpush.bf16.msrb.mxu2 %v293_v50  ;;  %v569_v52 = vsel %vm273_vm0, %v11178_v46, 0  ;;  %v58_v56 = vrot.slane %v42_v48, 4  ;;  %v117_v58 = vld [vmem:[%s24319_s0 + $0x1] sm:$0xff] }
   0xf   :  { %v290_v53 = vsel %vm273_vm0, %v11114_v47, 0  ;;  %595 = vmatpush.bf16.msrb.mxu3 %v569_v52 }
  0x10   :  { %v16181_v51 = vld.sshfl [vmem:[#allocation1] sm:$0xff pattern:$0x75316420]  ;;  %441 = vmatpush.bf16.msrb.mxu1 %v290_v53 }
  0x11   :  { %81 = vst [vmem:[#allocation1] ss:$2 sm:$0xff] %v59_v34 }
  0x12   :  { %v16191_v57 = vld.sshfl [vmem:[#allocation1 + $0x10] sm:$0xff pattern:$0x75316420]  ;;  %82 = vst [vmem:[#allocation1 + $0x1] ss:$2 sm:$0xff] %v45_v33 }
  0x13   :  { %83 = vst [vmem:[#allocation1 + $0x10] ss:$2 sm:$0xff] %v60_v49 }
  0x14   :  { %84 = vst [vmem:[#allocation1 + $0x11] ss:$2 sm:$0xff] %v46_v54 }
  0x15   :  { %16 = vsyncpa [#allocation4], 0  ;;  %72 = vst [vmem:[#allocation1 + $0x21] ss:$2 sm:$0xff] %v58_v56  ;;  %v118_v59 = vld [vmem:[%s24319_s0 + $0x9] sm:$0xff]  ;;  %v133_v60 = vrot.slane %v117_v58, 4 }
  0x16   :  { %74 = vst [vmem:[#allocation1 + $0x30] ss:$2 sm:$0xff] %v43_v55  ;;  %v134_v62 = vrot.slane %v118_v59, 4  ;;  %v47_v63 = vld [vmem:[%s24319_s0 + $0x38] sm:$0xf]  ;;  %v61_v0 = vrot.slane %v46_v54, 4 }
  0x17   :  { %v120_v2 = vld [vmem:[%s24319_s0 + $0x19] sm:$0xf]  ;;  %v121_v5 = vld [vmem:[%s24319_s0 + $0x21] sm:$0xff]  ;;  %v122_v6 = vld [vmem:[%s24319_s0 + $0x29] sm:$0xff]  ;;  %vm260_vm1 = vcmask 228352   ;;  %s16025_s26 = smov 32  }
  0x18   :  { %v136_v7 = vrot.slane %v121_v5, 4  ;;  %v119_v8 = vld [vmem:[%s24319_s0 + $0x11] sm:$0xff]  ;;  %v137_v9 = vrot.slane %v122_v6, 4  ;;  %v785_v15 = vld [vmem:[%s24319_s0 + $0x2] sm:$0xff]  ;;  %v15055_v19 = vld [vmem:[%s24320_s1 + $0x98] sm:$0xf0] }
  0x19   :  { %v16199_v61 = vld.sshfl [vmem:[#allocation1] sm:$0xff pattern:$0x75316420]  ;;  %v123_v11 = vld [vmem:[%s24319_s0 + $0x31] sm:$0xff]  ;;  %v135_v13 = vrot.slane %v119_v8, 4  ;;  %v801_v17 = vrot.slane %v785_v15, 4 }
  0x1a   :  { %139 = vst [vmem:[#allocation1] ss:$2 sm:$0xff] %v117_v58  ;;  %v11081_v18 = vld [vmem:[%s24320_s1 + $0x80] sm:$0xf]  ;;  %v11089_v20 = vld [vmem:[%s24320_s1 + $0x88] sm:$0xf]  ;;  %v16309_v58 = vpack.c.bf16 %v16191_v57, %v16181_v51 }
  0x1b   :  { %v16204_v1 = vld.sshfl [vmem:[#allocation1 + $0x10] sm:$0xff pattern:$0x75316420]  ;;  %141 = vst [vmem:[#allocation1 + $0x1] ss:$2 sm:$0xff] %v133_v60  ;;  %v11082_v21 = vor.u32 %v15055_v19, %v11081_v18  ;;  %v138_v30 = vrot.slane %v123_v11, 4 }
  0x1c   :  { %143 = vst [vmem:[#allocation1 + $0x10] ss:$2 sm:$0xff] %v118_v59  ;;  %v16209_v3 = vld.sshfl [vmem:[#allocation1 + $0x20] sm:$0xff pattern:$0x75316420]  ;;  %vm1897_vm2 = vcmask 523264  }
  0x1d   :  { %145 = vst [vmem:[#allocation1 + $0x11] ss:$2 sm:$0xff] %v134_v62  ;;  %v16211_v4 = vld.sshfl [vmem:[#allocation1 + $0x30] sm:$0xff pattern:$0x75316420]  ;;  %414 = vmatpush.bf16.msrb.mxu0 %v11082_v21  ;;  %vm1889_vm3 = vcmask 261120  }
  0x1e   :  { %85 = vst [vmem:[#allocation1 + $0x20] ss:$2 sm:$0xff] %v61_v0  ;;  %v15056_v22 = vld [vmem:[%s24320_s1 + $0xa0] sm:$0xf0]  ;;  %v11149_v23 = vld [vmem:[%s24320_s1] sm:$0xf] }
  0x1f   :  { %86 = vst [vmem:[#allocation1 + $0x21] ss:$2 sm:$0xff] %v47_v63  ;;  %v15039_v24 = vld [vmem:[%s24320_s1 + $0x18] sm:$0xf0]  ;;  %v11090_v26 = vor.u32 %v15056_v22, %v11089_v20  ;;  %v15052_v28 = vld [vmem:[%s24320_s1 + $0x84] sm:$0xf] }
  0x20   :  { %151 = vst [vmem:[#allocation1 + $0x30] ss:$2 sm:$0xff] %v120_v2  ;;  %v11150_v27 = vor.u32 %v15039_v24, %v11149_v23  ;;  %v11083_v29 = vld [vmem:[%s24320_s1 + $0x9c] sm:$0xf0]  ;;  %v124_v32 = vld [vmem:[%s24319_s0 + $0x39] sm:$0xf] }
  0x21   :  { %153 = vst [vmem:[#allocation1 + $0x31] ss:$2 sm:$0xff] %v121_v5  ;;  %470 = vmatpush.bf16.msrb.mxu2 %v11090_v26  ;;  %v11086_v31 = vor.u32 %v15052_v28, %v11083_v29  ;;  %v15043_v38 = vld [vmem:[%s24320_s1 + $0x3c] sm:$0xf]  ;;  %v11179_v39 = vld [vmem:[%s24320_s1 + $0x54] sm:$0x30] }
  0x22   :  { %v154_v10 = vld.sshfl [vmem:[#allocation1] sm:$0xff pattern:$0x75316420]  ;;  %596 = vmatpush.bf16.msrb.mxu3 %v11150_v27  ;;  %v11182_v41 = vor.u32 %v15043_v38, %v11179_v39  ;;  %v11193_v43 = vld [vmem:[%s24320_s1 + $0x48] sm:$0xf]  ;;  %vm24386_vm4 = vcmask 785408  }
  0x23   :  { %158 = vst [vmem:[#allocation1] ss:$2 sm:$0xff] %v136_v7  ;;  %442 = vmatpush.bf16.msrb.mxu1 %v11086_v31  ;;  %v15044_v40 = vld [vmem:[%s24320_s1 + $0x44] sm:$0xf]  ;;  %v11187_v42 = vld [vmem:[%s24320_s1 + $0x5c] sm:$0x30] }
  0x24   :  { %v155_v12 = vld.sshfl [vmem:[#allocation1 + $0x10] sm:$0xff pattern:$0x75316420]  ;;  %159 = vst [vmem:[#allocation1 + $0x1] ss:$2 sm:$0xff] %v122_v6  ;;  %v11190_v45 = vor.u32 %v15044_v40, %v11187_v42  ;;  %v572_v49 = vsel %vm273_vm0, %v11182_v41, 0 }
  0x25   :  { %v16225_v14 = vpack.c.bf16 %v155_v12, %v154_v10  ;;  %160 = vst [vmem:[#allocation1 + $0x10] ss:$2 sm:$0xff] %v137_v9  ;;  %v15048_v44 = vld [vmem:[%s24320_s1 + $0x60] sm:$0x30]  ;;  %v11185_v47 = vld [vmem:[%s24320_s1 + $0x40] sm:$0xf]  ;;  %v16345_v9 = vpack.c.bf16 %v16211_v4, %v16209_v3  ;;  %v16354_v10 = vpack.c.bf16 %v16204_v1, %v16199_v61 }
  0x26   :  { %v16230_v16 = vld.sshfl [vmem:[#allocation1 + $0x20] sm:$0xff pattern:$0x75316420]  ;;  %161 = vst [vmem:[#allocation1 + $0x11] ss:$2 sm:$0xff] %v123_v11  ;;  %v11194_v46 = vor.u32 %v15048_v44, %v11193_v43  ;;  %v578_v52 = vsel %vm273_vm0, %v11190_v45, 0 }
  0x27   :  { %11119 = vmatmul.msk.bf16.vlgmr.msra.gmra.mxu0 %vm260_vm1, %v16225_v14  ;;  %11123 = vmatmul.msk.bf16.vlgmr.msra.gmra.mxu1 %vm260_vm1, %v16225_v14  ;;  %147 = vst [vmem:[#allocation1 + $0x20] ss:$2 sm:$0xff] %v119_v8  ;;  %v15047_v48 = vld [vmem:[%s24320_s1 + $0x58] sm:$0x30]  ;;  %v15036_v59 = vld [vmem:[%s24320_s1 + $0x4] sm:$0xf]  ;;  %v16391_v24 = vpack.c.bf16 %v16230_v16, %v16230_v16 }
  0x28   :  { %11127 = vmatmul.msk.bf16.vlgmr.msra.gmra.mxu2 %vm260_vm1, %v16225_v14  ;;  %11131 = vmatmul.msk.bf16.vlgmr.msra.gmra.mxu3 %vm260_vm1, %v16225_v14  ;;  %149 = vst [vmem:[#allocation1 + $0x21] ss:$2 sm:$0xff] %v135_v13  ;;  %v157_v34 = vld.sshfl [vmem:[#allocation1 + $0x30] sm:$0xff pattern:$0x75316420]  ;;  %v11186_v50 = vor.u32 %v15047_v48, %v11185_v47  ;;  %v581_v53 = vsel %vm273_vm0, %v11194_v46, 0 }
  0x29   :  { %623 = vmatpush.bf16.msra.mxu0 %v572_v49  ;;  %679 = vmatpush.bf16.msra.mxu2 %v578_v52  ;;  %v11151_v51 = vld [vmem:[%s24320_s1 + $0x1c] sm:$0xf0]  ;;  %v15037_v57 = vld [vmem:[%s24320_s1 + $0xc] sm:$0xf]  ;;  %v11159_v62 = vld [vmem:[%s24320_s1 + $0x24] sm:$0xf0] }
  0x2a   :  { %707 = vmatpush.bf16.msra.mxu3 %v581_v53  ;;  %v575_v54 = vsel %vm273_vm0, %v11186_v50, 0  ;;  %v11154_v60 = vor.u32 %v15036_v59, %v11151_v51  ;;  %v11165_v63 = vld [vmem:[%s24320_s1 + $0x10] sm:$0xf]  ;;  %v15041_v0 = vld [vmem:[%s24320_s1 + $0x28] sm:$0xf0]  ;;  %v11162_v2 = vor.u32 %v15037_v57, %v11159_v62  ;;  %vm2011_vm5 = vcmask 1041408  }
  0x2b   :  { %v164_v25 = vld.sshfl [vmem:[#allocation1] sm:$0xff pattern:$0x75316420]  ;;  %651 = vmatpush.bf16.msra.mxu1 %v575_v54  ;;  %v11166_v5 = vor.u32 %v15041_v0, %v11165_v63  ;;  %v11157_v6 = vld [vmem:[%s24320_s1 + $0x8] sm:$0xf]  ;;  %v787_v0 = vld [vmem:[%s24319_s0 + $0x12] sm:$0xff] }
  0x2c   :  { %807 = vst [vmem:[#allocation1] ss:$2 sm:$0xff] %v785_v15  ;;  %v15040_v7 = vld [vmem:[%s24320_s1 + $0x20] sm:$0xf0]  ;;  %v15045_v3 = vld [vmem:[%s24320_s1 + $0x4c] sm:$0xf] }
  0x2d   :  { %809 = vst [vmem:[#allocation1 + $0x1] ss:$2 sm:$0xff] %v801_v17  ;;  %v165_v36 = vld.sshfl [vmem:[#allocation1 + $0x10] sm:$0xff pattern:$0x75316420]  ;;  %624 = vmatpush.bf16.msra.mxu0 %v11154_v60  ;;  %v11158_v8 = vor.u32 %v15040_v7, %v11157_v6  ;;  %680 = vmatpush.bf16.msra.mxu2 %v11162_v2  ;;  %vm2013_vm6 = vcmask 1045508  }
  0x2e   :  { %v176_v37 = vpack.c.bf16 %v165_v36, %v164_v25  ;;  %708 = vmatpush.bf16.msra.mxu3 %v11166_v5  ;;  %v11195_v4 = vld [vmem:[%s24320_s1 + $0x64] sm:$0x30]  ;;  %v11277_v61 = vld [vmem:[%s24320_s1 + $0x118] sm:$0xf]  ;;  %v15074_v11 = vld [vmem:[%s24320_s1 + $0x130] sm:$0x30] }
  0x2f   :  { %v156_v33 = vld.sshfl [vmem:[#allocation1 + $0x20] sm:$0xff pattern:$0x75316420]  ;;  %652 = vmatpush.bf16.msra.mxu1 %v11158_v8  ;;  %v11198_v1 = vor.u32 %v15045_v3, %v11195_v4  ;;  %v15071_v12 = vld [vmem:[%s24320_s1 + $0x11c] sm:$0xf]  ;;  %v786_v48 = vld [vmem:[%s24319_s0 + $0xa] sm:$0xff] }
  0x30   :  { %162 = vst [vmem:[#allocation1 + $0x20] ss:$2 sm:$0xff] %v138_v30  ;;  %v175_v35 = vpack.c.bf16 %v157_v34, %v156_v33  ;;  %v11279_v13 = vld [vmem:[%s24320_s1 + $0x134] sm:$0x30]  ;;  %v11201_v20 = vld [vmem:[%s24320_s1 + $0x50] sm:$0xf] }
  0x31   :  { %163 = vst [vmem:[#allocation1 + $0x21] ss:$2 sm:$0xff] %v124_v32  ;;  %v11282_v15 = vor.u32 %v15071_v12, %v11279_v13  ;;  %v584_v17 = vsel %vm273_vm0, %v11198_v1, 0  ;;  %v15049_v21 = vld [vmem:[%s24320_s1 + $0x68] sm:$0x30]  ;;  %v802_v52 = vrot.slane %v786_v48, 4 }
  0x32   :  { %v11202_v22 = vor.u32 %v15049_v21, %v11201_v20  ;;  %v15038_v16 = vld [vmem:[%s24320_s1 + $0x14] sm:$0xf]  ;;  %v11167_v27 = vld [vmem:[%s24320_s1 + $0x2c] sm:$0xf0]  ;;  %v11249_v28 = vld [vmem:[%s24320_s1 + $0xe0] sm:$0xf] }
  0x33   :  { %v944_v19 = vsel %vm273_vm0, %v11282_v15, 0  ;;  %v11170_v29 = vor.u32 %v15038_v16, %v11167_v27  ;;  %v15067_v30 = vld [vmem:[%s24320_s1 + $0xf8] sm:$0xf0]  ;;  %v15064_v31 = vld [vmem:[%s24320_s1 + $0xe4] sm:$0xf]  ;;  %v803_v15 = vrot.slane %v787_v0, 4 }
  0x34   :  { %v587_v23 = vsel %vm273_vm0, %v11202_v22, 0  ;;  %v11251_v32 = vld [vmem:[%s24320_s1 + $0xfc] sm:$0xf0]  ;;  %v11250_v33 = vor.u32 %v15067_v30, %v11249_v28  ;;  %v11173_v39 = vld [vmem:[%s24320_s1 + $0x18] sm:$0xf]  ;;  %v790_v30 = vld [vmem:[%s24319_s0 + $0x2a] sm:$0xff] }
  0x35   :  { %v11254_v34 = vor.u32 %v15064_v31, %v11251_v32  ;;  %v15042_v40 = vld [vmem:[%s24320_s1 + $0x30] sm:$0xf0]  ;;  %811 = vst [vmem:[#allocation1 + $0x10] ss:$2 sm:$0xff] %v786_v48  ;;  %v11285_v59 = vld [vmem:[%s24320_s1 + $0x120] sm:$0xf] }
  0x36   :  { %v11174_v41 = vor.u32 %v15042_v40, %v11173_v39  ;;  %813 = vst [vmem:[#allocation1 + $0x11] ss:$2 sm:$0xff] %v802_v52  ;;  %v15075_v51 = vld [vmem:[%s24320_s1 + $0x138] sm:$0x30]  ;;  %v11293_v6 = vld [vmem:[%s24320_s1 + $0x128] sm:$0xf] }
  0x37   :  { %11120 = vmatmul.msk.bf16.gmra.mxu0 %vm260_vm1, %v175_v35  ;;  %11124 = vmatmul.msk.bf16.gmra.mxu1 %vm260_vm1, %v175_v35  ;;  %v11286_v57 = vor.u32 %v15075_v51, %v11285_v59  ;;  %v15076_v7 = vld [vmem:[%s24320_s1 + $0x140] sm:$0x30]  ;;  %v11287_v4 = vld [vmem:[%s24320_s1 + $0x13c] sm:$0x30]  ;;  %v11295_v1 = vld [vmem:[%s24320_s1 + $0x144] sm:$0x30] }
  0x38   :  { %11128 = vmatmul.msk.bf16.gmra.mxu2 %vm260_vm1, %v175_v35  ;;  %11132 = vmatmul.msk.bf16.gmra.mxu3 %vm260_vm1, %v175_v35  ;;  %v166_v55 = vld.sshfl [vmem:[#allocation1 + $0x20] sm:$0xff pattern:$0x75316420]  ;;  %v11294_v3 = vor.u32 %v15076_v7, %v11293_v6  ;;  %v788_v13 = vld [vmem:[%s24319_s0 + $0x1a] sm:$0xf]  ;;  %v791_v39 = vld [vmem:[%s24319_s0 + $0x32] sm:$0xff] }
  0x39   :  { %v177_v56 = vpack.c.bf16 %v166_v55, %v166_v55  ;;  %v947_v63 = vsel %vm273_vm0, %v11286_v57, 0  ;;  %v15072_v8 = vld [vmem:[%s24320_s1 + $0x124] sm:$0xf]  ;;  %815 = vst [vmem:[#allocation1 + $0x20] ss:$2 sm:$0xff] %v787_v0  ;;  %vm2017_vm7 = vcmask 1043458  }
  0x3a   :  { %819 = vst [vmem:[#allocation1 + $0x30] ss:$2 sm:$0xff] %v788_v13  ;;  %v822_v27 = vld.sshfl [vmem:[#allocation1] sm:$0xff pattern:$0x75316420]  ;;  %vm2015_vm8 = vcmask 1043456  }
  0x3b   :  { %817 = vst [vmem:[#allocation1 + $0x21] ss:$2 sm:$0xff] %v803_v15  ;;  %v11257_v51 = vld [vmem:[%s24320_s1 + $0xe8] sm:$0xf]  ;;  %v15068_v57 = vld [vmem:[%s24320_s1 + $0x100] sm:$0xf0] }
  0x3c   :  { %827 = vst [vmem:[#allocation1 + $0x1] ss:$2 sm:$0xff] %v790_v30  ;;  %vm2020_vm9 = vcmask 1045506   ;;  %vm2417_vm10 = vcmask 1042434   ;;  %vm2419_vm11 = vcmask 1043459   ;;  %vm2421_vm12 = vcmask 1044484  }
  0x3d   :  { %vm2423_vm13 = vcmask 1045509   ;;  %vm2425_vm14 = vcmask 1046534   ;;  %vm2427_vm15 = vcmask 1047559   ;;  %s16027_s25 = smov [#allocation3]  }
  0x42   :  { %v824_v13 = vld.sshfl [vmem:[#allocation1 + $0x20] sm:$0xff pattern:$0x75316420] }
  0x47   :  { %11121 = vmatmul.msk.bf16.gmra.mxu0 %vm260_vm1, %v176_v37  ;;  %11125 = vmatmul.msk.bf16.gmra.mxu1 %vm260_vm1, %v176_v37 }
  0x48   :  { %11129 = vmatmul.msk.bf16.gmra.mxu2 %vm260_vm1, %v176_v37  ;;  %11133 = vmatmul.msk.bf16.gmra.mxu3 %vm260_vm1, %v176_v37 }
  0x57   :  { %11122 = vmatmul.msk.bf16.gmra.mxu0 %vm260_vm1, %v177_v56  ;;  %11126 = vmatmul.msk.bf16.gmra.mxu1 %vm260_vm1, %v177_v56 }
  0x58   :  { %11130 = vmatmul.msk.bf16.gmra.mxu2 %vm260_vm1, %v177_v56  ;;  %11134 = vmatmul.msk.bf16.gmra.mxu3 %vm260_vm1, %v177_v56 }
  0x67   :  { %11135 = vmatmul.msk.bf16.vlgmr.msrb.gmra.mxu0 %vm260_vm1, %v16225_v14  ;;  %11139 = vmatmul.msk.bf16.vlgmr.msrb.gmra.mxu1 %vm260_vm1, %v16225_v14 }
  0x68   :  { %11143 = vmatmul.msk.bf16.vlgmr.msrb.gmra.mxu2 %vm260_vm1, %v16225_v14  ;;  %11203 = vmatmul.msk.bf16.vlgmr.msrb.gmra.mxu3 %vm260_vm1, %v16309_v58  ;;  %v11278_v14 = vor.u32 %v15074_v11, %v11277_v61  ;;  %v15073_v61 = vld [vmem:[%s24320_s1 + $0x12c] sm:$0xf]  ;;  %v11290_v11 = vor.u32 %v15072_v8, %v11287_v4 }
  0x69   :  { %735 = vmatpush.bf16.msrb.mxu0 %v584_v17  ;;  %995 = vmatpush.bf16.msrb.mxu3 %v944_v19  ;;  %v11298_v12 = vor.u32 %v15073_v61, %v11295_v1  ;;  %v953_v17 = vsel %vm273_vm0, %v11294_v3, 0  ;;  %v11265_v3 = vld [vmem:[%s24320_s1 + $0xf0] sm:$0xf]  ;;  %v15069_v4 = vld [vmem:[%s24320_s1 + $0x108] sm:$0xf0] }
  0x6a   :  { %v941_v18 = vsel %vm273_vm0, %v11278_v14, 0  ;;  %763 = vmatpush.bf16.msrb.mxu1 %v587_v23  ;;  %v789_v14 = vld [vmem:[%s24319_s0 + $0x22] sm:$0xff]  ;;  %v15065_v61 = vld [vmem:[%s24320_s1 + $0xec] sm:$0xf]  ;;  %v11266_v1 = vor.u32 %v15069_v4, %v11265_v3 }
  0x6b   :  { %967 = vmatpush.bf16.msrb.mxu2 %v941_v18  ;;  %v950_v18 = vsel %vm273_vm0, %v11290_v11, 0  ;;  %v956_v19 = vsel %vm273_vm0, %v11298_v12, 0  ;;  %821 = vst [vmem:[#allocation1 + $0x31] ss:$2 sm:$0xff] %v789_v14  ;;  %v804_v16 = vrot.slane %v789_v14, 4 }
  0x6c   :  { %v15066_v11 = vld [vmem:[%s24320_s1 + $0xf4] sm:$0xf]  ;;  %v11267_v12 = vld [vmem:[%s24320_s1 + $0x10c] sm:$0xf0] }
  0x6d   :  { %736 = vmatpush.bf16.msrb.mxu0 %v11170_v29  ;;  %996 = vmatpush.bf16.msrb.mxu3 %v11254_v34  ;;  %826 = vst [vmem:[#allocation1] ss:$2 sm:$0xff] %v804_v16  ;;  %v823_v34 = vld.sshfl [vmem:[#allocation1 + $0x10] sm:$0xff pattern:$0x75316420]  ;;  %v11270_v15 = vor.u32 %v15066_v11, %v11267_v12 }
  0x6e   :  { %764 = vmatpush.bf16.msrb.mxu1 %v11174_v41  ;;  %829 = vst [vmem:[#allocation1 + $0x11] ss:$2 sm:$0xff] %v791_v39  ;;  %v16560_v59 = vpack.c.bf16 %v823_v34, %v822_v27  ;;  %v15077_v12 = vld [vmem:[%s24320_s1 + $0x148] sm:$0x30] }
  0x6f   :  { %968 = vmatpush.bf16.msrb.mxu2 %v11250_v33  ;;  %v805_v33 = vrot.slane %v790_v30, 4 }
  0x71   :  { %828 = vst [vmem:[#allocation1 + $0x10] ss:$2 sm:$0xff] %v805_v33 }
  0x77   :  { %11136 = vmatmul.msk.bf16.gmra.mxu0 %vm260_vm1, %v175_v35  ;;  %11140 = vmatmul.msk.bf16.gmra.mxu1 %vm260_vm1, %v175_v35 }
  0x78   :  { %11144 = vmatmul.msk.bf16.gmra.mxu2 %vm260_vm1, %v175_v35  ;;  %11204 = vmatmul.msk.bf16.gmra.mxu3 %vm260_vm1, %v16345_v9 }
  0x87   :  { %11137 = vmatmul.msk.bf16.gmra.mxu0 %vm260_vm1, %v176_v37  ;;  %11141 = vmatmul.msk.bf16.gmra.mxu1 %vm260_vm1, %v176_v37 }
  0x88   :  { %11145 = vmatmul.msk.bf16.gmra.mxu2 %vm260_vm1, %v176_v37  ;;  %11205 = vmatmul.msk.bf16.gmra.mxu3 %vm260_vm1, %v16354_v10 }
  0x97   :  { %11138 = vmatmul.msk.bf16.gmra.mxu0 %vm260_vm1, %v177_v56  ;;  %11142 = vmatmul.msk.bf16.gmra.mxu1 %vm260_vm1, %v177_v56 }
  0x98   :  { %11146 = vmatmul.msk.bf16.gmra.mxu2 %vm260_vm1, %v177_v56  ;;  %11206 = vmatmul.msk.bf16.gmra.mxu3 %vm260_vm1, %v16391_v24 }
  0xa4   :  { %v16398_v25 = vpop.f32.mrf.mxu0  ;;  %v16400_v26 = vpop.f32.mrf.mxu1 }
  0xa7   :  { %11207 = vmatmul.msk.bf16.vlgmr.msra.gmra.mxu0 %vm260_vm1, %v16309_v58  ;;  %11211 = vmatmul.msk.bf16.vlgmr.msra.gmra.mxu1 %vm260_vm1, %v16309_v58 }
  0xa8   :  { %11215 = vmatmul.msk.bf16.vlgmr.msra.gmra.mxu2 %vm260_vm1, %v16309_v58  ;;  %11219 = vmatmul.msk.bf16.vlgmr.msra.gmra.mxu3 %vm260_vm1, %v16309_v58 }
  0xa9   :  { %1023 = vmatpush.bf16.msra.mxu0 %v947_v63  ;;  %1079 = vmatpush.bf16.msra.mxu2 %v953_v17  ;;  %v11258_v63 = vor.u32 %v15068_v57, %v11257_v51  ;;  %v792_v17 = vld [vmem:[%s24319_s0 + $0x3a] sm:$0xf]  ;;  %v832_v51 = vld.sshfl [vmem:[#allocation1] sm:$0xff pattern:$0x75316420] }
  0xaa   :  { %1051 = vmatpush.bf16.msra.mxu1 %v950_v18  ;;  %1107 = vmatpush.bf16.msra.mxu3 %v956_v19  ;;  %v806_v18 = vrot.slane %v791_v39, 4  ;;  %831 = vst [vmem:[#allocation1 + $0x21] ss:$2 sm:$0xff] %v792_v17  ;;  %v825_v19 = vld.sshfl [vmem:[#allocation1 + $0x30] sm:$0xff pattern:$0x75316420] }
  0xab   :  { %v16428_v35 = vpop.f32.mrf.mxu2  ;;  %v16430_v36 = vpop.f32.mrf.mxu3  ;;  %v16615_v33 = vpack.c.bf16 %v825_v19, %v824_v13  ;;  %v833_v57 = vld.sshfl [vmem:[#allocation1 + $0x10] sm:$0xff pattern:$0x75316420] }
  0xac   :  { %v16432_v37 = vpop.f32.mrf.mxu0  ;;  %v16434_v38 = vpop.f32.mrf.mxu1  ;;  %830 = vst [vmem:[#allocation1 + $0x20] ss:$2 sm:$0xff] %v806_v18 }
  0xad   :  { %1024 = vmatpush.bf16.msra.mxu0 %v11258_v63  ;;  %1080 = vmatpush.bf16.msra.mxu2 %v11266_v1 }
  0xae   :  { %1108 = vmatpush.bf16.msra.mxu3 %v11270_v15 }
  0xb3   :  { %v16442_v42 = vpop.f32.mrf.mxu2  ;;  %v16444_v43 = vpop.f32.mrf.mxu3  ;;  %v834_v15 = vld.sshfl [vmem:[#allocation1 + $0x20] sm:$0xff pattern:$0x75316420] }
  0xb4   :  { %v16446_v44 = vpop.f32.mrf.mxu0  ;;  %v16448_v45 = vpop.f32.mrf.mxu1 }
  0xb7   :  { %11208 = vmatmul.msk.bf16.gmra.mxu0 %vm260_vm1, %v16345_v9  ;;  %11212 = vmatmul.msk.bf16.gmra.mxu1 %vm260_vm1, %v16345_v9 }
  0xb8   :  { %11216 = vmatmul.msk.bf16.gmra.mxu2 %vm260_vm1, %v16345_v9  ;;  %11220 = vmatmul.msk.bf16.gmra.mxu3 %vm260_vm1, %v16345_v9 }
  0xbb   :  { %v16458_v46 = vpop.f32.mrf.mxu2  ;;  %v16460_v47 = vpop.f32.mrf.mxu3 }
  0xbc   :  { %v16465_v49 = vpop.f32.mrf.mxu0  ;;  %v16467_v50 = vpop.f32.mrf.mxu1 }
  0xc3   :  { %v16469_v53 = vpop.f32.mrf.mxu2  ;;  %v16471_v54 = vpop.f32.mrf.mxu3 }
  0xc4   :  { %24390 = vst [vmem:[#allocation6_spill] sm:$0xff] %v16469_v53  ;;  %v16473_v55 = vpop.f32.mrf.mxu0  ;;  %v16475_v56 = vpop.f32.mrf.mxu1 }
  0xc5   :  { %24391 = vst [vmem:[#allocation7_spill] sm:$0xff] %v16471_v54 }
  0xc7   :  { %11209 = vmatmul.msk.bf16.gmra.mxu0 %vm260_vm1, %v16354_v10  ;;  %11213 = vmatmul.msk.bf16.gmra.mxu1 %vm260_vm1, %v16354_v10 }
  0xc8   :  { %11217 = vmatmul.msk.bf16.gmra.mxu2 %vm260_vm1, %v16354_v10  ;;  %11221 = vmatmul.msk.bf16.gmra.mxu3 %vm260_vm1, %v16354_v10 }
  0xcb   :  { %v16491_v60 = vpop.f32.mrf.mxu2  ;;  %v16493_v62 = vpop.f32.mrf.mxu3 }
  0xcc   :  { %24392 = vst [vmem:[#allocation8_spill] sm:$0xff] %v16493_v62  ;;  %v16499_v2 = vpop.f32.mrf.mxu0  ;;  %v16501_v5 = vpop.f32.mrf.mxu1 }
  0xd3   :  { %v16530_v20 = vpop.f32.mrf.mxu2  ;;  %v16532_v21 = vpop.f32.mrf.mxu3 }
  0xd4   :  { %24393 = vst [vmem:[#allocation9_spill] sm:$0xff] %v16530_v20  ;;  %v16534_v22 = vpop.f32.mrf.mxu0  ;;  %v16536_v23 = vpop.f32.mrf.mxu1 }
  0xd5   :  { %24394 = vst [vmem:[#allocation10_spill] sm:$0xff] %v16532_v21 }
  0xd7   :  { %11210 = vmatmul.msk.bf16.gmra.mxu0 %vm260_vm1, %v16391_v24  ;;  %11214 = vmatmul.msk.bf16.gmra.mxu1 %vm260_vm1, %v16391_v24 }
  0xd8   :  { %11218 = vmatmul.msk.bf16.gmra.mxu2 %vm260_vm1, %v16391_v24  ;;  %11222 = vmatmul.msk.bf16.gmra.mxu3 %vm260_vm1, %v16391_v24 }
  0xdb   :  { %v16546_v28 = vpop.f32.mrf.mxu2  ;;  %v16548_v29 = vpop.f32.mrf.mxu3 }
  0xdc   :  { %24395 = vst [vmem:[#allocation11_spill] sm:$0xff] %v16546_v28  ;;  %v321_v31 = vpop.f32.mrf.mxu0  ;;  %v349_v32 = vpop.f32.mrf.mxu1 }
  0xdd   :  { %24396 = vst [vmem:[#allocation12_spill] sm:$0xff] %v16548_v29 }
  0xe3   :  { %v377_v40 = vpop.f32.mrf.mxu2  ;;  %v405_v41 = vpop.f32.mrf.mxu3 }
  0xe4   :  { %v16556_v48 = vpop.f32.mrf.mxu0  ;;  %v16558_v52 = vpop.f32.mrf.mxu1 }
  0xe7   :  { %11223 = vmatmul.msk.bf16.vlgmr.msrb.gmra.mxu0 %vm260_vm1, %v16309_v58  ;;  %11227 = vmatmul.msk.bf16.vlgmr.msrb.gmra.mxu1 %vm260_vm1, %v16309_v58 }
  0xe8   :  { %11303 = vmatmul.msk.bf16.vlgmr.msrb.gmra.mxu2 %vm260_vm1, %v16560_v59  ;;  %11307 = vmatmul.msk.bf16.vlgmr.msrb.gmra.mxu3 %vm260_vm1, %v16560_v59 }
  0xeb   :  { %v16576_v0 = vpop.f32.mrf.mxu2  ;;  %v598_v6 = vpop.f32.mrf.mxu3 }
  0xec   :  { %24397 = vst [vmem:[#allocation13_spill] sm:$0xff] %v16576_v0  ;;  %v16579_v58 = vadd.f32 %v598_v6, %v16398_v25  ;;  %v16581_v7 = vpop.f32.mrf.mxu0  ;;  %v16583_v8 = vpop.f32.mrf.mxu1  ;;  %v11259_v25 = vld [vmem:[%s24320_s1 + $0x104] sm:$0xf0] }
  0xed   :  { %v11262_v14 = vor.u32 %v15065_v61, %v11259_v25  ;;  %v16643_v61 = vpack.c.bf16 %v833_v57, %v832_v51 }
  0xef   :  { %1052 = vmatpush.bf16.msra.mxu1 %v11262_v14 }
  0xf3   :  { %v16606_v16 = vpop.f32.mrf.mxu2  ;;  %v600_v27 = vpop.f32.mrf.mxu3 }
  0xf4   :  { %24398 = vst [vmem:[#allocation14_spill] sm:$0xff] %v16606_v16  ;;  %v16609_v30 = vadd.f32 %v600_v27, %v16432_v37  ;;  %v16611_v31 = vpop.f32.mrf.mxu0  ;;  %v16613_v32 = vpop.f32.mrf.mxu1 }
  0xf7   :  { %11224 = vmatmul.msk.bf16.gmra.mxu0 %vm260_vm1, %v16345_v9  ;;  %11228 = vmatmul.msk.bf16.gmra.mxu1 %vm260_vm1, %v16345_v9 }
  0xf8   :  { %11304 = vmatmul.msk.bf16.gmra.mxu2 %vm260_vm1, %v16615_v33  ;;  %11308 = vmatmul.msk.bf16.gmra.mxu3 %vm260_vm1, %v16615_v33 }
  0xfb   :  { %v16625_v37 = vpop.f32.mrf.mxu2  ;;  %v603_v34 = vpop.f32.mrf.mxu3 }
  0xfc   :  { %24399 = vst [vmem:[#allocation15_spill] sm:$0xff] %v16625_v37  ;;  %v16628_v39 = vadd.f32 %v603_v34, %v16446_v44  ;;  %v16630_v40 = vpop.f32.mrf.mxu0  ;;  %v16632_v41 = vpop.f32.mrf.mxu1  ;;  %v16678_v34 = vpack.c.bf16 %v834_v15, %v834_v15 }
  0xfd   :  { %24400 = vst [vmem:[#allocation16_spill] sm:$0xff] %v16632_v41 }
 0x103   :  { %v16634_v63 = vpop.f32.mrf.mxu2  ;;  %v605_v9 = vpop.f32.mrf.mxu3 }
 0x104   :  { %24401 = vst [vmem:[#allocation17_spill] sm:$0xff] %v16634_v63  ;;  %v16637_v6 = vadd.f32 %v605_v9, %v16465_v49  ;;  %v16639_v3 = vpop.f32.mrf.mxu0  ;;  %v16641_v4 = vpop.f32.mrf.mxu1 }
 0x105   :  { %24402 = vst [vmem:[#allocation18_spill] sm:$0xff] %v16641_v4  ;;  %v16800_v4 = vld [vmem:[%s24321_s2] sm:$0xff]  ;;  %s16023_s2 = smov 96  }
 0x106   :  { %v16822_v20 = vperm.slane %v16800_v4, 1 }
 0x107   :  { %11225 = vmatmul.msk.bf16.gmra.mxu0 %vm260_vm1, %v16354_v10  ;;  %11229 = vmatmul.msk.bf16.gmra.mxu1 %vm260_vm1, %v16354_v10  ;;  %v11301_v10 = vld [vmem:[%s24320_s1 + $0x130] sm:$0xf] }
 0x108   :  { %11305 = vmatmul.msk.bf16.gmra.mxu2 %vm260_vm1, %v16643_v61  ;;  %11309 = vmatmul.msk.bf16.gmra.mxu3 %vm260_vm1, %v16643_v61  ;;  %v11302_v13 = vor.u32 %v15077_v12, %v11301_v10 }
 0x10a   :  { %v959_v14 = vsel %vm273_vm0, %v11302_v13, 0 }
 0x10b   :  { %v16653_v44 = vpop.f32.mrf.mxu2  ;;  %v608_v49 = vpop.f32.mrf.mxu3  ;;  %1135 = vmatpush.bf16.msrb.mxu0 %v959_v14 }
 0x10c   :  { %24403 = vst [vmem:[#allocation19_spill] sm:$0xff] %v16653_v44  ;;  %v16656_v1 = vadd.f32 %v608_v49, %v16473_v55  ;;  %v16658_v25 = vpop.f32.mrf.mxu0  ;;  %v16660_v11 = vpop.f32.mrf.mxu1 }
 0x10d   :  { %24404 = vst [vmem:[#allocation20_spill] sm:$0xff] %v16658_v25 }
 0x10e   :  { %24405 = vst [vmem:[#allocation21_spill] sm:$0xff] %v16660_v11 }
 0x113   :  { %v16669_v17 = vpop.f32.mrf.mxu2  ;;  %v610_v55 = vpop.f32.mrf.mxu3 }
 0x114   :  { %24406 = vst [vmem:[#allocation22_spill] sm:$0xff] %v16669_v17  ;;  %v16672_v18 = vadd.f32 %v610_v55, %v16499_v2  ;;  %v16674_v19 = vpop.f32.mrf.mxu0  ;;  %v16676_v27 = vpop.f32.mrf.mxu1 }
 0x115   :  { %24407 = vst [vmem:[#allocation23_spill] sm:$0xff] %v16676_v27 }
 0x117   :  { %11226 = vmatmul.msk.bf16.gmra.mxu0 %vm260_vm1, %v16391_v24  ;;  %11230 = vmatmul.msk.bf16.gmra.mxu1 %vm260_vm1, %v16391_v24 }
 0x118   :  { %11306 = vmatmul.msk.bf16.gmra.mxu2 %vm260_vm1, %v16678_v34  ;;  %11310 = vmatmul.msk.bf16.gmra.mxu3 %vm260_vm1, %v16678_v34 }
 0x11b   :  { %v16688_v2 = vpop.f32.mrf.mxu2  ;;  %v613_v51 = vpop.f32.mrf.mxu3 }
 0x11c   :  { %24408 = vst [vmem:[#allocation24_spill] sm:$0xff] %v16688_v2  ;;  %v16691_v57 = vadd.f32 %v613_v51, %v16534_v22  ;;  %v433_v9 = vpop.f32.mrf.mxu0  ;;  %v461_v49 = vpop.f32.mrf.mxu1 }
 0x11d   :  { %v11273_v9 = vld [vmem:[%s24320_s1 + $0xf8] sm:$0xf]  ;;  %v15070_v49 = vld [vmem:[%s24320_s1 + $0x110] sm:$0xf0] }
 0x123   :  { %v489_v10 = vpop.f32.mrf.mxu2  ;;  %v615_v12 = vpop.f32.mrf.mxu3 }
 0x124   :  { %v16693_v13 = vpop.f32.mrf.mxu0  ;;  %v16695_v14 = vpop.f32.mrf.mxu1  ;;  %v11274_v10 = vor.u32 %v15070_v49, %v11273_v9 }
 0x126   :  { %1136 = vmatpush.bf16.msrb.mxu0 %v11274_v10 }
 0x127   :  { %11311 = vmatmul.msk.bf16.vlgmr.msra.gmra.mxu0 %vm260_vm1, %v16560_v59  ;;  %11315 = vmatmul.msk.bf16.vlgmr.msra.gmra.mxu1 %vm260_vm1, %v16560_v59 }
 0x128   :  { %11319 = vmatmul.msk.bf16.vlgmr.msra.gmra.mxu2 %vm260_vm1, %v16560_v59  ;;  %11323 = vmatmul.msk.bf16.vlgmr.msra.gmra.mxu3 %vm260_vm1, %v16560_v59 }
 0x12b   :  { %v16705_v24 = vpop.f32.mrf.mxu2  ;;  %v710_v22 = vpop.f32.mrf.mxu3 }
 0x12c   :  { %v16708_v15 = vadd.f32 %v710_v22, %v16556_v48  ;;  %v16710_v55 = vpop.f32.mrf.mxu0  ;;  %v16712_v51 = vpop.f32.mrf.mxu1 }
 0x12d   :  { %v629_v53 = vadd.f32 %v16710_v55, %v16434_v38 }
 0x133   :  { %v16720_v12 = vpop.f32.mrf.mxu2  ;;  %v16722_v44 = vpop.f32.mrf.mxu3 }
 0x134   :  { %v16724_v48 = vpop.f32.mrf.mxu0  ;;  %v16726_v22 = vpop.f32.mrf.mxu1 }
 0x137   :  { %11312 = vmatmul.msk.bf16.gmra.mxu0 %vm260_vm1, %v16615_v33  ;;  %11316 = vmatmul.msk.bf16.gmra.mxu1 %vm260_vm1, %v16615_v33 }
 0x138   :  { %11320 = vmatmul.msk.bf16.gmra.mxu2 %vm260_vm1, %v16615_v33  ;;  %11324 = vmatmul.msk.bf16.gmra.mxu3 %vm260_vm1, %v16615_v33 }
 0x13b   :  { %v16736_v9 = vpop.f32.mrf.mxu2  ;;  %v715_v49 = vpop.f32.mrf.mxu3 }
 0x13c   :  { %v16739_v10 = vadd.f32 %v715_v49, %v16611_v31  ;;  %v16741_v2 = vpop.f32.mrf.mxu0  ;;  %v16743_v63 = vpop.f32.mrf.mxu1 }
 0x13d   :  { %24409 = vst [vmem:[#allocation25_spill] sm:$0xff] %v16743_v63 }
 0x143   :  { %v16745_v37 = vpop.f32.mrf.mxu2  ;;  %v16747_v17 = vpop.f32.mrf.mxu3 }
 0x144   :  { %24410 = vst [vmem:[#allocation26_spill] sm:$0xff] %v16745_v37  ;;  %v16749_v16 = vpop.f32.mrf.mxu0  ;;  %v16751_v0 = vpop.f32.mrf.mxu1 }
 0x147   :  { %11313 = vmatmul.msk.bf16.gmra.mxu0 %vm260_vm1, %v16643_v61  ;;  %11317 = vmatmul.msk.bf16.gmra.mxu1 %vm260_vm1, %v16643_v61 }
 0x148   :  { %11321 = vmatmul.msk.bf16.gmra.mxu2 %vm260_vm1, %v16643_v61  ;;  %11325 = vmatmul.msk.bf16.gmra.mxu3 %vm260_vm1, %v16643_v61 }
 0x14b   :  { %v16761_v31 = vpop.f32.mrf.mxu2  ;;  %v720_v49 = vpop.f32.mrf.mxu3 }
 0x14c   :  { %24411 = vst [vmem:[#allocation27_spill] sm:$0xff] %v16761_v31  ;;  %v16764_v27 = vadd.f32 %v720_v49, %v16639_v3  ;;  %v16766_v62 = vpop.f32.mrf.mxu0  ;;  %v16768_v11 = vpop.f32.mrf.mxu1 }
 0x14d   :  { %24413 = vst [vmem:[#allocation29_spill] sm:$0xff] %v16768_v11 }
 0x14e   :  { %24412 = vst [vmem:[#allocation28_spill] sm:$0xff] %v16764_v27 }
 0x153   :  { %v16770_v29 = vpop.f32.mrf.mxu2  ;;  %v16772_v28 = vpop.f32.mrf.mxu3 }
 0x154   :  { %24414 = vst [vmem:[#allocation30_spill] sm:$0xff] %v16770_v29  ;;  %v16774_v25 = vpop.f32.mrf.mxu0  ;;  %v16776_v21 = vpop.f32.mrf.mxu1 }
 0x155   :  { %24415 = vst [vmem:[#allocation31_spill] sm:$0xff] %v16772_v28 }
 0x156   :  { %24416 = vst [vmem:[#allocation32_spill] sm:$0xff] %v16776_v21 }
 0x157   :  { %11314 = vmatmul.msk.bf16.gmra.mxu0 %vm260_vm1, %v16678_v34  ;;  %11318 = vmatmul.msk.bf16.gmra.mxu1 %vm260_vm1, %v16678_v34 }
 0x158   :  { %11322 = vmatmul.msk.bf16.gmra.mxu2 %vm260_vm1, %v16678_v34  ;;  %11326 = vmatmul.msk.bf16.gmra.mxu3 %vm260_vm1, %v16678_v34 }
 0x15b   :  { %v16786_v3 = vpop.f32.mrf.mxu2  ;;  %v725_v49 = vpop.f32.mrf.mxu3 }
 0x15c   :  { %24417 = vst [vmem:[#allocation33_spill] sm:$0xff] %v16786_v3  ;;  %v16789_v27 = vadd.f32 %v725_v49, %v16674_v19  ;;  %v643_v31 = vpop.f32.mrf.mxu0  ;;  %v671_v21 = vpop.f32.mrf.mxu1  ;;  %v16805_v19 = vld [vmem:[%s24322_s3] sm:$0xff]  ;;  %s16024_s3 = smov 64  }
 0x15d   :  { %v16808_v21 = vperm.slane %v16800_v4, 0  ;;  %v627_v31 = vadd.f32 %v16693_v13, %v16400_v26  ;;  %v16830_v13 = vperm.slane %v16805_v19, 1 }
 0x15e   :  { %24418 = vst [vmem:[#allocation34_spill] sm:$0xff] %v16789_v27  ;;  %v16818_v27 = vperm.slane %v16805_v19, 0 }
 0x163   :  { %v699_v28 = vpop.f32.mrf.mxu2  ;;  %v727_v29 = vpop.f32.mrf.mxu3 }
 0x164   :  { %v16791_v37 = vpop.f32.mrf.mxu0  ;;  %v16793_v54 = vpop.f32.mrf.mxu1 }
 0x165   :  { %24419 = vst [vmem:[#allocation35_spill] sm:$0xff] %v16793_v54 }
 0x167   :  { %11327 = vmatmul.msk.bf16.vlgmr.msrb.gmra.mxu0 %vm260_vm1, %v16560_v59 }
 0x16b   :  { %v970_v28 = vpop.f32.mrf.mxu2  ;;  %v998_v29 = vpop.f32.mrf.mxu3 }
 0x16c   :  { %v1157_v59 = vadd.f32 %v970_v28, %v16579_v58  ;;  %v16813_v49 = vpop.f32.mrf.mxu0  ;;  %v16815_v54 = vpop.f32.mrf.mxu1  ;;  %v1158_v11 = vadd.f32 %v998_v29, %v627_v31 }
 0x16d   :  { %24420 = vst [vmem:[#allocation36_spill] sm:$0xff] %v16815_v54 }
 0x16e   :  { %v1222_v3 = vmul.f32 %v16808_v21, %v1157_v59  ;;  %v1223_v26 = vmul.f32 %v16822_v20, %v1158_v11 }
 0x170   :  { %v16825_v63 = vadd.f32 %v16818_v27, %v1222_v3  ;;  %v16844_v41 = vadd.f32 %v16830_v13, %v1223_v26 }
 0x172   :  { %v24331_v58 = vmax.f32 %v16825_v63, 0.0 }
 0x173   :  { %v972_v28 = vpop.f32.mrf.mxu2  ;;  %v1000_v54 = vpop.f32.mrf.mxu3 }
 0x174   :  { %v1164_v29 = vadd.f32 %v972_v28, %v16609_v30  ;;  %1392 = vrot.lane.b32.xlu1 %v24331_v58, %s16023_s2  ;;  %v16838_v3 = vpop.f32.mrf.mxu0  ;;  %v16840_v11 = vpop.f32.mrf.mxu1  ;;  %v1165_v59 = vadd.f32 %v1000_v54, %v629_v53  ;;  %v632_v30 = vadd.f32 %v16724_v48, %v16448_v45  ;;  %v24333_v58 = vmax.f32 %v16844_v41, 0.0 }
 0x176   :  { %v1229_v31 = vmul.f32 %v16808_v21, %v1164_v29  ;;  %v1230_v55 = vmul.f32 %v16822_v20, %v1165_v59 }
 0x177   :  { %11328 = vmatmul.msk.bf16.gmra.mxu0 %vm260_vm1, %v16615_v33 }
 0x178   :  { %v16849_v38 = vadd.f32 %v16818_v27, %v1229_v31  ;;  %v16870_v59 = vadd.f32 %v16830_v13, %v1230_v55 }
 0x17a   :  { %24421 = vst [vmem:[#allocation37_spill] sm:$0xff] %v16849_v38  ;;  %v24332_v28 = vmax.f32 %v16849_v38, 0.0 }
 0x17b   :  { %v975_v29 = vpop.f32.mrf.mxu2  ;;  %v1003_v53 = vpop.f32.mrf.mxu3 }
 0x17c   :  { %v1171_v54 = vadd.f32 %v975_v29, %v16628_v39  ;;  %v1172_v26 = vadd.f32 %v1003_v53, %v632_v30  ;;  %1394 = vrot.lane.b32.xlu2 %v24332_v28, %s16023_s2  ;;  %1427 = vrot.lane.b32.xlu1 %v24333_v58, %s16023_s2  ;;  %v16863_v45 = vpop.f32.mrf.mxu0  ;;  %v16865_v33 = vpop.f32.mrf.mxu1  ;;  %v634_v29 = vadd.f32 %v16741_v2, %v16467_v50  ;;  %v24337_v28 = vmax.f32 %v16870_v59, 0.0 }
 0x17e   :  { %v1236_v48 = vmul.f32 %v16808_v21, %v1171_v54  ;;  %v1237_v31 = vmul.f32 %v16822_v20, %v1172_v26 }
 0x180   :  { %v16873_v39 = vadd.f32 %v16818_v27, %v1236_v48  ;;  %v16876_v30 = vadd.f32 %v16830_v13, %v1237_v31 }
 0x182   :  { %v24336_v53 = vmax.f32 %v16873_v39, 0.0  ;;  %v24335_v54 = vmax.f32 %v16876_v30, 0.0 }
 0x183   :  { %v977_v58 = vpop.f32.mrf.mxu2  ;;  %v1005_v26 = vpop.f32.mrf.mxu3 }
 0x184   :  { %v1178_v55 = vadd.f32 %v977_v58, %v16637_v6  ;;  %v1179_v38 = vadd.f32 %v1005_v26, %v634_v29  ;;  %1396 = vrot.lane.b32.xlu0 %v24336_v53, %s16023_s2  ;;  %1429 = vrot.lane.b32.xlu2 %v24337_v28, %s16023_s2  ;;  %v16890_v50 = vpop.f32.mrf.mxu0  ;;  %v16892_v2 = vpop.f32.mrf.mxu1  ;;  %v637_v29 = vadd.f32 %v16749_v16, %v16475_v56 }
 0x185   :  { %24422 = vst [vmem:[#allocation38_spill] sm:$0xff] %v16892_v2  ;;  %1431 = vrot.lane.b32.xlu1 %v24335_v54, %s16023_s2 }
 0x186   :  { %v1243_v48 = vmul.f32 %v16808_v21, %v1178_v55  ;;  %v1244_v6 = vmul.f32 %v16822_v20, %v1179_v38 }
 0x187   :  { %11329 = vmatmul.msk.bf16.gmra.mxu0 %vm260_vm1, %v16643_v61 }
 0x188   :  { %v16902_v58 = vadd.f32 %v16818_v27, %v1243_v48  ;;  %v16905_v31 = vadd.f32 %v16830_v13, %v1244_v6 }
 0x18a   :  { %v24339_v26 = vmax.f32 %v16902_v58, 0.0  ;;  %v24338_v54 = vmax.f32 %v16905_v31, 0.0 }
 0x18b   :  { %v980_v53 = vpop.f32.mrf.mxu2  ;;  %v1008_v55 = vpop.f32.mrf.mxu3 }
 0x18c   :  { %v1185_v38 = vadd.f32 %v980_v53, %v16656_v1  ;;  %v1186_v28 = vadd.f32 %v1008_v55, %v637_v29  ;;  %1398 = vrot.lane.b32.xlu0 %v24339_v26, %s16023_s2  ;;  %1433 = vrot.lane.b32.xlu2 %v24338_v54, %s16023_s2  ;;  %v16918_v61 = vpop.f32.mrf.mxu0  ;;  %v16920_v56 = vpop.f32.mrf.mxu1  ;;  %v639_v53 = vadd.f32 %v16766_v62, %v16501_v5 }
 0x18e   :  { %v1250_v16 = vmul.f32 %v16808_v21, %v1185_v38  ;;  %v1251_v48 = vmul.f32 %v16822_v20, %v1186_v28 }
 0x190   :  { %v16925_v6 = vadd.f32 %v16830_v13, %v1251_v48  ;;  %v16928_v1 = vadd.f32 %v16818_v27, %v1250_v16 }
 0x192   :  { %v24340_v29 = vmax.f32 %v16925_v6, 0.0  ;;  %v24341_v55 = vmax.f32 %v16928_v1, 0.0 }
 0x193   :  { %v982_v54 = vpop.f32.mrf.mxu2  ;;  %v1010_v26 = vpop.f32.mrf.mxu3 }
 0x194   :  { %v1192_v2 = vadd.f32 %v982_v54, %v16672_v18  ;;  %v1193_v38 = vadd.f32 %v1010_v26, %v639_v53  ;;  %1435 = vrot.lane.b32.xlu1 %v24340_v29, %s16023_s2  ;;  %1400 = vrot.lane.b32.xlu2 %v24341_v55, %s16023_s2  ;;  %v16941_v28 = vpop.f32.mrf.mxu0  ;;  %v16943_v62 = vpop.f32.mrf.mxu1  ;;  %v642_v26 = vadd.f32 %v16774_v25, %v16536_v23 }
 0x196   :  { %v1257_v5 = vmul.f32 %v16808_v21, %v1192_v2  ;;  %v1258_v16 = vmul.f32 %v16822_v20, %v1193_v38 }
 0x197   :  { %11330 = vmatmul.msk.bf16.gmra.mxu0 %vm260_vm1, %v16678_v34  ;;  %vm2447_vm1 = vcmask 1041409  }
 0x198   :  { %v16950_v18 = vadd.f32 %v16818_v27, %v1257_v5  ;;  %v16953_v54 = vadd.f32 %v16830_v13, %v1258_v16 }
 0x19a   :  { %v24345_v48 = vmax.f32 %v16950_v18, 0.0  ;;  %v24344_v53 = vmax.f32 %v16953_v54, 0.0 }
 0x19b   :  { %v985_v29 = vpop.f32.mrf.mxu2  ;;  %v1013_v2 = vpop.f32.mrf.mxu3 }
 0x19c   :  { %v1199_v38 = vadd.f32 %v985_v29, %v16691_v57  ;;  %v1200_v55 = vadd.f32 %v1013_v2, %v642_v26  ;;  %1402 = vrot.lane.b32.xlu0 %v24345_v48, %s16023_s2  ;;  %1437 = vrot.lane.b32.xlu2 %v24344_v53, %s16023_s2  ;;  %v755_v34 = vpop.f32.mrf.mxu0  ;;  %v783_v5 = vpop.f32.mrf.mxu1  ;;  %v655_v2 = vadd.f32 %v16695_v14, %v16428_v35  ;;  %v17023_v53 = vperm.slane %v16805_v19, 5 }
 0x19d   :  { %v683_v34 = vadd.f32 %v16705_v24, %v16430_v36  ;;  %v16993_v24 = vperm.slane %v16805_v19, 2 }
 0x19e   :  { %v1264_v23 = vmul.f32 %v16808_v21, %v1199_v38  ;;  %v1265_v25 = vmul.f32 %v16822_v20, %v1200_v55  ;;  %v16981_v20 = vperm.slane %v16800_v4, 2  ;;  %v16996_v55 = vperm.slane %v16805_v19, 3 }
 0x1a0   :  { %v16969_v16 = vadd.f32 %v16818_v27, %v1264_v23  ;;  %v16972_v57 = vadd.f32 %v16830_v13, %v1265_v25  ;;  %v16984_v27 = vperm.slane %v16800_v4, 3 }
 0x1a2   :  { %24423 = vst [vmem:[#allocation39_spill] sm:$0xff] %v16972_v57  ;;  %v24343_v29 = vmax.f32 %v16969_v16, 0.0  ;;  %v24342_v26 = vmax.f32 %v16972_v57, 0.0  ;;  %v24439_v57 = vld [vmem:[#allocation30_spill] sm:$0xff] }
 0x1a3   :  { %v987_v5 = vpop.f32.mrf.mxu2  ;;  %v1015_v21 = vpop.f32.mrf.mxu3 }
 0x1a4   :  { %1404 = vrot.lane.b32.xlu1 %v24343_v29, %s16023_s2  ;;  %1439 = vrot.lane.b32.xlu0 %v24342_v26, %s16023_s2  ;;  %v1026_v35 = vpop.f32.mrf.mxu0  ;;  %v1054_v14 = vpop.f32.mrf.mxu1  ;;  %v17012_v21 = vperm.slane %v16800_v4, 5 }
 0x1a5   :  { %v1159_v13 = vadd.f32 %v1026_v35, %v655_v2  ;;  %v1160_v36 = vadd.f32 %v1054_v14, %v683_v34  ;;  %v739_v2 = vadd.f32 %v16791_v37, %v16558_v52  ;;  %v17009_v34 = vperm.slane %v16800_v4, 4 }
 0x1a6   :  { %v657_v35 = vadd.f32 %v16712_v51, %v16442_v42  ;;  %v17020_v37 = vperm.slane %v16805_v19, 4  ;;  %v685_v42 = vadd.f32 %v16720_v12, %v16444_v43 }
 0x1a7   :  { %v1224_v38 = vmul.f32 %v16981_v20, %v1159_v13  ;;  %v1225_v23 = vmul.f32 %v16984_v27, %v1160_v36 }
 0x1a9   :  { %v17001_v25 = vadd.f32 %v16993_v24, %v1224_v38  ;;  %v17004_v5 = vadd.f32 %v16996_v55, %v1225_v23 }
 0x1ab   :  { %v1082_v14 = vpop.f32.mrf.mxu2  ;;  %v1110_v13 = vpop.f32.mrf.mxu3  ;;  %v24354_v36 = vmax.f32 %v17001_v25, 0.0  ;;  %v24357_v38 = vmax.f32 %v17004_v5, 0.0 }
 0x1ac   :  { %v1161_v23 = vadd.f32 %v1082_v14, %v16708_v15  ;;  %v1162_v26 = vadd.f32 %v1110_v13, %v739_v2  ;;  %v1028_v29 = vpop.f32.mrf.mxu0  ;;  %v1056_v52 = vpop.f32.mrf.mxu1 }
 0x1ad   :  { %v1166_v51 = vadd.f32 %v1028_v29, %v657_v35  ;;  %1462 = vrot.lane.b32.xlu0 %v24354_v36, %s16023_s2  ;;  %1497 = vrot.lane.b32.xlu2 %v24357_v38, %s16023_s2  ;;  %v1167_v13 = vadd.f32 %v1056_v52, %v685_v42  ;;  %v713_v29 = vadd.f32 %v16722_v44, %v16581_v7  ;;  %v24438_v38 = vld [vmem:[#allocation10_spill] sm:$0xff] }
 0x1ae   :  { %v1226_v15 = vmul.f32 %v17009_v34, %v1161_v23  ;;  %v1227_v2 = vmul.f32 %v17012_v21, %v1162_v26  ;;  %v660_v26 = vadd.f32 %v16726_v22, %v16458_v46  ;;  %v741_v46 = vadd.f32 %v16813_v49, %v16583_v8 }
 0x1af   :  { %v1231_v14 = vmul.f32 %v16981_v20, %v1166_v51  ;;  %v1232_v23 = vmul.f32 %v16984_v27, %v1167_v13 }
 0x1b0   :  { %v17037_v48 = vadd.f32 %v17020_v37, %v1226_v15  ;;  %v17040_v43 = vadd.f32 %v17023_v53, %v1227_v2  ;;  %v688_v2 = vadd.f32 %v16736_v9, %v16460_v47 }
 0x1b1   :  { %v17043_v12 = vadd.f32 %v16993_v24, %v1231_v14 }
 0x1b2   :  { %v24349_v35 = vmax.f32 %v17037_v48, 0.0  ;;  %v24351_v15 = vmax.f32 %v17040_v43, 0.0 }
 0x1b3   :  { %v1084_v52 = vpop.f32.mrf.mxu2  ;;  %v1112_v42 = vpop.f32.mrf.mxu3  ;;  %v24346_v51 = vmax.f32 %v17043_v12, 0.0 }
 0x1b4   :  { %v1168_v14 = vadd.f32 %v1084_v52, %v713_v29  ;;  %1532 = vrot.lane.b32.xlu1 %v24349_v35, %s16023_s2  ;;  %v1031_v7 = vpop.f32.mrf.mxu0  ;;  %v1059_v44 = vpop.f32.mrf.mxu1  ;;  %v1169_v13 = vadd.f32 %v1112_v42, %v741_v46  ;;  %v17069_v52 = vadd.f32 %v16996_v55, %v1232_v23 }
 0x1b5   :  { %v1173_v22 = vadd.f32 %v1031_v7, %v660_v26  ;;  %1464 = vrot.lane.b32.xlu0 %v24346_v51, %s16023_s2  ;;  %1567 = vrot.lane.b32.xlu2 %v24351_v15, %s16023_s2  ;;  %v1174_v9 = vadd.f32 %v1059_v44, %v688_v2 }
 0x1b6   :  { %v1233_v47 = vmul.f32 %v17009_v34, %v1168_v14  ;;  %v1234_v51 = vmul.f32 %v17012_v21, %v1169_v13  ;;  %v24348_v42 = vmax.f32 %v17069_v52, 0.0 }
 0x1b7   :  { %v1238_v29 = vmul.f32 %v16981_v20, %v1173_v22  ;;  %v1239_v26 = vmul.f32 %v16984_v27, %v1174_v9  ;;  %v744_v22 = vadd.f32 %v16838_v3, %v16613_v32  ;;  %v718_v32 = vadd.f32 %v16747_v17, %v16630_v40 }
 0x1b8   :  { %v17072_v8 = vadd.f32 %v17020_v37, %v1233_v47 }
 0x1b9   :  { %v17075_v49 = vadd.f32 %v16993_v24, %v1238_v29  ;;  %v17095_v9 = vadd.f32 %v16996_v55, %v1239_v26  ;;  %v17098_v29 = vadd.f32 %v17023_v53, %v1234_v51  ;;  %v665_v26 = vadd.f32 %v16751_v0, %v16491_v60 }
 0x1ba   :  { %v24347_v7 = vmax.f32 %v17072_v8, 0.0 }
 0x1bb   :  { %24424 = vst [vmem:[#allocation40_spill] sm:$0xff] %v17075_v49  ;;  %v1087_v14 = vpop.f32.mrf.mxu2  ;;  %v1115_v2 = vpop.f32.mrf.mxu3  ;;  %v24350_v44 = vmax.f32 %v17075_v49, 0.0 }
 0x1bc   :  { %1534 = vrot.lane.b32.xlu1 %v24347_v7, %s16023_s2  ;;  %v1033_v23 = vpop.f32.mrf.mxu0  ;;  %v1061_v46 = vpop.f32.mrf.mxu1  ;;  %v1175_v47 = vadd.f32 %v1087_v14, %v16739_v10  ;;  %v1176_v13 = vadd.f32 %v1115_v2, %v744_v22  ;;  %24425 = vst [vmem:[#allocation41_spill] sm:$0xff] %v17098_v29  ;;  %v24353_v7 = vmax.f32 %v17095_v9, 0.0  ;;  %v24352_v10 = vmax.f32 %v17098_v29, 0.0  ;;  %v24426_v14 = vld [vmem:[#allocation16_spill] sm:$0xff]  ;;  %v24427_v22 = vld [vmem:[#allocation6_spill] sm:$0xff] }
 0x1bd   :  { %1499 = vrot.lane.b32.xlu0 %v24348_v42, %s16023_s2  ;;  %1466 = vrot.lane.b32.xlu2 %v24350_v44, %s16023_s2  ;;  %v746_v51 = vadd.f32 %v16863_v45, %v24426_v14 }
 0x1be   :  { %v1240_v3 = vmul.f32 %v17009_v34, %v1175_v47  ;;  %v1241_v42 = vmul.f32 %v17012_v21, %v1176_v13  ;;  %v24428_v47 = vld [vmem:[#allocation25_spill] sm:$0xff] }
 0x1bf   :  { %v662_v13 = vadd.f32 %v24428_v47, %v24427_v22 }
 0x1c0   :  { %v17120_v45 = vadd.f32 %v17020_v37, %v1240_v3 }
 0x1c2   :  { %24429 = vst [vmem:[#allocation16_spill] sm:$0xff] %v17120_v45 }
 0x1c3   :  { %v1089_v35 = vpop.f32.mrf.mxu2  ;;  %v1117_v44 = vpop.f32.mrf.mxu3 }
 0x1c4   :  { %v1182_v2 = vadd.f32 %v1089_v35, %v718_v32  ;;  %1501 = vrot.lane.b32.xlu1 %v24353_v7, %s16023_s2  ;;  %v1036_v40 = vpop.f32.mrf.mxu0  ;;  %v1064_v17 = vpop.f32.mrf.mxu1  ;;  %v1183_v60 = vadd.f32 %v1117_v44, %v746_v51  ;;  %v1180_v35 = vadd.f32 %v1033_v23, %v662_v13  ;;  %v17123_v32 = vadd.f32 %v17023_v53, %v1241_v42  ;;  %v24432_v42 = vld [vmem:[#allocation9_spill] sm:$0xff]  ;;  %v24436_v7 = vld [vmem:[#allocation26_spill] sm:$0xff] }
 0x1c5   :  { %1569 = vrot.lane.b32.xlu0 %v24352_v10, %s16023_s2  ;;  %v1187_v0 = vadd.f32 %v1036_v40, %v665_v26  ;;  %v24355_v10 = vmax.f32 %v17120_v45, 0.0  ;;  %v24433_v51 = vld [vmem:[#allocation29_spill] sm:$0xff] }
 0x1c6   :  { %v1247_v15 = vmul.f32 %v17009_v34, %v1182_v2  ;;  %24430 = vst [vmem:[#allocation6_spill] sm:$0xff] %v17123_v32  ;;  %v1248_v22 = vmul.f32 %v17012_v21, %v1183_v60  ;;  %v1245_v44 = vmul.f32 %v16981_v20, %v1180_v35  ;;  %v24361_v23 = vmax.f32 %v17123_v32, 0.0  ;;  %v24435_v35 = vld [vmem:[#allocation7_spill] sm:$0xff] }
 0x1c7   :  { %v1252_v47 = vmul.f32 %v16981_v20, %v1187_v0  ;;  %v667_v40 = vadd.f32 %v24433_v51, %v24432_v42  ;;  %v690_v36 = vadd.f32 %v24436_v7, %v24435_v35  ;;  %v24440_v7 = vld [vmem:[#allocation20_spill] sm:$0xff]  ;;  %v24441_v35 = vld [vmem:[#allocation31_spill] sm:$0xff] }
 0x1c8   :  { %v17126_v14 = vadd.f32 %v17020_v37, %v1247_v15  ;;  %v24434_v15 = vld [vmem:[#allocation18_spill] sm:$0xff]  ;;  %v723_v45 = vadd.f32 %v24441_v35, %v24440_v7  ;;  %v24446_v35 = vld [vmem:[#allocation21_spill] sm:$0xff] }
 0x1c9   :  { %v749_v13 = vadd.f32 %v16890_v50, %v24434_v15  ;;  %v17152_v50 = vadd.f32 %v17023_v53, %v1248_v22  ;;  %v17155_v15 = vadd.f32 %v16993_v24, %v1252_v47  ;;  %v24442_v47 = vld [vmem:[#allocation11_spill] sm:$0xff] }
 0x1ca   :  { %24431 = vst [vmem:[#allocation25_spill] sm:$0xff] %v17126_v14  ;;  %v24356_v2 = vmax.f32 %v17126_v14, 0.0  ;;  %v695_v14 = vadd.f32 %v24439_v57, %v24438_v38 }
 0x1cb   :  { %v17133_v26 = vpop.f32.mrf.mxu2  ;;  %v1120_v3 = vpop.f32.mrf.mxu3  ;;  %24437 = vst [vmem:[#allocation9_spill] sm:$0xff] %v17155_v15  ;;  %v24366_v22 = vmax.f32 %v17152_v50, 0.0 }
 0x1cc   :  { %1536 = vrot.lane.b32.xlu1 %v24355_v10, %s16023_s2  ;;  %1538 = vrot.lane.b32.xlu2 %v24356_v2, %s16023_s2  ;;  %v1038_v60 = vpop.f32.mrf.mxu0  ;;  %v1066_v0 = vpop.f32.mrf.mxu1  ;;  %v1190_v42 = vadd.f32 %v1120_v3, %v749_v13  ;;  %v1181_v10 = vadd.f32 %v1061_v46, %v690_v36  ;;  %v17158_v2 = vadd.f32 %v16993_v24, %v1245_v44  ;;  %v24443_v13 = vld [vmem:[#allocation32_spill] sm:$0xff]  ;;  %v24445_v44 = vld [vmem:[#allocation33_spill] sm:$0xff] }
 0x1cd   :  { %1571 = vrot.lane.b32.xlu0 %v24361_v23, %s16023_s2  ;;  %v1194_v51 = vadd.f32 %v1038_v60, %v667_v40  ;;  %v24365_v40 = vmax.f32 %v17155_v15, 0.0  ;;  %v670_v36 = vadd.f32 %v24443_v13, %v24442_v47  ;;  %v24444_v46 = vld [vmem:[#allocation12_spill] sm:$0xff]  ;;  %v1195_v32 = vadd.f32 %v1066_v0, %v695_v14 }
 0x1ce   :  { %v1255_v23 = vmul.f32 %v17012_v21, %v1190_v42  ;;  %v698_v60 = vadd.f32 %v24445_v44, %v24444_v46  ;;  %v1246_v49 = vmul.f32 %v16984_v27, %v1181_v10  ;;  %v751_v42 = vadd.f32 %v16918_v61, %v24446_v35  ;;  %v24447_v46 = vld [vmem:[#allocation8_spill] sm:$0xff]  ;;  %v24448_v10 = vld [vmem:[#allocation27_spill] sm:$0xff] }
 0x1cf   :  { %v1259_v3 = vmul.f32 %v16981_v20, %v1194_v51  ;;  %v693_v44 = vadd.f32 %v24448_v10, %v24447_v46  ;;  %v24449_v61 = vmax.f32 %v17158_v2, 0.0 }
 0x1d0   :  { %v17189_v35 = vadd.f32 %v17023_v53, %v1255_v23  ;;  %v17197_v0 = vadd.f32 %v16996_v55, %v1246_v49 }
 0x1d2   :  { %v24375_v49 = vmax.f32 %v17189_v35, 0.0 }
 0x1d3   :  { %v1094_v57 = vpop.f32.mrf.mxu2  ;;  %v1122_v38 = vpop.f32.mrf.mxu3 }
 0x1d4   :  { %v1196_v51 = vadd.f32 %v1094_v57, %v723_v45  ;;  %1573 = vrot.lane.b32.xlu1 %v24366_v22, %s16023_s2  ;;  %1470 = vrot.lane.b32.xlu2 %v24365_v40, %s16023_s2  ;;  %v1041_v47 = vpop.f32.mrf.mxu0  ;;  %v1069_v13 = vpop.f32.mrf.mxu1  ;;  %v1197_v57 = vadd.f32 %v1122_v38, %v751_v42  ;;  %v17192_v40 = vadd.f32 %v16993_v24, %v1259_v3 }
 0x1d5   :  { %v1201_v29 = vadd.f32 %v1041_v47, %v670_v36  ;;  %v1202_v7 = vadd.f32 %v1069_v13, %v698_v60  ;;  %1468 = vrot.lane.b32.xlu0 %v24449_v61, %s16023_s2  ;;  %v1188_v22 = vadd.f32 %v1064_v17, %v693_v44  ;;  %v24450_v60 = vld [vmem:[#allocation23_spill] sm:$0xff]  ;;  %v1260_v17 = vmul.f32 %v16984_v27, %v1195_v32  ;;  %v24452_v44 = vld [vmem:[#allocation28_spill] sm:$0xff] }
 0x1d6   :  { %v1261_v45 = vmul.f32 %v17009_v34, %v1196_v51  ;;  %v754_v38 = vadd.f32 %v16941_v28, %v24450_v60  ;;  %v24381_v47 = vmax.f32 %v17197_v0, 0.0  ;;  %v1189_v61 = vadd.f32 %v17133_v26, %v24452_v44  ;;  %v24454_v26 = vld [vmem:[#allocation35_spill] sm:$0xff] }
 0x1d7   :  { %v1266_v15 = vmul.f32 %v16981_v20, %v1201_v29  ;;  %v1267_v14 = vmul.f32 %v16984_v27, %v1202_v7  ;;  %v1262_v20 = vmul.f32 %v17012_v21, %v1197_v57  ;;  %v17212_v29 = vpop.permute.xlu2 %1394  ;;  %v24378_v7 = vmax.f32 %v17192_v40, 0.0 }
 0x1d8   :  { %v17200_v36 = vadd.f32 %v17020_v37, %v1261_v45  ;;  %v1253_v42 = vmul.f32 %v16984_v27, %v1188_v22  ;;  %v24451_v27 = vld [vmem:[#allocation34_spill] sm:$0xff]  ;;  %v17230_v46 = vadd.f32 %v16996_v55, %v1260_v17  ;;  %v17272_v44 = vperm.slane %v16805_v19, 6 }
 0x1d9   :  { %v17205_v23 = vadd.f32 %v16996_v55, %v1267_v14  ;;  %v17208_v3 = vadd.f32 %v16993_v24, %v1266_v15  ;;  %v17233_v10 = vadd.f32 %v17023_v53, %v1262_v20 }
 0x1da   :  { %v17238_v45 = vadd.f32 %v16996_v55, %v1253_v42  ;;  %v24368_v60 = vmax.f32 %v17230_v46, 0.0  ;;  %v17260_v42 = vperm.slane %v16800_v4, 6  ;;  %v24456_v4 = vld [vmem:[#allocation36_spill] sm:$0xff] }
 0x1db   :  { %v1097_v51 = vpop.f32.mrf.mxu2  ;;  %v1125_v28 = vpop.f32.mrf.mxu3 }
 0x1dc   :  { %v1204_v13 = vadd.f32 %v1125_v28, %v754_v38  ;;  %1575 = vrot.lane.b32.xlu1 %v24375_v49, %s16023_s2  ;;  %1472 = vrot.lane.b32.xlu2 %v24378_v7, %s16023_s2  ;;  %v1043_v24 = vpop.f32.mrf.mxu0  ;;  %v1071_v32 = vpop.f32.mrf.mxu1  ;;  %v1203_v15 = vadd.f32 %v1097_v51, %v24451_v27  ;;  %v1254_v38 = vmul.f32 %v17009_v34, %v1189_v61  ;;  %v24380_v20 = vmax.f32 %v17238_v45, 0.0  ;;  %v24453_v28 = vld [vmem:[#allocation13_spill] sm:$0xff]  ;;  %v24464_v7 = vld [vmem:[#allocation15_spill] sm:$0xff] }
 0x1dd   :  { %1503 = vrot.lane.b32.xlu0 %v24381_v47, %s16023_s2 }
 0x1de   :  { %v1269_v22 = vmul.f32 %v17012_v21, %v1204_v13  ;;  %v1268_v14 = vmul.f32 %v17009_v34, %v1203_v15  ;;  %v24377_v21 = vmax.f32 %v17233_v10, 0.0  ;;  %v767_v13 = vadd.f32 %v24454_v26, %v24453_v28 }
 0x1df   :  { %v1430_v55 = vpop.permute.xlu2 %1429  ;;  %v17266_v32 = vadd.f32 %v17020_v37, %v1254_v38  ;;  %v24457_v26 = vmax.f32 %v16825_v63, 0.0 }
 0x1e0   :  { %v17241_v57 = vadd.f32 %v17023_v53, %v1269_v22  ;;  %v17263_v24 = vadd.f32 %v17020_v37, %v1268_v14  ;;  %v24372_v22 = vmax.f32 %v17205_v23, 0.0 }
 0x1e1   :  { %v24376_v61 = vmax.f32 %v17266_v32, 0.0 }
 0x1e2   :  { %v24371_v15 = vmax.f32 %v17263_v24, 0.0 }
 0x1e3   :  { %v1099_v17 = vpop.f32.mrf.mxu2  ;;  %v1127_v51 = vpop.f32.mrf.mxu3 }
 0x1e4   :  { %1507 = vrot.lane.b32.xlu1 %v24368_v60, %s16023_s2  ;;  %1577 = vrot.lane.b32.xlu2 %v24377_v21, %s16023_s2  ;;  %v1138_v53 = vpop.f32.mrf.mxu0  ;;  %v24455_v17 = vld [vmem:[#allocation14_spill] sm:$0xff] }
 0x1e5   :  { %1505 = vrot.lane.b32.xlu0 %v24380_v20, %s16023_s2  ;;  %v1163_v34 = vadd.f32 %v1138_v53, %v767_v13  ;;  %v769_v51 = vadd.f32 %v24456_v4, %v24455_v17  ;;  %v24373_v17 = vmax.f32 %v17200_v36, 0.0  ;;  %v24465_v20 = vld [vmem:[#allocation17_spill] sm:$0xff] }
 0x1e6   :  { %v1393_v28 = vpop.permute.xlu1 %1392  ;;  %v774_v47 = vadd.f32 %v16865_v33, %v24465_v20 }
 0x1e7   :  { %v1228_v27 = vmul.f32 %v17260_v42, %v1163_v34  ;;  %v1434_v19 = vpop.permute.xlu2 %1433  ;;  %v17291_v13 = vmax.f32 %v24457_v26, %v1393_v28  ;;  %v24374_v28 = vmax.f32 %v17208_v3, 0.0 }
 0x1e9   :  { %v17287_v38 = vadd.f32 %v17272_v44, %v1228_v27 }
 0x1eb   :  { %v24369_v34 = vmax.f32 %v17287_v38, 0.0 }
 0x1ec   :  { %1544 = vrot.lane.b32.xlu1 %v24371_v15, %s16023_s2  ;;  %1509 = vrot.lane.b32.xlu2 %v24372_v22, %s16023_s2  ;;  %v1140_v37 = vpop.f32.mrf.mxu0 }
 0x1ed   :  { %1540 = vrot.lane.b32.xlu0 %v24376_v61, %s16023_s2  ;;  %v1170_v14 = vadd.f32 %v1140_v37, %v769_v51  ;;  %v24458_v51 = vmax.f32 %v16870_v59, 0.0  ;;  %v24459_v59 = vmax.f32 %v16873_v39, 0.0  ;;  %v24460_v39 = vmax.f32 %v16876_v30, 0.0 }
 0x1ee   :  { %v24463_v61 = vmax.f32 %v16844_v41, 0.0 }
 0x1ef   :  { %v1235_v53 = vmul.f32 %v17260_v42, %v1170_v14  ;;  %v17307_v4 = vpop.permute.xlu2 %1400  ;;  %v1449_v37 = vmax.f32 %v24458_v51, %v1430_v55 }
 0x1f1   :  { %v17305_v63 = vadd.f32 %v17272_v44, %v1235_v53  ;;  %v1428_v53 = vpop.permute.xlu1 %1427 }
 0x1f2   :  { %v1448_v21 = vmax.f32 %v24463_v61, %v1428_v53  ;;  %v24467_v53 = vld [vmem:[#allocation24_spill] sm:$0xff] }
 0x1f3   :  { %v24370_v14 = vmax.f32 %v17305_v63, 0.0 }
 0x1f4   :  { %1602 = vrot.lane.b32.xlu1 %v24369_v34, %s16023_s2  ;;  %1637 = vrot.lane.b32.xlu2 %v17291_v13, %s16023_s2  ;;  %v1143_v27 = vpop.f32.mrf.mxu0  ;;  %v24379_v34 = vmax.f32 %v17241_v57, 0.0 }
 0x1f5   :  { %1542 = vrot.lane.b32.xlu0 %v24373_v17, %s16023_s2 }
 0x1f6   :  { %v1397_v26 = vpop.permute.xlu0 %1396 }
 0x1f7   :  { %v17322_v55 = vmax.f32 %v24459_v59, %v1397_v26  ;;  %v17324_v51 = vpop.permute.xlu2 %1437  ;;  %v24461_v59 = vmax.f32 %v16902_v58, 0.0 }
 0x1f9   :  { %v1432_v22 = vpop.permute.xlu1 %1431 }
 0x1fa   :  { %v1450_v26 = vmax.f32 %v24460_v39, %v1432_v22 }
 0x1fc   :  { %1667 = vrot.lane.b32.xlu1 %v1449_v37, %s16024_s3  ;;  %1604 = vrot.lane.b32.xlu2 %v24370_v14, %s16023_s2  ;;  %v1145_v60 = vpop.f32.mrf.mxu0 }
 0x1fd   :  { %1474 = vrot.lane.b32.xlu0 %v24374_v28, %s16023_s2 }
 0x1fe   :  { %v1399_v15 = vpop.permute.xlu0 %1398 }
 0x1ff   :  { %v17337_v17 = vmax.f32 %v24461_v59, %v1399_v15 }
 0x204   :  { %1688 = vrot.lane.b32.xlu1 %v1449_v37, %s16025_s26  ;;  %1641 = vrot.lane.b32.xlu2 %v17322_v55, %s16023_s2  ;;  %v1148_v14 = vpop.f32.mrf.mxu0  ;;  %v24462_v37 = vld [vmem:[#allocation22_spill] sm:$0xff] }
 0x205   :  { %1579 = vrot.lane.b32.xlu0 %v24379_v34, %s16023_s2  ;;  %v779_v49 = vadd.f32 %v16920_v56, %v24462_v37  ;;  %v772_v34 = vadd.f32 %v16840_v11, %v24464_v7  ;;  %v1184_v56 = vadd.f32 %v1145_v60, %v774_v47  ;;  %v24466_v11 = vmax.f32 %v16905_v31, 0.0 }
 0x207   :  { %v17339_v28 = vpop.permute.xlu2 %1497  ;;  %v1177_v15 = vadd.f32 %v1143_v27, %v772_v34  ;;  %v1451_v33 = vmax.f32 %v24466_v11, %v1434_v19  ;;  %v1249_v20 = vmul.f32 %v17260_v42, %v1184_v56  ;;  %v1436_v34 = vpop.permute.xlu1 %1435  ;;  %v24470_v56 = vld [vmem:[#allocation19_spill] sm:$0xff] }
 0x209   :  { %v1242_v7 = vmul.f32 %v17260_v42, %v1177_v15  ;;  %v17367_v31 = vadd.f32 %v17272_v44, %v1249_v20 }
 0x20b   :  { %v17370_v19 = vadd.f32 %v17272_v44, %v1242_v7 }
 0x20c   :  { %1643 = vrot.lane.b32.xlu1 %v17337_v17, %s16023_s2  ;;  %1669 = vrot.lane.b32.xlu2 %v1450_v26, %s16024_s3  ;;  %v1150_v30 = vpop.f32.mrf.mxu0 }
 0x20d   :  { %v1198_v58 = vadd.f32 %v1150_v30, %v779_v49  ;;  %1665 = vrot.lane.b32.xlu0 %v1448_v21, %s16024_s3  ;;  %v782_v49 = vadd.f32 %v16943_v62, %v24467_v53  ;;  %v1356_v37 = vmax.f32 %v17370_v19, 0.0 }
 0x20e   :  { %v1403_v22 = vpop.permute.xlu0 %1402 }
 0x20f   :  { %v1263_v41 = vmul.f32 %v17260_v42, %v1198_v58  ;;  %v1568_v39 = vpop.permute.xlu2 %1567 }
 0x211   :  { %v17355_v61 = vadd.f32 %v17272_v44, %v1263_v41  ;;  %v24471_v41 = vld [vmem:[#allocation38_spill] sm:$0xff] }
 0x212   :  { %v777_v11 = vadd.f32 %v24471_v41, %v24470_v56  ;;  %v24476_v41 = vmax.f32 %v17004_v5, 0.0 }
 0x213   :  { %v24382_v56 = vmax.f32 %v17355_v61, 0.0 }
 0x214   :  { %1671 = vrot.lane.b32.xlu1 %v1451_v33, %s16024_s3  ;;  %1690 = vrot.lane.b32.xlu2 %v1450_v26, %s16025_s26  ;;  %v1153_v47 = vpop.f32.mrf.mxu0  ;;  %v24385_v26 = vmax.f32 %v17367_v31, 0.0 }
 0x215   :  { %v1205_v60 = vadd.f32 %v1153_v47, %v782_v49  ;;  %1686 = vrot.lane.b32.xlu0 %v1448_v21, %s16025_s26  ;;  %v24468_v21 = vld [vmem:[#allocation37_spill] sm:$0xff]  ;;  %v24472_v49 = vmax.f32 %v16928_v1, 0.0 }
 0x216   :  { %v17373_v59 = vpop.permute.xlu0 %1439  ;;  %v24469_v30 = vmax.f32 %v24468_v21, 0.0  ;;  %v1405_v7 = vpop.permute.xlu1 %1404 }
 0x217   :  { %v1270_v27 = vmul.f32 %v17260_v42, %v1205_v60  ;;  %v17395_v20 = vpop.permute.xlu2 %1466  ;;  %v17400_v47 = vmax.f32 %v24472_v49, %v17307_v4  ;;  %v24473_v60 = vmax.f32 %v16925_v6, 0.0  ;;  %v24474_v4 = vmax.f32 %v16950_v18, 0.0 }
 0x218   :  { %v17383_v58 = vmax.f32 %v24469_v30, %v17212_v29  ;;  %v1191_v29 = vadd.f32 %v1148_v14, %v777_v11  ;;  %v24475_v18 = vmax.f32 %v16953_v54, 0.0  ;;  %v1518_v11 = vmax.f32 %v24476_v41, %v17339_v28 }
 0x219   :  { %v17376_v62 = vadd.f32 %v17272_v44, %v1270_v27  ;;  %v1452_v27 = vmax.f32 %v24473_v60, %v1436_v34  ;;  %v17416_v6 = vmax.f32 %v24474_v4, %v1403_v22  ;;  %v24477_v54 = vmax.f32 %v17001_v25, 0.0 }
 0x21a   :  { %v1256_v21 = vmul.f32 %v17260_v42, %v1191_v29  ;;  %v1453_v22 = vmax.f32 %v24475_v18, %v17324_v51  ;;  %v24479_v18 = vmax.f32 %v16969_v16, 0.0  ;;  %v24480_v25 = vmax.f32 %v17037_v48, 0.0 }
 0x21b   :  { %v24481_v16 = vmax.f32 %v17069_v52, 0.0  ;;  %v24483_v52 = vmax.f32 %v17095_v9, 0.0 }
 0x21c   :  { %1608 = vrot.lane.b32.xlu1 %v24385_v26, %s16023_s2  ;;  %1606 = vrot.lane.b32.xlu2 %v1356_v37, %s16023_s2  ;;  %v1155_v15 = vpop.f32.mrf.mxu0  ;;  %v17412_v1 = vadd.f32 %v17272_v44, %v1256_v21  ;;  %v24478_v21 = vmax.f32 %v17040_v43, 0.0  ;;  %v17455_v41 = vmax.f32 %v24479_v18, %v1405_v7  ;;  %v24384_v7 = vmax.f32 %v17376_v62, 0.0 }
 0x21d   :  { %1639 = vrot.lane.b32.xlu0 %v17383_v58, %s16023_s2 }
 0x21e   :  { %v24383_v42 = vmax.f32 %v17412_v1, 0.0  ;;  %v1588_v4 = vmax.f32 %v24478_v21, %v1568_v39  ;;  %v24482_v21 = vmax.f32 %v17043_v12, 0.0 }
 0x21f   :  { %v1463_v53 = vpop.permute.xlu0 %1462 }
 0x220   :  { %v17443_v51 = vmax.f32 %v24477_v54, %v1463_v53 }
 0x224   :  { %1673 = vrot.lane.b32.xlu1 %v1452_v27, %s16024_s3  ;;  %1645 = vrot.lane.b32.xlu2 %v17400_v47, %s16023_s2 }
 0x225   :  { %1692 = vrot.lane.b32.xlu0 %v1451_v33, %s16025_s26 }
 0x226   :  { %v1533_v30 = vpop.permute.xlu1 %1532  ;;  %v17409_v14 = vpop.permute.xlu2 %1538 }
 0x227   :  { %v1465_v15 = vpop.permute.xlu0 %1464  ;;  %v17459_v53 = vmax.f32 %v24480_v25, %v1533_v30 }
 0x228   :  { %v17480_v18 = vmax.f32 %v24482_v21, %v1465_v15  ;;  %v24485_v15 = vld [vmem:[#allocation41_spill] sm:$0xff] }
 0x229   :  { %v24486_v21 = vmax.f32 %v24485_v15, 0.0 }
 0x22c   :  { %1647 = vrot.lane.b32.xlu1 %v17416_v6, %s16023_s2  ;;  %1694 = vrot.lane.b32.xlu2 %v1452_v27, %s16025_s26 }
 0x22d   :  { %1610 = vrot.lane.b32.xlu0 %v24383_v42, %s16023_s2 }
 0x22e   :  { %v1535_v33 = vpop.permute.xlu1 %1534  ;;  %v17425_v34 = vpop.permute.xlu2 %1470 }
 0x22f   :  { %v1500_v44 = vpop.permute.xlu0 %1499 }
 0x230   :  { %v1519_v39 = vmax.f32 %v24481_v16, %v1500_v44 }
 0x234   :  { %1612 = vrot.lane.b32.xlu1 %v24382_v56, %s16023_s2  ;;  %1675 = vrot.lane.b32.xlu2 %v1453_v22, %s16024_s3  ;;  %v24484_v56 = vmax.f32 %v17072_v8, 0.0  ;;  %v24489_v8 = vld [vmem:[#allocation40_spill] sm:$0xff] }
 0x235   :  { %1742 = vrot.lane.b32.xlu0 %v1518_v11, %s16024_s3 }
 0x236   :  { %v1502_v29 = vpop.permute.xlu1 %1501  ;;  %v17439_v49 = vpop.permute.xlu2 %1472  ;;  %v17494_v12 = vmax.f32 %v24484_v56, %v1535_v33  ;;  %v24490_v33 = vmax.f32 %v24489_v8, 0.0 }
 0x237   :  { %v1570_v60 = vpop.permute.xlu0 %1569  ;;  %v1520_v44 = vmax.f32 %v24483_v52, %v1502_v29  ;;  %v24487_v29 = vld [vmem:[#allocation6_spill] sm:$0xff] }
 0x238   :  { %v1589_v9 = vmax.f32 %v24486_v21, %v1570_v60  ;;  %v24488_v52 = vmax.f32 %v24487_v29, 0.0  ;;  %v17509_v56 = vmax.f32 %v24490_v33, %v17395_v20  ;;  %v24491_v60 = vmax.f32 %v17197_v0, 0.0 }
 0x239   :  { %v24492_v0 = vmax.f32 %v17158_v2, 0.0  ;;  %v24494_v2 = vld [vmem:[#allocation16_spill] sm:$0xff] }
 0x23c   :  { %1714 = vrot.lane.b32.xlu1 %v17443_v51, %s16023_s2  ;;  %1696 = vrot.lane.b32.xlu2 %v1453_v22, %s16025_s26 }
 0x23d   :  { %1763 = vrot.lane.b32.xlu0 %v1518_v11, %s16025_s26 }
 0x23e   :  { %v1537_v5 = vpop.permute.xlu1 %1536  ;;  %v17449_v28 = vpop.permute.xlu2 %1577 }
 0x23f   :  { %v1572_v27 = vpop.permute.xlu0 %1571 }
 0x240   :  { %v1590_v42 = vmax.f32 %v24488_v52, %v1572_v27 }
 0x244   :  { %1649 = vrot.lane.b32.xlu2 %v17455_v41, %s16023_s2  ;;  %1840 = vrot.lane.b32.xlu1 %v1588_v4, %s16025_s26 }
 0x245   :  { %1791 = vrot.lane.b32.xlu0 %v17459_v53, %s16023_s2 }
 0x246   :  { %v1574_v22 = vpop.permute.xlu1 %1573  ;;  %v17466_v11 = vpop.permute.xlu2 %1509 }
 0x247   :  { %v1469_v43 = vpop.permute.xlu0 %1468 }
 0x24c   :  { %1614 = vrot.lane.b32.xlu2 %v24384_v7, %s16023_s2  ;;  %1744 = vrot.lane.b32.xlu1 %v1519_v39, %s16024_s3 }
 0x24d   :  { %1819 = vrot.lane.b32.xlu0 %v1588_v4, %s16024_s3 }
 0x24e   :  { %v17476_v48 = vpop.permute.xlu1 %1575  ;;  %v1638_v30 = vpop.permute.xlu2 %1637 }
 0x24f   :  { %v1504_v54 = vpop.permute.xlu0 %1503 }
 0x250   :  { %v1521_v15 = vmax.f32 %v24491_v60, %v1504_v54  ;;  %v17524_v54 = vmax.f32 %v24492_v0, %v1469_v43  ;;  %v24495_v43 = vmax.f32 %v24494_v2, 0.0 }
 0x254   :  { %1716 = vrot.lane.b32.xlu2 %v17480_v18, %s16023_s2  ;;  %1765 = vrot.lane.b32.xlu1 %v1519_v39, %s16025_s26 }
 0x255   :  { %1767 = vrot.lane.b32.xlu0 %v1520_v44, %s16025_s26 }
 0x256   :  { %v17488_v25 = vpop.permute.xlu1 %1507  ;;  %v17490_v4 = vpop.permute.xlu2 %1604 }
 0x257   :  { %v1506_v16 = vpop.permute.xlu0 %1505 }
 0x25c   :  { %1842 = vrot.lane.b32.xlu2 %v1589_v9, %s16025_s26  ;;  %1793 = vrot.lane.b32.xlu1 %v17494_v12, %s16023_s2 }
 0x25d   :  { %1823 = vrot.lane.b32.xlu0 %v1590_v42, %s16024_s3 }
 0x25e   :  { %v17504_v39 = vpop.permute.xlu1 %1544  ;;  %v1642_v7 = vpop.permute.xlu2 %1641 }
 0x25f   :  { %v1541_v26 = vpop.permute.xlu0 %1540  ;;  %v1892_v27 = vsel %vm1889_vm3, %v17322_v55, %v1642_v7 }
 0x264   :  { %1821 = vrot.lane.b32.xlu1 %v1589_v9, %s16024_s3  ;;  %1718 = vrot.lane.b32.xlu2 %v17509_v56, %s16023_s2  ;;  %v24493_v9 = vmax.f32 %v17238_v45, 0.0  ;;  %v24496_v45 = vmax.f32 %v17152_v50, 0.0  ;;  %v24498_v50 = vmax.f32 %v17233_v10, 0.0 }
 0x265   :  { %1769 = vrot.lane.b32.xlu0 %v1521_v15, %s16025_s26 }
 0x266   :  { %v17519_v21 = vpop.permute.xlu1 %1602  ;;  %v1670_v29 = vpop.permute.xlu2 %1669  ;;  %v1522_v8 = vmax.f32 %v24493_v9, %v1506_v16  ;;  %v1591_v16 = vmax.f32 %v24496_v45, %v1574_v22  ;;  %v1593_v22 = vmax.f32 %v24498_v50, %v17449_v28  ;;  %v1890_v9 = vsel %vm1889_vm3, %v17291_v13, %v1638_v30 }
 0x267   :  { %v1900_v20 = vsel %vm1897_vm2, %v1892_v27, %v1670_v29  ;;  %v1543_v52 = vpop.permute.xlu0 %1542  ;;  %v17537_v27 = vmax.f32 %v24495_v43, %v1537_v5  ;;  %v24497_v29 = vmax.f32 %v17192_v40, 0.0  ;;  %v24499_v43 = vmax.f32 %v17266_v32, 0.0  ;;  %v24500_v32 = vld [vmem:[#allocation25_spill] sm:$0xff] }
 0x269   :  { %v17564_v45 = vmax.f32 %v24499_v43, %v1541_v26  ;;  %v24501_v26 = vmax.f32 %v24500_v32, 0.0 }
 0x26c   :  { %1720 = vrot.lane.b32.xlu1 %v17524_v54, %s16023_s2  ;;  %1746 = vrot.lane.b32.xlu2 %v1520_v44, %s16024_s3  ;;  %v17544_v44 = vmax.f32 %v24497_v29, %v17439_v49  ;;  %v17579_v29 = vmax.f32 %v24501_v26, %v17409_v14 }
 0x26d   :  { %1750 = vrot.lane.b32.xlu0 %v1522_v8, %s16024_s3 }
 0x26e   :  { %v1668_v55 = vpop.permute.xlu1 %1667  ;;  %v1691_v7 = vpop.permute.xlu2 %1690 }
 0x26f   :  { %v17533_v33 = vsel %vm24386_vm4, %v1900_v20, %v1691_v7  ;;  %v1475_v60 = vpop.permute.xlu0 %1474 }
 0x274   :  { %1825 = vrot.lane.b32.xlu1 %v1591_v16, %s16024_s3  ;;  %1795 = vrot.lane.b32.xlu2 %v17537_v27, %s16023_s2 }
 0x275   :  { %1724 = vrot.lane.b32.xlu0 %v17544_v44, %s16023_s2 }
 0x276   :  { %v1689_v20 = vpop.permute.xlu1 %1688  ;;  %v17551_v0 = vpop.permute.xlu2 %1606 }
 0x277   :  { %v1580_v5 = vpop.permute.xlu0 %1579 }
 0x27c   :  { %1771 = vrot.lane.b32.xlu1 %v1522_v8, %s16025_s26  ;;  %1844 = vrot.lane.b32.xlu2 %v1590_v42, %s16025_s26 }
 0x27d   :  { %1829 = vrot.lane.b32.xlu0 %v1593_v22, %s16024_s3 }
 0x27e   :  { %v1644_v40 = vpop.permute.xlu1 %1643  ;;  %v1646_v49 = vpop.permute.xlu2 %1645 }
 0x27f   :  { %v1666_v7 = vpop.permute.xlu0 %1665  ;;  %v1893_v10 = vsel %vm1889_vm3, %v17337_v17, %v1644_v40 }
 0x280   :  { %v1898_v2 = vsel %vm1897_vm2, %v1890_v9, %v1666_v7 }
 0x284   :  { %1799 = vrot.lane.b32.xlu1 %v17564_v45, %s16023_s2  ;;  %1748 = vrot.lane.b32.xlu2 %v1521_v15, %s16024_s3  ;;  %v24502_v15 = vmax.f32 %v17189_v35, 0.0 }
 0x285   :  { %1850 = vrot.lane.b32.xlu0 %v1593_v22, %s16025_s26  ;;  %v24503_v22 = vmax.f32 %v17208_v3, 0.0  ;;  %v24504_v3 = vmax.f32 %v17200_v36, 0.0 }
 0x286   :  { %v1672_v42 = vpop.permute.xlu1 %1671  ;;  %v1695_v28 = vpop.permute.xlu2 %1694  ;;  %v1592_v50 = vmax.f32 %v24502_v15, %v17476_v48  ;;  %v24510_v15 = vmax.f32 %v17287_v38, 0.0  ;;  %v17659_v38 = vmax.f32 %v1356_v37, %v17551_v0 }
 0x287   :  { %v1901_v13 = vsel %vm1897_vm2, %v1893_v10, %v1672_v42  ;;  %v1687_v30 = vpop.permute.xlu0 %1686  ;;  %v17586_v17 = vmax.f32 %v24503_v22, %v1475_v60  ;;  %v17598_v48 = vmax.f32 %v24504_v3, %v1543_v52  ;;  %v24513_v3 = vmax.f32 %v17367_v31, 0.0 }
 0x288   :  { %v17574_v8 = vsel %vm24386_vm4, %v1898_v2, %v1687_v30  ;;  %v24505_v2 = vmax.f32 %v17205_v23, 0.0  ;;  %v24508_v30 = vmax.f32 %v17263_v24, 0.0  ;;  %v17647_v22 = vmax.f32 %v24510_v15, %v17519_v21 }
 0x28a   :  { %v1524_v43 = vmax.f32 %v24505_v2, %v17466_v11  ;;  %v24506_v11 = vld [vmem:[#allocation9_spill] sm:$0xff] }
 0x28b   :  { %v24507_v42 = vmax.f32 %v24506_v11, 0.0 }
 0x28c   :  { %1827 = vrot.lane.b32.xlu1 %v1592_v50, %s16024_s3  ;;  %1797 = vrot.lane.b32.xlu2 %v17579_v29, %s16023_s2 }
 0x28d   :  { %1726 = vrot.lane.b32.xlu0 %v17586_v17, %s16023_s2 }
 0x28e   :  { %v1609_v40 = vpop.permute.xlu1 %1608  ;;  %v1676_v9 = vpop.permute.xlu2 %1675 }
 0x28f   :  { %v1640_v14 = vpop.permute.xlu0 %1639  ;;  %v17676_v2 = vmax.f32 %v24513_v3, %v1609_v40 }
 0x290   :  { %v1891_v7 = vsel %vm1889_vm3, %v17383_v58, %v1640_v14  ;;  %v1894_v58 = vsel %vm1889_vm3, %v17400_v47, %v1646_v49  ;;  %v17627_v47 = vmax.f32 %v24508_v30, %v17504_v39  ;;  %v24509_v39 = vmax.f32 %v17241_v57, 0.0 }
 0x291   :  { %v1899_v35 = vsel %vm1897_vm2, %v1891_v7, %v1668_v55  ;;  %v24511_v7 = vmax.f32 %v17230_v46, 0.0 }
 0x292   :  { %v17601_v60 = vsel %vm24386_vm4, %v1899_v35, %v1689_v20  ;;  %v1594_v26 = vmax.f32 %v24509_v39, %v1580_v5 }
 0x293   :  { %v1523_v57 = vmax.f32 %v24511_v7, %v17488_v25  ;;  %v24512_v25 = vmax.f32 %v17305_v63, 0.0 }
 0x294   :  { %1801 = vrot.lane.b32.xlu1 %v17598_v48, %s16023_s2  ;;  %1846 = vrot.lane.b32.xlu2 %v1591_v16, %s16025_s26  ;;  %v17622_v16 = vmax.f32 %v24507_v42, %v17425_v34 }
 0x295   :  { %1754 = vrot.lane.b32.xlu0 %v1524_v43, %s16024_s3  ;;  %v17672_v0 = vmax.f32 %v24512_v25, %v17490_v4 }
 0x296   :  { %v1674_v36 = vpop.permute.xlu1 %1673  ;;  %v1697_v52 = vpop.permute.xlu2 %1696 }
 0x297   :  { %v1902_v55 = vsel %vm1897_vm2, %v1894_v58, %v1674_v36  ;;  %v1693_v20 = vpop.permute.xlu0 %1692  ;;  %v24514_v36 = vmax.f32 %v17376_v62, 0.0 }
 0x298   :  { %v17614_v10 = vsel %vm24386_vm4, %v1902_v55, %v1695_v28  ;;  %v17617_v23 = vsel %vm24386_vm4, %v1901_v13, %v1693_v20  ;;  %v24515_v55 = vmax.f32 %v17412_v1, 0.0  ;;  %v24516_v20 = vmax.f32 %v17355_v61, 0.0 }
 0x29c   :  { %1803 = vrot.lane.b32.xlu1 %v17627_v47, %s16023_s2  ;;  %1722 = vrot.lane.b32.xlu2 %v17622_v16, %s16023_s2 }
 0x29d   :  { %1775 = vrot.lane.b32.xlu0 %v1524_v43, %s16025_s26 }
 0x29e   :  { %v1648_v49 = vpop.permute.xlu1 %1647  ;;  %v17634_v28 = vpop.permute.xlu2 %1649 }
 0x29f   :  { %v1895_v34 = vsel %vm1889_vm3, %v17416_v6, %v1648_v49  ;;  %v1611_v13 = vpop.permute.xlu0 %1610 }
 0x2a0   :  { %v1903_v32 = vsel %vm1897_vm2, %v1895_v34, %v1676_v9  ;;  %v24517_v34 = vld [vmem:[#allocation39_spill] sm:$0xff] }
 0x2a1   :  { %v17640_v24 = vsel %vm24386_vm4, %v1903_v32, %v1697_v52 }
 0x2a4   :  { %1831 = vrot.lane.b32.xlu1 %v1594_v26, %s16024_s3  ;;  %1848 = vrot.lane.b32.xlu2 %v1592_v50, %s16025_s26 }
 0x2a5   :  { %1868 = vrot.lane.b32.xlu0 %v17647_v22, %s16023_s2 }
 0x2a6   :  { %v1613_v6 = vpop.permute.xlu1 %1612  ;;  %v1615_v9 = vpop.permute.xlu2 %1614 }
 0x2a7   :  { %v1743_v14 = vpop.permute.xlu0 %1742  ;;  %v17703_v52 = vmax.f32 %v24514_v36, %v1615_v9  ;;  %v17711_v11 = vmax.f32 %v24516_v20, %v1613_v6 }
 0x2ac   :  { %1852 = vrot.lane.b32.xlu1 %v1594_v26, %s16025_s26  ;;  %1752 = vrot.lane.b32.xlu2 %v1523_v57, %s16024_s3 }
 0x2ad   :  { %1872 = vrot.lane.b32.xlu0 %v17659_v38, %s16023_s2 }
 0x2ae   :  { %v1715_v21 = vpop.permute.xlu1 %1714  ;;  %v1717_v5 = vpop.permute.xlu2 %1716 }
 0x2af   :  { %v1913_v50 = vsel %vm1889_vm3, %v17443_v51, %v1715_v21  ;;  %v1764_v35 = vpop.permute.xlu0 %1763  ;;  %v1914_v39 = vsel %vm1889_vm3, %v17480_v18, %v1717_v5 }
 0x2b0   :  { %v1920_v46 = vsel %vm1897_vm2, %v1913_v50, %v1743_v14 }
 0x2b1   :  { %v1927_v19 = vsel %vm24386_vm4, %v1920_v46, %v1764_v35 }
 0x2b2   :  { %v1990_v37 = vrot.slane %v1927_v19, 6 }
 0x2b4   :  { %v17680_v51 = vsel %vm2011_vm5, %v17574_v8, %v1990_v37  ;;  %v17684_v43 = vsel %vm2017_vm7, %v17574_v8, %v1990_v37  ;;  %v17688_v58 = vsel %vm2013_vm6, %v17574_v8, %v1990_v37  ;;  %v17692_v63 = vsel %vm273_vm0, %v1990_v37, %v17574_v8  ;;  %1773 = vrot.lane.b32.xlu2 %v1523_v57, %s16025_s26 }
 0x2b5   :  { %1870 = vrot.lane.b32.xlu1 %v17672_v0, %s16023_s2  ;;  %1874 = vrot.lane.b32.xlu0 %v17676_v2, %s16023_s2  ;;  %v17707_v8 = vmax.f32 %v24515_v55, %v1611_v13  ;;  %v24518_v13 = vmax.f32 %v24517_v34, 0.0 }
 0x2b6   :  { %v1841_v31 = vpop.permute.xlu1 %1840  ;;  %v17699_v4 = vpop.permute.xlu2 %1842 }
 0x2b7   :  { %v1792_v40 = vpop.permute.xlu0 %1791  ;;  %v1454_v32 = vmax.f32 %v24518_v13, %v17373_v59 }
 0x2b8   :  { %v1934_v1 = vsel %vm1889_vm3, %v17459_v53, %v1792_v40 }
 0x2bc   :  { %1880 = vrot.lane.b32.xlu2 %v17703_v52, %s16023_s2 }
 0x2bd   :  { %1878 = vrot.lane.b32.xlu1 %v17711_v11, %s16023_s2  ;;  %1876 = vrot.lane.b32.xlu0 %v17707_v8, %s16023_s2  ;;  %s11036_s2 = sshll.u32 %s16027_s25, 4  ;;  %s11037_s2 = int_to_ptr.vmem [resolvable:$true] %s11036_s2 }
 0x2be   :  { %v1745_v62 = vpop.permute.xlu1 %1744  ;;  %v1719_v42 = vpop.permute.xlu2 %1718 }
 0x2bf   :  { %v1820_v30 = vpop.permute.xlu0 %1819  ;;  %v1921_v26 = vsel %vm1897_vm2, %v1914_v39, %v1745_v62  ;;  %v1915_v53 = vsel %vm1889_vm3, %v17509_v56, %v1719_v42 }
 0x2c0   :  { %v1941_v49 = vsel %vm1897_vm2, %v1934_v1, %v1820_v30 }
 0x2c1   :  { %v17723_v61 = vsel %vm24386_vm4, %v1941_v49, %v1841_v31 }
 0x2c5   :  { %1698 = vrot.lane.b32.xlu1 %v1454_v32, %s16025_s26  ;;  %1677 = vrot.lane.b32.xlu0 %v1454_v32, %s16024_s3 }
 0x2c6   :  { %v1766_v15 = vpop.permute.xlu1 %1765  ;;  %v1747_v6 = vpop.permute.xlu2 %1746 }
 0x2c7   :  { %v1928_v9 = vsel %vm24386_vm4, %v1921_v26, %v1766_v15  ;;  %v1922_v14 = vsel %vm1897_vm2, %v1915_v53, %v1747_v6  ;;  %v1768_v7 = vpop.permute.xlu0 %1767 }
 0x2c8   :  { %v1993_v59 = vrot.slane %v1928_v9, 6  ;;  %v1929_v57 = vsel %vm24386_vm4, %v1922_v14, %v1768_v7 }
 0x2c9   :  { %v1996_v18 = vrot.slane %v1929_v57, 6 }
 0x2ca   :  { %v17740_v21 = vsel %vm2011_vm5, %v17601_v60, %v1993_v59  ;;  %v17744_v5 = vsel %vm2017_vm7, %v17601_v60, %v1993_v59  ;;  %v17748_v56 = vsel %vm2013_vm6, %v17601_v60, %v1993_v59  ;;  %v17752_v50 = vsel %vm273_vm0, %v1993_v59, %v17601_v60 }
 0x2cb   :  { %v17756_v35 = vsel %vm2011_vm5, %v17533_v33, %v1996_v18  ;;  %v17760_v46 = vsel %vm2017_vm7, %v17533_v33, %v1996_v18  ;;  %v17764_v19 = vsel %vm2013_vm6, %v17533_v33, %v1996_v18  ;;  %v17768_v37 = vsel %vm273_vm0, %v1996_v18, %v17533_v33 }
 0x2ce   :  { %v1794_v25 = vpop.permute.xlu1 %1793  ;;  %v1796_v3 = vpop.permute.xlu2 %1795 }
 0x2cf   :  { %v17770_v60 = vpop.permute.xlu0 %1823  ;;  %v1935_v31 = vsel %vm1889_vm3, %v17494_v12, %v1794_v25 }
 0x2d6   :  { %v1822_v40 = vpop.permute.xlu1 %1821  ;;  %v17774_v36 = vpop.permute.xlu2 %1844 }
 0x2d7   :  { %v17777_v55 = vsel %vm1897_vm2, %v1935_v31, %v1822_v40  ;;  %v1770_v20 = vpop.permute.xlu0 %1769 }
 0x2de   :  { %v1721_v62 = vpop.permute.xlu1 %1720  ;;  %v1749_v42 = vpop.permute.xlu2 %1748 }
 0x2df   :  { %v1916_v33 = vsel %vm1889_vm3, %v17524_v54, %v1721_v62  ;;  %v1751_v1 = vpop.permute.xlu0 %1750 }
 0x2e0   :  { %v1923_v30 = vsel %vm1897_vm2, %v1916_v33, %v1749_v42 }
 0x2e1   :  { %v1930_v49 = vsel %vm24386_vm4, %v1923_v30, %v1770_v20 }
 0x2e2   :  { %v1999_v34 = vrot.slane %v1930_v49, 6 }
 0x2e4   :  { %v17785_v12 = vsel %vm2011_vm5, %v17617_v23, %v1999_v34  ;;  %v17789_v13 = vsel %vm2017_vm7, %v17617_v23, %v1999_v34  ;;  %v17793_v32 = vsel %vm2013_vm6, %v17617_v23, %v1999_v34  ;;  %v17797_v54 = vsel %vm273_vm0, %v1999_v34, %v17617_v23 }
 0x2e6   :  { %v17799_v39 = vpop.permute.xlu1 %1825  ;;  %v17801_v26 = vpop.permute.xlu2 %1797 }
 0x2e7   :  { %v1725_v53 = vpop.permute.xlu0 %1724 }
 0x2ee   :  { %v1772_v15 = vpop.permute.xlu1 %1771  ;;  %v17803_v6 = vpop.permute.xlu2 %1846 }
 0x2ef   :  { %v1830_v9 = vpop.permute.xlu0 %1829 }
 0x2f6   :  { %v1800_v14 = vpop.permute.xlu1 %1799  ;;  %v1723_v7 = vpop.permute.xlu2 %1722 }
 0x2f7   :  { %v1917_v59 = vsel %vm1889_vm3, %v17622_v16, %v1723_v7  ;;  %v1851_v57 = vpop.permute.xlu0 %1850  ;;  %v1938_v25 = vsel %vm1889_vm3, %v17564_v45, %v1800_v14 }
 0x2f8   :  { %v1924_v18 = vsel %vm1897_vm2, %v1917_v59, %v1751_v1 }
 0x2f9   :  { %v1931_v23 = vsel %vm24386_vm4, %v1924_v18, %v1772_v15  ;;  %v1918_v15 = vsel %vm1889_vm3, %v17544_v44, %v1725_v53 }
 0x2fe   :  { %v1828_v31 = vpop.permute.xlu1 %1827  ;;  %v17811_v40 = vpop.permute.xlu2 %1848 }
 0x2ff   :  { %v17814_v20 = vsel %vm1897_vm2, %v1938_v25, %v1828_v31  ;;  %v1727_v62 = vpop.permute.xlu0 %1726  ;;  %v2002_v31 = vrot.slane %v1931_v23, 6 }
 0x300   :  { %v1919_v16 = vsel %vm1889_vm3, %v17586_v17, %v1727_v62  ;;  %v1936_v62 = vsel %vm1889_vm3, %v17537_v27, %v1796_v3 }
 0x301   :  { %v17862_v27 = vsel %vm2011_vm5, %v17614_v10, %v2002_v31 }
 0x306   :  { %v1802_v42 = vpop.permute.xlu1 %1801  ;;  %v1753_v33 = vpop.permute.xlu2 %1752 }
 0x307   :  { %v1939_v1 = vsel %vm1889_vm3, %v17598_v48, %v1802_v42  ;;  %v1755_v30 = vpop.permute.xlu0 %1754  ;;  %v1925_v14 = vsel %vm1897_vm2, %v1918_v15, %v1753_v33 }
 0x308   :  { %v1946_v49 = vsel %vm1897_vm2, %v1939_v1, %v1830_v9  ;;  %v1926_v45 = vsel %vm1897_vm2, %v1919_v16, %v1755_v30  ;;  %v16026_v30 = vmov 0.0  }
 0x309   :  { %v17823_v34 = vsel %vm24386_vm4, %v1946_v49, %v1851_v57  ;;  %2261 = vst [vmem:[#allocation2] sm:$0xff] %v16026_v30  ;;  %v1991_v49 = vrot.slane %v17723_v61, 4  ;;  %v17867_v61 = vsel %vm2017_vm7, %v17614_v10, %v2002_v31 }
 0x30a   :  { %2262 = vst [vmem:[#allocation2 + $0x8] sm:$0xff] %v16026_v30 }
 0x30b   :  { %2263 = vst [vmem:[#allocation2 + $0x10] sm:$0xff] %v16026_v30 }
 0x30c   :  { %2264 = vst.msk [vmem:[#allocation2 + $0x18] sm:$0xff] %vm1897_vm2, %v16026_v30 }
 0x30d   :  { %2265 = vst [vmem:[#allocation2 + $0x20] sm:$0xff] %v16026_v30 }
 0x30e   :  { %v1804_v7 = vpop.permute.xlu1 %1803  ;;  %v1774_v59 = vpop.permute.xlu2 %1773  ;;  %2266 = vst [vmem:[#allocation2 + $0x28] sm:$0xff] %v16026_v30 }
 0x30f   :  { %v1932_v17 = vsel %vm24386_vm4, %v1925_v14, %v1774_v59  ;;  %v1776_v18 = vpop.permute.xlu0 %1775  ;;  %v1940_v42 = vsel %vm1889_vm3, %v17627_v47, %v1804_v7  ;;  %2267 = vst [vmem:[#allocation2 + $0x30] sm:$0xff] %v16026_v30 }
 0x310   :  { %v2005_v25 = vrot.slane %v1932_v17, 6  ;;  %v17830_v48 = vsel %vm24386_vm4, %v1926_v45, %v1776_v18  ;;  %2268 = vst.msk [vmem:[#allocation2 + $0x38] sm:$0xff] %vm1897_vm2, %v16026_v30 }
 0x311   :  { %2269 = vst [vmem:[#allocation2 + $0x40] sm:$0xff] %v16026_v30 }
 0x312   :  { %v17834_v9 = vsel %vm2011_vm5, %v17640_v24, %v2005_v25  ;;  %v17838_v57 = vsel %vm2017_vm7, %v17640_v24, %v2005_v25  ;;  %v17842_v44 = vsel %vm2013_vm6, %v17640_v24, %v2005_v25  ;;  %v17846_v53 = vsel %vm273_vm0, %v2005_v25, %v17640_v24  ;;  %2270 = vst [vmem:[#allocation2 + $0x48] sm:$0xff] %v16026_v30 }
 0x313   :  { %v1943_v24 = vsel %vm1897_vm2, %v1936_v62, %v17770_v60  ;;  %2271 = vst [vmem:[#allocation2 + $0x50] sm:$0xff] %v16026_v30 }
 0x314   :  { %v17871_v3 = vsel %vm24386_vm4, %v1943_v24, %v17774_v36  ;;  %2272 = vst.msk [vmem:[#allocation2 + $0x58] sm:$0xff] %vm1897_vm2, %v16026_v30 }
 0x315   :  { %2273 = vst [vmem:[#allocation2 + $0x60] sm:$0xff] %v16026_v30 }
 0x316   :  { %v1832_v33 = vpop.permute.xlu1 %1831  ;;  %2274 = vst [vmem:[#allocation2 + $0x68] sm:$0xff] %v16026_v30 }
 0x317   :  { %v1947_v16 = vsel %vm1897_vm2, %v1940_v42, %v1832_v33  ;;  %v1869_v1 = vpop.permute.xlu0 %1868  ;;  %v17904_v42 = vsel %vm273_vm0, %v2002_v31, %v17614_v10  ;;  %2275 = vst [vmem:[#allocation2 + $0x70] sm:$0xff] %v16026_v30 }
 0x318   :  { %v1955_v23 = vsel %vm1889_vm3, %v17647_v22, %v1869_v1  ;;  %2276 = vst.msk [vmem:[#allocation2 + $0x78] sm:$0xff] %vm1897_vm2, %v16026_v30 }
 0x319   :  { %v1992_v47 = vrot.slane %v1955_v23, 2 }
 0x31b   :  { %v2014_v22 = vsel %vm2013_vm6, %v1991_v49, %v1992_v47  ;;  %v2019_v60 = vsel %vm273_vm0, %v1992_v47, %v1991_v49  ;;  %v2024_v45 = vsel %vm2011_vm5, %v1991_v49, %v1992_v47  ;;  %v2028_v15 = vsel %vm2017_vm7, %v1991_v49, %v1992_v47 }
 0x31c   :  { %v2016_v14 = vsel %vm2015_vm8, %v17680_v51, %v2014_v22  ;;  %v2021_v36 = vsel %vm2020_vm9, %v17684_v43, %v2019_v60  ;;  %v2025_v7 = vsel %vm2015_vm8, %v2024_v45, %v17688_v58  ;;  %v2029_v59 = vsel %vm2020_vm9, %v2028_v15, %v17692_v63 }
 0x31d   :  { %v2022_v17 = vrot.slane %v2021_v36, 2  ;;  %v2026_v18 = vrot.slane %v2025_v7, 4  ;;  %v2030_v25 = vrot.slane %v2029_v59, 6  ;;  %v11331_v62 = vrot.slane %v2016_v14, 9 }
 0x31e   :  { %v1949_v51 = vsel %vm24386_vm4, %v17777_v55, %v17699_v4  ;;  %v1937_v43 = vsel %vm1889_vm3, %v17579_v29, %v17801_v26  ;;  %v1853_v58 = vpop.permute.xlu1 %1852  ;;  %v17900_v63 = vsel %vm2013_vm6, %v17614_v10, %v2002_v31 }
 0x31f   :  { %v11332_v33 = vrot.slane %v2022_v17, 9  ;;  %v11333_v1 = vrot.slane %v2026_v18, 9  ;;  %v11334_v49 = vrot.slane %v2030_v25, 9  ;;  %v2233_v4 = vmax.f32 %v2016_v14, %v11331_v62  ;;  %v1873_v55 = vpop.permute.xlu0 %1872 }
 0x320   :  { %v17908_v29 = vsel %vm24386_vm4, %v1947_v16, %v1853_v58  ;;  %v1957_v10 = vsel %vm1889_vm3, %v17659_v38, %v1873_v55 }
 0x321   :  { %v2234_v26 = vmax.f32 %v2022_v17, %v11332_v33  ;;  %v2235_v24 = vmax.f32 %v2026_v18, %v11333_v1  ;;  %v2236_v23 = vmax.f32 %v2030_v25, %v11334_v49  ;;  %v2305_v31 = vperm.slane %v2233_v4, 0 }
 0x322   :  { %v2306_v47 = vperm.slane %v2233_v4, 2  ;;  %v2307_v22 = vperm.slane %v2233_v4, 4  ;;  %v2308_v60 = vperm.slane %v2233_v4, 6 }
 0x323   :  { %v2309_v45 = vperm.slane %v2234_v26, 0  ;;  %v2310_v16 = vperm.slane %v2234_v26, 2  ;;  %v2311_v15 = vperm.slane %v2234_v26, 4  ;;  %v2312_v14 = vperm.slane %v2234_v26, 6 }
 0x324   :  { %v2313_v36 = vperm.slane %v2235_v24, 0  ;;  %v2314_v7 = vperm.slane %v2235_v24, 2  ;;  %v2315_v59 = vperm.slane %v2235_v24, 4  ;;  %v2316_v17 = vperm.slane %v2235_v24, 6 }
 0x325   :  { %v2317_v38 = vperm.slane %v2236_v23, 0  ;;  %v2318_v18 = vperm.slane %v2236_v23, 2  ;;  %v2319_v25 = vperm.slane %v2236_v23, 4  ;;  %v2320_v62 = vperm.slane %v2236_v23, 6 }
 0x326   :  { %v2418_v58 = vsel %vm2417_vm10, %v2309_v45, %v2305_v31  ;;  %v2429_v33 = vsel %vm2417_vm10, %v2310_v16, %v2306_v47  ;;  %v2435_v1 = vsel %vm2417_vm10, %v2311_v15, %v2307_v22  ;;  %v2441_v49 = vsel %vm2417_vm10, %v2312_v14, %v2308_v60 }
 0x327   :  { %v2420_v4 = vsel %vm2419_vm11, %v2313_v36, %v2418_v58  ;;  %v2430_v55 = vsel %vm2419_vm11, %v2314_v7, %v2429_v33  ;;  %v2436_v26 = vsel %vm2419_vm11, %v2315_v59, %v2435_v1  ;;  %v2442_v24 = vsel %vm2419_vm11, %v2316_v17, %v2441_v49  ;;  %v1871_v23 = vpop.permute.xlu1 %1870  ;;  %v1875_v60 = vpop.permute.xlu0 %1874 }
 0x328   :  { %v17930_v31 = vsel %vm2421_vm12, %v2317_v38, %v2420_v4  ;;  %v17933_v47 = vsel %vm2421_vm12, %v2318_v18, %v2430_v55  ;;  %v17936_v22 = vsel %vm2421_vm12, %v2319_v25, %v2436_v26  ;;  %v17939_v30 = vsel %vm2421_vm12, %v2320_v62, %v2442_v24  ;;  %v1881_v49 = vpop.permute.xlu2 %1880 }
 0x329   :  { %v1997_v45 = vrot.slane %v17871_v3, 4  ;;  %v1944_v16 = vsel %vm1897_vm2, %v1937_v43, %v17799_v39  ;;  %v1998_v15 = vrot.slane %v1957_v10, 2  ;;  %v1956_v14 = vsel %vm1889_vm3, %v17672_v0, %v1871_v23 }
 0x32a   :  { %v1994_v36 = vrot.slane %v1949_v51, 4  ;;  %v1951_v7 = vsel %vm24386_vm4, %v1944_v16, %v17803_v6  ;;  %v1995_v59 = vrot.slane %v1956_v14, 2  ;;  %v1958_v17 = vsel %vm1889_vm3, %v17676_v2, %v1875_v60 }
 0x32b   :  { %v2047_v38 = vsel %vm2013_vm6, %v1997_v45, %v1998_v15  ;;  %v2050_v18 = vsel %vm273_vm0, %v1998_v15, %v1997_v45  ;;  %v2054_v3 = vsel %vm2011_vm5, %v1997_v45, %v1998_v15  ;;  %v2058_v39 = vsel %vm2017_vm7, %v1997_v45, %v1998_v15 }
 0x32c   :  { %v2048_v43 = vsel %vm2015_vm8, %v17756_v35, %v2047_v38  ;;  %v2051_v0 = vsel %vm2020_vm9, %v17760_v46, %v2050_v18  ;;  %v2055_v6 = vsel %vm2015_vm8, %v2054_v3, %v17764_v19  ;;  %v2059_v2 = vsel %vm2020_vm9, %v2058_v39, %v17768_v37 }
 0x32d   :  { %v2052_v51 = vrot.slane %v2051_v0, 2  ;;  %v2056_v10 = vrot.slane %v2055_v6, 4  ;;  %v2060_v25 = vrot.slane %v2059_v2, 6  ;;  %v11339_v62 = vrot.slane %v2048_v43, 9 }
 0x32e   :  { %v2032_v58 = vsel %vm2013_vm6, %v1994_v36, %v1995_v59  ;;  %v2035_v33 = vsel %vm273_vm0, %v1995_v59, %v1994_v36  ;;  %v2039_v1 = vsel %vm2011_vm5, %v1994_v36, %v1995_v59  ;;  %v2043_v35 = vsel %vm2017_vm7, %v1994_v36, %v1995_v59 }
 0x32f   :  { %v11340_v46 = vrot.slane %v2052_v51, 9  ;;  %v11341_v4 = vrot.slane %v2056_v10, 9  ;;  %v11342_v55 = vrot.slane %v2060_v25, 9  ;;  %v17966_v19 = vmax.f32 %v2048_v43, %v11339_v62 }
 0x330   :  { %v2033_v37 = vsel %vm2015_vm8, %v17740_v21, %v2032_v58  ;;  %v2036_v26 = vsel %vm2020_vm9, %v17744_v5, %v2035_v33  ;;  %v2040_v24 = vsel %vm2015_vm8, %v2039_v1, %v17748_v56  ;;  %v2044_v23 = vsel %vm2020_vm9, %v2043_v35, %v17752_v50 }
 0x331   :  { %v17976_v60 = vrot.slane %v1951_v7, 4  ;;  %v17981_v45 = vsel %vm24386_vm4, %v17814_v20, %v17811_v40  ;;  %v17983_v16 = vmax.f32 %v2052_v51, %v11340_v46  ;;  %v17985_v15 = vmax.f32 %v2056_v10, %v11341_v4  ;;  %v15326_v46 = vld [vmem:[%s24323_s4 + $0x7c0] sm:$0xf0] }
 0x332   :  { %v17989_v21 = vsel %vm1889_vm3, %v17703_v52, %v1881_v49  ;;  %v17991_v5 = vmax.f32 %v2060_v25, %v11342_v55  ;;  %v2037_v56 = vrot.slane %v2036_v26, 2  ;;  %v17993_v14 = vrot.slane %v1958_v17, 2  ;;  %v11785_v49 = vld [vmem:[%s24323_s4 + $0x7a8] sm:$0xf] }
 0x333   :  { %v2337_v50 = vperm.slane %v17966_v19, 0  ;;  %v2338_v36 = vperm.slane %v17966_v19, 2  ;;  %v2339_v40 = vperm.slane %v17966_v19, 4  ;;  %v2340_v20 = vperm.slane %v17966_v19, 6 }
 0x334   :  { %v2341_v7 = vperm.slane %v17983_v16, 0  ;;  %v2342_v59 = vperm.slane %v17983_v16, 2  ;;  %v2343_v52 = vperm.slane %v17983_v16, 4  ;;  %v2041_v43 = vrot.slane %v2040_v24, 4 }
 0x335   :  { %v2045_v0 = vrot.slane %v2044_v23, 6  ;;  %v11335_v6 = vrot.slane %v2033_v37, 9  ;;  %v11336_v2 = vrot.slane %v2037_v56, 9  ;;  %v2062_v10 = vsel %vm2013_vm6, %v17976_v60, %v17993_v14 }
 0x336   :  { %v2065_v25 = vsel %vm273_vm0, %v17993_v14, %v17976_v60  ;;  %v2069_v62 = vsel %vm2011_vm5, %v17976_v60, %v17993_v14  ;;  %v11337_v58 = vrot.slane %v2041_v43, 9  ;;  %vm24387_vm4 = vcmask 523265  }
 0x337   :  { %v11338_v33 = vrot.slane %v2045_v0, 9  ;;  %v2237_v1 = vmax.f32 %v2033_v37, %v11335_v6  ;;  %v2238_v35 = vmax.f32 %v2037_v56, %v11336_v2  ;;  %v11786_v4 = vor.u32 %v15326_v46, %v11785_v49 }
 0x338   :  { %v2063_v55 = vsel %vm2015_vm8, %v17785_v12, %v2062_v10  ;;  %v18027_v26 = vsel %vm2020_vm9, %v17789_v13, %v2065_v25  ;;  %v18031_v37 = vsel %vm2015_vm8, %v2069_v62, %v17793_v32  ;;  %v2239_v24 = vmax.f32 %v2041_v43, %v11337_v58 }
 0x339   :  { %v2240_v23 = vmax.f32 %v2045_v0, %v11338_v33  ;;  %v2321_v56 = vperm.slane %v2237_v1, 0  ;;  %v2322_v6 = vperm.slane %v2237_v1, 2  ;;  %v2323_v2 = vperm.slane %v2237_v1, 4  ;;  %4387 = vmatpush.bf16.msrb.mxu1 %v11786_v4 }
 0x33a   :  { %v2324_v39 = vperm.slane %v2237_v1, 6  ;;  %v2325_v3 = vperm.slane %v2238_v35, 0  ;;  %v2326_v51 = vperm.slane %v2238_v35, 2  ;;  %v2327_v49 = vperm.slane %v2238_v35, 4 }
 0x33b   :  { %v2328_v46 = vperm.slane %v2238_v35, 6  ;;  %v2329_v12 = vperm.slane %v2239_v24, 0  ;;  %v2330_v10 = vperm.slane %v2239_v24, 2  ;;  %v2331_v18 = vperm.slane %v2239_v24, 4 }
 0x33c   :  { %v2332_v13 = vperm.slane %v2239_v24, 6  ;;  %v2333_v25 = vperm.slane %v2240_v23, 0  ;;  %v2334_v17 = vperm.slane %v2240_v23, 2  ;;  %v2335_v38 = vperm.slane %v2240_v23, 4 }
 0x33d   :  { %v2336_v32 = vperm.slane %v2240_v23, 6  ;;  %v2424_v43 = vsel %vm2423_vm13, %v2321_v56, %v17930_v31  ;;  %v2432_v0 = vsel %vm2423_vm13, %v2322_v6, %v17933_v47  ;;  %v2438_v33 = vsel %vm2423_vm13, %v2323_v2, %v17936_v22 }
 0x33e   :  { %v2426_v62 = vsel %vm2425_vm14, %v2325_v3, %v2424_v43  ;;  %v2433_v58 = vsel %vm2425_vm14, %v2326_v51, %v2432_v0  ;;  %v2444_v1 = vsel %vm2423_vm13, %v2324_v39, %v17939_v30  ;;  %v2439_v24 = vsel %vm2425_vm14, %v2327_v49, %v2438_v33 }
 0x33f   :  { %v2428_v35 = vsel %vm2427_vm15, %v2329_v12, %v2426_v62  ;;  %v2434_v4 = vsel %vm2427_vm15, %v2330_v10, %v2433_v58  ;;  %v2445_v31 = vsel %vm2425_vm14, %v2328_v46, %v2444_v1  ;;  %v2440_v47 = vsel %vm2427_vm15, %v2331_v18, %v2439_v24 }
 0x340   :  { %v2446_v3 = vsel %vm2427_vm15, %v2332_v13, %v2445_v31  ;;  %v2448_v51 = vsel %vm2447_vm1, %v2337_v50, %v2333_v25  ;;  %v2454_v22 = vsel %vm2447_vm1, %v2338_v36, %v2334_v17  ;;  %2536 = vst [vmem:[#allocation2] sm:$0xfe] %v2428_v35  ;;  %v2460_v18 = vsel %vm2447_vm1, %v2339_v40, %v2335_v38 }
 0x341   :  { %v2449_v30 = vsel %vm2417_vm10, %v2341_v7, %v2448_v51  ;;  %v2455_v39 = vsel %vm2417_vm10, %v2342_v59, %v2454_v22  ;;  %v2466_v50 = vsel %vm2447_vm1, %v2340_v20, %v2336_v32  ;;  %2537 = vst [vmem:[#allocation2 + $0x8] sm:$0xfe] %v2434_v4  ;;  %v2350_v36 = vperm.slane %v17991_v5, 2 }
 0x342   :  { %v2351_v17 = vperm.slane %v17991_v5, 4  ;;  %v2461_v7 = vsel %vm2417_vm10, %v2343_v52, %v2460_v18  ;;  %v24519_v23 = vperm.slane %v17983_v16, 6  ;;  %2538 = vst [vmem:[#allocation2 + $0x10] sm:$0xfe] %v2440_v47  ;;  %v2073_v19 = vsel %vm2017_vm7, %v17976_v60, %v17993_v14 }
 0x343   :  { %2540 = vst.msk [vmem:[#allocation2 + $0x18] sm:$0xfe] %vm24387_vm4, %v2446_v3  ;;  %v11343_v40 = vrot.slane %v2063_v55, 9  ;;  %v24520_v20 = vperm.slane %v17985_v15, 0  ;;  %v24521_v56 = vperm.slane %v17985_v15, 2  ;;  %v2352_v16 = vperm.slane %v17991_v5, 6 }
 0x344   :  { %v2467_v59 = vsel %vm2417_vm10, %v24519_v23, %v2466_v50  ;;  %v2067_v6 = vrot.slane %v18027_v26, 2  ;;  %v18089_v2 = vsel %vm2020_vm9, %v2073_v19, %v17797_v54  ;;  %v24522_v49 = vperm.slane %v17991_v5, 0 }
 0x345   :  { %v2450_v38 = vsel %vm2419_vm11, %v24520_v20, %v2449_v30  ;;  %v2456_v52 = vsel %vm2419_vm11, %v24521_v56, %v2455_v39  ;;  %v2071_v14 = vrot.slane %v18031_v37, 4  ;;  %v18095_v46 = vmax.f32 %v2063_v55, %v11343_v40 }
 0x346   :  { %v2451_v60 = vsel %vm2421_vm12, %v24522_v49, %v2450_v38  ;;  %v18098_v12 = vsel %vm2421_vm12, %v2350_v36, %v2456_v52  ;;  %v24523_v10 = vperm.slane %v17985_v15, 4  ;;  %v24524_v54 = vperm.slane %v17985_v15, 6 }
 0x347   :  { %v18110_v25 = vrot.slane %v17981_v45, 4  ;;  %v18113_v55 = vrot.slane %v17823_v34, 4  ;;  %v18116_v37 = vrot.slane %v17989_v21, 2  ;;  %v18122_v43 = vrot.slane %v17908_v29, 4  ;;  %v2554_v4 = vld [vmem:[#allocation2] sm:$0xff] }
 0x348   :  { %v2462_v13 = vsel %vm2419_vm11, %v24523_v10, %v2461_v7  ;;  %v2468_v5 = vsel %vm2419_vm11, %v24524_v54, %v2467_v59  ;;  %v2555_v0 = vld [vmem:[#allocation2 + $0x8] sm:$0xff]  ;;  %v11344_v15 = vrot.slane %v2067_v6, 9  ;;  %v2353_v58 = vperm.slane %v18095_v46, 0  ;;  %v2935_v18 = vld [vmem:[#allocation2] sm:$0xfe]  ;;  %v1879_v54 = vpop.permute.xlu1 %1878 }
 0x349   :  { %v18104_v26 = vsel %vm2421_vm12, %v2351_v17, %v2462_v13  ;;  %v18119_v32 = vsel %vm2421_vm12, %v2352_v16, %v2468_v5  ;;  %v2936_v62 = vld [vmem:[#allocation2 + $0x8] sm:$0xfe]  ;;  %v2556_v33 = vld [vmem:[#allocation2 + $0x10] sm:$0xff]  ;;  %v2586_v45 = vrot.slane %v2555_v0, 6  ;;  %v11345_v34 = vrot.slane %v2071_v14, 9 }
 0x34a   :  { %v2937_v1 = vld [vmem:[#allocation2 + $0x10] sm:$0xfe]  ;;  %v2967_v35 = vrot.slane %v2936_v62, 6  ;;  %v18128_v21 = vsel %vm1889_vm3, %v17455_v41, %v17634_v28  ;;  %v2557_v24 = vld [vmem:[#allocation2 + $0x18] sm:$0xff]  ;;  %v2587_v31 = vrot.slane %v2556_v33, 4  ;;  %v2075_v47 = vrot.slane %v18089_v2, 6 }
 0x34b   :  { %v2938_v29 = vld [vmem:[#allocation2 + $0x18] sm:$0xfe]  ;;  %v18132_v3 = vsel %vm2423_vm13, %v2353_v58, %v2451_v60  ;;  %v2588_v51 = vrot.slane %v2557_v24, 2  ;;  %v2598_v22 = vsel %vm2011_vm5, %v2554_v4, %v2586_v45  ;;  %v2601_v30 = vsel %vm2017_vm7, %v2554_v4, %v2586_v45 }
 0x34c   :  { %v2605_v39 = vsel %vm2013_vm6, %v2554_v4, %v2586_v45  ;;  %v2609_v41 = vsel %vm273_vm0, %v2586_v45, %v2554_v4  ;;  %v2968_v28 = vrot.slane %v2937_v1, 4  ;;  %v2969_v50 = vrot.slane %v2938_v29, 2 }
 0x34d   :  { %v2982_v36 = vsel %vm2017_vm7, %v2935_v18, %v2967_v35  ;;  %v2599_v17 = vsel %vm2013_vm6, %v2587_v31, %v2588_v51  ;;  %v2602_v7 = vsel %vm273_vm0, %v2588_v51, %v2587_v31  ;;  %v2606_v23 = vsel %vm2011_vm5, %v2587_v31, %v2588_v51 }
 0x34e   :  { %v2610_v59 = vsel %vm2017_vm7, %v2587_v31, %v2588_v51  ;;  %v2600_v19 = vsel %vm2015_vm8, %v2598_v22, %v2599_v17  ;;  %v2603_v40 = vsel %vm2020_vm9, %v2601_v30, %v2602_v7  ;;  %v2607_v20 = vsel %vm2015_vm8, %v2606_v23, %v2605_v39 }
 0x34f   :  { %v2611_v38 = vsel %vm2020_vm9, %v2610_v59, %v2609_v41  ;;  %v2604_v56 = vrot.slane %v2603_v40, 2  ;;  %v2608_v52 = vrot.slane %v2607_v20, 4  ;;  %2650 = vst [vmem:[#allocation1] ss:$4 sm:$0xff] %v2600_v19  ;;  %v11346_v2 = vrot.slane %v2075_v47, 9  ;;  %v1877_v19 = vpop.permute.xlu0 %1876 }
 0x350   :  { %v2612_v16 = vrot.slane %v2611_v38, 6  ;;  %v2983_v49 = vsel %vm273_vm0, %v2969_v50, %v2968_v28  ;;  %v2986_v60 = vsel %vm2013_vm6, %v2935_v18, %v2967_v35  ;;  %v2987_v10 = vsel %vm2011_vm5, %v2968_v28, %v2969_v50 }
 0x351   :  { %v2246_v13 = vmax.f32 %v2067_v6, %v11344_v15  ;;  %2652 = vst [vmem:[#allocation1 + $0x1] ss:$4 sm:$0xff] %v2604_v56  ;;  %v2979_v5 = vsel %vm2011_vm5, %v2935_v18, %v2967_v35  ;;  %v2980_v0 = vsel %vm2013_vm6, %v2968_v28, %v2969_v50  ;;  %v2984_v62 = vsel %vm2020_vm9, %v2982_v36, %v2983_v49 }
 0x352   :  { %v2247_v58 = vmax.f32 %v2071_v14, %v11345_v34  ;;  %v18154_v33 = vrot.slane %v17830_v48, 6  ;;  %v18159_v45 = vsel %vm2013_vm6, %v18122_v43, %v18116_v37  ;;  %v18164_v6 = vsel %vm273_vm0, %v18116_v37, %v18122_v43  ;;  %2654 = vst [vmem:[#allocation1 + $0x2] ss:$4 sm:$0xff] %v2608_v52 }
 0x353   :  { %v2988_v15 = vsel %vm2015_vm8, %v2987_v10, %v2986_v60  ;;  %2656 = vst [vmem:[#allocation1 + $0x3] ss:$4 sm:$0xff] %v2612_v16  ;;  %vm2544_vm4 = vcmask 522240   ;;  %v2248_v1 = vmax.f32 %v2075_v47, %v11346_v2  ;;  %v2354_v14 = vperm.slane %v18095_v46, 2 }
 0x354   :  { %v2355_v48 = vperm.slane %v18095_v46, 4  ;;  %v1960_v34 = vsel %vm1889_vm3, %v17711_v11, %v1879_v54  ;;  %v18172_v4 = vsel %vm2015_vm8, %v2979_v5, %v2980_v0  ;;  %v2985_v24 = vrot.slane %v2984_v62, 2 }
 0x355   :  { %v2990_v31 = vsel %vm273_vm0, %v2967_v35, %v2935_v18  ;;  %v2991_v29 = vsel %vm2017_vm7, %v2968_v28, %v2969_v50  ;;  %v2989_v51 = vrot.slane %v2988_v15, 4  ;;  %v2356_v22 = vperm.slane %v18095_v46, 6  ;;  %v11757_v46 = vld [vmem:[%s24323_s4 + $0x770] sm:$0xf]  ;;  %v15319_v28 = vld [vmem:[%s24323_s4 + $0x788] sm:$0xf0] }
 0x356   :  { %v2357_v30 = vperm.slane %v2246_v13, 0  ;;  %v2361_v47 = vperm.slane %v2247_v58, 0  ;;  %v2358_v39 = vperm.slane %v2246_v13, 2  ;;  %v2359_v41 = vperm.slane %v2246_v13, 4 }
 0x357   :  { %v2362_v36 = vperm.slane %v2247_v58, 2  ;;  %v2363_v17 = vperm.slane %v2247_v58, 4  ;;  %v2364_v7 = vperm.slane %v2247_v58, 6  ;;  %v2365_v23 = vperm.slane %v2248_v1, 0 }
 0x358   :  { %v2366_v11 = vperm.slane %v2248_v1, 2  ;;  %v2367_v59 = vperm.slane %v2248_v1, 4  ;;  %v2992_v40 = vsel %vm2020_vm9, %v2991_v29, %v2990_v31  ;;  %v2360_v20 = vperm.slane %v2246_v13, 6 }
 0x359   :  { %v2368_v35 = vperm.slane %v2248_v1, 6  ;;  %v2453_v18 = vsel %vm2425_vm14, %v2357_v30, %v18132_v3  ;;  %v2458_v50 = vsel %vm2423_vm13, %v2354_v14, %v18098_v12  ;;  %v2464_v38 = vsel %vm2423_vm13, %v2355_v48, %v18104_v26 }
 0x35a   :  { %v2470_v56 = vsel %vm2423_vm13, %v2356_v22, %v18119_v32  ;;  %v18193_v52 = vsel %vm2417_vm10, %v2365_v23, %v2361_v47  ;;  %2541 = vst [vmem:[#allocation2 + $0x20] sm:$0x7f] %v2453_v18  ;;  %v2459_v3 = vsel %vm2425_vm14, %v2358_v39, %v2458_v50  ;;  %v2465_v16 = vsel %vm2425_vm14, %v2359_v41, %v2464_v38 }
 0x35b   :  { %v2471_v2 = vsel %vm2425_vm14, %v2360_v20, %v2470_v56  ;;  %v18199_v49 = vsel %vm2417_vm10, %v2366_v11, %v2362_v36  ;;  %v18202_v12 = vsel %vm2417_vm10, %v2367_v59, %v2363_v17  ;;  %v18205_v26 = vsel %vm2417_vm10, %v2368_v35, %v2364_v7  ;;  %2542 = vst [vmem:[#allocation2 + $0x28] sm:$0x7f] %v2459_v3 }
 0x35c   :  { %v11758_v32 = vor.u32 %v15319_v28, %v11757_v46  ;;  %v1959_v60 = vsel %vm1889_vm3, %v17707_v8, %v1877_v19  ;;  %v18212_v10 = vsel %vm2011_vm5, %v18122_v43, %v18116_v37  ;;  %v18217_v13 = vsel %vm2017_vm7, %v18122_v43, %v18116_v37  ;;  %2543 = vst [vmem:[#allocation2 + $0x30] sm:$0x7f] %v2465_v16 }
 0x35d   :  { %v2007_v54 = vrot.slane %v1960_v34, 2  ;;  %v2004_v5 = vrot.slane %v1959_v60, 2  ;;  %v2993_v0 = vrot.slane %v2992_v40, 6  ;;  %v11359_v62 = vrot.slane %v18172_v4, 9  ;;  %2545 = vst.msk [vmem:[#allocation2 + $0x38] sm:$0x7f] %vm2544_vm4, %v2471_v2 }
 0x35e   :  { %v18220_v58 = vrot.slane %v2985_v24, 7  ;;  %v18222_v15 = vrot.slane %v2989_v51, 7  ;;  %4388 = vmatpush.bf16.msrb.mxu1 %v11758_v32  ;;  %vm24525_vm3 = vcmask 785408  }
 0x35f   :  { %v2092_v8 = vsel %vm2013_vm6, %v18113_v55, %v2007_v54  ;;  %v2095_v37 = vsel %vm273_vm0, %v2007_v54, %v18113_v55  ;;  %v2099_v43 = vsel %vm2011_vm5, %v18113_v55, %v2007_v54  ;;  %v2103_v1 = vsel %vm2017_vm7, %v18113_v55, %v2007_v54 }
 0x360   :  { %v2093_v14 = vsel %vm2015_vm8, %v17834_v9, %v2092_v8  ;;  %v2096_v48 = vsel %vm2020_vm9, %v17838_v57, %v2095_v37  ;;  %v18239_v34 = vsel %vm2015_vm8, %v2099_v43, %v17842_v44  ;;  %v18243_v24 = vsel %vm2020_vm9, %v2103_v1, %v17846_v53  ;;  %v1678_v53 = vpop.permute.xlu0 %1677 }
 0x361   :  { %v2097_v31 = vrot.slane %v2096_v48, 2  ;;  %v2077_v29 = vsel %vm2013_vm6, %v18110_v25, %v2004_v5  ;;  %v2080_v55 = vsel %vm273_vm0, %v2004_v5, %v18110_v25  ;;  %v2084_v9 = vsel %vm2011_vm5, %v18110_v25, %v2004_v5  ;;  %v2558_v36 = vld [vmem:[#allocation2 + $0x20] sm:$0x3f] }
 0x362   :  { %v18251_v51 = vrot.slane %v2993_v0, 7  ;;  %v2101_v57 = vrot.slane %v18239_v34, 4  ;;  %v11351_v44 = vrot.slane %v2093_v14, 9  ;;  %v18256_v22 = vsel %vm2015_vm8, %v17862_v27, %v2077_v29  ;;  %v2559_v17 = vld [vmem:[#allocation2 + $0x28] sm:$0x3f] }
 0x363   :  { %v11352_v30 = vrot.slane %v2097_v31, 9  ;;  %v18260_v47 = vsel %vm2020_vm9, %v17867_v61, %v2080_v55  ;;  %v18264_v39 = vsel %vm2015_vm8, %v2084_v9, %v17900_v63  ;;  %v2088_v41 = vsel %vm2017_vm7, %v18110_v25, %v2004_v5  ;;  %v2940_v7 = vld [vmem:[#allocation2 + $0x28] sm:$0x7f]  ;;  %v1699_v61 = vpop.permute.xlu1 %1698  ;;  %v2560_v59 = vld [vmem:[#allocation2 + $0x30] sm:$0x3f] }
 0x364   :  { %v2105_v23 = vrot.slane %v18243_v24, 6  ;;  %v11353_v27 = vrot.slane %v2101_v57, 9  ;;  %v18273_v11 = vsel %vm2020_vm9, %v2088_v41, %v17904_v42  ;;  %v1904_v63 = vsel %vm1897_vm2, %v18128_v21, %v1678_v53  ;;  %v2941_v40 = vld [vmem:[#allocation2 + $0x30] sm:$0x7f]  ;;  %v2561_v18 = vld [vmem:[#allocation2 + $0x38] sm:$0x3f] }
 0x365   :  { %v2589_v19 = vrot.slane %v2559_v17, 6  ;;  %v2970_v25 = vrot.slane %v2940_v7, 6  ;;  %v18277_v20 = vmax.f32 %v2093_v14, %v11351_v44  ;;  %v18280_v35 = vsel %vm24525_vm3, %v1904_v63, %v1699_v61  ;;  %v2942_v28 = vld [vmem:[#allocation2 + $0x38] sm:$0x7f]  ;;  %v2939_v2 = vld [vmem:[#allocation2 + $0x20] sm:$0x7f] }
 0x366   :  { %v2590_v46 = vrot.slane %v2560_v59, 4  ;;  %v2971_v50 = vrot.slane %v2941_v40, 4  ;;  %v18282_v38 = vmax.f32 %v2097_v31, %v11352_v30  ;;  %v18287_v42 = vsel %vm2011_vm5, %v18280_v35, %v18154_v33 }
 0x367   :  { %v2591_v21 = vrot.slane %v2561_v18, 2  ;;  %v2613_v56 = vsel %vm2011_vm5, %v2558_v36, %v2589_v19  ;;  %v2616_v3 = vsel %vm2017_vm7, %v2558_v36, %v2589_v19  ;;  %v2620_v16 = vsel %vm2013_vm6, %v2558_v36, %v2589_v19 }
 0x368   :  { %v2972_v32 = vrot.slane %v2942_v28, 2  ;;  %v2994_v60 = vsel %vm2011_vm5, %v2939_v2, %v2970_v25  ;;  %v2997_v54 = vsel %vm2017_vm7, %v2939_v2, %v2970_v25  ;;  %v3001_v5 = vsel %vm2013_vm6, %v2939_v2, %v2970_v25 }
 0x369   :  { %v2614_v0 = vsel %vm2013_vm6, %v2590_v46, %v2591_v21  ;;  %v2617_v8 = vsel %vm273_vm0, %v2591_v21, %v2590_v46  ;;  %v2621_v37 = vsel %vm2011_vm5, %v2590_v46, %v2591_v21  ;;  %v3005_v43 = vsel %vm273_vm0, %v2970_v25, %v2939_v2 }
 0x36a   :  { %v2615_v1 = vsel %vm2015_vm8, %v2613_v56, %v2614_v0  ;;  %v2618_v14 = vsel %vm2020_vm9, %v2616_v3, %v2617_v8  ;;  %v2622_v48 = vsel %vm2015_vm8, %v2621_v37, %v2620_v16  ;;  %v2995_v24 = vsel %vm2013_vm6, %v2971_v50, %v2972_v32 }
 0x36b   :  { %v2619_v31 = vrot.slane %v2618_v14, 2  ;;  %v2623_v29 = vrot.slane %v2622_v48, 4  ;;  %2658 = vst [vmem:[#allocation1 + $0x20] ss:$4 sm:$0xff] %v2615_v1  ;;  %v18304_v55 = vsel %vm2015_vm8, %v2994_v60, %v2995_v24  ;;  %v2998_v9 = vsel %vm273_vm0, %v2972_v32, %v2971_v50 }
 0x36c   :  { %v2999_v44 = vsel %vm2020_vm9, %v2997_v54, %v2998_v9  ;;  %v3002_v53 = vsel %vm2011_vm5, %v2971_v50, %v2972_v32  ;;  %v3006_v30 = vsel %vm2017_vm7, %v2971_v50, %v2972_v32  ;;  %v3054_v41 = vrot.slane %v18304_v55, 7 }
 0x36d   :  { %2660 = vst [vmem:[#allocation1 + $0x21] ss:$4 sm:$0xff] %v2619_v31  ;;  %v3000_v36 = vrot.slane %v2999_v44, 2  ;;  %v3003_v17 = vsel %vm2015_vm8, %v3002_v53, %v3001_v5  ;;  %v18313_v7 = vsel %vm2020_vm9, %v3006_v30, %v3005_v43  ;;  %v11354_v61 = vrot.slane %v2105_v23, 9 }
 0x36e   :  { %v3047_v63 = vrot.slane %v18220_v58, 2  ;;  %v3050_v59 = vrot.slane %v18222_v15, 2  ;;  %2662 = vst [vmem:[#allocation1 + $0x22] ss:$4 sm:$0xff] %v2623_v29  ;;  %v3004_v19 = vrot.slane %v3003_v17, 4  ;;  %v2255_v40 = vmax.f32 %v2101_v57, %v11353_v27 }
 0x36f   :  { %v18322_v18 = vrot.slane %v3054_v41, 2  ;;  %v18324_v46 = vrot.slane %v3000_v36, 7  ;;  %v18329_v21 = vmax.f32 %v2105_v23, %v11354_v61  ;;  %v2385_v56 = vperm.slane %v18277_v20, 0 }
 0x370   :  { %v18327_v50 = vrot.slane %v3004_v19, 7  ;;  %v2386_v3 = vperm.slane %v18277_v20, 2  ;;  %v2387_v34 = vperm.slane %v18277_v20, 4  ;;  %v2389_v57 = vperm.slane %v18282_v38, 0 }
 0x371   :  { %v2390_v27 = vperm.slane %v18282_v38, 2  ;;  %v2391_v16 = vperm.slane %v18282_v38, 4  ;;  %v2388_v2 = vperm.slane %v18277_v20, 6  ;;  %v2392_v32 = vperm.slane %v18282_v38, 6 }
 0x372   :  { %v2393_v60 = vperm.slane %v2255_v40, 0  ;;  %v2394_v54 = vperm.slane %v2255_v40, 2  ;;  %v2395_v0 = vperm.slane %v2255_v40, 4  ;;  %v2396_v8 = vperm.slane %v2255_v40, 6 }
 0x373   :  { %v2397_v37 = vperm.slane %v18329_v21, 0  ;;  %v2398_v43 = vperm.slane %v18329_v21, 2  ;;  %v2399_v1 = vperm.slane %v18329_v21, 4  ;;  %v2400_v14 = vperm.slane %v18329_v21, 6  ;;  %v12235_v21 = vld [vmem:[%s24323_s4 + $0xb44] sm:$0xf0] }
 0x374   :  { %v18346_v48 = vsel %vm2447_vm1, %v2393_v60, %v2389_v57  ;;  %v18349_v38 = vsel %vm2447_vm1, %v2394_v54, %v2390_v27  ;;  %v18352_v24 = vsel %vm2447_vm1, %v2395_v0, %v2391_v16  ;;  %v18355_v31 = vsel %vm2447_vm1, %v2396_v8, %v2392_v32 }
 0x375   :  { %v2082_v29 = vrot.slane %v18260_v47, 2  ;;  %v2086_v9 = vrot.slane %v18264_v39, 4  ;;  %v2090_v44 = vrot.slane %v18273_v11, 6  ;;  %v11347_v53 = vrot.slane %v18256_v22, 9 }
 0x376   :  { %v2108_v30 = vsel %vm2015_vm8, %v18287_v42, %v18159_v45  ;;  %v2109_v36 = vsel %vm2017_vm7, %v18280_v35, %v18154_v33  ;;  %v2113_v17 = vsel %vm2013_vm6, %v18280_v35, %v18154_v33  ;;  %v2117_v47 = vsel %vm273_vm0, %v18154_v33, %v18280_v35  ;;  %v11729_v45 = vld [vmem:[%s24323_s4 + $0x738] sm:$0xf]  ;;  %v15312_v42 = vld [vmem:[%s24323_s4 + $0x750] sm:$0xf0] }
 0x377   :  { %v11348_v39 = vrot.slane %v2082_v29, 9  ;;  %v11349_v11 = vrot.slane %v2086_v9, 9  ;;  %v11350_v61 = vrot.slane %v2090_v44, 9  ;;  %v2249_v19 = vmax.f32 %v18256_v22, %v11347_v53 }
 0x378   :  { %v18382_v40 = vsel %vm2020_vm9, %v2109_v36, %v18164_v6  ;;  %v18386_v33 = vsel %vm2015_vm8, %v18212_v10, %v2113_v17  ;;  %v18390_v35 = vsel %vm2020_vm9, %v18217_v13, %v2117_v47  ;;  %v11355_v22 = vrot.slane %v2108_v30, 9 }
 0x379   :  { %v2250_v57 = vmax.f32 %v2082_v29, %v11348_v39  ;;  %v2251_v27 = vmax.f32 %v2086_v9, %v11349_v11  ;;  %v2252_v16 = vmax.f32 %v2090_v44, %v11350_v61  ;;  %v2369_v32 = vperm.slane %v2249_v19, 0 }
 0x37a   :  { %v2370_v60 = vperm.slane %v2249_v19, 2  ;;  %v2371_v54 = vperm.slane %v2249_v19, 4  ;;  %v2372_v0 = vperm.slane %v2249_v19, 6  ;;  %v11730_v8 = vor.u32 %v15312_v42, %v11729_v45 }
 0x37b   :  { %v2373_v53 = vperm.slane %v2250_v57, 0  ;;  %v2374_v6 = vperm.slane %v2250_v57, 2  ;;  %v2375_v36 = vperm.slane %v2250_v57, 4  ;;  %v2376_v5 = vperm.slane %v2250_v57, 6 }
 0x37c   :  { %v2377_v28 = vperm.slane %v2251_v27, 0  ;;  %v2378_v10 = vperm.slane %v2251_v27, 2  ;;  %v2379_v17 = vperm.slane %v2251_v27, 4  ;;  %v2380_v23 = vperm.slane %v2251_v27, 6  ;;  %4389 = vmatpush.bf16.msrb.mxu1 %v11730_v8 }
 0x37d   :  { %v2381_v13 = vperm.slane %v2252_v16, 0  ;;  %v2382_v47 = vperm.slane %v2252_v16, 2  ;;  %v2383_v25 = vperm.slane %v2252_v16, 4  ;;  %v2384_v29 = vperm.slane %v2252_v16, 6 }
 0x37e   :  { %v2473_v9 = vsel %vm2419_vm11, %v2369_v32, %v18193_v52  ;;  %v2479_v44 = vsel %vm2419_vm11, %v2370_v60, %v18199_v49  ;;  %v2485_v39 = vsel %vm2419_vm11, %v2371_v54, %v18202_v12  ;;  %v2491_v11 = vsel %vm2419_vm11, %v2372_v0, %v18205_v26 }
 0x37f   :  { %v2474_v61 = vsel %vm2421_vm12, %v2373_v53, %v2473_v9  ;;  %v2480_v19 = vsel %vm2421_vm12, %v2374_v6, %v2479_v44  ;;  %v2486_v45 = vsel %vm2421_vm12, %v2375_v36, %v2485_v39  ;;  %v2492_v42 = vsel %vm2421_vm12, %v2376_v5, %v2491_v11  ;;  %v11981_v36 = vld [vmem:[%s24323_s4 + $0x930] sm:$0xf]  ;;  %v15431_v44 = vld [vmem:[%s24323_s4 + $0xb08] sm:$0xf0] }
 0x380   :  { %v2475_v57 = vsel %vm2423_vm13, %v2377_v28, %v2474_v61  ;;  %v2481_v52 = vsel %vm2423_vm13, %v2378_v10, %v2480_v19  ;;  %v2487_v49 = vsel %vm2423_vm13, %v2379_v17, %v2486_v45  ;;  %v2493_v27 = vsel %vm2423_vm13, %v2380_v23, %v2492_v42  ;;  %v15375_v10 = vld [vmem:[%s24323_s4 + $0x948] sm:$0xf0]  ;;  %v12205_v17 = vld [vmem:[%s24323_s4 + $0xaf0] sm:$0xf] }
 0x381   :  { %v2476_v12 = vsel %vm2425_vm14, %v2381_v13, %v2475_v57  ;;  %v2482_v26 = vsel %vm2425_vm14, %v2382_v47, %v2481_v52  ;;  %v2488_v16 = vsel %vm2425_vm14, %v2383_v25, %v2487_v49  ;;  %v2494_v32 = vsel %vm2425_vm14, %v2384_v29, %v2493_v27  ;;  %v12009_v25 = vld [vmem:[%s24323_s4 + $0x968] sm:$0xf] }
 0x382   :  { %v2477_v5 = vsel %vm2427_vm15, %v2385_v56, %v2476_v12  ;;  %v2483_v28 = vsel %vm2427_vm15, %v2386_v3, %v2482_v26  ;;  %v2489_v23 = vsel %vm2427_vm15, %v2387_v34, %v2488_v16  ;;  %v2495_v60 = vsel %vm2427_vm15, %v2388_v2, %v2494_v32  ;;  %v15382_v56 = vld [vmem:[%s24323_s4 + $0x980] sm:$0xf0] }
 0x383   :  { %2546 = vst [vmem:[#allocation2 + $0x40] sm:$0xfe] %v2477_v5  ;;  %v2112_v54 = vrot.slane %v18382_v40, 2  ;;  %v2116_v3 = vrot.slane %v18386_v33, 4  ;;  %v2120_v0 = vrot.slane %v18390_v35, 6  ;;  %v2257_v34 = vmax.f32 %v2108_v30, %v11355_v22 }
 0x384   :  { %2547 = vst [vmem:[#allocation2 + $0x48] sm:$0xfe] %v2483_v28  ;;  %v2497_v20 = vsel %vm2417_vm10, %v2397_v37, %v18346_v48  ;;  %v2503_v2 = vsel %vm2417_vm10, %v2398_v43, %v18349_v38  ;;  %v2509_v40 = vsel %vm2417_vm10, %v2399_v1, %v18352_v24  ;;  %v2515_v30 = vsel %vm2417_vm10, %v2400_v14, %v18355_v31  ;;  %v12233_v33 = vld [vmem:[%s24323_s4 + $0xb28] sm:$0xf]  ;;  %v15438_v37 = vld [vmem:[%s24323_s4 + $0xb40] sm:$0xf0] }
 0x385   :  { %2548 = vst [vmem:[#allocation2 + $0x50] sm:$0xfe] %v2489_v23  ;;  %v11356_v43 = vrot.slane %v2112_v54, 9  ;;  %v11357_v48 = vrot.slane %v2116_v3, 9  ;;  %v11358_v38 = vrot.slane %v2120_v0, 9  ;;  %v2401_v35 = vperm.slane %v2257_v34, 0 }
 0x386   :  { %v15435_v1 = vld [vmem:[%s24323_s4 + $0xb2c] sm:$0xf]  ;;  %vm24526_vm15 = vcmask 523265   ;;  %v2402_v14 = vperm.slane %v2257_v34, 2  ;;  %v2403_v24 = vperm.slane %v2257_v34, 4  ;;  %v2404_v31 = vperm.slane %v2257_v34, 6 }
 0x387   :  { %2549 = vst.msk [vmem:[#allocation2 + $0x58] sm:$0xfe] %vm24526_vm15, %v2495_v60  ;;  %v12010_v22 = vor.u32 %v15382_v56, %v12009_v25  ;;  %v18462_v8 = vmax.f32 %v2112_v54, %v11356_v43  ;;  %v18464_v53 = vmax.f32 %v2116_v3, %v11357_v48  ;;  %v2498_v6 = vsel %vm2419_vm11, %v2401_v35, %v2497_v20 }
 0x388   :  { %v2504_v13 = vsel %vm2419_vm11, %v2402_v14, %v2503_v2  ;;  %v2510_v47 = vsel %vm2419_vm11, %v2403_v24, %v2509_v40  ;;  %v18479_v29 = vsel %vm2419_vm11, %v2404_v31, %v2515_v30  ;;  %v12234_v9 = vor.u32 %v15438_v37, %v12233_v33 }
 0x389   :  { %4406 = vmatpush.bf16.msrb.mxu2 %v12010_v22  ;;  %v2405_v39 = vperm.slane %v18462_v8, 0  ;;  %v2406_v11 = vperm.slane %v18462_v8, 2  ;;  %v2407_v61 = vperm.slane %v18462_v8, 4  ;;  %v2408_v19 = vperm.slane %v18462_v8, 6  ;;  %v12149_v8 = vld [vmem:[%s24323_s4 + $0xa80] sm:$0xf] }
 0x38a   :  { %v2409_v45 = vperm.slane %v18464_v53, 0  ;;  %4425 = vmatpush.bf16.msrb.mxu3 %v12234_v9  ;;  %v11982_v42 = vor.u32 %v15375_v10, %v11981_v36  ;;  %v12206_v57 = vor.u32 %v15431_v44, %v12205_v17  ;;  %v12238_v52 = vor.u32 %v15435_v1, %v12235_v21  ;;  %v2562_v5 = vld [vmem:[#allocation2 + $0x40] sm:$0xff]  ;;  %v18516_v10 = vld.sshfl [vmem:[#allocation1 + $0x10] sm:$0xff pattern:$0x73625140] }
 0x38b   :  { %v2563_v49 = vld [vmem:[#allocation2 + $0x48] sm:$0xff]  ;;  %v2410_v12 = vperm.slane %v18464_v53, 2  ;;  %v2499_v26 = vsel %vm2421_vm12, %v2405_v39, %v2498_v6  ;;  %v2505_v16 = vsel %vm2421_vm12, %v2406_v11, %v2504_v13  ;;  %v18493_v32 = vsel %vm2421_vm12, %v2407_v61, %v2510_v47  ;;  %v2943_v48 = vld [vmem:[#allocation2 + $0x40] sm:$0xfe] }
 0x38c   :  { %v2944_v27 = vld [vmem:[#allocation2 + $0x48] sm:$0xfe]  ;;  %v2564_v28 = vld [vmem:[#allocation2 + $0x50] sm:$0xff]  ;;  %v2592_v23 = vrot.slane %v2563_v49, 6  ;;  %v18495_v56 = vmax.f32 %v2120_v0, %v11358_v38  ;;  %v18498_v54 = vsel %vm2423_vm13, %v2409_v45, %v2499_v26  ;;  %4501 = vmatpush.bf16.msra.mxu0 %v12238_v52  ;;  %v2411_v40 = vperm.slane %v18464_v53, 4 }
 0x38d   :  { %v2945_v60 = vld [vmem:[#allocation2 + $0x50] sm:$0xfe]  ;;  %v2973_v25 = vrot.slane %v2944_v27, 6  ;;  %4407 = vmatpush.bf16.msrb.mxu2 %v11982_v42  ;;  %v2593_v34 = vrot.slane %v2564_v28, 4  ;;  %v2506_v30 = vsel %vm2423_vm13, %v2410_v12, %v2505_v16  ;;  %v2412_v49 = vperm.slane %v18464_v53, 6 }
 0x38e   :  { %v2565_v3 = vld [vmem:[#allocation2 + $0x58] sm:$0xff]  ;;  %v2974_v2 = vrot.slane %v2945_v60, 4  ;;  %v2624_v37 = vsel %vm2011_vm5, %v2562_v5, %v2592_v23  ;;  %v2627_v43 = vsel %vm2017_vm7, %v2562_v5, %v2592_v23  ;;  %v2631_v0 = vsel %vm2013_vm6, %v2562_v5, %v2592_v23  ;;  %4426 = vmatpush.bf16.msrb.mxu3 %v12206_v57  ;;  %v18514_v36 = vld.sshfl [vmem:[#allocation1 + $0x8] sm:$0xff pattern:$0x73625140] }
 0x38f   :  { %v2946_v20 = vld [vmem:[#allocation2 + $0x58] sm:$0xfe]  ;;  %v2594_v33 = vrot.slane %v2565_v3, 2  ;;  %v2635_v38 = vsel %vm273_vm0, %v2592_v23, %v2562_v5  ;;  %v3009_v1 = vsel %vm2011_vm5, %v2943_v48, %v2973_v25  ;;  %v3012_v21 = vsel %vm2017_vm7, %v2943_v48, %v2973_v25  ;;  %v18523_v45 = vld.sshfl [vmem:[#allocation1 + $0x18] sm:$0xff pattern:$0x73625140] }
 0x390   :  { %v2975_v35 = vrot.slane %v2946_v20, 2  ;;  %v18512_v6 = vld.sshfl [vmem:[#allocation1] sm:$0xff pattern:$0x73625140]  ;;  %v3016_v57 = vsel %vm2013_vm6, %v2943_v48, %v2973_v25  ;;  %v3020_v26 = vsel %vm273_vm0, %v2973_v25, %v2943_v48  ;;  %v15305_v28 = vld [vmem:[%s24323_s4 + $0x718] sm:$0xf0] }
 0x391   :  { %v2625_v14 = vsel %vm2013_vm6, %v2593_v34, %v2594_v33  ;;  %v2628_v24 = vsel %vm273_vm0, %v2594_v33, %v2593_v34  ;;  %v2632_v31 = vsel %vm2011_vm5, %v2593_v34, %v2594_v33  ;;  %v2636_v22 = vsel %vm2017_vm7, %v2593_v34, %v2594_v33  ;;  %v11701_v5 = vld [vmem:[%s24323_s4 + $0x700] sm:$0xf]  ;;  %v15428_v53 = vld [vmem:[%s24323_s4 + $0xaf4] sm:$0xf]  ;;  %v12207_v60 = vld [vmem:[%s24323_s4 + $0xb0c] sm:$0xf0] }
 0x392   :  { %v2626_v17 = vsel %vm2015_vm8, %v2624_v37, %v2625_v14  ;;  %v2629_v13 = vsel %vm2020_vm9, %v2627_v43, %v2628_v24  ;;  %v2633_v47 = vsel %vm2015_vm8, %v2632_v31, %v2631_v0  ;;  %v2637_v9 = vsel %vm2020_vm9, %v2636_v22, %v2635_v38  ;;  %v11953_v25 = vld [vmem:[%s24323_s4 + $0x8f8] sm:$0xf]  ;;  %v15368_v3 = vld [vmem:[%s24323_s4 + $0x910] sm:$0xf0] }
 0x393   :  { %v2630_v44 = vrot.slane %v2629_v13, 2  ;;  %v2634_v39 = vrot.slane %v2633_v47, 4  ;;  %v2638_v11 = vrot.slane %v2637_v9, 6  ;;  %2664 = vst [vmem:[#allocation1 + $0x23] ss:$4 sm:$0xff] %v2626_v17  ;;  %v3010_v61 = vsel %vm2013_vm6, %v2974_v2, %v2975_v35 }
 0x394   :  { %v3013_v42 = vsel %vm273_vm0, %v2975_v35, %v2974_v2  ;;  %v3017_v52 = vsel %vm2011_vm5, %v2974_v2, %v2975_v35  ;;  %v3021_v16 = vsel %vm2017_vm7, %v2974_v2, %v2975_v35  ;;  %v18540_v23 = vsel %vm2015_vm8, %v3009_v1, %v3010_v61  ;;  %v12177_v34 = vld [vmem:[%s24323_s4 + $0xab8] sm:$0xf]  ;;  %v15424_v20 = vld [vmem:[%s24323_s4 + $0xad0] sm:$0xf0]  ;;  %v11673_v35 = vld [vmem:[%s24323_s4 + $0x6c8] sm:$0xf] }
 0x395   :  { %v3014_v27 = vsel %vm2020_vm9, %v3012_v21, %v3013_v42  ;;  %v3018_v12 = vsel %vm2015_vm8, %v3017_v52, %v3016_v57  ;;  %2673 = vst [vmem:[#allocation1] ss:$4 sm:$0xff] %v2630_v44  ;;  %v3022_v2 = vsel %vm2020_vm9, %v3021_v16, %v3020_v26  ;;  %v2413_v33 = vperm.slane %v18495_v56, 0  ;;  %v15421_v1 = vld [vmem:[%s24323_s4 + $0xabc] sm:$0xf] }
 0x396   :  { %2674 = vst [vmem:[#allocation1 + $0x1] ss:$4 sm:$0xff] %v2634_v39  ;;  %v2414_v37 = vperm.slane %v18495_v56, 2  ;;  %v2415_v43 = vperm.slane %v18495_v56, 4  ;;  %v3015_v0 = vrot.slane %v3014_v27, 2  ;;  %v3019_v48 = vrot.slane %v3018_v12, 4 }
 0x397   :  { %2675 = vst [vmem:[#allocation1 + $0x2] ss:$4 sm:$0xff] %v2638_v11  ;;  %v2512_v38 = vsel %vm2423_vm13, %v2411_v40, %v18493_v32  ;;  %v11361_v21 = vrot.slane %v18540_v23, 9  ;;  %v2501_v14 = vsel %vm2425_vm14, %v2413_v33, %v18498_v54  ;;  %v15298_v32 = vld [vmem:[%s24323_s4 + $0x6e0] sm:$0xf0]  ;;  %v3023_v22 = vrot.slane %v3022_v2, 6 }
 0x398   :  { %v2507_v24 = vsel %vm2425_vm14, %v2414_v37, %v2506_v30  ;;  %v2513_v31 = vsel %vm2425_vm14, %v2415_v43, %v2512_v38  ;;  %v12179_v40 = vld [vmem:[%s24323_s4 + $0xad4] sm:$0xf0]  ;;  %v2416_v17 = vperm.slane %v18495_v56, 6  ;;  %v2517_v54 = vsel %vm2421_vm12, %v2408_v19, %v18479_v29  ;;  %v11925_v30 = vld [vmem:[%s24323_s4 + $0x8c0] sm:$0xf] }
 0x399   :  { %v11702_v13 = vor.u32 %v15305_v28, %v11701_v5  ;;  %v15361_v47 = vld [vmem:[%s24323_s4 + $0x8d8] sm:$0xf0]  ;;  %v2518_v9 = vsel %vm2423_vm13, %v2412_v49, %v2517_v54  ;;  %v12210_v44 = vor.u32 %v15428_v53, %v12207_v60  ;;  %v11954_v39 = vor.u32 %v15368_v3, %v11953_v25  ;;  %2550 = vst [vmem:[#allocation2 + $0x60] sm:$0x7f] %v2501_v14  ;;  %v11645_v57 = vld [vmem:[%s24323_s4 + $0x690] sm:$0xf] }
 0x39a   :  { %v12178_v11 = vor.u32 %v15424_v20, %v12177_v34  ;;  %v15417_v29 = vld [vmem:[%s24323_s4 + $0xa98] sm:$0xf0]  ;;  %v18601_v19 = vrot.slane %v3015_v0, 7  ;;  %v18603_v56 = vrot.slane %v3019_v48, 7  ;;  %v2519_v61 = vsel %vm2425_vm14, %v2416_v17, %v2518_v9  ;;  %v15414_v52 = vld [vmem:[%s24323_s4 + $0xa84] sm:$0xf] }
 0x39b   :  { %4390 = vmatpush.bf16.msrb.mxu1 %v11702_v13  ;;  %v11674_v42 = vor.u32 %v15298_v32, %v11673_v35  ;;  %2551 = vst [vmem:[#allocation2 + $0x68] sm:$0x7f] %v2507_v24  ;;  %4502 = vmatpush.bf16.msra.mxu0 %v12210_v44  ;;  %v15291_v49 = vld [vmem:[%s24323_s4 + $0x6a8] sm:$0xf0]  ;;  %v12182_v27 = vor.u32 %v15421_v1, %v12179_v40  ;;  %v12151_v26 = vld [vmem:[%s24323_s4 + $0xa9c] sm:$0xf0] }
 0x39c   :  { %4408 = vmatpush.bf16.msrb.mxu2 %v11954_v39  ;;  %v11926_v12 = vor.u32 %v15361_v47, %v11925_v30  ;;  %vm3039_vm11 = vcmask 1040384   ;;  %2552 = vst [vmem:[#allocation2 + $0x70] sm:$0x7f] %v2513_v31  ;;  %4427 = vmatpush.bf16.msrb.mxu3 %v12178_v11  ;;  %v12150_v16 = vor.u32 %v15417_v29, %v12149_v8  ;;  %v11897_v5 = vld [vmem:[%s24323_s4 + $0x888] sm:$0xf]  ;;  %v3069_v25 = vrot.slane %v18601_v19, 2 }
 0x39d   :  { %v15354_v28 = vld [vmem:[%s24323_s4 + $0x8a0] sm:$0xf0]  ;;  %2553 = vst.msk [vmem:[#allocation2 + $0x78] sm:$0x7f] %vm2544_vm4, %v2519_v61  ;;  %v12121_v53 = vld [vmem:[%s24323_s4 + $0xa48] sm:$0xf]  ;;  %v11646_v20 = vor.u32 %v15291_v49, %v11645_v57  ;;  %v12154_v33 = vor.u32 %v15414_v52, %v12151_v26  ;;  %vm18692_vm4 = vmor %vm3039_vm11, %vm2417_vm10 }
 0x39e   :  { %v15410_v60 = vld [vmem:[%s24323_s4 + $0xa60] sm:$0xf0]  ;;  %v3072_v3 = vrot.slane %v18603_v56, 2  ;;  %v18633_v34 = vrot.slane %v3023_v22, 7  ;;  %v11617_v2 = vld [vmem:[%s24323_s4 + $0x658] sm:$0xf]  ;;  %v11898_v43 = vor.u32 %v15354_v28, %v11897_v5  ;;  %vm18744_vm10 = vmor %vm18692_vm4, %vm2421_vm12 }
 0x39f   :  { %4391 = vmatpush.bf16.msrb.mxu1 %v11674_v42  ;;  %4503 = vmatpush.bf16.msra.mxu0 %v12182_v27  ;;  %v15284_v37 = vld [vmem:[%s24323_s4 + $0x670] sm:$0xf0]  ;;  %v15407_v0 = vld [vmem:[%s24323_s4 + $0xa4c] sm:$0xf]  ;;  %v12123_v48 = vld [vmem:[%s24323_s4 + $0xa64] sm:$0xf0]  ;;  %v12122_v38 = vor.u32 %v15410_v60, %v12121_v53 }
 0x3a0   :  { %4409 = vmatpush.bf16.msrb.mxu2 %v11926_v12  ;;  %4428 = vmatpush.bf16.msrb.mxu3 %v12150_v16  ;;  %v11869_v35 = vld [vmem:[%s24323_s4 + $0x850] sm:$0xf]  ;;  %v15347_v1 = vld [vmem:[%s24323_s4 + $0x868] sm:$0xf0]  ;;  %v18662_v31 = vld [vmem:[%s24323_s4 + $0xa14] sm:$0xf]  ;;  %v11618_v54 = vor.u32 %v15284_v37, %v11617_v2  ;;  %v12126_v44 = vor.u32 %v15407_v0, %v12123_v48 }
 0x3a1   :  { %v12093_v14 = vld [vmem:[%s24323_s4 + $0xa10] sm:$0xf]  ;;  %v15403_v24 = vld [vmem:[%s24323_s4 + $0xa28] sm:$0xf0]  ;;  %v11870_v61 = vor.u32 %v15347_v1, %v11869_v35  ;;  %v15277_v35 = vld [vmem:[%s24323_s4 + $0x638] sm:$0xf0] }
 0x3a2   :  { %v18667_v32 = vld [vmem:[%s24323_s4 + $0xa2c] sm:$0xf0]  ;;  %v2566_v40 = vld [vmem:[#allocation2 + $0x60] sm:$0x3f]  ;;  %v12094_v42 = vor.u32 %v15403_v24, %v12093_v14  ;;  %vm18773_vm12 = vmor %vm18744_vm10, %vm2425_vm14  ;;  %v3075_v4 = vrot.slane %v18633_v34, 2 }
 0x3a3   :  { %v2567_v22 = vld [vmem:[#allocation2 + $0x68] sm:$0x3f]  ;;  %4392 = vmatpush.bf16.msrb.mxu1 %v11646_v20  ;;  %v2568_v13 = vld [vmem:[#allocation2 + $0x70] sm:$0x3f]  ;;  %4504 = vmatpush.bf16.msra.mxu0 %v12154_v33  ;;  %v2947_v12 = vld [vmem:[#allocation2 + $0x60] sm:$0x7f]  ;;  %v12098_v2 = vor.u32 %v18662_v31, %v18667_v32 }
 0x3a4   :  { %v2948_v17 = vld [vmem:[#allocation2 + $0x68] sm:$0x7f]  ;;  %v2595_v30 = vrot.slane %v2567_v22, 6  ;;  %v2949_v47 = vld [vmem:[#allocation2 + $0x70] sm:$0x7f]  ;;  %4410 = vmatpush.bf16.msrb.mxu2 %v11898_v43  ;;  %v2596_v11 = vrot.slane %v2568_v13, 4  ;;  %4429 = vmatpush.bf16.msrb.mxu3 %v12122_v38 }
 0x3a5   :  { %v18669_v9 = vrot.slane %v2948_v17, 6  ;;  %v2569_v39 = vld [vmem:[#allocation2 + $0x78] sm:$0x3f]  ;;  %v18671_v29 = vrot.slane %v2949_v47, 4  ;;  %v11841_v32 = vld [vmem:[%s24323_s4 + $0x818] sm:$0xf] }
 0x3a6   :  { %v2950_v8 = vld [vmem:[#allocation2 + $0x78] sm:$0x7f]  ;;  %v2597_v57 = vrot.slane %v2569_v39, 2  ;;  %v2639_v52 = vsel %vm2011_vm5, %v2566_v40, %v2595_v30  ;;  %v2642_v49 = vsel %vm2017_vm7, %v2566_v40, %v2595_v30  ;;  %v2646_v27 = vsel %vm2013_vm6, %v2566_v40, %v2595_v30  ;;  %v18678_v16 = vld.sshfl [vmem:[#allocation1 + $0x28] sm:$0xff pattern:$0x73625140] }
 0x3a7   :  { %v18676_v26 = vld.sshfl [vmem:[#allocation1 + $0x20] sm:$0xff pattern:$0x73625140]  ;;  %v18680_v5 = vld.sshfl [vmem:[#allocation1 + $0x30] sm:$0xff pattern:$0x73625140]  ;;  %v3024_v60 = vsel %vm2011_vm5, %v2947_v12, %v18669_v9  ;;  %v3027_v20 = vsel %vm2017_vm7, %v2947_v12, %v18669_v9  ;;  %4393 = vmatpush.bf16.msrb.mxu1 %v11618_v54  ;;  %v3031_v48 = vsel %vm2013_vm6, %v2947_v12, %v18669_v9  ;;  %4505 = vmatpush.bf16.msra.mxu0 %v12126_v44 }
 0x3a8   :  { %v18682_v28 = vld.sshfl [vmem:[#allocation1 + $0x38] sm:$0xff pattern:$0x73625140]  ;;  %v2978_v53 = vrot.slane %v2950_v8, 2  ;;  %v2640_v37 = vsel %vm2013_vm6, %v2596_v11, %v2597_v57  ;;  %v2643_v43 = vsel %vm273_vm0, %v2597_v57, %v2596_v11  ;;  %v2647_v0 = vsel %vm2011_vm5, %v2596_v11, %v2597_v57  ;;  %v11589_v38 = vld [vmem:[%s24323_s4 + $0x620] sm:$0xf]  ;;  %4411 = vmatpush.bf16.msrb.mxu2 %v11870_v61  ;;  %4430 = vmatpush.bf16.msrb.mxu3 %v12094_v42 }
 0x3a9   :  { %v2641_v1 = vsel %vm2015_vm8, %v2639_v52, %v2640_v37  ;;  %v2644_v14 = vsel %vm2020_vm9, %v2642_v49, %v2643_v43  ;;  %v2648_v24 = vsel %vm2015_vm8, %v2647_v0, %v2646_v27  ;;  %v15340_v40 = vld [vmem:[%s24323_s4 + $0x830] sm:$0xf0]  ;;  %v12065_v22 = vld [vmem:[%s24323_s4 + $0x9d8] sm:$0xf]  ;;  %v15393_v47 = vld [vmem:[%s24323_s4 + $0x9dc] sm:$0xf]  ;;  %v11590_v27 = vor.u32 %v15277_v35, %v11589_v38 }
 0x3aa   :  { %v3025_v31 = vsel %vm2013_vm6, %v18671_v29, %v2978_v53  ;;  %v15396_v17 = vld [vmem:[%s24323_s4 + $0x9f0] sm:$0xf0]  ;;  %v2645_v54 = vrot.slane %v2644_v14, 2  ;;  %v2649_v13 = vrot.slane %v2648_v24, 4  ;;  %2676 = vst [vmem:[#allocation1 + $0x3] ss:$4 sm:$0xff] %v2641_v1  ;;  %v3028_v30 = vsel %vm273_vm0, %v2978_v53, %v18671_v29 }
 0x3ab   :  { %v3029_v44 = vsel %vm2020_vm9, %v3027_v20, %v3028_v30  ;;  %v3032_v39 = vsel %vm2011_vm5, %v18671_v29, %v2978_v53  ;;  %v12067_v11 = vld [vmem:[%s24323_s4 + $0x9f4] sm:$0xf0]  ;;  %v11813_v8 = vld [vmem:[%s24323_s4 + $0x7e0] sm:$0xf]  ;;  %v15333_v61 = vld [vmem:[%s24323_s4 + $0x7f8] sm:$0xf0]  ;;  %v18749_v57 = vsel %vm2015_vm8, %v3024_v60, %v3025_v31  ;;  %4506 = vmatpush.bf16.msra.mxu0 %v12098_v2  ;;  %4394 = vmatpush.bf16.msrb.mxu1 %v11590_v27 }
 0x3ac   :  { %v3030_v52 = vrot.slane %v3029_v44, 2  ;;  %v3033_v49 = vsel %vm2015_vm8, %v3032_v39, %v3031_v48  ;;  %2677 = vst [vmem:[#allocation1 + $0x20] ss:$4 sm:$0xff] %v2645_v54  ;;  %v12037_v20 = vld [vmem:[%s24323_s4 + $0x9a0] sm:$0xf]  ;;  %v11842_v37 = vor.u32 %v15340_v40, %v11841_v32  ;;  %v12066_v43 = vor.u32 %v15396_v17, %v12065_v22 }
 0x3ad   :  { %2678 = vst [vmem:[#allocation1 + $0x21] ss:$4 sm:$0xff] %v2649_v13  ;;  %v15389_v33 = vld [vmem:[%s24323_s4 + $0x9b8] sm:$0xf0]  ;;  %v15386_v60 = vld [vmem:[%s24323_s4 + $0x9a4] sm:$0xf]  ;;  %v12070_v0 = vor.u32 %v15393_v47, %v12067_v11  ;;  %v3035_v14 = vsel %vm273_vm0, %v18669_v9, %v2947_v12  ;;  %v3036_v24 = vsel %vm2017_vm7, %v18671_v29, %v2978_v53  ;;  %v11814_v17 = vor.u32 %v15333_v61, %v11813_v8 }
 0x3ae   :  { %v12039_v2 = vld [vmem:[%s24323_s4 + $0x9bc] sm:$0xf0]  ;;  %v12345_v48 = vld [vmem:[%s24323_s4 + $0xc08] sm:$0xf]  ;;  %v15466_v38 = vld [vmem:[%s24323_s4 + $0xc20] sm:$0xf0]  ;;  %4412 = vmatpush.bf16.msrb.mxu2 %v11842_v37  ;;  %4431 = vmatpush.bf16.msrb.mxu3 %v12066_v43  ;;  %v12038_v54 = vor.u32 %v15389_v33, %v12037_v20  ;;  %v3046_v44 = vsel %vm18773_vm12, %v11359_v62, %v18220_v58  ;;  %v18810_v8 = vsel %vm2020_vm9, %v3036_v24, %v3035_v14 }
 0x3af   :  { %v3034_v1 = vrot.slane %v3033_v49, 4  ;;  %v3076_v31 = vrot.slane %v18749_v57, 7  ;;  %v15323_v32 = vld [vmem:[%s24323_s4 + $0x7ac] sm:$0xf]  ;;  %v11787_v40 = vld [vmem:[%s24323_s4 + $0x7c4] sm:$0xf0]  ;;  %v12346_v9 = vor.u32 %v15466_v38, %v12345_v48  ;;  %4507 = vmatpush.bf16.msra.mxu0 %v12070_v0  ;;  %v12042_v30 = vor.u32 %v15386_v60, %v12039_v2 }
 0x3b0   :  { %v18788_v22 = vrot.slane %v3030_v52, 7  ;;  %v15379_v29 = vld [vmem:[%s24323_s4 + $0x96c] sm:$0xf]  ;;  %v12011_v12 = vld [vmem:[%s24323_s4 + $0x984] sm:$0xf0]  ;;  %v11790_v47 = vor.u32 %v15323_v32, %v11787_v40  ;;  %v3049_v42 = vsel %vm18773_vm12, %v3047_v63, %v18222_v15  ;;  %v3052_v49 = vsel %vm18773_vm12, %v3050_v59, %v18251_v51 }
 0x3b1   :  { %v18796_v53 = vld.sshfl [vmem:[#allocation1] sm:$0xff pattern:$0x73625140]  ;;  %v18798_v13 = vld.sshfl [vmem:[#allocation1 + $0x8] sm:$0xff pattern:$0x73625140]  ;;  %4448 = vmatpush.bf16.msra.mxu1 %v12346_v9  ;;  %v12014_v61 = vor.u32 %v15379_v29, %v12011_v12 }
 0x3b2   :  { %v18805_v39 = vld.sshfl [vmem:[#allocation1 + $0x10] sm:$0xff pattern:$0x73625140]  ;;  %v18807_v11 = vld.sshfl [vmem:[#allocation1 + $0x18] sm:$0xff pattern:$0x73625140]  ;;  %4413 = vmatpush.bf16.msrb.mxu2 %v11814_v17  ;;  %4432 = vmatpush.bf16.msrb.mxu3 %v12038_v54 }
 0x3b3   :  { %v18818_v52 = vrot.slane %v3034_v1, 7  ;;  %3087 = vst [vmem:[#allocation1] ss:$4 sm:$0xff] %v3046_v44  ;;  %v12241_v62 = vld [vmem:[%s24323_s4 + $0xb30] sm:$0xf]  ;;  %v18830_v58 = vrot.slane %v3076_v31, 2  ;;  %4508 = vmatpush.bf16.msra.mxu0 %v12042_v30 }
 0x3b4   :  { %3089 = vst [vmem:[#allocation1 + $0x1] ss:$4 sm:$0xff] %v3049_v42  ;;  %v18832_v63 = vld.sshfl [vmem:[#allocation1 + $0x20] sm:$0xff pattern:$0x73625140]  ;;  %v24533_v27 = vrot.slane %v18251_v51, 2  ;;  %v3058_v51 = vsel %vm18773_vm12, %v18322_v18, %v18324_v46  ;;  %v3071_v42 = vsel %vm18773_vm12, %v3069_v25, %v18603_v56  ;;  %v3077_v56 = vsel %vm18773_vm12, %v3075_v4, %v3076_v31 }
 0x3b5   :  { %v11362_v15 = vrot.slane %v18810_v8, 13  ;;  %3091 = vst [vmem:[#allocation1 + $0x2] ss:$4 sm:$0xff] %v3052_v49  ;;  %v18841_v59 = vld.sshfl [vmem:[#allocation1 + $0x28] sm:$0xff pattern:$0x73625140] }
 0x3b6   :  { %v3055_v20 = vsel %vm18773_vm12, %v24533_v27, %v3054_v41  ;;  %4463 = vmatpush.bf16.msra.mxu2 %v11790_v47  ;;  %v3081_v33 = vrot.slane %v18788_v22, 2  ;;  %v18844_v60 = vld.sshfl [vmem:[#allocation1 + $0x30] sm:$0xff pattern:$0x73625140]  ;;  %4482 = vmatpush.bf16.msra.mxu3 %v12014_v61  ;;  %v3084_v55 = vrot.slane %v18818_v52, 2  ;;  %v24534_v43 = vrot.slane %v18324_v46, 2 }
 0x3b7   :  { %3093 = vst [vmem:[#allocation1 + $0x3] ss:$4 sm:$0xff] %v3055_v20  ;;  %v18851_v41 = vld.sshfl [vmem:[#allocation1 + $0x38] sm:$0xff pattern:$0x73625140]  ;;  %v24535_v38 = vrot.slane %v18313_v7, 13  ;;  %v3068_v7 = vsel %vm18773_vm12, %v11361_v21, %v18601_v19  ;;  %v3074_v27 = vsel %vm18773_vm12, %v3072_v3, %v18633_v34 }
 0x3b8   :  { %v15439_v37 = vld [vmem:[%s24323_s4 + $0xb48] sm:$0xf0]  ;;  %v3061_v0 = vsel %vm18773_vm12, %v24534_v43, %v18327_v50  ;;  %3095 = vst [vmem:[#allocation1 + $0x20] ss:$4 sm:$0xff] %v3058_v51  ;;  %v15316_v18 = vld [vmem:[%s24323_s4 + $0x774] sm:$0xf] }
 0x3b9   :  { %v12242_v2 = vor.u32 %v15439_v37, %v12241_v62  ;;  %v11759_v48 = vld [vmem:[%s24323_s4 + $0x78c] sm:$0xf0]  ;;  %v24536_v1 = vrot.slane %v18327_v50, 2  ;;  %3097 = vst [vmem:[#allocation1 + $0x21] ss:$4 sm:$0xff] %v3061_v0  ;;  %v3080_v0 = vsel %vm18773_vm12, %v18830_v58, %v18788_v22  ;;  %v3086_v22 = vsel %vm18773_vm12, %v3084_v55, %v11362_v15 }
 0x3ba   :  { %v11762_v14 = vor.u32 %v15316_v18, %v11759_v48  ;;  %v15372_v24 = vld [vmem:[%s24323_s4 + $0x934] sm:$0xf]  ;;  %v11983_v32 = vld [vmem:[%s24323_s4 + $0x94c] sm:$0xf0]  ;;  %v12213_v40 = vld [vmem:[%s24323_s4 + $0xaf8] sm:$0xf] }
 0x3bb   :  { %v3064_v46 = vsel %vm18773_vm12, %v24536_v1, %v24535_v38  ;;  %4577 = vmatpush.bf16.msrb.mxu0 %v12242_v2  ;;  %v11986_v50 = vor.u32 %v15372_v24, %v11983_v32  ;;  %v15432_v17 = vld [vmem:[%s24323_s4 + $0xb10] sm:$0xf0]  ;;  %3101 = vst [vmem:[#allocation1 + $0x23] ss:$4 sm:$0xff] %v3068_v7  ;;  %v12317_v23 = vld [vmem:[%s24323_s4 + $0xbd0] sm:$0xf]  ;;  %v3083_v38 = vsel %vm18773_vm12, %v3081_v33, %v18818_v52 }
 0x3bc   :  { %3099 = vst [vmem:[#allocation1 + $0x22] ss:$4 sm:$0xff] %v3064_v46  ;;  %4464 = vmatpush.bf16.msra.mxu2 %v11762_v14  ;;  %v12214_v54 = vor.u32 %v15432_v17, %v12213_v40  ;;  %v15459_v21 = vld [vmem:[%s24323_s4 + $0xbe8] sm:$0xf0]  ;;  %v15309_v29 = vld [vmem:[%s24323_s4 + $0x73c] sm:$0xf] }
 0x3bd   :  { %4483 = vmatpush.bf16.msra.mxu3 %v11986_v50  ;;  %v12318_v9 = vor.u32 %v15459_v21, %v12317_v23  ;;  %v11731_v12 = vld [vmem:[%s24323_s4 + $0x754] sm:$0xf0]  ;;  %v15365_v30 = vld [vmem:[%s24323_s4 + $0x8fc] sm:$0xf]  ;;  %v12185_v19 = vld [vmem:[%s24323_s4 + $0xac0] sm:$0xf] }
 0x3be   :  { %v3102_v47 = vld.sshfl [vmem:[#allocation1] sm:$0xff pattern:$0x73625140]  ;;  %v18905_v44 = vld.sshfl [vmem:[#allocation1 + $0x18] sm:$0xff pattern:$0x73625140]  ;;  %v11734_v61 = vor.u32 %v15309_v29, %v11731_v12 }
 0x3bf   :  { %v3103_v62 = vld.sshfl [vmem:[#allocation1 + $0x8] sm:$0xff pattern:$0x73625140]  ;;  %v3104_v49 = vld.sshfl [vmem:[#allocation1 + $0x10] sm:$0xff pattern:$0x73625140]  ;;  %4578 = vmatpush.bf16.msrb.mxu0 %v12214_v54  ;;  %4449 = vmatpush.bf16.msra.mxu1 %v12318_v9 }
 0x3c0   :  { %3110 = vst [vmem:[#allocation1] ss:$4 sm:$0xff] %v3071_v42  ;;  %4465 = vmatpush.bf16.msra.mxu2 %v11734_v61  ;;  %v11955_v20 = vld [vmem:[%s24323_s4 + $0x914] sm:$0xf0]  ;;  %v15425_v3 = vld [vmem:[%s24323_s4 + $0xad8] sm:$0xf0] }
 0x3c1   :  { %3111 = vst [vmem:[#allocation1 + $0x1] ss:$4 sm:$0xff] %v3074_v27  ;;  %v11958_v25 = vor.u32 %v15365_v30, %v11955_v20  ;;  %v15302_v51 = vld [vmem:[%s24323_s4 + $0x704] sm:$0xf]  ;;  %v12186_v37 = vor.u32 %v15425_v3, %v12185_v19  ;;  %v11703_v57 = vld [vmem:[%s24323_s4 + $0x71c] sm:$0xf0] }
 0x3c2   :  { %3112 = vst [vmem:[#allocation1 + $0x2] ss:$4 sm:$0xff] %v3077_v56  ;;  %v15358_v34 = vld [vmem:[%s24323_s4 + $0x8c4] sm:$0xf]  ;;  %v11706_v43 = vor.u32 %v15302_v51, %v11703_v57  ;;  %v11927_v58 = vld [vmem:[%s24323_s4 + $0x8dc] sm:$0xf0] }
 0x3c3   :  { %v3106_v31 = vld.sshfl [vmem:[#allocation1 + $0x20] sm:$0xff pattern:$0x73625140]  ;;  %v18941_v4 = vld.sshfl [vmem:[#allocation1 + $0x38] sm:$0xff pattern:$0x73625140]  ;;  %4484 = vmatpush.bf16.msra.mxu3 %v11958_v25  ;;  %4579 = vmatpush.bf16.msrb.mxu0 %v12186_v37  ;;  %v11930_v33 = vor.u32 %v15358_v34, %v11927_v58  ;;  %v19024_v34 = vpack.c.bf16 %v18680_v5, %v18516_v10 }
 0x3c4   :  { %v18947_v2 = vpack.c.bf16 %v3106_v31, %v3102_v47  ;;  %v3107_v18 = vld.sshfl [vmem:[#allocation1 + $0x28] sm:$0xff pattern:$0x73625140]  ;;  %v3108_v48 = vld.sshfl [vmem:[#allocation1 + $0x30] sm:$0xff pattern:$0x73625140]  ;;  %4466 = vmatpush.bf16.msra.mxu2 %v11706_v43  ;;  %v19028_v31 = vpack.c.bf16 %v18676_v26, %v18512_v6  ;;  %v19032_v43 = vpack.c.bf16 %v18678_v16, %v18514_v36 }
 0x3c5   :  { %v18954_v1 = vpack.c.bf16 %v3107_v18, %v3103_v62  ;;  %v18956_v46 = vpack.c.bf16 %v3108_v48, %v3104_v49  ;;  %3113 = vst [vmem:[#allocation1 + $0x3] ss:$4 sm:$0xff] %v3080_v0  ;;  %v12157_v14 = vld [vmem:[%s24323_s4 + $0xa88] sm:$0xf]  ;;  %v15418_v24 = vld [vmem:[%s24323_s4 + $0xaa0] sm:$0xf0] }
 0x3c6   :  { %4395 = vmatmul.bf16.vlgmr.msrb.gmra.mxu1 %v18947_v2  ;;  %3114 = vst [vmem:[#allocation1 + $0x20] ss:$4 sm:$0xff] %v3083_v38  ;;  %v12289_v32 = vld [vmem:[%s24323_s4 + $0xb98] sm:$0xf]  ;;  %v12158_v8 = vor.u32 %v15418_v24, %v12157_v14  ;;  %v15452_v35 = vld [vmem:[%s24323_s4 + $0xbb0] sm:$0xf0] }
 0x3c7   :  { %4414 = vmatmul.bf16.vlgmr.msrb.gmra.mxu2 %v18954_v1  ;;  %4433 = vmatmul.bf16.vlgmr.msrb.gmra.mxu3 %v18956_v46  ;;  %3115 = vst [vmem:[#allocation1 + $0x21] ss:$4 sm:$0xff] %v3086_v22  ;;  %v15295_v52 = vld [vmem:[%s24323_s4 + $0x6cc] sm:$0xf]  ;;  %v12290_v15 = vor.u32 %v15452_v35, %v12289_v32  ;;  %v11675_v55 = vld [vmem:[%s24323_s4 + $0x6e4] sm:$0xf0] }
 0x3c8   :  { %4509 = vmatmul.bf16.vlgmr.msra.gmra.mxu0 %v18956_v46  ;;  %4485 = vmatpush.bf16.msra.mxu3 %v11930_v33  ;;  %v15351_v7 = vld [vmem:[%s24323_s4 + $0x88c] sm:$0xf]  ;;  %v11899_v50 = vld [vmem:[%s24323_s4 + $0x8a4] sm:$0xf0]  ;;  %v11678_v40 = vor.u32 %v15295_v52, %v11675_v55  ;;  %v12129_v54 = vld [vmem:[%s24323_s4 + $0xa50] sm:$0xf] }
 0x3c9   :  { %4580 = vmatpush.bf16.msrb.mxu0 %v12158_v8  ;;  %v11902_v17 = vor.u32 %v15351_v7, %v11899_v50  ;;  %v15411_v23 = vld [vmem:[%s24323_s4 + $0xa68] sm:$0xf0]  ;;  %v15288_v21 = vld [vmem:[%s24323_s4 + $0x694] sm:$0xf]  ;;  %4450 = vmatpush.bf16.msra.mxu1 %v12290_v15  ;;  %v11647_v29 = vld [vmem:[%s24323_s4 + $0x6ac] sm:$0xf0] }
 0x3ca   :  { %v12130_v9 = vor.u32 %v15411_v23, %v12129_v54  ;;  %v15344_v12 = vld [vmem:[%s24323_s4 + $0x854] sm:$0xf]  ;;  %v11871_v30 = vld [vmem:[%s24323_s4 + $0x86c] sm:$0xf0]  ;;  %v6465_v47 = vld [vmem:[#allocation2] sm:$0xfc]  ;;  %4467 = vmatpush.bf16.msra.mxu2 %v11678_v40  ;;  %v11650_v61 = vor.u32 %v15288_v21, %v11647_v29  ;;  %v19082_v54 = vpack.c.bf16 %v18844_v60, %v18805_v39  ;;  %v19086_v23 = vpack.c.bf16 %v18832_v63, %v18796_v53 }
 0x3cb   :  { %v12101_v42 = vld [vmem:[%s24323_s4 + $0xa18] sm:$0xf]  ;;  %v15404_v62 = vld [vmem:[%s24323_s4 + $0xa30] sm:$0xf0]  ;;  %v6469_v49 = vld [vmem:[#allocation2 + $0x20] sm:$0xff]  ;;  %v11874_v19 = vor.u32 %v15344_v12, %v11871_v30  ;;  %v19090_v21 = vpack.c.bf16 %v18841_v59, %v18798_v13  ;;  %v19105_v13 = vpack.c.bf16 %v18851_v41, %v18807_v11 }
 0x3cc   :  { %v3116_v27 = vld.sshfl [vmem:[#allocation1] sm:$0xff pattern:$0x73625140]  ;;  %v3117_v20 = vld.sshfl [vmem:[#allocation1 + $0x8] sm:$0xff pattern:$0x73625140]  ;;  %4486 = vmatpush.bf16.msra.mxu3 %v11902_v17  ;;  %v12102_v51 = vor.u32 %v15404_v62, %v12101_v42 }
 0x3cd   :  { %v12261_v56 = vld [vmem:[%s24323_s4 + $0xb60] sm:$0xf]  ;;  %v6466_v25 = vld [vmem:[#allocation2 + $0x8] sm:$0xfc]  ;;  %4581 = vmatpush.bf16.msrb.mxu0 %v12130_v9  ;;  %v6467_v0 = vld [vmem:[#allocation2 + $0x10] sm:$0xfc] }
 0x3ce   :  { %6497 = vst.sshfl [vmem:[#allocation1] sm:$0xff pattern:$0x73625140] %v6465_v47  ;;  %v3118_v3 = vld.sshfl [vmem:[#allocation1 + $0x10] sm:$0xff pattern:$0x73625140]  ;;  %4468 = vmatpush.bf16.msra.mxu2 %v11650_v61 }
 0x3cf   :  { %v3120_v37 = vld.sshfl [vmem:[#allocation1 + $0x20] sm:$0xff pattern:$0x73625140]  ;;  %v3121_v57 = vld.sshfl [vmem:[#allocation1 + $0x28] sm:$0xff pattern:$0x73625140] }
 0x3d0   :  { %6501 = vst.sshfl [vmem:[#allocation1 + $0x20] sm:$0xff pattern:$0x73625140] %v6469_v49  ;;  %v3122_v18 = vld.sshfl [vmem:[#allocation1 + $0x30] sm:$0xff pattern:$0x73625140]  ;;  %4487 = vmatpush.bf16.msra.mxu3 %v11874_v19  ;;  %v19046_v58 = vpack.c.bf16 %v3120_v37, %v3116_v27  ;;  %v19057_v24 = vpack.c.bf16 %v3121_v57, %v3117_v20 }
 0x3d1   :  { %v6470_v48 = vld [vmem:[#allocation2 + $0x28] sm:$0xff]  ;;  %6498 = vst.sshfl [vmem:[#allocation1 + $0x8] sm:$0xff pattern:$0x73625140] %v6466_v25  ;;  %v15445_v10 = vld [vmem:[%s24323_s4 + $0xb78] sm:$0xf0]  ;;  %4582 = vmatpush.bf16.msrb.mxu0 %v12102_v51  ;;  %v19059_v32 = vpack.c.bf16 %v3122_v18, %v3118_v3 }
 0x3d2   :  { %6502 = vst.sshfl [vmem:[#allocation1 + $0x28] sm:$0xff pattern:$0x73625140] %v6470_v48  ;;  %v12262_v5 = vor.u32 %v15445_v10, %v12261_v56  ;;  %v15281_v6 = vld [vmem:[%s24323_s4 + $0x65c] sm:$0xf] }
 0x3d3   :  { %v6471_v36 = vld [vmem:[#allocation2 + $0x30] sm:$0xff]  ;;  %6499 = vst.sshfl [vmem:[#allocation1 + $0x10] sm:$0xff pattern:$0x73625140] %v6467_v0  ;;  %v12073_v22 = vld [vmem:[%s24323_s4 + $0x9e0] sm:$0xf] }
 0x3d4   :  { %v11619_v26 = vld [vmem:[%s24323_s4 + $0x674] sm:$0xf0]  ;;  %6503 = vst.sshfl [vmem:[#allocation1 + $0x30] sm:$0xff pattern:$0x73625140] %v6471_v36  ;;  %4451 = vmatpush.bf16.msra.mxu1 %v12262_v5 }
 0x3d5   :  { %v11622_v16 = vor.u32 %v15281_v6, %v11619_v26  ;;  %v15337_v38 = vld [vmem:[%s24323_s4 + $0x81c] sm:$0xf]  ;;  %v11843_v14 = vld [vmem:[%s24323_s4 + $0x834] sm:$0xf0]  ;;  %v15274_v52 = vld [vmem:[%s24323_s4 + $0x624] sm:$0xf] }
 0x3d6   :  { %v15397_v33 = vld [vmem:[%s24323_s4 + $0x9f8] sm:$0xf0]  ;;  %v11846_v8 = vor.u32 %v15337_v38, %v11843_v14  ;;  %v11591_v15 = vld [vmem:[%s24323_s4 + $0x63c] sm:$0xf0]  ;;  %v15330_v55 = vld [vmem:[%s24323_s4 + $0x7e4] sm:$0xf]  ;;  %4400 = vmatmul.bf16.gmra.mxu1 %v19046_v58 }
 0x3d7   :  { %4469 = vmatpush.bf16.msra.mxu2 %v11622_v16  ;;  %v12074_v35 = vor.u32 %v15397_v33, %v12073_v22  ;;  %v11594_v7 = vor.u32 %v15274_v52, %v11591_v15  ;;  %v11815_v50 = vld [vmem:[%s24323_s4 + $0x7fc] sm:$0xf0]  ;;  %v12045_v40 = vld [vmem:[%s24323_s4 + $0x9a8] sm:$0xf]  ;;  %v15390_v17 = vld [vmem:[%s24323_s4 + $0x9c0] sm:$0xf0]  ;;  %4438 = vmatmul.bf16.gmra.mxu3 %v19059_v32 }
 0x3d8   :  { %4419 = vmatmul.bf16.gmra.mxu2 %v19057_v24  ;;  %v15463_v9 = vld [vmem:[%s24323_s4 + $0xc0c] sm:$0xf]  ;;  %v12347_v39 = vld [vmem:[%s24323_s4 + $0xc24] sm:$0xf0]  ;;  %v11793_v53 = vld [vmem:[%s24323_s4 + $0x7b0] sm:$0xf]  ;;  %4514 = vmatmul.bf16.gmra.mxu0 %v19059_v32  ;;  %v11818_v63 = vor.u32 %v15330_v55, %v11815_v50  ;;  %v12046_v11 = vor.u32 %v15390_v17, %v12045_v40 }
 0x3d9   :  { %4488 = vmatpush.bf16.msra.mxu3 %v11846_v8  ;;  %v12350_v59 = vor.u32 %v15463_v9, %v12347_v39  ;;  %v15327_v60 = vld [vmem:[%s24323_s4 + $0x7c8] sm:$0xf0]  ;;  %v12017_v29 = vld [vmem:[%s24323_s4 + $0x970] sm:$0xf]  ;;  %4583 = vmatpush.bf16.msrb.mxu0 %v12074_v35  ;;  %v15436_v47 = vld [vmem:[%s24323_s4 + $0xb34] sm:$0xf]  ;;  %v19195_v9 = vpack.c.bf16 %v18941_v4, %v18905_v44 }
 0x3da   :  { %v15383_v12 = vld [vmem:[%s24323_s4 + $0x988] sm:$0xf0]  ;;  %v11794_v41 = vor.u32 %v15327_v60, %v11793_v53  ;;  %v12243_v61 = vld [vmem:[%s24323_s4 + $0xb4c] sm:$0xf0]  ;;  %v11765_v42 = vld [vmem:[%s24323_s4 + $0x778] sm:$0xf] }
 0x3db   :  { %4470 = vmatpush.bf16.msra.mxu2 %v11594_v7  ;;  %v12018_v30 = vor.u32 %v15383_v12, %v12017_v29  ;;  %4524 = vmatpush.bf16.msrb.mxu1 %v12350_v59  ;;  %v12246_v62 = vor.u32 %v15436_v47, %v12243_v61  ;;  %v15320_v49 = vld [vmem:[%s24323_s4 + $0x790] sm:$0xf0]  ;;  %v11989_v27 = vld [vmem:[%s24323_s4 + $0x938] sm:$0xf]  ;;  %v15429_v56 = vld [vmem:[%s24323_s4 + $0xafc] sm:$0xf] }
 0x3dc   :  { %v15376_v20 = vld [vmem:[%s24323_s4 + $0x950] sm:$0xf0]  ;;  %v11766_v19 = vor.u32 %v15320_v49, %v11765_v42  ;;  %v12215_v25 = vld [vmem:[%s24323_s4 + $0xb14] sm:$0xf0]  ;;  %v12319_v51 = vld [vmem:[%s24323_s4 + $0xbec] sm:$0xf0] }
 0x3dd   :  { %v15456_v3 = vld [vmem:[%s24323_s4 + $0xbd4] sm:$0xf]  ;;  %4489 = vmatpush.bf16.msra.mxu3 %v11818_v63  ;;  %v11737_v37 = vld [vmem:[%s24323_s4 + $0x740] sm:$0xf]  ;;  %v15313_v57 = vld [vmem:[%s24323_s4 + $0x758] sm:$0xf0]  ;;  %4584 = vmatpush.bf16.msrb.mxu0 %v12046_v11  ;;  %v11990_v0 = vor.u32 %v15376_v20, %v11989_v27  ;;  %v12218_v48 = vor.u32 %v15429_v56, %v12215_v25 }
 0x3de   :  { %v12322_v18 = vor.u32 %v15456_v3, %v12319_v51  ;;  %v11961_v10 = vld [vmem:[%s24323_s4 + $0x900] sm:$0xf]  ;;  %v15369_v5 = vld [vmem:[%s24323_s4 + $0x918] sm:$0xf0]  ;;  %v15422_v6 = vld [vmem:[%s24323_s4 + $0xac4] sm:$0xf]  ;;  %v11738_v26 = vor.u32 %v15313_v57, %v11737_v37 }
 0x3df   :  { %4539 = vmatpush.bf16.msrb.mxu2 %v11794_v41  ;;  %v6468_v36 = vld [vmem:[#allocation2 + $0x18] sm:$0xfc]  ;;  %v11709_v38 = vld [vmem:[%s24323_s4 + $0x708] sm:$0xf]  ;;  %v11962_v35 = vor.u32 %v15369_v5, %v11961_v10  ;;  %v15415_v52 = vld [vmem:[%s24323_s4 + $0xa8c] sm:$0xf] }
 0x3e0   :  { %4525 = vmatpush.bf16.msrb.mxu1 %v12322_v18  ;;  %v12187_v16 = vld [vmem:[%s24323_s4 + $0xadc] sm:$0xf0]  ;;  %v15306_v14 = vld [vmem:[%s24323_s4 + $0x720] sm:$0xf0]  ;;  %v11933_v22 = vld [vmem:[%s24323_s4 + $0x8c8] sm:$0xf] }
 0x3e1   :  { %4558 = vmatpush.bf16.msrb.mxu3 %v12018_v30  ;;  %4653 = vmatpush.bf16.msra.mxu0 %v12246_v62  ;;  %v15362_v33 = vld [vmem:[%s24323_s4 + $0x8e0] sm:$0xf0]  ;;  %v19177_v8 = vld.sshfl [vmem:[#allocation1 + $0x18] sm:$0xff pattern:$0x73625140]  ;;  %v12190_v50 = vor.u32 %v15422_v6, %v12187_v16  ;;  %v11710_v39 = vor.u32 %v15306_v14, %v11709_v38  ;;  %v6477_v10 = vld [vmem:[#allocation2 + $0x60] sm:$0xff] }
 0x3e2   :  { %v12159_v15 = vld [vmem:[%s24323_s4 + $0xaa4] sm:$0xf0]  ;;  %v19185_v55 = vld.sshfl [vmem:[#allocation1 + $0x38] sm:$0xff pattern:$0x73625140]  ;;  %v6472_v7 = vld [vmem:[#allocation2 + $0x38] sm:$0xff]  ;;  %v11934_v53 = vor.u32 %v15362_v33, %v11933_v22 }
 0x3e3   :  { %4540 = vmatpush.bf16.msrb.mxu2 %v11766_v19  ;;  %6500 = vst.sshfl [vmem:[#allocation1 + $0x18] sm:$0xff pattern:$0x73625140] %v6468_v36  ;;  %v15449_v40 = vld [vmem:[%s24323_s4 + $0xb9c] sm:$0xf]  ;;  %v12162_v29 = vor.u32 %v15415_v52, %v12159_v15  ;;  %v6478_v36 = vld [vmem:[#allocation2 + $0x68] sm:$0xff] }
 0x3e4   :  { %6504 = vst.sshfl [vmem:[#allocation1 + $0x38] sm:$0xff pattern:$0x73625140] %v6472_v7  ;;  %v12291_v17 = vld [vmem:[%s24323_s4 + $0xbb4] sm:$0xf0]  ;;  %v6480_v52 = vld [vmem:[#allocation2 + $0x78] sm:$0xff] }
 0x3e5   :  { %4559 = vmatpush.bf16.msrb.mxu3 %v11990_v0  ;;  %4654 = vmatpush.bf16.msra.mxu0 %v12218_v48  ;;  %v12294_v63 = vor.u32 %v15449_v40, %v12291_v17  ;;  %v11681_v59 = vld [vmem:[%s24323_s4 + $0x6d0] sm:$0xf]  ;;  %v15299_v60 = vld [vmem:[%s24323_s4 + $0x6e8] sm:$0xf0]  ;;  %v15408_v12 = vld [vmem:[%s24323_s4 + $0xa54] sm:$0xf] }
 0x3e6   :  { %12371 = vmatmul.msk.bf16.vlgmr.msra.gmra.mxu1 %vm1897_vm2, %v19195_v9  ;;  %v11905_v44 = vld [vmem:[%s24323_s4 + $0x890] sm:$0xf]  ;;  %v15355_v4 = vld [vmem:[%s24323_s4 + $0x8a8] sm:$0xf0]  ;;  %v11653_v41 = vld [vmem:[%s24323_s4 + $0x698] sm:$0xf]  ;;  %v11682_v61 = vor.u32 %v15299_v60, %v11681_v59 }
 0x3e7   :  { %4541 = vmatpush.bf16.msrb.mxu2 %v11738_v26  ;;  %4490 = vmatmul.bf16.vlgmr.msra.gmra.mxu3 %v18954_v1  ;;  %v12131_v11 = vld [vmem:[%s24323_s4 + $0xa6c] sm:$0xf0]  ;;  %v15292_v30 = vld [vmem:[%s24323_s4 + $0x6b0] sm:$0xf0]  ;;  %v6476_v47 = vld [vmem:[#allocation2 + $0x58] sm:$0xfc]  ;;  %v11906_v25 = vor.u32 %v15355_v4, %v11905_v44  ;;  %v19288_v4 = vpack.c.bf16 %v19185_v55, %v19177_v8 }
 0x3e8   :  { %4471 = vmatmul.bf16.vlgmr.msra.gmra.mxu2 %v18947_v2  ;;  %4585 = vmatmul.bf16.vlgmr.msrb.gmra.mxu0 %v18956_v46  ;;  %v11877_v42 = vld [vmem:[%s24323_s4 + $0x858] sm:$0xf]  ;;  %v15348_v62 = vld [vmem:[%s24323_s4 + $0x870] sm:$0xf0]  ;;  %v15442_v49 = vld [vmem:[%s24323_s4 + $0xb64] sm:$0xf]  ;;  %v12134_v48 = vor.u32 %v15408_v12, %v12131_v11  ;;  %v11654_v26 = vor.u32 %v15292_v30, %v11653_v41 }
 0x3e9   :  { %4560 = vmatpush.bf16.msrb.mxu3 %v11962_v35  ;;  %4655 = vmatpush.bf16.msra.mxu0 %v12190_v50  ;;  %v12263_v27 = vld [vmem:[%s24323_s4 + $0xb7c] sm:$0xf0]  ;;  %v15401_v3 = vld [vmem:[%s24323_s4 + $0xa1c] sm:$0xf]  ;;  %v12103_v51 = vld [vmem:[%s24323_s4 + $0xa34] sm:$0xf0]  ;;  %v11878_v22 = vor.u32 %v15348_v62, %v11877_v42 }
 0x3ea   :  { %v6506_v20 = vld [vmem:[#allocation1 + $0x1] ss:$4 sm:$0xff]  ;;  %v19238_v19 = vld [vmem:[#allocation1 + $0x2] ss:$4 sm:$0xff]  ;;  %v19240_v56 = vld [vmem:[#allocation1 + $0x3] ss:$4 sm:$0xff]  ;;  %4526 = vmatpush.bf16.msrb.mxu1 %v12294_v63  ;;  %v12266_v37 = vor.u32 %v15442_v49, %v12263_v27  ;;  %v12106_v15 = vor.u32 %v15401_v3, %v12103_v51 }
 0x3eb   :  { %4542 = vmatpush.bf16.msrb.mxu2 %v11710_v39  ;;  %v19248_v57 = vld [vmem:[#allocation1 + $0x20] ss:$4 sm:$0xff]  ;;  %v19250_v0 = vld [vmem:[#allocation1 + $0x21] ss:$4 sm:$0xff]  ;;  %v19252_v18 = vld [vmem:[#allocation1 + $0x22] ss:$4 sm:$0xff] }
 0x3ec   :  { %v19254_v5 = vld [vmem:[#allocation1 + $0x23] ss:$4 sm:$0xff]  ;;  %6522 = vst.sshfl [vmem:[#allocation1 + $0x18] sm:$0xff pattern:$0x73625140] %v6476_v47 }
 0x3ed   :  { %4561 = vmatpush.bf16.msrb.mxu3 %v11934_v53  ;;  %4656 = vmatpush.bf16.msra.mxu0 %v12162_v29  ;;  %v11625_v6 = vld [vmem:[%s24323_s4 + $0x660] sm:$0xf]  ;;  %6523 = vst.sshfl [vmem:[#allocation1 + $0x20] sm:$0xff pattern:$0x73625140] %v6477_v10  ;;  %v6479_v14 = vld [vmem:[#allocation2 + $0x70] sm:$0xff] }
 0x3ee   :  { %v15285_v16 = vld [vmem:[%s24323_s4 + $0x678] sm:$0xf0]  ;;  %v6473_v38 = vld [vmem:[#allocation2 + $0x40] sm:$0xfc]  ;;  %4527 = vmatpush.bf16.msrb.mxu1 %v12266_v37  ;;  %v11849_v33 = vld [vmem:[%s24323_s4 + $0x820] sm:$0xf] }
 0x3ef   :  { %4543 = vmatpush.bf16.msrb.mxu2 %v11682_v61  ;;  %6524 = vst.sshfl [vmem:[#allocation1 + $0x28] sm:$0xff pattern:$0x73625140] %v6478_v36  ;;  %v6474_v35 = vld [vmem:[#allocation2 + $0x48] sm:$0xfc]  ;;  %v11626_v17 = vor.u32 %v15285_v16, %v11625_v6 }
 0x3f0   :  { %6525 = vst.sshfl [vmem:[#allocation1 + $0x30] sm:$0xff pattern:$0x73625140] %v6479_v14  ;;  %v15341_v7 = vld [vmem:[%s24323_s4 + $0x838] sm:$0xf0] }
 0x3f1   :  { %4562 = vmatpush.bf16.msrb.mxu3 %v11906_v25  ;;  %4657 = vmatpush.bf16.msra.mxu0 %v12134_v48  ;;  %v6475_v50 = vld [vmem:[#allocation2 + $0x50] sm:$0xfc]  ;;  %6526 = vst.sshfl [vmem:[#allocation1 + $0x38] sm:$0xff pattern:$0x73625140] %v6480_v52  ;;  %v11850_v53 = vor.u32 %v15341_v7, %v11849_v33 }
 0x3f2   :  { %v15394_v40 = vld [vmem:[%s24323_s4 + $0x9e4] sm:$0xf]  ;;  %6519 = vst.sshfl [vmem:[#allocation1] sm:$0xff pattern:$0x73625140] %v6473_v38 }
 0x3f3   :  { %4544 = vmatpush.bf16.msrb.mxu2 %v11654_v26  ;;  %v12075_v39 = vld [vmem:[%s24323_s4 + $0x9fc] sm:$0xf0]  ;;  %6520 = vst.sshfl [vmem:[#allocation1 + $0x8] sm:$0xff pattern:$0x73625140] %v6474_v35 }
 0x3f4   :  { %v11597_v63 = vld [vmem:[%s24323_s4 + $0x628] sm:$0xf]  ;;  %6521 = vst.sshfl [vmem:[#allocation1 + $0x10] sm:$0xff pattern:$0x73625140] %v6475_v50  ;;  %v12078_v59 = vor.u32 %v15394_v40, %v12075_v39 }
 0x3f5   :  { %4563 = vmatpush.bf16.msrb.mxu3 %v11878_v22  ;;  %4658 = vmatpush.bf16.msra.mxu0 %v12106_v15  ;;  %v15278_v60 = vld [vmem:[%s24323_s4 + $0x640] sm:$0xf0]  ;;  %6534 = vst [vmem:[#allocation1] ss:$4 sm:$0xff] %v6506_v20  ;;  %v11821_v29 = vld [vmem:[%s24323_s4 + $0x7e8] sm:$0xf] }
 0x3f6   :  { %v15334_v44 = vld [vmem:[%s24323_s4 + $0x800] sm:$0xf0]  ;;  %v11598_v12 = vor.u32 %v15278_v60, %v11597_v63  ;;  %v15387_v11 = vld [vmem:[%s24323_s4 + $0x9ac] sm:$0xf]  ;;  %v12047_v41 = vld [vmem:[%s24323_s4 + $0x9c4] sm:$0xf0]  ;;  %12372 = vmatmul.msk.bf16.gmra.mxu1 %vm1897_vm2, %v19288_v4 }
 0x3f7   :  { %4545 = vmatpush.bf16.msrb.mxu2 %v11626_v17  ;;  %v12353_v30 = vld [vmem:[%s24323_s4 + $0xc10] sm:$0xf]  ;;  %v11822_v47 = vor.u32 %v15334_v44, %v11821_v29  ;;  %v15467_v8 = vld [vmem:[%s24323_s4 + $0xc28] sm:$0xf0]  ;;  %v15324_v55 = vld [vmem:[%s24323_s4 + $0x7b4] sm:$0xf]  ;;  %v12050_v42 = vor.u32 %v15387_v11, %v12047_v41  ;;  %4495 = vmatmul.bf16.gmra.mxu3 %v19057_v24 }
 0x3f8   :  { %v11795_v61 = vld [vmem:[%s24323_s4 + $0x7cc] sm:$0xf0]  ;;  %v12354_v62 = vor.u32 %v15467_v8, %v12353_v30  ;;  %v15380_v27 = vld [vmem:[%s24323_s4 + $0x974] sm:$0xf]  ;;  %v12249_v25 = vld [vmem:[%s24323_s4 + $0xb38] sm:$0xf]  ;;  %4476 = vmatmul.bf16.gmra.mxu2 %v19046_v58  ;;  %4590 = vmatmul.bf16.gmra.mxu0 %v19059_v32 }
 0x3f9   :  { %4564 = vmatpush.bf16.msrb.mxu3 %v11850_v53  ;;  %4659 = vmatpush.bf16.msra.mxu0 %v12078_v59  ;;  %v11798_v49 = vor.u32 %v15324_v55, %v11795_v61  ;;  %v12019_v20 = vld [vmem:[%s24323_s4 + $0x98c] sm:$0xf0]  ;;  %v15440_v51 = vld [vmem:[%s24323_s4 + $0xb50] sm:$0xf0]  ;;  %v15317_v37 = vld [vmem:[%s24323_s4 + $0x77c] sm:$0xf] }
 0x3fa   :  { %v12022_v3 = vor.u32 %v15380_v27, %v12019_v20  ;;  %v11767_v48 = vld [vmem:[%s24323_s4 + $0x794] sm:$0xf0]  ;;  %v12250_v10 = vor.u32 %v15440_v51, %v12249_v25  ;;  %v15373_v6 = vld [vmem:[%s24323_s4 + $0x93c] sm:$0xf]  ;;  %v12221_v26 = vld [vmem:[%s24323_s4 + $0xb00] sm:$0xf]  ;;  %4600 = vmatpush.bf16.msra.mxu1 %v12354_v62 }
 0x3fb   :  { %4546 = vmatpush.bf16.msrb.mxu2 %v11598_v12  ;;  %v11991_v36 = vld [vmem:[%s24323_s4 + $0x954] sm:$0xf0]  ;;  %v15433_v16 = vld [vmem:[%s24323_s4 + $0xb18] sm:$0xf0]  ;;  %v15460_v14 = vld [vmem:[%s24323_s4 + $0xbf0] sm:$0xf0]  ;;  %v11770_v22 = vor.u32 %v15317_v37, %v11767_v48 }
 0x3fc   :  { %v12325_v38 = vld [vmem:[%s24323_s4 + $0xbd8] sm:$0xf]  ;;  %v11994_v35 = vor.u32 %v15373_v6, %v11991_v36  ;;  %v12222_v52 = vor.u32 %v15433_v16, %v12221_v26  ;;  %v15310_v15 = vld [vmem:[%s24323_s4 + $0x744] sm:$0xf]  ;;  %v11739_v7 = vld [vmem:[%s24323_s4 + $0x75c] sm:$0xf0] }
 0x3fd   :  { %4565 = vmatpush.bf16.msrb.mxu3 %v11822_v47  ;;  %4660 = vmatpush.bf16.msra.mxu0 %v12050_v42  ;;  %v12326_v33 = vor.u32 %v15460_v14, %v12325_v38  ;;  %v15366_v50 = vld [vmem:[%s24323_s4 + $0x904] sm:$0xf]  ;;  %v11963_v40 = vld [vmem:[%s24323_s4 + $0x91c] sm:$0xf0]  ;;  %v12193_v17 = vld [vmem:[%s24323_s4 + $0xac8] sm:$0xf]  ;;  %v11742_v53 = vor.u32 %v15310_v15, %v11739_v7 }
 0x3fe   :  { %v15426_v39 = vld [vmem:[%s24323_s4 + $0xae0] sm:$0xf0]  ;;  %v12297_v63 = vld [vmem:[%s24323_s4 + $0xba0] sm:$0xf]  ;;  %v15453_v59 = vld [vmem:[%s24323_s4 + $0xbb8] sm:$0xf0]  ;;  %v11966_v60 = vor.u32 %v15366_v50, %v11963_v40 }
 0x3ff   :  { %4615 = vmatpush.bf16.msra.mxu2 %v11798_v49  ;;  %4601 = vmatpush.bf16.msra.mxu1 %v12326_v33  ;;  %v12194_v29 = vor.u32 %v15426_v39, %v12193_v17  ;;  %v15303_v44 = vld [vmem:[%s24323_s4 + $0x70c] sm:$0xf]  ;;  %v11711_v12 = vld [vmem:[%s24323_s4 + $0x724] sm:$0xf0]  ;;  %v12298_v11 = vor.u32 %v15453_v59, %v12297_v63  ;;  %v12165_v8 = vld [vmem:[%s24323_s4 + $0xa90] sm:$0xf] }
 0x400   :  { %v15359_v41 = vld [vmem:[%s24323_s4 + $0x8cc] sm:$0xf]  ;;  %v11935_v30 = vld [vmem:[%s24323_s4 + $0x8e4] sm:$0xf0]  ;;  %v11714_v47 = vor.u32 %v15303_v44, %v11711_v12  ;;  %v15296_v42 = vld [vmem:[%s24323_s4 + $0x6d4] sm:$0xf] }
 0x401   :  { %4634 = vmatpush.bf16.msra.mxu3 %v12022_v3  ;;  %4729 = vmatpush.bf16.msrb.mxu0 %v12250_v10  ;;  %v15419_v55 = vld [vmem:[%s24323_s4 + $0xaa8] sm:$0xf0]  ;;  %v12269_v61 = vld [vmem:[%s24323_s4 + $0xb68] sm:$0xf]  ;;  %v11683_v62 = vld [vmem:[%s24323_s4 + $0x6ec] sm:$0xf0]  ;;  %v11938_v27 = vor.u32 %v15359_v41, %v11935_v30 }
 0x402   :  { %v15446_v49 = vld [vmem:[%s24323_s4 + $0xb80] sm:$0xf0]  ;;  %v12166_v20 = vor.u32 %v15419_v55, %v12165_v8  ;;  %v15352_v25 = vld [vmem:[%s24323_s4 + $0x894] sm:$0xf]  ;;  %v11907_v3 = vld [vmem:[%s24323_s4 + $0x8ac] sm:$0xf0]  ;;  %v11686_v37 = vor.u32 %v15296_v42, %v11683_v62 }
 0x403   :  { %4616 = vmatpush.bf16.msra.mxu2 %v11770_v22  ;;  %4602 = vmatpush.bf16.msra.mxu1 %v12298_v11  ;;  %v12270_v51 = vor.u32 %v15446_v49, %v12269_v61  ;;  %v12137_v48 = vld [vmem:[%s24323_s4 + $0xa58] sm:$0xf]  ;;  %v15412_v10 = vld [vmem:[%s24323_s4 + $0xa70] sm:$0xf0]  ;;  %v15289_v6 = vld [vmem:[%s24323_s4 + $0x69c] sm:$0xf]  ;;  %v11910_v38 = vor.u32 %v15352_v25, %v11907_v3 }
 0x404   :  { %v11655_v36 = vld [vmem:[%s24323_s4 + $0x6b4] sm:$0xf0]  ;;  %v15464_v26 = vld [vmem:[%s24323_s4 + $0xc14] sm:$0xf]  ;;  %v12355_v16 = vld [vmem:[%s24323_s4 + $0xc2c] sm:$0xf0]  ;;  %v12138_v22 = vor.u32 %v15412_v10, %v12137_v48 }
 0x405   :  { %4635 = vmatpush.bf16.msra.mxu3 %v11994_v35  ;;  %4730 = vmatpush.bf16.msrb.mxu0 %v12222_v52  ;;  %v12358_v14 = vor.u32 %v15464_v26, %v12355_v16  ;;  %v15345_v33 = vld [vmem:[%s24323_s4 + $0x85c] sm:$0xf]  ;;  %v11879_v35 = vld [vmem:[%s24323_s4 + $0x874] sm:$0xf0]  ;;  %v11658_v52 = vor.u32 %v15289_v6, %v11655_v36  ;;  %v12109_v15 = vld [vmem:[%s24323_s4 + $0xa20] sm:$0xf] }
 0x406   :  { %12373 = vmatmul.msk.bf16.vlgmr.msrb.gmra.mxu1 %vm1897_vm2, %v19195_v9  ;;  %v15405_v7 = vld [vmem:[%s24323_s4 + $0xa38] sm:$0xf0]  ;;  %v15282_v50 = vld [vmem:[%s24323_s4 + $0x664] sm:$0xf]  ;;  %v11627_v40 = vld [vmem:[%s24323_s4 + $0x67c] sm:$0xf0]  ;;  %v11882_v17 = vor.u32 %v15345_v33, %v11879_v35 }
 0x407   :  { %4617 = vmatpush.bf16.msra.mxu2 %v11742_v53  ;;  %4566 = vmatmul.bf16.vlgmr.msrb.gmra.mxu3 %v18954_v1  ;;  %v15457_v39 = vld [vmem:[%s24323_s4 + $0xbdc] sm:$0xf]  ;;  %v12327_v53 = vld [vmem:[%s24323_s4 + $0xbf4] sm:$0xf0]  ;;  %v12110_v63 = vor.u32 %v15405_v7, %v12109_v15  ;;  %v15338_v59 = vld [vmem:[%s24323_s4 + $0x824] sm:$0xf]  ;;  %v11630_v44 = vor.u32 %v15282_v50, %v11627_v40 }
 0x408   :  { %4547 = vmatmul.bf16.vlgmr.msrb.gmra.mxu2 %v18947_v2  ;;  %4661 = vmatmul.bf16.vlgmr.msra.gmra.mxu0 %v18956_v46  ;;  %v12081_v12 = vld [vmem:[%s24323_s4 + $0x9e8] sm:$0xf]  ;;  %v15398_v11 = vld [vmem:[%s24323_s4 + $0xa00] sm:$0xf0]  ;;  %v15275_v41 = vld [vmem:[%s24323_s4 + $0x62c] sm:$0xf] }
 0x409   :  { %4636 = vmatpush.bf16.msra.mxu3 %v11966_v60  ;;  %4731 = vmatpush.bf16.msrb.mxu0 %v12194_v29  ;;  %v11851_v60 = vld [vmem:[%s24323_s4 + $0x83c] sm:$0xf0]  ;;  %v12330_v29 = vor.u32 %v15457_v39, %v12327_v53  ;;  %v11599_v30 = vld [vmem:[%s24323_s4 + $0x644] sm:$0xf0]  ;;  %v12053_v61 = vld [vmem:[%s24323_s4 + $0x9b0] sm:$0xf] }
 0x40a   :  { %4603 = vmatpush.bf16.msra.mxu1 %v12270_v51  ;;  %v11823_v8 = vld [vmem:[%s24323_s4 + $0x804] sm:$0xf0]  ;;  %v11854_v55 = vor.u32 %v15338_v59, %v11851_v60  ;;  %v15391_v42 = vld [vmem:[%s24323_s4 + $0x9c8] sm:$0xf0]  ;;  %v11801_v62 = vld [vmem:[%s24323_s4 + $0x7b8] sm:$0xf]  ;;  %v11602_v51 = vor.u32 %v15275_v41, %v11599_v30 }
 0x40b   :  { %4618 = vmatpush.bf16.msra.mxu2 %v11714_v47  ;;  %v15331_v47 = vld [vmem:[%s24323_s4 + $0x7ec] sm:$0xf]  ;;  %v12025_v25 = vld [vmem:[%s24323_s4 + $0x978] sm:$0xf]  ;;  %v15437_v48 = vld [vmem:[%s24323_s4 + $0xb3c] sm:$0xf] }
 0x40c   :  { %v19489_v49 = vld [vmem:[#allocation1 + $0x1] ss:$4 sm:$0xff]  ;;  %v19497_v3 = vld [vmem:[#allocation1 + $0x2] ss:$4 sm:$0xff]  ;;  %v19505_v10 = vld [vmem:[#allocation1 + $0x3] ss:$4 sm:$0xff]  ;;  %v11826_v26 = vor.u32 %v15331_v47, %v11823_v8 }
 0x40d   :  { %4637 = vmatpush.bf16.msra.mxu3 %v11938_v27  ;;  %4732 = vmatpush.bf16.msrb.mxu0 %v12166_v20  ;;  %v12082_v27 = vor.u32 %v15398_v11, %v12081_v12  ;;  %v15328_v20 = vld [vmem:[%s24323_s4 + $0x7d0] sm:$0xf0]  ;;  %v12251_v6 = vld [vmem:[%s24323_s4 + $0xb54] sm:$0xf0]  ;;  %6536 = vst [vmem:[#allocation1 + $0x1] ss:$4 sm:$0xff] %v19238_v19 }
 0x40e   :  { %4676 = vmatpush.bf16.msrb.mxu1 %v12358_v14  ;;  %v19510_v36 = vld [vmem:[#allocation1 + $0x20] ss:$4 sm:$0xff]  ;;  %v19519_v14 = vld [vmem:[#allocation1 + $0x21] ss:$4 sm:$0xff]  ;;  %6538 = vst [vmem:[#allocation1 + $0x2] ss:$4 sm:$0xff] %v19240_v56  ;;  %v11802_v33 = vor.u32 %v15328_v20, %v11801_v62  ;;  %v12254_v15 = vor.u32 %v15437_v48, %v12251_v6 }
 0x40f   :  { %4619 = vmatpush.bf16.msra.mxu2 %v11686_v37  ;;  %v15384_v37 = vld [vmem:[%s24323_s4 + $0x990] sm:$0xf0]  ;;  %v11773_v16 = vld [vmem:[%s24323_s4 + $0x780] sm:$0xf]  ;;  %v15377_v35 = vld [vmem:[%s24323_s4 + $0x958] sm:$0xf0] }
 0x410   :  { %v11997_v19 = vld [vmem:[%s24323_s4 + $0x940] sm:$0xf]  ;;  %6540 = vst [vmem:[#allocation1 + $0x3] ss:$4 sm:$0xff] %v19248_v57  ;;  %v15430_v56 = vld [vmem:[%s24323_s4 + $0xb04] sm:$0xf] }
 0x411   :  { %4638 = vmatpush.bf16.msra.mxu3 %v11910_v38  ;;  %4733 = vmatpush.bf16.msrb.mxu0 %v12138_v22  ;;  %v15321_v38 = vld [vmem:[%s24323_s4 + $0x798] sm:$0xf0]  ;;  %v12054_v22 = vor.u32 %v15391_v42, %v12053_v61  ;;  %v12223_v7 = vld [vmem:[%s24323_s4 + $0xb1c] sm:$0xf0]  ;;  %6542 = vst [vmem:[#allocation1 + $0x20] ss:$4 sm:$0xff] %v19250_v0  ;;  %v11998_v39 = vor.u32 %v15377_v35, %v11997_v19 }
 0x412   :  { %4677 = vmatpush.bf16.msrb.mxu1 %v12330_v29  ;;  %v15450_v57 = vld [vmem:[%s24323_s4 + $0xba4] sm:$0xf]  ;;  %v12299_v50 = vld [vmem:[%s24323_s4 + $0xbbc] sm:$0xf0]  ;;  %6544 = vst [vmem:[#allocation1 + $0x21] ss:$4 sm:$0xff] %v19252_v18  ;;  %v11774_v0 = vor.u32 %v15321_v38, %v11773_v16  ;;  %v12226_v53 = vor.u32 %v15430_v56, %v12223_v7 }
 0x413   :  { %4620 = vmatpush.bf16.msra.mxu2 %v11658_v52  ;;  %v12026_v52 = vor.u32 %v15384_v37, %v12025_v25  ;;  %v12302_v40 = vor.u32 %v15450_v57, %v12299_v50  ;;  %v11969_v18 = vld [vmem:[%s24323_s4 + $0x908] sm:$0xf]  ;;  %v15370_v59 = vld [vmem:[%s24323_s4 + $0x920] sm:$0xf0]  ;;  %v15423_v60 = vld [vmem:[%s24323_s4 + $0xacc] sm:$0xf] }
 0x414   :  { %v12195_v29 = vld [vmem:[%s24323_s4 + $0xae4] sm:$0xf0]  ;;  %v15443_v12 = vld [vmem:[%s24323_s4 + $0xb6c] sm:$0xf]  ;;  %v11717_v47 = vld [vmem:[%s24323_s4 + $0x710] sm:$0xf]  ;;  %v11970_v61 = vor.u32 %v15370_v59, %v11969_v18 }
 0x415   :  { %4639 = vmatpush.bf16.msra.mxu3 %v11882_v17  ;;  %4734 = vmatpush.bf16.msrb.mxu0 %v12110_v63  ;;  %v11745_v17 = vld [vmem:[%s24323_s4 + $0x748] sm:$0xf]  ;;  %v15314_v63 = vld [vmem:[%s24323_s4 + $0x760] sm:$0xf0]  ;;  %v15307_v8 = vld [vmem:[%s24323_s4 + $0x728] sm:$0xf0]  ;;  %v12198_v42 = vor.u32 %v15423_v60, %v12195_v29 }
 0x416   :  { %12374 = vmatmul.msk.bf16.gmra.mxu1 %vm1897_vm2, %v19288_v4  ;;  %v12271_v11 = vld [vmem:[%s24323_s4 + $0xb84] sm:$0xf0]  ;;  %v11746_v30 = vor.u32 %v15314_v63, %v11745_v17  ;;  %v11941_v62 = vld [vmem:[%s24323_s4 + $0x8d0] sm:$0xf]  ;;  %v15416_v25 = vld [vmem:[%s24323_s4 + $0xa94] sm:$0xf]  ;;  %v11718_v48 = vor.u32 %v15307_v8, %v11717_v47 }
 0x417   :  { %4621 = vmatpush.bf16.msra.mxu2 %v11630_v44  ;;  %4571 = vmatmul.bf16.gmra.mxu3 %v19057_v24  ;;  %v19566_v44 = vld [vmem:[#allocation1 + $0x22] ss:$4 sm:$0xff]  ;;  %v19574_v41 = vld [vmem:[#allocation1 + $0x23] ss:$4 sm:$0xff] }
 0x418   :  { %4552 = vmatmul.bf16.gmra.mxu2 %v19046_v58  ;;  %4666 = vmatmul.bf16.gmra.mxu0 %v19059_v32  ;;  %6546 = vst [vmem:[#allocation1 + $0x22] ss:$4 sm:$0xff] %v19254_v5  ;;  %v6549_v20 = vld.sshfl [vmem:[#allocation1] sm:$0xff pattern:$0x73625140] }
 0x419   :  { %4640 = vmatpush.bf16.msra.mxu3 %v11854_v55  ;;  %4735 = vmatpush.bf16.msrb.mxu0 %v12082_v27  ;;  %v12274_v55 = vor.u32 %v15443_v12, %v12271_v11  ;;  %v15363_v27 = vld [vmem:[%s24323_s4 + $0x8e8] sm:$0xf0]  ;;  %6548 = vst [vmem:[#allocation1 + $0x23] ss:$4 sm:$0xff] %v19489_v49  ;;  %v12167_v6 = vld [vmem:[%s24323_s4 + $0xaac] sm:$0xf0] }
 0x41a   :  { %4678 = vmatpush.bf16.msrb.mxu1 %v12302_v40  ;;  %v6551_v37 = vld.sshfl [vmem:[#allocation1 + $0x10] sm:$0xff pattern:$0x73625140]  ;;  %v11942_v5 = vor.u32 %v15363_v27, %v11941_v62  ;;  %v11689_v49 = vld [vmem:[%s24323_s4 + $0x6d8] sm:$0xf] }
 0x41b   :  { %4622 = vmatpush.bf16.msra.mxu2 %v11602_v51  ;;  %v6550_v51 = vld.sshfl [vmem:[#allocation1 + $0x8] sm:$0xff pattern:$0x73625140]  ;;  %v15300_v16 = vld [vmem:[%s24323_s4 + $0x6f0] sm:$0xf0] }
 0x41c   :  { %v11913_v38 = vld [vmem:[%s24323_s4 + $0x898] sm:$0xf]  ;;  %v11690_v19 = vor.u32 %v15300_v16, %v11689_v49  ;;  %v15409_v35 = vld [vmem:[%s24323_s4 + $0xa5c] sm:$0xf]  ;;  %v15468_v57 = vld [vmem:[%s24323_s4 + $0xc30] sm:$0xf0] }
 0x41d   :  { %4641 = vmatpush.bf16.msra.mxu3 %v11826_v26  ;;  %4736 = vmatpush.bf16.msrb.mxu0 %v12054_v22  ;;  %v6552_v26 = vld.sshfl [vmem:[#allocation1 + $0x18] sm:$0xff pattern:$0x73625140]  ;;  %v15356_v22 = vld [vmem:[%s24323_s4 + $0x8b0] sm:$0xf0] }
 0x41e   :  { %4679 = vmatpush.bf16.msrb.mxu1 %v12274_v55  ;;  %6557 = vst [vmem:[#allocation1] ss:$4 sm:$0xff] %v19497_v3  ;;  %v12139_v3 = vld [vmem:[%s24323_s4 + $0xa74] sm:$0xf0]  ;;  %v15349_v56 = vld [vmem:[%s24323_s4 + $0x878] sm:$0xf0] }
 0x41f   :  { %4691 = vmatpush.bf16.msrb.mxu2 %v11802_v33  ;;  %6558 = vst [vmem:[#allocation1 + $0x1] ss:$4 sm:$0xff] %v19505_v10  ;;  %v12170_v33 = vor.u32 %v15416_v25, %v12167_v6  ;;  %v11914_v10 = vor.u32 %v15356_v22, %v11913_v38  ;;  %v12361_v7 = vld [vmem:[%s24323_s4 + $0xc18] sm:$0xf]  ;;  %v15402_v50 = vld [vmem:[%s24323_s4 + $0xa24] sm:$0xf] }
 0x420   :  { %6559 = vst [vmem:[#allocation1 + $0x2] ss:$4 sm:$0xff] %v19510_v36  ;;  %v15293_v36 = vld [vmem:[%s24323_s4 + $0x6b8] sm:$0xf0]  ;;  %v12111_v40 = vld [vmem:[%s24323_s4 + $0xa3c] sm:$0xf0]  ;;  %v12362_v17 = vor.u32 %v15468_v57, %v12361_v7 }
 0x421   :  { %4710 = vmatpush.bf16.msrb.mxu3 %v12026_v52  ;;  %4805 = vmatpush.bf16.msra.mxu0 %v12254_v15  ;;  %v11661_v52 = vld [vmem:[%s24323_s4 + $0x6a0] sm:$0xf]  ;;  %6560 = vst [vmem:[#allocation1 + $0x3] ss:$4 sm:$0xff] %v19519_v14  ;;  %v15286_v14 = vld [vmem:[%s24323_s4 + $0x680] sm:$0xf0] }
 0x422   :  { %v11885_v15 = vld [vmem:[%s24323_s4 + $0x860] sm:$0xf]  ;;  %v11857_v63 = vld [vmem:[%s24323_s4 + $0x828] sm:$0xf]  ;;  %v15342_v18 = vld [vmem:[%s24323_s4 + $0x840] sm:$0xf0] }
 0x423   :  { %4692 = vmatpush.bf16.msrb.mxu2 %v11774_v0  ;;  %v11633_v0 = vld [vmem:[%s24323_s4 + $0x668] sm:$0xf]  ;;  %v11886_v59 = vor.u32 %v15349_v56, %v11885_v15  ;;  %v6553_v60 = vld.sshfl [vmem:[#allocation1 + $0x20] sm:$0xff pattern:$0x73625140] }
 0x424   :  { %v6554_v29 = vld.sshfl [vmem:[#allocation1 + $0x28] sm:$0xff pattern:$0x73625140]  ;;  %v6555_v12 = vld.sshfl [vmem:[#allocation1 + $0x30] sm:$0xff pattern:$0x73625140] }
 0x425   :  { %4711 = vmatpush.bf16.msrb.mxu3 %v11998_v39  ;;  %4806 = vmatpush.bf16.msra.mxu0 %v12226_v53  ;;  %v12142_v39 = vor.u32 %v15409_v35, %v12139_v3  ;;  %v11662_v53 = vor.u32 %v15293_v36, %v11661_v52  ;;  %v6556_v11 = vld.sshfl [vmem:[#allocation1 + $0x38] sm:$0xff pattern:$0x73625140]  ;;  %v19661_v47 = vpack.c.bf16 %v6554_v29, %v6550_v51  ;;  %v15395_v62 = vld [vmem:[%s24323_s4 + $0x9ec] sm:$0xf] }
 0x426   :  { %12375 = vmatmul.msk.bf16.vlgmr.msra.gmra.mxu1 %vm1897_vm2, %v19195_v9  ;;  %6561 = vst [vmem:[#allocation1 + $0x20] ss:$4 sm:$0xff] %v19566_v44  ;;  %v19664_v8 = vpack.c.bf16 %v6555_v12, %v6551_v37  ;;  %v19666_v55 = vpack.c.bf16 %v6556_v11, %v6552_v26  ;;  %v12083_v27 = vld [vmem:[%s24323_s4 + $0xa04] sm:$0xf0]  ;;  %v11605_v44 = vld [vmem:[%s24323_s4 + $0x630] sm:$0xf] }
 0x427   :  { %4693 = vmatpush.bf16.msrb.mxu2 %v11746_v30  ;;  %4642 = vmatmul.bf16.vlgmr.msra.gmra.mxu3 %v18954_v1  ;;  %v19659_v30 = vpack.c.bf16 %v6553_v60, %v6549_v20  ;;  %v11858_v20 = vor.u32 %v15342_v18, %v11857_v63  ;;  %v15279_v25 = vld [vmem:[%s24323_s4 + $0x648] sm:$0xf0]  ;;  %v11829_v51 = vld [vmem:[%s24323_s4 + $0x7f0] sm:$0xf]  ;;  %v15461_v6 = vld [vmem:[%s24323_s4 + $0xbf8] sm:$0xf0]  ;;  %v12086_v49 = vor.u32 %v15395_v62, %v12083_v27 }
 0x428   :  { %4623 = vmatmul.bf16.vlgmr.msra.gmra.mxu2 %v18947_v2  ;;  %4737 = vmatmul.bf16.vlgmr.msrb.gmra.mxu0 %v18956_v46  ;;  %v15335_v37 = vld [vmem:[%s24323_s4 + $0x808] sm:$0xf0]  ;;  %v15388_v26 = vld [vmem:[%s24323_s4 + $0x9b4] sm:$0xf]  ;;  %v11606_v16 = vor.u32 %v15279_v25, %v11605_v44  ;;  %v15325_v38 = vld [vmem:[%s24323_s4 + $0x7bc] sm:$0xf] }
 0x429   :  { %4712 = vmatpush.bf16.msrb.mxu3 %v11970_v61  ;;  %4807 = vmatpush.bf16.msra.mxu0 %v12198_v42  ;;  %v12114_v61 = vor.u32 %v15402_v50, %v12111_v40  ;;  %v11634_v42 = vor.u32 %v15286_v14, %v11633_v0  ;;  %v11803_v22 = vld [vmem:[%s24323_s4 + $0x7d4] sm:$0xf0]  ;;  %6562 = vst [vmem:[#allocation1 + $0x21] ss:$4 sm:$0xff] %v19574_v41  ;;  %v15381_v35 = vld [vmem:[%s24323_s4 + $0x97c] sm:$0xf] }
 0x42a   :  { %4752 = vmatpush.bf16.msra.mxu1 %v12362_v17  ;;  %v12027_v3 = vld [vmem:[%s24323_s4 + $0x994] sm:$0xf0]  ;;  %v12257_v52 = vld [vmem:[%s24323_s4 + $0xb40] sm:$0xf]  ;;  %v15441_v41 = vld [vmem:[%s24323_s4 + $0xb58] sm:$0xf0] }
 0x42b   :  { %4694 = vmatpush.bf16.msrb.mxu2 %v11718_v48  ;;  %v12333_v48 = vld [vmem:[%s24323_s4 + $0xbe0] sm:$0xf]  ;;  %v12030_v15 = vor.u32 %v15381_v35, %v12027_v3  ;;  %v15318_v56 = vld [vmem:[%s24323_s4 + $0x784] sm:$0xf]  ;;  %v12258_v57 = vor.u32 %v15441_v41, %v12257_v52  ;;  %v12229_v0 = vld [vmem:[%s24323_s4 + $0xb08] sm:$0xf] }
 0x42c   :  { %v11775_v7 = vld [vmem:[%s24323_s4 + $0x79c] sm:$0xf0]  ;;  %v15374_v50 = vld [vmem:[%s24323_s4 + $0x944] sm:$0xf]  ;;  %v11747_v60 = vld [vmem:[%s24323_s4 + $0x764] sm:$0xf0] }
 0x42d   :  { %4713 = vmatpush.bf16.msrb.mxu3 %v11942_v5  ;;  %4808 = vmatpush.bf16.msra.mxu0 %v12170_v33  ;;  %v12334_v5 = vor.u32 %v15461_v6, %v12333_v48  ;;  %v11830_v33 = vor.u32 %v15335_v37, %v11829_v51  ;;  %v11999_v40 = vld [vmem:[%s24323_s4 + $0x95c] sm:$0xf0]  ;;  %v15434_v17 = vld [vmem:[%s24323_s4 + $0xb20] sm:$0xf0]  ;;  %v11778_v14 = vor.u32 %v15318_v56, %v11775_v7  ;;  %v15367_v12 = vld [vmem:[%s24323_s4 + $0x90c] sm:$0xf] }
 0x42e   :  { %v12002_v18 = vor.u32 %v15374_v50, %v11999_v40  ;;  %v12230_v29 = vor.u32 %v15434_v17, %v12229_v0  ;;  %v11971_v11 = vld [vmem:[%s24323_s4 + $0x924] sm:$0xf0]  ;;  %v11719_v44 = vld [vmem:[%s24323_s4 + $0x72c] sm:$0xf0]  ;;  %v15360_v51 = vld [vmem:[%s24323_s4 + $0x8d4] sm:$0xf] }
 0x42f   :  { %4695 = vmatpush.bf16.msrb.mxu2 %v11690_v19  ;;  %v12055_v19 = vld [vmem:[%s24323_s4 + $0x9cc] sm:$0xf0]  ;;  %4753 = vmatpush.bf16.msra.mxu1 %v12334_v5  ;;  %v11974_v27 = vor.u32 %v15367_v12, %v11971_v11  ;;  %v12173_v48 = vld [vmem:[%s24323_s4 + $0xa98] sm:$0xf]  ;;  %v15420_v6 = vld [vmem:[%s24323_s4 + $0xab0] sm:$0xf0] }
 0x430   :  { %v12058_v36 = vor.u32 %v15388_v26, %v12055_v19  ;;  %v11943_v37 = vld [vmem:[%s24323_s4 + $0x8ec] sm:$0xf0]  ;;  %v15447_v5 = vld [vmem:[%s24323_s4 + $0xb88] sm:$0xf0]  ;;  %v12174_v19 = vor.u32 %v15420_v6, %v12173_v48  ;;  %v15353_v35 = vld [vmem:[%s24323_s4 + $0x89c] sm:$0xf] }
 0x431   :  { %4714 = vmatpush.bf16.msrb.mxu3 %v11914_v10  ;;  %4809 = vmatpush.bf16.msra.mxu0 %v12142_v39  ;;  %v11806_v10 = vor.u32 %v15325_v38, %v11803_v22  ;;  %v12305_v39 = vld [vmem:[%s24323_s4 + $0xba8] sm:$0xf]  ;;  %v12277_v26 = vld [vmem:[%s24323_s4 + $0xb70] sm:$0xf]  ;;  %v11946_v38 = vor.u32 %v15360_v51, %v11943_v37  ;;  %v15297_v22 = vld [vmem:[%s24323_s4 + $0x6dc] sm:$0xf] }
 0x432   :  { %v11915_v3 = vld [vmem:[%s24323_s4 + $0x8b4] sm:$0xf0]  ;;  %v12145_v41 = vld [vmem:[%s24323_s4 + $0xa60] sm:$0xf]  ;;  %v15290_v7 = vld [vmem:[%s24323_s4 + $0x6a4] sm:$0xf] }
 0x433   :  { %4696 = vmatpush.bf16.msrb.mxu2 %v11662_v53  ;;  %v15454_v53 = vld [vmem:[%s24323_s4 + $0xbc0] sm:$0xf0]  ;;  %v11918_v56 = vor.u32 %v15353_v35, %v11915_v3  ;;  %v11887_v0 = vld [vmem:[%s24323_s4 + $0x87c] sm:$0xf0]  ;;  %v12117_v17 = vld [vmem:[%s24323_s4 + $0xa28] sm:$0xf] }
 0x434   :  { %v12306_v63 = vor.u32 %v15454_v53, %v12305_v39  ;;  %v15346_v40 = vld [vmem:[%s24323_s4 + $0x864] sm:$0xf]  ;;  %v15465_v53 = vld [vmem:[%s24323_s4 + $0xc1c] sm:$0xf]  ;;  %v15276_v37 = vld [vmem:[%s24323_s4 + $0x634] sm:$0xf] }
 0x435   :  { %4715 = vmatpush.bf16.msrb.mxu3 %v11886_v59  ;;  %4810 = vmatpush.bf16.msra.mxu0 %v12114_v61  ;;  %v15311_v59 = vld [vmem:[%s24323_s4 + $0x74c] sm:$0xf]  ;;  %v12201_v61 = vld [vmem:[%s24323_s4 + $0xad0] sm:$0xf]  ;;  %v15406_v39 = vld [vmem:[%s24323_s4 + $0xa40] sm:$0xf0] }
 0x436   :  { %12376 = vmatmul.msk.bf16.gmra.mxu1 %vm1897_vm2, %v19288_v4  ;;  %v11750_v62 = vor.u32 %v15311_v59, %v11747_v60  ;;  %v11890_v59 = vor.u32 %v15346_v40, %v11887_v0  ;;  %v15283_v60 = vld [vmem:[%s24323_s4 + $0x66c] sm:$0xf]  ;;  %v15392_v35 = vld [vmem:[%s24323_s4 + $0x9d0] sm:$0xf0]  ;;  %v15458_v3 = vld [vmem:[%s24323_s4 + $0xbe4] sm:$0xf] }
 0x437   :  { %4697 = vmatpush.bf16.msrb.mxu2 %v11634_v42  ;;  %4647 = vmatmul.bf16.gmra.mxu3 %v19057_v24  ;;  %v15427_v42 = vld [vmem:[%s24323_s4 + $0xae8] sm:$0xf0] }
 0x438   :  { %4628 = vmatmul.bf16.gmra.mxu2 %v19046_v58  ;;  %4742 = vmatmul.bf16.gmra.mxu0 %v19059_v32  ;;  %v12202_v25 = vor.u32 %v15427_v42, %v12201_v61  ;;  %v12118_v61 = vor.u32 %v15406_v39, %v12117_v17  ;;  %v15339_v42 = vld [vmem:[%s24323_s4 + $0x82c] sm:$0xf]  ;;  %v15242_v39 = vld [vmem:[%s24323_s4 + $0x520] sm:$0xf0] }
 0x439   :  { %4716 = vmatpush.bf16.msrb.mxu3 %v11858_v20  ;;  %4811 = vmatpush.bf16.msra.mxu0 %v12086_v49  ;;  %v15304_v20 = vld [vmem:[%s24323_s4 + $0x714] sm:$0xf] }
 0x43a   :  { %4754 = vmatpush.bf16.msra.mxu1 %v12306_v63  ;;  %v11722_v49 = vor.u32 %v15304_v20, %v11719_v44  ;;  %v12089_v44 = vld [vmem:[%s24323_s4 + $0x9f0] sm:$0xf] }
 0x43b   :  { %4698 = vmatpush.bf16.msrb.mxu2 %v11606_v16  ;;  %v12278_v16 = vor.u32 %v15447_v5, %v12277_v26  ;;  %v11607_v5 = vld [vmem:[%s24323_s4 + $0x64c] sm:$0xf0] }
 0x43d   :  { %4717 = vmatpush.bf16.msrb.mxu3 %v11830_v33  ;;  %4812 = vmatpush.bf16.msra.mxu0 %v12058_v36  ;;  %v11691_v33 = vld [vmem:[%s24323_s4 + $0x6f4] sm:$0xf0] }
 0x43e   :  { %4755 = vmatpush.bf16.msra.mxu1 %v12278_v16  ;;  %v11694_v36 = vor.u32 %v15297_v22, %v11691_v33  ;;  %v11831_v16 = vld [vmem:[%s24323_s4 + $0x80c] sm:$0xf0]  ;;  %v12061_v22 = vld [vmem:[%s24323_s4 + $0x9b8] sm:$0xf]  ;;  %v11809_v33 = vld [vmem:[%s24323_s4 + $0x7c0] sm:$0xf] }
 0x43f   :  { %4767 = vmatpush.bf16.msra.mxu2 %v11806_v10  ;;  %v15413_v10 = vld [vmem:[%s24323_s4 + $0xa78] sm:$0xf0]  ;;  %v12062_v17 = vor.u32 %v15392_v35, %v12061_v22  ;;  %v12975_v22 = vld [vmem:[%s24323_s4 + $0x498] sm:$0xf]  ;;  %v15228_v35 = vld [vmem:[%s24323_s4 + $0x4b0] sm:$0xf0] }
 0x440   :  { %v12146_v50 = vor.u32 %v15413_v10, %v12145_v41  ;;  %v11610_v41 = vor.u32 %v15276_v37, %v11607_v5 }
 0x441   :  { %4786 = vmatpush.bf16.msra.mxu3 %v12030_v15  ;;  %4881 = vmatpush.bf16.msrb.mxu0 %v12258_v57  ;;  %v11663_v57 = vld [vmem:[%s24323_s4 + $0x6bc] sm:$0xf0] }
 0x442   :  { %v11666_v63 = vor.u32 %v15290_v7, %v11663_v57  ;;  %v12033_v7 = vld [vmem:[%s24323_s4 + $0x980] sm:$0xf]  ;;  %v15385_v57 = vld [vmem:[%s24323_s4 + $0x998] sm:$0xf0] }
 0x443   :  { %4768 = vmatpush.bf16.msra.mxu2 %v11778_v14  ;;  %v4396_v52 = vpop.f32.mrf.mxu1  ;;  %v12363_v14 = vld [vmem:[%s24323_s4 + $0xc34] sm:$0xf0] }
 0x445   :  { %4787 = vmatpush.bf16.msra.mxu3 %v12002_v18  ;;  %4882 = vmatpush.bf16.msrb.mxu0 %v12230_v29  ;;  %v19806_v15 = vpop.f32.mrf.mxu0  ;;  %v12366_v18 = vor.u32 %v15465_v53, %v12363_v14  ;;  %v11635_v29 = vld [vmem:[%s24323_s4 + $0x684] sm:$0xf0]  ;;  %v15322_v14 = vld [vmem:[%s24323_s4 + $0x7a0] sm:$0xf0] }
 0x446   :  { %12377 = vmatmul.msk.bf16.vlgmr.msrb.gmra.mxu1 %vm1897_vm2, %v19195_v9  ;;  %v11638_v51 = vor.u32 %v15283_v60, %v11635_v29  ;;  %v11781_v53 = vld [vmem:[%s24323_s4 + $0x788] sm:$0xf] }
 0x447   :  { %4769 = vmatpush.bf16.msra.mxu2 %v11750_v62  ;;  %4718 = vmatmul.bf16.vlgmr.msrb.gmra.mxu3 %v18954_v1  ;;  %v11859_v62 = vld [vmem:[%s24323_s4 + $0x844] sm:$0xf0] }
 0x448   :  { %4699 = vmatmul.bf16.vlgmr.msrb.gmra.mxu2 %v18947_v2  ;;  %4813 = vmatmul.bf16.vlgmr.msra.gmra.mxu0 %v18956_v46  ;;  %v11862_v26 = vor.u32 %v15339_v42, %v11859_v62  ;;  %v15378_v42 = vld [vmem:[%s24323_s4 + $0x960] sm:$0xf0]  ;;  %v13003_v62 = vld [vmem:[%s24323_s4 + $0x4d0] sm:$0xf] }
 0x449   :  { %4788 = vmatpush.bf16.msra.mxu3 %v11974_v27  ;;  %4883 = vmatpush.bf16.msrb.mxu0 %v12202_v25  ;;  %v15399_v25 = vld [vmem:[%s24323_s4 + $0xa08] sm:$0xf0] }
 0x44a   :  { %v4415_v12 = vpop.f32.mrf.mxu2  ;;  %v4434_v11 = vpop.f32.mrf.mxu3  ;;  %4828 = vmatpush.bf16.msrb.mxu1 %v12366_v18 }
 0x44b   :  { %4770 = vmatpush.bf16.msra.mxu2 %v11722_v49  ;;  %v4416_v27 = vadd.f32 %v4415_v12, %v4396_v52  ;;  %v4398_v20 = vpop.f32.mrf.mxu1  ;;  %v15332_v49 = vld [vmem:[%s24323_s4 + $0x7f4] sm:$0xf]  ;;  %v12335_v52 = vld [vmem:[%s24323_s4 + $0xbfc] sm:$0xf0] }
 0x44c   :  { %v12338_v10 = vor.u32 %v15458_v3, %v12335_v52  ;;  %v11725_v3 = vld [vmem:[%s24323_s4 + $0x718] sm:$0xf]  ;;  %v15308_v52 = vld [vmem:[%s24323_s4 + $0x730] sm:$0xf0] }
 0x44d   :  { %4789 = vmatpush.bf16.msra.mxu3 %v11946_v38  ;;  %4884 = vmatpush.bf16.msrb.mxu0 %v12174_v19  ;;  %v19858_v48 = vadd.f32 %v4434_v11, %v4416_v27  ;;  %v19860_v6 = vpop.f32.mrf.mxu0  ;;  %v12090_v38 = vor.u32 %v15399_v25, %v12089_v44  ;;  %v15329_v19 = vld [vmem:[%s24323_s4 + $0x7d8] sm:$0xf0]  ;;  %v11782_v11 = vor.u32 %v15322_v14, %v11781_v53  ;;  %v15235_v27 = vld [vmem:[%s24323_s4 + $0x4e8] sm:$0xf0]  ;;  %v11697_v53 = vld [vmem:[%s24323_s4 + $0x6e0] sm:$0xf] }
 0x44e   :  { %4829 = vmatpush.bf16.msrb.mxu1 %v12338_v10  ;;  %v15315_v44 = vld [vmem:[%s24323_s4 + $0x768] sm:$0xf0]  ;;  %v13004_v5 = vor.u32 %v15235_v27, %v13003_v62  ;;  %v15301_v14 = vld [vmem:[%s24323_s4 + $0x6f8] sm:$0xf0]  ;;  %v12919_v27 = vld [vmem:[%s24323_s4 + $0x428] sm:$0xf] }
 0x44f   :  { %4771 = vmatpush.bf16.msra.mxu2 %v11694_v36  ;;  %v11834_v36 = vor.u32 %v15332_v49, %v11831_v16  ;;  %v15451_v25 = vld [vmem:[%s24323_s4 + $0xbac] sm:$0xf]  ;;  %v11977_v16 = vld [vmem:[%s24323_s4 + $0x910] sm:$0xf]  ;;  %v15357_v62 = vld [vmem:[%s24323_s4 + $0x8b8] sm:$0xf0] }
 0x451   :  { %4790 = vmatpush.bf16.msra.mxu3 %v11918_v56  ;;  %4885 = vmatpush.bf16.msrb.mxu0 %v12146_v50  ;;  %v11810_v56 = vor.u32 %v15329_v19, %v11809_v33  ;;  %v13031_v50 = vld [vmem:[%s24323_s4 + $0x508] sm:$0xf] }
 0x452   :  { %v4417_v40 = vpop.f32.mrf.mxu2  ;;  %v4436_v0 = vpop.f32.mrf.mxu3  ;;  %v13032_v12 = vor.u32 %v15242_v39, %v13031_v50  ;;  %v11726_v50 = vor.u32 %v15308_v52, %v11725_v3  ;;  %v15221_v39 = vld [vmem:[%s24323_s4 + $0x478] sm:$0xf0]  ;;  %v15350_v3 = vld [vmem:[%s24323_s4 + $0x880] sm:$0xf0]  ;;  %v15207_v52 = vld [vmem:[%s24323_s4 + $0x408] sm:$0xf0] }
 0x453   :  { %4772 = vmatpush.bf16.msra.mxu2 %v11666_v63  ;;  %v4418_v63 = vadd.f32 %v4417_v40, %v4398_v20  ;;  %v4401_v18 = vpop.f32.mrf.mxu1  ;;  %v11753_v20 = vld [vmem:[%s24323_s4 + $0x750] sm:$0xf]  ;;  %v11949_v40 = vld [vmem:[%s24323_s4 + $0x8d8] sm:$0xf] }
 0x454   :  { %v11754_v49 = vor.u32 %v15315_v44, %v11753_v20 }
 0x455   :  { %4791 = vmatpush.bf16.msra.mxu3 %v11890_v59  ;;  %4886 = vmatpush.bf16.msrb.mxu0 %v12118_v61  ;;  %v12034_v59 = vor.u32 %v15385_v57, %v12033_v7  ;;  %v19907_v60 = vadd.f32 %v4436_v0, %v4418_v63  ;;  %v19909_v29 = vpop.f32.mrf.mxu0  ;;  %v12005_v61 = vld [vmem:[%s24323_s4 + $0x948] sm:$0xf]  ;;  %v12976_v57 = vor.u32 %v15228_v35, %v12975_v22  ;;  %v15364_v0 = vld [vmem:[%s24323_s4 + $0x8f0] sm:$0xf0] }
 0x456   :  { %12378 = vmatmul.msk.bf16.gmra.mxu1 %vm1897_vm2, %v19288_v4  ;;  %v12006_v37 = vor.u32 %v15378_v42, %v12005_v61  ;;  %v15444_v63 = vld [vmem:[%s24323_s4 + $0xb74] sm:$0xf]  ;;  %v11698_v61 = vor.u32 %v15301_v14, %v11697_v53  ;;  %v11921_v42 = vld [vmem:[%s24323_s4 + $0x8a0] sm:$0xf]  ;;  %v11893_v35 = vld [vmem:[%s24323_s4 + $0x868] sm:$0xf] }
 0x457   :  { %4773 = vmatpush.bf16.msra.mxu2 %v11638_v51  ;;  %4723 = vmatmul.bf16.gmra.mxu3 %v19057_v24  ;;  %v12307_v51 = vld [vmem:[%s24323_s4 + $0xbc4] sm:$0xf0]  ;;  %v15343_v53 = vld [vmem:[%s24323_s4 + $0x848] sm:$0xf0]  ;;  %v12863_v14 = vld [vmem:[%s24323_s4 + $0x3b8] sm:$0xf] }
 0x458   :  { %4704 = vmatmul.bf16.gmra.mxu2 %v19046_v58  ;;  %4818 = vmatmul.bf16.gmra.mxu0 %v19059_v32 }
 0x459   :  { %4792 = vmatpush.bf16.msra.mxu3 %v11862_v26  ;;  %4887 = vmatpush.bf16.msrb.mxu0 %v12090_v38  ;;  %v12310_v26 = vor.u32 %v15451_v25, %v12307_v51  ;;  %v15371_v38 = vld [vmem:[%s24323_s4 + $0x928] sm:$0xf0]  ;;  %v15214_v25 = vld [vmem:[%s24323_s4 + $0x440] sm:$0xf0]  ;;  %v11669_v51 = vld [vmem:[%s24323_s4 + $0x6a8] sm:$0xf] }
 0x45a   :  { %v4439_v19 = vpop.f32.mrf.mxu3 }
 0x45b   :  { %4774 = vmatpush.bf16.msra.mxu2 %v11610_v41  ;;  %v4420_v33 = vpop.f32.mrf.mxu2  ;;  %4830 = vmatpush.bf16.msrb.mxu1 %v12310_v26  ;;  %v4403_v10 = vpop.f32.mrf.mxu1 }
 0x45c   :  { %v4421_v41 = vadd.f32 %v4420_v33, %v4401_v18  ;;  %v12279_v18 = vld [vmem:[%s24323_s4 + $0xb8c] sm:$0xf0]  ;;  %v12920_v33 = vor.u32 %v15214_v25, %v12919_v27 }
 0x45d   :  { %4793 = vmatpush.bf16.msra.mxu3 %v11834_v36  ;;  %4888 = vmatpush.bf16.msrb.mxu0 %v12062_v17  ;;  %v11978_v36 = vor.u32 %v15371_v38, %v11977_v16  ;;  %v19960_v7 = vpop.f32.mrf.mxu0  ;;  %v12947_v17 = vld [vmem:[%s24323_s4 + $0x460] sm:$0xf]  ;;  %v11922_v16 = vor.u32 %v15357_v62, %v11921_v42  ;;  %v12583_v42 = vld [vmem:[%s24323_s4 + $0x188] sm:$0xf]  ;;  %v15130_v62 = vld [vmem:[%s24323_s4 + $0x1a0] sm:$0xf0] }
 0x45f   :  { %4843 = vmatpush.bf16.msrb.mxu2 %v11810_v56  ;;  %v19958_v56 = vadd.f32 %v4439_v19, %v4421_v41  ;;  %v11641_v41 = vld [vmem:[%s24323_s4 + $0x670] sm:$0xf] }
 0x461   :  { %4862 = vmatpush.bf16.msrb.mxu3 %v12034_v59  ;;  %5971 = vmatpush.bf16.msra.mxu0 %v13032_v12  ;;  %v11950_v59 = vor.u32 %v15364_v0, %v11949_v40  ;;  %v12282_v12 = vor.u32 %v15444_v63, %v12279_v18  ;;  %v15200_v18 = vld [vmem:[%s24323_s4 + $0x3d0] sm:$0xf0] }
 0x462   :  { %v4441_v44 = vpop.f32.mrf.mxu3 }
 0x463   :  { %4844 = vmatpush.bf16.msrb.mxu2 %v11782_v11  ;;  %v12948_v11 = vor.u32 %v15221_v39, %v12947_v17  ;;  %v4422_v20 = vpop.f32.mrf.mxu2  ;;  %4831 = vmatpush.bf16.msrb.mxu1 %v12282_v12  ;;  %v11865_v39 = vld [vmem:[%s24323_s4 + $0x830] sm:$0xf]  ;;  %v15280_v12 = vld [vmem:[%s24323_s4 + $0x650] sm:$0xf0] }
 0x464   :  { %v4423_v26 = vadd.f32 %v4422_v20, %v4403_v10  ;;  %v15287_v10 = vld [vmem:[%s24323_s4 + $0x688] sm:$0xf0]  ;;  %v11866_v20 = vor.u32 %v15343_v53, %v11865_v39  ;;  %v12779_v53 = vld [vmem:[%s24323_s4 + $0x310] sm:$0xf] }
 0x465   :  { %4863 = vmatpush.bf16.msrb.mxu3 %v12006_v37  ;;  %5972 = vmatpush.bf16.msra.mxu0 %v13004_v5  ;;  %v15294_v37 = vld [vmem:[%s24323_s4 + $0x6c0] sm:$0xf0]  ;;  %v4453_v5 = vpop.f32.mrf.mxu1  ;;  %v20009_v22 = vpop.f32.mrf.mxu0  ;;  %v11642_v17 = vor.u32 %v15287_v10, %v11641_v41 }
 0x466   :  { %v20007_v38 = vadd.f32 %v4441_v44, %v4423_v26  ;;  %v11670_v19 = vor.u32 %v15294_v37, %v11669_v51  ;;  %12379 = vmatmul.msk.bf16.vlgmr.msra.gmra.mxu1 %vm1897_vm2, %v19195_v9  ;;  %v11837_v44 = vld [vmem:[%s24323_s4 + $0x7f8] sm:$0xf]  ;;  %v12864_v51 = vor.u32 %v15200_v18, %v12863_v14  ;;  %v15179_v14 = vld [vmem:[%s24323_s4 + $0x328] sm:$0xf0]  ;;  %v15232_v18 = vld [vmem:[%s24323_s4 + $0x4d4] sm:$0xf] }
 0x467   :  { %4845 = vmatpush.bf16.msrb.mxu2 %v11754_v49  ;;  %v20005_v49 = vadd.f32 %v4453_v5, %v19858_v48  ;;  %v12891_v48 = vld [vmem:[%s24323_s4 + $0x3f0] sm:$0xf]  ;;  %4794 = vmatmul.bf16.vlgmr.msra.gmra.mxu3 %v18954_v1  ;;  %v12835_v5 = vld [vmem:[%s24323_s4 + $0x380] sm:$0xf] }
 0x468   :  { %4775 = vmatmul.bf16.vlgmr.msra.gmra.mxu2 %v18947_v2  ;;  %4889 = vmatmul.bf16.vlgmr.msrb.gmra.mxu0 %v18956_v46  ;;  %v12892_v0 = vor.u32 %v15207_v52, %v12891_v48  ;;  %v12341_v48 = vld [vmem:[%s24323_s4 + $0xbe8] sm:$0xf]  ;;  %v15462_v52 = vld [vmem:[%s24323_s4 + $0xc00] sm:$0xf0] }
 0x469   :  { %4864 = vmatpush.bf16.msrb.mxu3 %v11978_v36  ;;  %5973 = vmatpush.bf16.msra.mxu0 %v12976_v57  ;;  %v12369_v36 = vld [vmem:[%s24323_s4 + $0xc20] sm:$0xf]  ;;  %v15469_v57 = vld [vmem:[%s24323_s4 + $0xc38] sm:$0xf0]  ;;  %v12342_v10 = vor.u32 %v15462_v52, %v12341_v48 }
 0x46a   :  { %v12370_v40 = vor.u32 %v15469_v57, %v12369_v36  ;;  %v4491_v63 = vpop.f32.mrf.mxu3 }
 0x46b   :  { %4846 = vmatpush.bf16.msrb.mxu2 %v11726_v50  ;;  %v11894_v50 = vor.u32 %v15350_v3, %v11893_v35  ;;  %v4472_v46 = vpop.f32.mrf.mxu2  ;;  %v15239_v35 = vld [vmem:[%s24323_s4 + $0x50c] sm:$0xf]  ;;  %v13033_v3 = vld [vmem:[%s24323_s4 + $0x524] sm:$0xf0] }
 0x46c   :  { %4904 = vmatpush.bf16.msra.mxu1 %v12370_v40  ;;  %v15123_v40 = vld [vmem:[%s24323_s4 + $0x168] sm:$0xf0]  ;;  %v13036_v39 = vor.u32 %v15239_v35, %v13033_v3  ;;  %v12499_v35 = vld [vmem:[%s24323_s4 + $0xe0] sm:$0xf]  ;;  %v15109_v3 = vld [vmem:[%s24323_s4 + $0xf8] sm:$0xf0] }
 0x46d   :  { %4865 = vmatpush.bf16.msrb.mxu3 %v11950_v59  ;;  %5974 = vmatpush.bf16.msra.mxu0 %v12948_v11  ;;  %v11613_v59 = vld [vmem:[%s24323_s4 + $0x638] sm:$0xf]  ;;  %v4492_v11 = vadd.f32 %v4491_v63, %v4472_v46  ;;  %v20070_v25 = vpop.f32.mrf.mxu0 }
 0x46e   :  { %v11614_v26 = vor.u32 %v15280_v12, %v11613_v59  ;;  %v13005_v59 = vld [vmem:[%s24323_s4 + $0x4ec] sm:$0xf0] }
 0x46f   :  { %4847 = vmatpush.bf16.msrb.mxu2 %v11698_v61  ;;  %v4455_v61 = vpop.f32.mrf.mxu1  ;;  %v20073_v37 = vadd.f32 %v19806_v15, %v4492_v11  ;;  %v15186_v15 = vld [vmem:[%s24323_s4 + $0x360] sm:$0xf0] }
 0x470   :  { %v20065_v27 = vadd.f32 %v4455_v61, %v19907_v60  ;;  %v15336_v60 = vld [vmem:[%s24323_s4 + $0x810] sm:$0xf0]  ;;  %4905 = vmatpush.bf16.msra.mxu1 %v12342_v10  ;;  %v15165_v10 = vld [vmem:[%s24323_s4 + $0x2b8] sm:$0xf0] }
 0x471   :  { %4866 = vmatpush.bf16.msrb.mxu3 %v11922_v16  ;;  %5975 = vmatpush.bf16.msra.mxu0 %v12920_v33  ;;  %v15193_v16 = vld [vmem:[%s24323_s4 + $0x398] sm:$0xf0]  ;;  %v12584_v33 = vor.u32 %v15130_v62, %v12583_v42  ;;  %v11838_v41 = vor.u32 %v15336_v60, %v11837_v44  ;;  %v12780_v62 = vor.u32 %v15179_v14, %v12779_v53  ;;  %v15116_v44 = vld [vmem:[%s24323_s4 + $0x130] sm:$0xf0]  ;;  %v12977_v60 = vld [vmem:[%s24323_s4 + $0x4b4] sm:$0xf0] }
 0x472   :  { %v12836_v36 = vor.u32 %v15193_v16, %v12835_v5  ;;  %v12313_v5 = vld [vmem:[%s24323_s4 + $0xbb0] sm:$0xf]  ;;  %v15455_v16 = vld [vmem:[%s24323_s4 + $0xbc8] sm:$0xf0] }
 0x473   :  { %4848 = vmatpush.bf16.msrb.mxu2 %v11670_v19  ;;  %v12807_v19 = vld [vmem:[%s24323_s4 + $0x348] sm:$0xf] }
 0x474   :  { %v12808_v57 = vor.u32 %v15186_v15, %v12807_v19  ;;  %v12314_v19 = vor.u32 %v15455_v16, %v12313_v5 }
 0x475   :  { %4867 = vmatpush.bf16.msrb.mxu3 %v11894_v50  ;;  %5976 = vmatpush.bf16.msra.mxu0 %v12892_v0  ;;  %v12555_v50 = vld [vmem:[%s24323_s4 + $0x150] sm:$0xf]  ;;  %v4474_v0 = vpop.f32.mrf.mxu2  ;;  %v20123_v61 = vpop.f32.mrf.mxu0 }
 0x476   :  { %v12556_v11 = vor.u32 %v15123_v40, %v12555_v50  ;;  %12380 = vmatmul.msk.bf16.gmra.mxu1 %vm1897_vm2, %v19288_v4  ;;  %v15218_v50 = vld [vmem:[%s24323_s4 + $0x464] sm:$0xf]  ;;  %v12949_v40 = vld [vmem:[%s24323_s4 + $0x47c] sm:$0xf0] }
 0x477   :  { %4849 = vmatpush.bf16.msrb.mxu2 %v11642_v17  ;;  %v4493_v17 = vpop.f32.mrf.mxu3  ;;  %v4458_v63 = vpop.f32.mrf.mxu1  ;;  %4799 = vmatmul.bf16.gmra.mxu3 %v19057_v24 }
 0x478   :  { %v4494_v46 = vadd.f32 %v4493_v17, %v4474_v0  ;;  %v20121_v12 = vadd.f32 %v4458_v63, %v19958_v56  ;;  %v13008_v56 = vor.u32 %v15232_v18, %v13005_v59  ;;  %4780 = vmatmul.bf16.gmra.mxu2 %v19046_v58  ;;  %4894 = vmatmul.bf16.gmra.mxu0 %v19059_v32  ;;  %v12723_v32 = vld [vmem:[%s24323_s4 + $0x2a0] sm:$0xf]  ;;  %v15102_v63 = vld [vmem:[%s24323_s4 + $0xc0] sm:$0xf0]  ;;  %v12695_v18 = vld [vmem:[%s24323_s4 + $0x268] sm:$0xf] }
 0x479   :  { %4868 = vmatpush.bf16.msrb.mxu3 %v11866_v20  ;;  %5977 = vmatpush.bf16.msra.mxu0 %v12864_v51  ;;  %v12527_v20 = vld [vmem:[%s24323_s4 + $0x118] sm:$0xf]  ;;  %v12500_v17 = vor.u32 %v15109_v3, %v12499_v35  ;;  %v12724_v14 = vor.u32 %v15165_v10, %v12723_v32  ;;  %v15211_v59 = vld [vmem:[%s24323_s4 + $0x42c] sm:$0xf]  ;;  %v15204_v3 = vld [vmem:[%s24323_s4 + $0x3f4] sm:$0xf] }
 0x47a   :  { %v20126_v42 = vadd.f32 %v19860_v6, %v4494_v46  ;;  %v12751_v51 = vld [vmem:[%s24323_s4 + $0x2d8] sm:$0xf]  ;;  %v15172_v6 = vld [vmem:[%s24323_s4 + $0x2f0] sm:$0xf0]  ;;  %4906 = vmatpush.bf16.msra.mxu1 %v12314_v19  ;;  %v12471_v46 = vld [vmem:[%s24323_s4 + $0xa8] sm:$0xf] }
 0x47b   :  { %4850 = vmatpush.bf16.msrb.mxu2 %v11614_v26  ;;  %v15225_v26 = vld [vmem:[%s24323_s4 + $0x49c] sm:$0xf]  ;;  %v12752_v15 = vor.u32 %v15172_v6, %v12751_v51  ;;  %v12443_v6 = vld [vmem:[%s24323_s4 + $0x70] sm:$0xf]  ;;  %v15151_v19 = vld [vmem:[%s24323_s4 + $0x248] sm:$0xf0] }
 0x47d   :  { %4869 = vmatpush.bf16.msrb.mxu3 %v11838_v41  ;;  %5978 = vmatpush.bf16.msra.mxu0 %v12836_v36  ;;  %v4477_v48 = vpop.f32.mrf.mxu2  ;;  %v12980_v41 = vor.u32 %v15225_v26, %v12977_v60  ;;  %v15095_v26 = vld [vmem:[%s24323_s4 + $0x88] sm:$0xf0] }
 0x47f   :  { %5933 = vmatpush.bf16.msra.mxu2 %v12584_v33  ;;  %v12528_v33 = vor.u32 %v15116_v44, %v12527_v20  ;;  %v4496_v52 = vpop.f32.mrf.mxu3  ;;  %v15448_v20 = vld [vmem:[%s24323_s4 + $0xb90] sm:$0xf0]  ;;  %v12472_v44 = vor.u32 %v15102_v63, %v12471_v46  ;;  %v13143_v46 = vld [vmem:[%s24323_s4 + $0x5e8] sm:$0xf]  ;;  %v15270_v63 = vld [vmem:[%s24323_s4 + $0x600] sm:$0xf0] }
 0x480   :  { %v4497_v36 = vadd.f32 %v4496_v52, %v4477_v48  ;;  %v12893_v48 = vld [vmem:[%s24323_s4 + $0x40c] sm:$0xf0] }
 0x481   :  { %5952 = vmatpush.bf16.msra.mxu3 %v12808_v57  ;;  %6047 = vmatpush.bf16.msrb.mxu0 %v13036_v39  ;;  %v4460_v57 = vpop.f32.mrf.mxu1  ;;  %v20178_v39 = vpop.f32.mrf.mxu0 }
 0x482   :  { %v20176_v0 = vadd.f32 %v4460_v57, %v20007_v38  ;;  %v20181_v53 = vadd.f32 %v19909_v29, %v4497_v36  ;;  %v12952_v38 = vor.u32 %v15218_v50, %v12949_v40  ;;  %v15158_v29 = vld [vmem:[%s24323_s4 + $0x280] sm:$0xf0]  ;;  %v12415_v57 = vld [vmem:[%s24323_s4 + $0x38] sm:$0xf]  ;;  %v15088_v50 = vld [vmem:[%s24323_s4 + $0x50] sm:$0xf0] }
 0x483   :  { %5934 = vmatpush.bf16.msra.mxu2 %v12556_v11  ;;  %v12921_v11 = vld [vmem:[%s24323_s4 + $0x444] sm:$0xf0]  ;;  %v12696_v51 = vor.u32 %v15158_v29, %v12695_v18  ;;  %v12639_v40 = vld [vmem:[%s24323_s4 + $0x1f8] sm:$0xf]  ;;  %v15081_v29 = vld [vmem:[%s24323_s4 + $0x18] sm:$0xf0] }
 0x484   :  { %v12924_v16 = vor.u32 %v15211_v59, %v12921_v11  ;;  %v12611_v59 = vld [vmem:[%s24323_s4 + $0x1c0] sm:$0xf]  ;;  %v15137_v11 = vld [vmem:[%s24323_s4 + $0x1d8] sm:$0xf0] }
 0x485   :  { %5953 = vmatpush.bf16.msra.mxu3 %v12780_v62  ;;  %6048 = vmatpush.bf16.msrb.mxu0 %v13008_v56  ;;  %v12285_v62 = vld [vmem:[%s24323_s4 + $0xb78] sm:$0xf]  ;;  %v4479_v60 = vpop.f32.mrf.mxu2 }
 0x486   :  { %v12286_v56 = vor.u32 %v15448_v20, %v12285_v62  ;;  %12381 = vmatmul.msk.bf16.vlgmr.msrb.gmra.mxu1 %vm1897_vm2, %v19195_v9 }
 0x487   :  { %5935 = vmatpush.bf16.msra.mxu2 %v12528_v33  ;;  %v4498_v5 = vpop.f32.mrf.mxu3  ;;  %v12667_v33 = vld [vmem:[%s24323_s4 + $0x230] sm:$0xf]  ;;  %4870 = vmatmul.bf16.vlgmr.msrb.gmra.mxu3 %v18954_v1  ;;  %v13144_v1 = vor.u32 %v15270_v63, %v13143_v46  ;;  %v15263_v46 = vld [vmem:[%s24323_s4 + $0x5c8] sm:$0xf0] }
 0x488   :  { %4907 = vmatpush.bf16.msra.mxu1 %v12286_v56  ;;  %v12668_v36 = vor.u32 %v15151_v19, %v12667_v33  ;;  %4851 = vmatmul.bf16.vlgmr.msrb.gmra.mxu2 %v18947_v2  ;;  %v12387_v2 = vld [vmem:[%s24323_s4] sm:$0xf]  ;;  %v15190_v56 = vld [vmem:[%s24323_s4 + $0x384] sm:$0xf]  ;;  %v12809_v33 = vld [vmem:[%s24323_s4 + $0x364] sm:$0xf0] }
 0x489   :  { %5954 = vmatpush.bf16.msra.mxu3 %v12752_v15  ;;  %6049 = vmatpush.bf16.msrb.mxu0 %v12980_v41  ;;  %v4499_v15 = vadd.f32 %v4498_v5, %v4479_v60  ;;  %v4529_v35 = vpop.f32.mrf.mxu1  ;;  %v12444_v41 = vor.u32 %v15095_v26, %v12443_v6  ;;  %v20228_v32 = vpop.f32.mrf.mxu0  ;;  %v12585_v6 = vld [vmem:[%s24323_s4 + $0x1a4] sm:$0xf0]  ;;  %v12837_v5 = vld [vmem:[%s24323_s4 + $0x39c] sm:$0xf0] }
 0x48a   :  { %v20226_v52 = vadd.f32 %v4529_v35, %v20073_v37  ;;  %v12896_v37 = vor.u32 %v15204_v3, %v12893_v48  ;;  %5979 = vmatmul.bf16.vlgmr.msra.gmra.mxu0 %v19024_v34  ;;  %v13039_v35 = vld [vmem:[%s24323_s4 + $0x510] sm:$0xf]  ;;  %v15243_v3 = vld [vmem:[%s24323_s4 + $0x528] sm:$0xf0] }
 0x48b   :  { %5936 = vmatpush.bf16.msra.mxu2 %v12500_v17  ;;  %v20231_v10 = vadd.f32 %v19960_v7, %v4499_v15  ;;  %v15144_v7 = vld [vmem:[%s24323_s4 + $0x210] sm:$0xf0]  ;;  %v15197_v17 = vld [vmem:[%s24323_s4 + $0x3bc] sm:$0xf]  ;;  %v12388_v15 = vor.u32 %v15081_v29, %v12387_v2  ;;  %v13011_v2 = vld [vmem:[%s24323_s4 + $0x4d8] sm:$0xf] }
 0x48c   :  { %v12640_v18 = vor.u32 %v15144_v7, %v12639_v40  ;;  %5994 = vmatpush.bf16.msrb.mxu1 %v13144_v1  ;;  %v12557_v40 = vld [vmem:[%s24323_s4 + $0x16c] sm:$0xf0]  ;;  %v15176_v7 = vld [vmem:[%s24323_s4 + $0x314] sm:$0xf] }
 0x48d   :  { %5955 = vmatpush.bf16.msra.mxu3 %v12724_v14  ;;  %6050 = vmatpush.bf16.msrb.mxu0 %v12952_v38  ;;  %v12865_v14 = vld [vmem:[%s24323_s4 + $0x3d4] sm:$0xf0]  ;;  %v12416_v38 = vor.u32 %v15088_v50, %v12415_v57  ;;  %v4548_v62 = vpop.f32.mrf.mxu2 }
 0x48f   :  { %5937 = vmatpush.bf16.msra.mxu2 %v12472_v44  ;;  %v4567_v20 = vpop.f32.mrf.mxu3  ;;  %v12868_v44 = vor.u32 %v15197_v17, %v12865_v14  ;;  %v13040_v17 = vor.u32 %v15243_v3, %v13039_v35  ;;  %v13115_v14 = vld [vmem:[%s24323_s4 + $0x5b0] sm:$0xf]  ;;  %v12501_v35 = vld [vmem:[%s24323_s4 + $0xfc] sm:$0xf0]  ;;  %v15162_v3 = vld [vmem:[%s24323_s4 + $0x2a4] sm:$0xf] }
 0x490   :  { %v4568_v26 = vadd.f32 %v4567_v20, %v4548_v62  ;;  %v13116_v63 = vor.u32 %v15263_v46, %v13115_v14  ;;  %v12529_v62 = vld [vmem:[%s24323_s4 + $0x134] sm:$0xf0]  ;;  %v15099_v14 = vld [vmem:[%s24323_s4 + $0xac] sm:$0xf]  ;;  %v12473_v46 = vld [vmem:[%s24323_s4 + $0xc4] sm:$0xf0] }
 0x491   :  { %5956 = vmatpush.bf16.msra.mxu3 %v12696_v51  ;;  %6051 = vmatpush.bf16.msrb.mxu0 %v12924_v16  ;;  %v15127_v51 = vld [vmem:[%s24323_s4 + $0x18c] sm:$0xf]  ;;  %v4531_v60 = vpop.f32.mrf.mxu1  ;;  %v20301_v48 = vpop.f32.mrf.mxu0 }
 0x492   :  { %v15183_v16 = vld [vmem:[%s24323_s4 + $0x34c] sm:$0xf]  ;;  %v20293_v19 = vadd.f32 %v4531_v60, %v20126_v42  ;;  %v12588_v57 = vor.u32 %v15127_v51, %v12585_v6  ;;  %v12840_v42 = vor.u32 %v15190_v56, %v12837_v5  ;;  %5995 = vmatpush.bf16.msrb.mxu1 %v13116_v63  ;;  %v15169_v56 = vld [vmem:[%s24323_s4 + $0x2dc] sm:$0xf]  ;;  %v12753_v51 = vld [vmem:[%s24323_s4 + $0x2f4] sm:$0xf0] }
 0x493   :  { %5938 = vmatpush.bf16.msra.mxu2 %v12444_v41  ;;  %v20304_v41 = vadd.f32 %v20009_v22, %v4568_v26  ;;  %v12812_v50 = vor.u32 %v15183_v16, %v12809_v33  ;;  %v12781_v22 = vld [vmem:[%s24323_s4 + $0x32c] sm:$0xf0]  ;;  %v12983_v33 = vld [vmem:[%s24323_s4 + $0x4a0] sm:$0xf] }
 0x494   :  { %v12784_v29 = vor.u32 %v15176_v7, %v12781_v22  ;;  %v15222_v22 = vld [vmem:[%s24323_s4 + $0x480] sm:$0xf0] }
 0x495   :  { %5957 = vmatpush.bf16.msra.mxu3 %v12668_v36  ;;  %6052 = vmatpush.bf16.msrb.mxu0 %v12896_v37  ;;  %v12612_v36 = vor.u32 %v15137_v11, %v12611_v59  ;;  %v15120_v37 = vld [vmem:[%s24323_s4 + $0x154] sm:$0xf]  ;;  %v4550_v1 = vpop.f32.mrf.mxu2  ;;  %v15113_v11 = vld [vmem:[%s24323_s4 + $0x11c] sm:$0xf] }
 0x496   :  { %v15236_v59 = vld [vmem:[%s24323_s4 + $0x4f0] sm:$0xf0]  ;;  %v12532_v16 = vor.u32 %v15113_v11, %v12529_v62  ;;  %12382 = vmatmul.msk.bf16.gmra.mxu1 %vm1897_vm2, %v19288_v4  ;;  %v12476_v62 = vor.u32 %v15099_v14, %v12473_v46 }
 0x497   :  { %5939 = vmatpush.bf16.msra.mxu2 %v12416_v38  ;;  %v12560_v38 = vor.u32 %v15120_v37, %v12557_v40  ;;  %v13012_v5 = vor.u32 %v15236_v59, %v13011_v2  ;;  %4875 = vmatmul.bf16.gmra.mxu3 %v19057_v24  ;;  %v12955_v24 = vld [vmem:[%s24323_s4 + $0x468] sm:$0xf]  ;;  %v15155_v2 = vld [vmem:[%s24323_s4 + $0x26c] sm:$0xf] }
 0x498   :  { %4856 = vmatmul.bf16.gmra.mxu2 %v19046_v58  ;;  %v12956_v11 = vor.u32 %v15222_v22, %v12955_v24 }
 0x499   :  { %5958 = vmatpush.bf16.msra.mxu3 %v12640_v18  ;;  %6053 = vmatpush.bf16.msrb.mxu0 %v12868_v44  ;;  %v4569_v18 = vpop.f32.mrf.mxu3  ;;  %v4534_v44 = vpop.f32.mrf.mxu1 }
 0x49a   :  { %v4570_v20 = vadd.f32 %v4569_v18, %v4550_v1  ;;  %v20343_v6 = vadd.f32 %v4534_v44, %v20181_v53  ;;  %v20345_v26 = vpop.f32.mrf.mxu0  ;;  %v12756_v53 = vor.u32 %v15169_v56, %v12753_v51  ;;  %5984 = vmatmul.bf16.gmra.mxu0 %v19082_v54  ;;  %v12697_v1 = vld [vmem:[%s24323_s4 + $0x284] sm:$0xf0]  ;;  %v15215_v44 = vld [vmem:[%s24323_s4 + $0x448] sm:$0xf0]  ;;  %v15092_v56 = vld [vmem:[%s24323_s4 + $0x74] sm:$0xf] }
 0x49b   :  { %5940 = vmatpush.bf16.msra.mxu2 %v12388_v15  ;;  %v15229_v15 = vld [vmem:[%s24323_s4 + $0x4b8] sm:$0xf0]  ;;  %v15148_v51 = vld [vmem:[%s24323_s4 + $0x234] sm:$0xf] }
 0x49c   :  { %v20348_v60 = vadd.f32 %v20070_v25, %v4570_v20  ;;  %v15106_v25 = vld [vmem:[%s24323_s4 + $0xe4] sm:$0xf]  ;;  %v12984_v58 = vor.u32 %v15229_v15, %v12983_v33  ;;  %v12927_v20 = vld [vmem:[%s24323_s4 + $0x430] sm:$0xf]  ;;  %v15249_v33 = vld [vmem:[%s24323_s4 + $0x558] sm:$0xf0] }
 0x49d   :  { %5959 = vmatpush.bf16.msra.mxu3 %v12612_v36  ;;  %6054 = vmatpush.bf16.msrb.mxu0 %v12840_v42  ;;  %v12725_v36 = vld [vmem:[%s24323_s4 + $0x2bc] sm:$0xf0]  ;;  %v15256_v42 = vld [vmem:[%s24323_s4 + $0x590] sm:$0xf0]  ;;  %v12504_v37 = vor.u32 %v15106_v25, %v12501_v35  ;;  %v4553_v40 = vpop.f32.mrf.mxu2  ;;  %v12899_v35 = vld [vmem:[%s24323_s4 + $0x3f8] sm:$0xf] }
 0x49f   :  { %6009 = vmatpush.bf16.msrb.mxu2 %v12588_v57  ;;  %v13087_v57 = vld [vmem:[%s24323_s4 + $0x578] sm:$0xf] }
 0x4a1   :  { %6028 = vmatpush.bf16.msrb.mxu3 %v12812_v50  ;;  %6123 = vmatpush.bf16.msra.mxu0 %v13040_v17  ;;  %v13088_v50 = vor.u32 %v15256_v42, %v13087_v57  ;;  %v4572_v7 = vpop.f32.mrf.mxu3  ;;  %v12728_v17 = vor.u32 %v15162_v3, %v12725_v36  ;;  %v15208_v42 = vld [vmem:[%s24323_s4 + $0x410] sm:$0xf0] }
 0x4a2   :  { %v4573_v63 = vadd.f32 %v4572_v7, %v4553_v40  ;;  %v15141_v40 = vld [vmem:[%s24323_s4 + $0x1fc] sm:$0xf]  ;;  %v12641_v7 = vld [vmem:[%s24323_s4 + $0x214] sm:$0xf0]  ;;  %v12900_v46 = vor.u32 %v15208_v42, %v12899_v35  ;;  %v15194_v35 = vld [vmem:[%s24323_s4 + $0x3a0] sm:$0xf0] }
 0x4a3   :  { %6010 = vmatpush.bf16.msrb.mxu2 %v12560_v38  ;;  %5996 = vmatpush.bf16.msrb.mxu1 %v13088_v50  ;;  %v4536_v38 = vpop.f32.mrf.mxu1  ;;  %v15085_v50 = vld [vmem:[%s24323_s4 + $0x3c] sm:$0xf] }
 0x4a4   :  { %v20398_v18 = vadd.f32 %v4536_v38, %v20231_v10  ;;  %v20403_v59 = vadd.f32 %v20123_v61, %v4573_v63  ;;  %v12700_v10 = vor.u32 %v15155_v2, %v12697_v1  ;;  %v12445_v61 = vld [vmem:[%s24323_s4 + $0x8c] sm:$0xf0]  ;;  %v12871_v38 = vld [vmem:[%s24323_s4 + $0x3c0] sm:$0xf]  ;;  %v15201_v2 = vld [vmem:[%s24323_s4 + $0x3d8] sm:$0xf0] }
 0x4a5   :  { %6029 = vmatpush.bf16.msrb.mxu3 %v12784_v29  ;;  %6124 = vmatpush.bf16.msra.mxu0 %v13012_v5  ;;  %v20400_v29 = vpop.f32.mrf.mxu0  ;;  %v12669_v5 = vld [vmem:[%s24323_s4 + $0x24c] sm:$0xf0]  ;;  %v12448_v25 = vor.u32 %v15092_v56, %v12445_v61  ;;  %v4555_v3 = vpop.f32.mrf.mxu2  ;;  %v12389_v1 = vld [vmem:[%s24323_s4 + $0x1c] sm:$0xf0]  ;;  %v15131_v56 = vld [vmem:[%s24323_s4 + $0x1a8] sm:$0xf0] }
 0x4a6   :  { %v12672_v57 = vor.u32 %v15148_v51, %v12669_v5  ;;  %12383 = vmatmul.msk.bf16.vlgmr.msra.gmra.mxu1 %vm1897_vm2, %v19195_v9  ;;  %v12613_v9 = vld [vmem:[%s24323_s4 + $0x1dc] sm:$0xf0]  ;;  %v12815_v61 = vld [vmem:[%s24323_s4 + $0x350] sm:$0xf]  ;;  %v12872_v51 = vor.u32 %v15201_v2, %v12871_v38 }
 0x4a7   :  { %6011 = vmatpush.bf16.msrb.mxu2 %v12532_v16  ;;  %v13059_v16 = vld [vmem:[%s24323_s4 + $0x540] sm:$0xf]  ;;  %5960 = vmatmul.bf16.vlgmr.msra.gmra.mxu3 %v19032_v43 }
 0x4a8   :  { %v13060_v15 = vor.u32 %v15249_v33, %v13059_v16  ;;  %5941 = vmatmul.bf16.vlgmr.msra.gmra.mxu2 %v19028_v31  ;;  %v15187_v16 = vld [vmem:[%s24323_s4 + $0x368] sm:$0xf0] }
 0x4a9   :  { %6030 = vmatpush.bf16.msrb.mxu3 %v12756_v53  ;;  %6125 = vmatpush.bf16.msra.mxu0 %v12984_v58  ;;  %v12928_v53 = vor.u32 %v15215_v44, %v12927_v20  ;;  %v4574_v36 = vpop.f32.mrf.mxu3  ;;  %v12417_v58 = vld [vmem:[%s24323_s4 + $0x54] sm:$0xf0]  ;;  %v13145_v20 = vld [vmem:[%s24323_s4 + $0x604] sm:$0xf0]  ;;  %v12816_v42 = vor.u32 %v15187_v16, %v12815_v61 }
 0x4aa   :  { %5997 = vmatpush.bf16.msrb.mxu1 %v13060_v15  ;;  %v12420_v63 = vor.u32 %v15085_v50, %v12417_v58  ;;  %6055 = vmatmul.bf16.vlgmr.msrb.gmra.mxu0 %v19024_v34  ;;  %v15240_v50 = vld [vmem:[%s24323_s4 + $0x514] sm:$0xf]  ;;  %v13041_v58 = vld [vmem:[%s24323_s4 + $0x52c] sm:$0xf0] }
 0x4ab   :  { %6012 = vmatpush.bf16.msrb.mxu2 %v12504_v37  ;;  %v4575_v37 = vadd.f32 %v4574_v36, %v4555_v3  ;;  %v4605_v24 = vpop.f32.mrf.mxu1  ;;  %v13044_v38 = vor.u32 %v15240_v50, %v13041_v58  ;;  %v15110_v50 = vld [vmem:[%s24323_s4 + $0x100] sm:$0xf0]  ;;  %v12731_v58 = vld [vmem:[%s24323_s4 + $0x2a8] sm:$0xf] }
 0x4ad   :  { %6031 = vmatpush.bf16.msrb.mxu3 %v12728_v17  ;;  %6126 = vmatpush.bf16.msra.mxu0 %v12956_v11  ;;  %v20448_v17 = vadd.f32 %v4605_v24, %v20304_v41  ;;  %v20450_v22 = vpop.f32.mrf.mxu0  ;;  %v20453_v14 = vadd.f32 %v20178_v39, %v4575_v37  ;;  %v12644_v41 = vor.u32 %v15141_v40, %v12641_v7  ;;  %v15078_v39 = vld [vmem:[%s24323_s4 + $0x4] sm:$0xf]  ;;  %v4624_v33 = vpop.f32.mrf.mxu2 }
 0x4ae   :  { %v15134_v11 = vld [vmem:[%s24323_s4 + $0x1c4] sm:$0xf]  ;;  %v12392_v5 = vor.u32 %v15078_v39, %v12389_v1  ;;  %v13013_v1 = vld [vmem:[%s24323_s4 + $0x4f4] sm:$0xf0] }
 0x4af   :  { %6013 = vmatpush.bf16.msrb.mxu2 %v12476_v62  ;;  %v15267_v62 = vld [vmem:[%s24323_s4 + $0x5ec] sm:$0xf] }
 0x4b0   :  { %v13148_v44 = vor.u32 %v15267_v62, %v13145_v20  ;;  %v12535_v20 = vld [vmem:[%s24323_s4 + $0x120] sm:$0xf] }
 0x4b1   :  { %6032 = vmatpush.bf16.msrb.mxu3 %v12700_v10  ;;  %6127 = vmatpush.bf16.msra.mxu0 %v12928_v53  ;;  %v12591_v10 = vld [vmem:[%s24323_s4 + $0x190] sm:$0xf]  ;;  %v4643_v15 = vpop.f32.mrf.mxu3  ;;  %v12616_v53 = vor.u32 %v15134_v11, %v12613_v9  ;;  %v15260_v11 = vld [vmem:[%s24323_s4 + $0x5b4] sm:$0xf] }
 0x4b2   :  { %6070 = vmatpush.bf16.msra.mxu1 %v13148_v44  ;;  %v12592_v3 = vor.u32 %v15131_v56, %v12591_v10  ;;  %v4644_v36 = vadd.f32 %v4643_v15, %v4624_v33  ;;  %v13117_v9 = vld [vmem:[%s24323_s4 + $0x5cc] sm:$0xf0]  ;;  %v15117_v44 = vld [vmem:[%s24323_s4 + $0x138] sm:$0xf0]  ;;  %v15226_v15 = vld [vmem:[%s24323_s4 + $0x4a4] sm:$0xf] }
 0x4b3   :  { %6014 = vmatpush.bf16.msrb.mxu2 %v12448_v25  ;;  %v12843_v25 = vld [vmem:[%s24323_s4 + $0x388] sm:$0xf]  ;;  %v13120_v62 = vor.u32 %v15260_v11, %v13117_v9  ;;  %v12703_v9 = vld [vmem:[%s24323_s4 + $0x270] sm:$0xf] }
 0x4b4   :  { %v20514_v40 = vadd.f32 %v20228_v32, %v4644_v36  ;;  %v12844_v7 = vor.u32 %v15194_v35, %v12843_v25  ;;  %v15180_v32 = vld [vmem:[%s24323_s4 + $0x330] sm:$0xf0]  ;;  %v12536_v35 = vor.u32 %v15117_v44, %v12535_v20 }
 0x4b5   :  { %6033 = vmatpush.bf16.msrb.mxu3 %v12672_v57  ;;  %6128 = vmatpush.bf16.msra.mxu0 %v12900_v46  ;;  %v4607_v57 = vpop.f32.mrf.mxu1  ;;  %v20511_v24 = vpop.f32.mrf.mxu0  ;;  %v12563_v46 = vld [vmem:[%s24323_s4 + $0x158] sm:$0xf] }
 0x4b6   :  { %v20509_v37 = vadd.f32 %v4607_v57, %v20348_v60  ;;  %v12787_v60 = vld [vmem:[%s24323_s4 + $0x318] sm:$0xf]  ;;  %v4626_v10 = vpop.f32.mrf.mxu2  ;;  %6071 = vmatpush.bf16.msra.mxu1 %v13120_v62  ;;  %v15159_v62 = vld [vmem:[%s24323_s4 + $0x288] sm:$0xf0] }
 0x4b7   :  { %6015 = vmatpush.bf16.msrb.mxu2 %v12420_v63  ;;  %v15124_v63 = vld [vmem:[%s24323_s4 + $0x170] sm:$0xf0]  ;;  %v12788_v39 = vor.u32 %v15180_v32, %v12787_v60  ;;  %12384 = vmatmul.msk.bf16.gmra.mxu1 %vm1897_vm2, %v19288_v4  ;;  %v12957_v4 = vld [vmem:[%s24323_s4 + $0x484] sm:$0xf0]  ;;  %v12479_v32 = vld [vmem:[%s24323_s4 + $0xb0] sm:$0xf] }
 0x4b8   :  { %v12564_v2 = vor.u32 %v15124_v63, %v12563_v46  ;;  %5946 = vmatmul.bf16.gmra.mxu2 %v19086_v23  ;;  %5965 = vmatmul.bf16.gmra.mxu3 %v19090_v21  ;;  %v15253_v46 = vld [vmem:[%s24323_s4 + $0x57c] sm:$0xf]  ;;  %v13089_v63 = vld [vmem:[%s24323_s4 + $0x594] sm:$0xf0] }
 0x4b9   :  { %6034 = vmatpush.bf16.msrb.mxu3 %v12644_v41  ;;  %6129 = vmatpush.bf16.msra.mxu0 %v12872_v51  ;;  %v15233_v41 = vld [vmem:[%s24323_s4 + $0x4dc] sm:$0xf]  ;;  %v4645_v56 = vpop.f32.mrf.mxu3  ;;  %v12759_v51 = vld [vmem:[%s24323_s4 + $0x2e0] sm:$0xf] }
 0x4ba   :  { %v13016_v61 = vor.u32 %v15233_v41, %v13013_v1  ;;  %v4646_v16 = vadd.f32 %v4645_v56, %v4626_v10  ;;  %6060 = vmatmul.bf16.gmra.mxu0 %v19082_v54  ;;  %v15103_v41 = vld [vmem:[%s24323_s4 + $0xc8] sm:$0xf0]  ;;  %v15212_v10 = vld [vmem:[%s24323_s4 + $0x434] sm:$0xf]  ;;  %v12929_v56 = vld [vmem:[%s24323_s4 + $0x44c] sm:$0xf0] }
 0x4bb   :  { %6016 = vmatpush.bf16.msrb.mxu2 %v12392_v5  ;;  %v15173_v5 = vld [vmem:[%s24323_s4 + $0x2f8] sm:$0xf0] }
 0x4bc   :  { %v20564_v36 = vadd.f32 %v20301_v48, %v4646_v16  ;;  %v12760_v57 = vor.u32 %v15173_v5, %v12759_v51  ;;  %v15166_v48 = vld [vmem:[%s24323_s4 + $0x2c0] sm:$0xf0]  ;;  %v12480_v51 = vor.u32 %v15103_v41, %v12479_v32  ;;  %v15145_v32 = vld [vmem:[%s24323_s4 + $0x218] sm:$0xf0] }
 0x4bd   :  { %6035 = vmatpush.bf16.msrb.mxu3 %v12616_v53  ;;  %6130 = vmatpush.bf16.msra.mxu0 %v12844_v7  ;;  %v4610_v33 = vpop.f32.mrf.mxu1  ;;  %v12985_v53 = vld [vmem:[%s24323_s4 + $0x4bc] sm:$0xf0]  ;;  %v15219_v7 = vld [vmem:[%s24323_s4 + $0x46c] sm:$0xf] }
 0x4be   :  { %v20559_v25 = vadd.f32 %v4610_v33, %v20403_v59  ;;  %v12988_v59 = vor.u32 %v15226_v15, %v12985_v53  ;;  %v12960_v11 = vor.u32 %v15219_v7, %v12957_v4  ;;  %v12704_v33 = vor.u32 %v15159_v62, %v12703_v9  ;;  %v12451_v15 = vld [vmem:[%s24323_s4 + $0x78] sm:$0xf]  ;;  %v15096_v53 = vld [vmem:[%s24323_s4 + $0x90] sm:$0xf0]  ;;  %v12423_v4 = vld [vmem:[%s24323_s4 + $0x40] sm:$0xf] }
 0x4bf   :  { %6085 = vmatpush.bf16.msra.mxu2 %v12592_v3  ;;  %v20561_v3 = vpop.f32.mrf.mxu0  ;;  %v20668_v62 = vpack.c.bf16 %v18682_v28, %v18523_v45  ;;  %v12619_v28 = vld [vmem:[%s24323_s4 + $0x1c8] sm:$0xf] }
 0x4c1   :  { %6104 = vmatpush.bf16.msra.mxu3 %v12816_v42  ;;  %6199 = vmatpush.bf16.msrb.mxu0 %v13044_v38  ;;  %v12507_v42 = vld [vmem:[%s24323_s4 + $0xe8] sm:$0xf]  ;;  %v13092_v38 = vor.u32 %v15253_v46, %v13089_v63  ;;  %v4648_v1 = vpop.f32.mrf.mxu3  ;;  %v15089_v46 = vld [vmem:[%s24323_s4 + $0x58] sm:$0xf0] }
 0x4c2   :  { %v12508_v60 = vor.u32 %v15110_v50, %v12507_v42  ;;  %v12901_v42 = vld [vmem:[%s24323_s4 + $0x414] sm:$0xf0]  ;;  %v15246_v50 = vld [vmem:[%s24323_s4 + $0x544] sm:$0xf] }
 0x4c3   :  { %6086 = vmatpush.bf16.msra.mxu2 %v12564_v2  ;;  %v12732_v2 = vor.u32 %v15166_v48, %v12731_v58  ;;  %6072 = vmatpush.bf16.msra.mxu1 %v13092_v38  ;;  %v12452_v58 = vor.u32 %v15096_v53, %v12451_v15  ;;  %v12845_v15 = vld [vmem:[%s24323_s4 + $0x3a4] sm:$0xf0]  ;;  %v13151_v53 = vld [vmem:[%s24323_s4 + $0x5f0] sm:$0xf] }
 0x4c5   :  { %6105 = vmatpush.bf16.msra.mxu3 %v12788_v39  ;;  %6200 = vmatpush.bf16.msrb.mxu0 %v13016_v61  ;;  %v4629_v39 = vpop.f32.mrf.mxu2  ;;  %v4612_v44 = vpop.f32.mrf.mxu1 }
 0x4c6   :  { %v4649_v20 = vadd.f32 %v4648_v1, %v4629_v39  ;;  %v20614_v61 = vadd.f32 %v4612_v44, %v20453_v14  ;;  %v12932_v14 = vor.u32 %v15212_v10, %v12929_v56  ;;  %v15198_v1 = vld [vmem:[%s24323_s4 + $0x3c4] sm:$0xf] }
 0x4c7   :  { %6087 = vmatpush.bf16.msra.mxu2 %v12536_v35  ;;  %v20616_v5 = vpop.f32.mrf.mxu0  ;;  %v12675_v35 = vld [vmem:[%s24323_s4 + $0x238] sm:$0xf]  ;;  %13169 = vmatmul.msk.bf16.vlgmr.msrb.gmra.mxu1 %vm1897_vm2, %v20668_v62 }
 0x4c8   :  { %v20619_v16 = vadd.f32 %v20345_v26, %v4649_v20  ;;  %v15152_v26 = vld [vmem:[%s24323_s4 + $0x250] sm:$0xf0]  ;;  %v12424_v20 = vor.u32 %v15089_v46, %v12423_v4  ;;  %6017 = vmatmul.bf16.vlgmr.msrb.gmra.mxu2 %v19028_v31  ;;  %6036 = vmatmul.bf16.vlgmr.msrb.gmra.mxu3 %v19032_v43 }
 0x4c9   :  { %6106 = vmatpush.bf16.msra.mxu3 %v12760_v57  ;;  %6201 = vmatpush.bf16.msrb.mxu0 %v12988_v59  ;;  %v15205_v57 = vld [vmem:[%s24323_s4 + $0x3fc] sm:$0xf]  ;;  %v13061_v59 = vld [vmem:[%s24323_s4 + $0x55c] sm:$0xf0]  ;;  %v12676_v7 = vor.u32 %v15152_v26, %v12675_v35  ;;  %v15244_v4 = vld [vmem:[%s24323_s4 + $0x530] sm:$0xf0] }
 0x4ca   :  { %v13064_v48 = vor.u32 %v15246_v50, %v13061_v59  ;;  %v12904_v38 = vor.u32 %v15205_v57, %v12901_v42  ;;  %6131 = vmatmul.bf16.vlgmr.msra.gmra.mxu0 %v19024_v34  ;;  %v15128_v57 = vld [vmem:[%s24323_s4 + $0x194] sm:$0xf]  ;;  %v12593_v42 = vld [vmem:[%s24323_s4 + $0x1ac] sm:$0xf0] }
 0x4cb   :  { %6088 = vmatpush.bf16.msra.mxu2 %v12508_v60  ;;  %v4650_v60 = vpop.f32.mrf.mxu3  ;;  %v15184_v50 = vld [vmem:[%s24323_s4 + $0x354] sm:$0xf] }
 0x4cc   :  { %6073 = vmatpush.bf16.msra.mxu1 %v13064_v48  ;;  %v12817_v48 = vld [vmem:[%s24323_s4 + $0x36c] sm:$0xf0] }
 0x4cd   :  { %6107 = vmatpush.bf16.msra.mxu3 %v12732_v2  ;;  %6202 = vmatpush.bf16.msrb.mxu0 %v12960_v11  ;;  %v4631_v63 = vpop.f32.mrf.mxu2  ;;  %v12647_v2 = vld [vmem:[%s24323_s4 + $0x200] sm:$0xf]  ;;  %v4681_v39 = vpop.f32.mrf.mxu1 }
 0x4ce   :  { %v4651_v41 = vadd.f32 %v4650_v60, %v4631_v63  ;;  %v12873_v11 = vld [vmem:[%s24323_s4 + $0x3dc] sm:$0xf0]  ;;  %v20664_v9 = vadd.f32 %v4681_v39, %v20514_v40  ;;  %v12648_v56 = vor.u32 %v15145_v32, %v12647_v2  ;;  %v15082_v40 = vld [vmem:[%s24323_s4 + $0x20] sm:$0xf0] }
 0x4cf   :  { %6089 = vmatpush.bf16.msra.mxu2 %v12480_v51  ;;  %v20670_v44 = vpop.f32.mrf.mxu0  ;;  %v12395_v51 = vld [vmem:[%s24323_s4 + $0x8] sm:$0xf]  ;;  %v12876_v45 = vor.u32 %v15198_v1, %v12873_v11 }
 0x4d0   :  { %v20673_v10 = vadd.f32 %v20400_v29, %v4651_v41  ;;  %v15138_v29 = vld [vmem:[%s24323_s4 + $0x1e0] sm:$0xf0]  ;;  %v12396_v35 = vor.u32 %v15082_v40, %v12395_v51  ;;  %v13019_v40 = vld [vmem:[%s24323_s4 + $0x4e0] sm:$0xf] }
 0x4d1   :  { %6108 = vmatpush.bf16.msra.mxu3 %v12704_v33  ;;  %6203 = vmatpush.bf16.msrb.mxu0 %v12932_v14  ;;  %v15191_v33 = vld [vmem:[%s24323_s4 + $0x38c] sm:$0xf]  ;;  %v12620_v59 = vor.u32 %v15138_v29, %v12619_v28 }
 0x4d2   :  { %v15271_v14 = vld [vmem:[%s24323_s4 + $0x608] sm:$0xf0]  ;;  %v12848_v60 = vor.u32 %v15191_v33, %v12845_v15  ;;  %v13123_v33 = vld [vmem:[%s24323_s4 + $0x5b8] sm:$0xf]  ;;  %v15264_v15 = vld [vmem:[%s24323_s4 + $0x5d0] sm:$0xf0] }
 0x4d3   :  { %6090 = vmatpush.bf16.msra.mxu2 %v12452_v58  ;;  %v13152_v26 = vor.u32 %v15271_v14, %v13151_v53  ;;  %v12596_v58 = vor.u32 %v15128_v57, %v12593_v42  ;;  %v4719_v63 = vpop.f32.mrf.mxu3  ;;  %v15114_v53 = vld [vmem:[%s24323_s4 + $0x124] sm:$0xf]  ;;  %v13124_v14 = vor.u32 %v15264_v15, %v13123_v33  ;;  %v12761_v57 = vld [vmem:[%s24323_s4 + $0x2fc] sm:$0xf0]  ;;  %v15156_v33 = vld [vmem:[%s24323_s4 + $0x274] sm:$0xf] }
 0x4d5   :  { %6109 = vmatpush.bf16.msra.mxu3 %v12676_v7  ;;  %6204 = vmatpush.bf16.msrb.mxu0 %v12904_v38  ;;  %v13047_v7 = vld [vmem:[%s24323_s4 + $0x518] sm:$0xf]  ;;  %v4700_v46 = vpop.f32.mrf.mxu2  ;;  %v12820_v38 = vor.u32 %v15184_v50, %v12817_v48  ;;  %v4683_v32 = vpop.f32.mrf.mxu1  ;;  %v12991_v48 = vld [vmem:[%s24323_s4 + $0x4a8] sm:$0xf] }
 0x4d6   :  { %6146 = vmatpush.bf16.msrb.mxu1 %v13152_v26  ;;  %v4720_v2 = vadd.f32 %v4719_v63, %v4700_v46  ;;  %v13048_v41 = vor.u32 %v15244_v4, %v13047_v7  ;;  %v20723_v39 = vadd.f32 %v4683_v32, %v20564_v36  ;;  %v15177_v36 = vld [vmem:[%s24323_s4 + $0x31c] sm:$0xf]  ;;  %v15170_v26 = vld [vmem:[%s24323_s4 + $0x2e4] sm:$0xf]  ;;  %v15107_v32 = vld [vmem:[%s24323_s4 + $0xec] sm:$0xf] }
 0x4d7   :  { %6091 = vmatpush.bf16.msra.mxu2 %v12424_v20  ;;  %v20725_v1 = vpop.f32.mrf.mxu0  ;;  %v15121_v20 = vld [vmem:[%s24323_s4 + $0x15c] sm:$0xf]  ;;  %v15230_v7 = vld [vmem:[%s24323_s4 + $0x4c0] sm:$0xf0]  ;;  %13170 = vmatmul.msk.bf16.gmra.mxu1 %vm1897_vm2, %v19105_v13 }
 0x4d8   :  { %v20728_v11 = vadd.f32 %v20450_v22, %v4720_v2  ;;  %v12789_v22 = vld [vmem:[%s24323_s4 + $0x334] sm:$0xf0]  ;;  %v12992_v2 = vor.u32 %v15230_v7, %v12991_v48  ;;  %6022 = vmatmul.bf16.gmra.mxu2 %v19086_v23  ;;  %6041 = vmatmul.bf16.gmra.mxu3 %v19090_v21 }
 0x4d9   :  { %6110 = vmatpush.bf16.msra.mxu3 %v12648_v56  ;;  %6205 = vmatpush.bf16.msrb.mxu0 %v12876_v45  ;;  %v12565_v56 = vld [vmem:[%s24323_s4 + $0x174] sm:$0xf0]  ;;  %v15237_v45 = vld [vmem:[%s24323_s4 + $0x4f8] sm:$0xf0]  ;;  %v12792_v28 = vor.u32 %v15177_v36, %v12789_v22  ;;  %v15223_v36 = vld [vmem:[%s24323_s4 + $0x488] sm:$0xf0] }
 0x4da   :  { %v12568_v51 = vor.u32 %v15121_v20, %v12565_v56  ;;  %v13020_v29 = vor.u32 %v15237_v45, %v13019_v40  ;;  %6147 = vmatpush.bf16.msrb.mxu1 %v13124_v14  ;;  %v12733_v20 = vld [vmem:[%s24323_s4 + $0x2c4] sm:$0xf0]  ;;  %v12963_v56 = vld [vmem:[%s24323_s4 + $0x470] sm:$0xf]  ;;  %v13095_v22 = vld [vmem:[%s24323_s4 + $0x580] sm:$0xf]  ;;  %6136 = vmatmul.bf16.gmra.mxu0 %v19082_v54 }
 0x4db   :  { %6092 = vmatpush.bf16.msra.mxu2 %v12396_v35  ;;  %v12537_v35 = vld [vmem:[%s24323_s4 + $0x13c] sm:$0xf0]  ;;  %v15257_v40 = vld [vmem:[%s24323_s4 + $0x598] sm:$0xf0]  ;;  %v12964_v15 = vor.u32 %v15223_v36, %v12963_v56  ;;  %v12705_v14 = vld [vmem:[%s24323_s4 + $0x28c] sm:$0xf0] }
 0x4dc   :  { %v12540_v42 = vor.u32 %v15114_v53, %v12537_v35  ;;  %v13096_v45 = vor.u32 %v15257_v40, %v13095_v22  ;;  %v13067_v56 = vld [vmem:[%s24323_s4 + $0x548] sm:$0xf]  ;;  %v15250_v36 = vld [vmem:[%s24323_s4 + $0x560] sm:$0xf0]  ;;  %v12425_v40 = vld [vmem:[%s24323_s4 + $0x5c] sm:$0xf0] }
 0x4dd   :  { %6111 = vmatpush.bf16.msra.mxu3 %v12620_v59  ;;  %6206 = vmatpush.bf16.msrb.mxu0 %v12848_v60  ;;  %v4702_v50 = vpop.f32.mrf.mxu2  ;;  %v4721_v59 = vpop.f32.mrf.mxu3  ;;  %v13068_v22 = vor.u32 %v15250_v36, %v13067_v56  ;;  %v12599_v36 = vld [vmem:[%s24323_s4 + $0x198] sm:$0xf] }
 0x4de   :  { %v4722_v4 = vadd.f32 %v4721_v59, %v4702_v50  ;;  %v4686_v46 = vpop.f32.mrf.mxu1  ;;  %6148 = vmatpush.bf16.msrb.mxu1 %v13096_v45  ;;  %v15216_v50 = vld [vmem:[%s24323_s4 + $0x450] sm:$0xf0]  ;;  %v15142_v45 = vld [vmem:[%s24323_s4 + $0x204] sm:$0xf] }
 0x4df   :  { %6161 = vmatpush.bf16.msrb.mxu2 %v12596_v58  ;;  %v12764_v58 = vor.u32 %v15170_v26, %v12761_v57  ;;  %v20773_v63 = vadd.f32 %v4686_v46, %v20619_v16  ;;  %v20775_v60 = vpop.f32.mrf.mxu0  ;;  %v15163_v16 = vld [vmem:[%s24323_s4 + $0x2ac] sm:$0xf]  ;;  %v12708_v57 = vor.u32 %v15156_v33, %v12705_v14 }
 0x4e1   :  { %6180 = vmatpush.bf16.msrb.mxu3 %v12820_v38  ;;  %6275 = vmatpush.bf16.msra.mxu0 %v13048_v41  ;;  %v20778_v38 = vadd.f32 %v20511_v24, %v4722_v4  ;;  %v12509_v41 = vld [vmem:[%s24323_s4 + $0x104] sm:$0xf0] }
 0x4e2   :  { %v12512_v24 = vor.u32 %v15107_v32, %v12509_v41  ;;  %v12453_v32 = vld [vmem:[%s24323_s4 + $0x94] sm:$0xf0]  ;;  %6149 = vmatpush.bf16.msrb.mxu1 %v13068_v22 }
 0x4e3   :  { %6162 = vmatpush.bf16.msrb.mxu2 %v12568_v51  ;;  %v12736_v51 = vor.u32 %v15163_v16, %v12733_v20  ;;  %v12907_v16 = vld [vmem:[%s24323_s4 + $0x400] sm:$0xf]  ;;  %v12823_v22 = vld [vmem:[%s24323_s4 + $0x358] sm:$0xf] }
 0x4e5   :  { %6181 = vmatpush.bf16.msrb.mxu3 %v12792_v28  ;;  %6276 = vmatpush.bf16.msra.mxu0 %v13020_v29  ;;  %v15100_v28 = vld [vmem:[%s24323_s4 + $0xb4] sm:$0xf]  ;;  %v12481_v29 = vld [vmem:[%s24323_s4 + $0xcc] sm:$0xf0]  ;;  %v4705_v35 = vpop.f32.mrf.mxu2  ;;  %v4724_v26 = vpop.f32.mrf.mxu3 }
 0x4e6   :  { %v12484_v53 = vor.u32 %v15100_v28, %v12481_v29  ;;  %v4725_v59 = vadd.f32 %v4724_v26, %v4705_v35  ;;  %v12649_v28 = vld [vmem:[%s24323_s4 + $0x21c] sm:$0xf0]  ;;  %v12879_v35 = vld [vmem:[%s24323_s4 + $0x3c8] sm:$0xf]  ;;  %v15202_v26 = vld [vmem:[%s24323_s4 + $0x3e0] sm:$0xf0] }
 0x4e7   :  { %6163 = vmatpush.bf16.msrb.mxu2 %v12540_v42  ;;  %v12935_v42 = vld [vmem:[%s24323_s4 + $0x438] sm:$0xf]  ;;  %v20830_v7 = vpop.f32.mrf.mxu0  ;;  %v12652_v14 = vor.u32 %v15142_v45, %v12649_v28  ;;  %13171 = vmatmul.msk.bf16.vlgmr.msra.gmra.mxu1 %vm1897_vm2, %v20668_v62  ;;  %v15188_v28 = vld [vmem:[%s24323_s4 + $0x370] sm:$0xf0] }
 0x4e8   :  { %v20833_v4 = vadd.f32 %v20561_v3, %v4725_v59  ;;  %v12936_v46 = vor.u32 %v15216_v50, %v12935_v42  ;;  %v12677_v3 = vld [vmem:[%s24323_s4 + $0x254] sm:$0xf0]  ;;  %6093 = vmatmul.bf16.vlgmr.msra.gmra.mxu2 %v19028_v31  ;;  %6112 = vmatmul.bf16.vlgmr.msra.gmra.mxu3 %v19032_v43 }
 0x4e9   :  { %6182 = vmatpush.bf16.msrb.mxu3 %v12764_v58  ;;  %6277 = vmatpush.bf16.msra.mxu0 %v12992_v2  ;;  %v4688_v58 = vpop.f32.mrf.mxu1  ;;  %v15093_v2 = vld [vmem:[%s24323_s4 + $0x7c] sm:$0xf] }
 0x4ea   :  { %v20828_v48 = vadd.f32 %v4688_v58, %v20673_v10  ;;  %v15149_v10 = vld [vmem:[%s24323_s4 + $0x23c] sm:$0xf]  ;;  %v12456_v41 = vor.u32 %v15093_v2, %v12453_v32  ;;  %v15079_v2 = vld [vmem:[%s24323_s4 + $0xc] sm:$0xf]  ;;  %v12397_v32 = vld [vmem:[%s24323_s4 + $0x24] sm:$0xf0]  ;;  %6207 = vmatmul.bf16.vlgmr.msrb.gmra.mxu0 %v19024_v34 }
 0x4eb   :  { %6164 = vmatpush.bf16.msrb.mxu2 %v12512_v24  ;;  %v15209_v24 = vld [vmem:[%s24323_s4 + $0x418] sm:$0xf0]  ;;  %v12680_v20 = vor.u32 %v15149_v10, %v12677_v3  ;;  %v12621_v10 = vld [vmem:[%s24323_s4 + $0x1e4] sm:$0xf0]  ;;  %v15195_v3 = vld [vmem:[%s24323_s4 + $0x3a8] sm:$0xf0] }
 0x4ec   :  { %v12908_v29 = vor.u32 %v15209_v24, %v12907_v16  ;;  %v15268_v24 = vld [vmem:[%s24323_s4 + $0x5f4] sm:$0xf] }
 0x4ed   :  { %6183 = vmatpush.bf16.msrb.mxu3 %v12736_v51  ;;  %6278 = vmatpush.bf16.msra.mxu0 %v12964_v15  ;;  %v15086_v51 = vld [vmem:[%s24323_s4 + $0x44] sm:$0xf]  ;;  %v4707_v15 = vpop.f32.mrf.mxu2 }
 0x4ee   :  { %v12428_v33 = vor.u32 %v15086_v51, %v12425_v40  ;;  %v15132_v51 = vld [vmem:[%s24323_s4 + $0x1b0] sm:$0xf0] }
 0x4ef   :  { %6165 = vmatpush.bf16.msrb.mxu2 %v12484_v53  ;;  %v4726_v53 = vpop.f32.mrf.mxu3  ;;  %v20880_v59 = vpop.f32.mrf.mxu0  ;;  %v12600_v45 = vor.u32 %v15132_v51, %v12599_v36  ;;  %v15118_v51 = vld [vmem:[%s24323_s4 + $0x140] sm:$0xf0] }
 0x4f1   :  { %6184 = vmatpush.bf16.msrb.mxu3 %v12708_v57  ;;  %6279 = vmatpush.bf16.msra.mxu0 %v12936_v46  ;;  %v4727_v57 = vadd.f32 %v4726_v53, %v4707_v15  ;;  %v4757_v42 = vpop.f32.mrf.mxu1  ;;  %v12880_v46 = vor.u32 %v15202_v26, %v12879_v35 }
 0x4f2   :  { %v20878_v50 = vadd.f32 %v4757_v42, %v20728_v11  ;;  %v15135_v11 = vld [vmem:[%s24323_s4 + $0x1cc] sm:$0xf] }
 0x4f3   :  { %6166 = vmatpush.bf16.msrb.mxu2 %v12456_v41  ;;  %v20883_v58 = vadd.f32 %v20616_v5, %v4727_v57  ;;  %v12400_v5 = vor.u32 %v15079_v2, %v12397_v32  ;;  %v12851_v41 = vld [vmem:[%s24323_s4 + $0x390] sm:$0xf]  ;;  %v12624_v16 = vor.u32 %v15135_v11, %v12621_v10  ;;  %v12571_v32 = vld [vmem:[%s24323_s4 + $0x160] sm:$0xf]  ;;  %v15125_v11 = vld [vmem:[%s24323_s4 + $0x178] sm:$0xf0] }
 0x4f4   :  { %v12852_v40 = vor.u32 %v15195_v3, %v12851_v41  ;;  %v15234_v10 = vld [vmem:[%s24323_s4 + $0x4e4] sm:$0xf]  ;;  %v13021_v41 = vld [vmem:[%s24323_s4 + $0x4fc] sm:$0xf0] }
 0x4f5   :  { %6185 = vmatpush.bf16.msrb.mxu3 %v12680_v20  ;;  %6280 = vmatpush.bf16.msra.mxu0 %v12908_v29  ;;  %v13153_v20 = vld [vmem:[%s24323_s4 + $0x60c] sm:$0xf0]  ;;  %v15241_v29 = vld [vmem:[%s24323_s4 + $0x51c] sm:$0xf]  ;;  %v4776_v15 = vpop.f32.mrf.mxu2 }
 0x4f6   :  { %v13156_v56 = vor.u32 %v15268_v24, %v13153_v20  ;;  %v15261_v24 = vld [vmem:[%s24323_s4 + $0x5bc] sm:$0xf]  ;;  %v13125_v20 = vld [vmem:[%s24323_s4 + $0x5d4] sm:$0xf0] }
 0x4f7   :  { %6167 = vmatpush.bf16.msrb.mxu2 %v12428_v33  ;;  %v13049_v33 = vld [vmem:[%s24323_s4 + $0x534] sm:$0xf0]  ;;  %v4795_v53 = vpop.f32.mrf.mxu3  ;;  %v13128_v36 = vor.u32 %v15261_v24, %v13125_v20  ;;  %13172 = vmatmul.msk.bf16.gmra.mxu1 %vm1897_vm2, %v19105_v13  ;;  %v15254_v24 = vld [vmem:[%s24323_s4 + $0x584] sm:$0xf]  ;;  %v13097_v20 = vld [vmem:[%s24323_s4 + $0x59c] sm:$0xf0] }
 0x4f8   :  { %6222 = vmatpush.bf16.msra.mxu1 %v13156_v56  ;;  %v13052_v35 = vor.u32 %v15241_v29, %v13049_v33  ;;  %v4796_v26 = vadd.f32 %v4795_v53, %v4776_v15  ;;  %v12543_v56 = vld [vmem:[%s24323_s4 + $0x128] sm:$0xf]  ;;  %v15227_v29 = vld [vmem:[%s24323_s4 + $0x4ac] sm:$0xf]  ;;  %6098 = vmatmul.bf16.gmra.mxu2 %v19086_v23 }
 0x4f9   :  { %6186 = vmatpush.bf16.msrb.mxu3 %v12652_v14  ;;  %6281 = vmatpush.bf16.msra.mxu0 %v12880_v46  ;;  %v12824_v14 = vor.u32 %v15188_v28, %v12823_v22  ;;  %v4759_v57 = vpop.f32.mrf.mxu1  ;;  %v20935_v46 = vpop.f32.mrf.mxu0  ;;  %v12767_v22 = vld [vmem:[%s24323_s4 + $0x2e8] sm:$0xf] }
 0x4fa   :  { %v20933_v42 = vadd.f32 %v4759_v57, %v20778_v38  ;;  %v20938_v2 = vadd.f32 %v20670_v44, %v4796_v26  ;;  %v12795_v38 = vld [vmem:[%s24323_s4 + $0x320] sm:$0xf]  ;;  %v15181_v44 = vld [vmem:[%s24323_s4 + $0x338] sm:$0xf0]  ;;  %v12993_v33 = vld [vmem:[%s24323_s4 + $0x4c4] sm:$0xf0]  ;;  %6117 = vmatmul.bf16.gmra.mxu3 %v19090_v21  ;;  %6212 = vmatmul.bf16.gmra.mxu0 %v19082_v54 }
 0x4fb   :  { %6168 = vmatpush.bf16.msrb.mxu2 %v12400_v5  ;;  %v12572_v5 = vor.u32 %v15125_v11, %v12571_v32  ;;  %v12796_v3 = vor.u32 %v15181_v44, %v12795_v38  ;;  %v12515_v38 = vld [vmem:[%s24323_s4 + $0xf0] sm:$0xf] }
 0x4fc   :  { %6223 = vmatpush.bf16.msra.mxu1 %v13128_v36  ;;  %v12487_v36 = vld [vmem:[%s24323_s4 + $0xb8] sm:$0xf] }
 0x4fd   :  { %6187 = vmatpush.bf16.msrb.mxu3 %v12624_v16  ;;  %6282 = vmatpush.bf16.msra.mxu0 %v12852_v40  ;;  %v13024_v16 = vor.u32 %v15234_v10, %v13021_v41  ;;  %v15174_v40 = vld [vmem:[%s24323_s4 + $0x300] sm:$0xf0]  ;;  %v4778_v15 = vpop.f32.mrf.mxu2  ;;  %v15220_v10 = vld [vmem:[%s24323_s4 + $0x474] sm:$0xf]  ;;  %v12965_v41 = vld [vmem:[%s24323_s4 + $0x48c] sm:$0xf0] }
 0x4fe   :  { %v12768_v28 = vor.u32 %v15174_v40, %v12767_v22  ;;  %v12711_v22 = vld [vmem:[%s24323_s4 + $0x278] sm:$0xf] }
 0x4ff   :  { %6237 = vmatpush.bf16.msra.mxu2 %v12600_v45  ;;  %v12544_v45 = vor.u32 %v15118_v51, %v12543_v56  ;;  %v4797_v53 = vpop.f32.mrf.mxu3  ;;  %v13100_v56 = vor.u32 %v15254_v24, %v13097_v20  ;;  %v15104_v51 = vld [vmem:[%s24323_s4 + $0xd0] sm:$0xf0]  ;;  %v15247_v20 = vld [vmem:[%s24323_s4 + $0x54c] sm:$0xf] }
 0x500   :  { %v12488_v40 = vor.u32 %v15104_v51, %v12487_v36  ;;  %v12431_v36 = vld [vmem:[%s24323_s4 + $0x48] sm:$0xf] }
 0x501   :  { %6256 = vmatpush.bf16.msra.mxu3 %v12824_v14  ;;  %6351 = vmatpush.bf16.msrb.mxu0 %v13052_v35  ;;  %v12996_v14 = vor.u32 %v15227_v29, %v12993_v33  ;;  %v4798_v35 = vadd.f32 %v4797_v53, %v4778_v15  ;;  %v4762_v26 = vpop.f32.mrf.mxu1  ;;  %v20985_v32 = vpop.f32.mrf.mxu0  ;;  %v12937_v29 = vld [vmem:[%s24323_s4 + $0x454] sm:$0xf0] }
 0x502   :  { %v20983_v57 = vadd.f32 %v4762_v26, %v20833_v4  ;;  %v12739_v4 = vld [vmem:[%s24323_s4 + $0x2b0] sm:$0xf]  ;;  %6224 = vmatpush.bf16.msra.mxu1 %v13100_v56  ;;  %v13069_v56 = vld [vmem:[%s24323_s4 + $0x564] sm:$0xf0] }
 0x503   :  { %6238 = vmatpush.bf16.msra.mxu2 %v12572_v5  ;;  %v20988_v11 = vadd.f32 %v20725_v1, %v4798_v35  ;;  %v15111_v5 = vld [vmem:[%s24323_s4 + $0x108] sm:$0xf0]  ;;  %v13072_v51 = vor.u32 %v15247_v20, %v13069_v56 }
 0x504   :  { %v12516_v44 = vor.u32 %v15111_v5, %v12515_v38  ;;  %v15167_v1 = vld [vmem:[%s24323_s4 + $0x2c8] sm:$0xf0] }
 0x505   :  { %6257 = vmatpush.bf16.msra.mxu3 %v12796_v3  ;;  %6352 = vmatpush.bf16.msrb.mxu0 %v13024_v16  ;;  %v12740_v3 = vor.u32 %v15167_v1, %v12739_v4  ;;  %v12968_v16 = vor.u32 %v15220_v10, %v12965_v41  ;;  %v4781_v33 = vpop.f32.mrf.mxu2  ;;  %v15097_v1 = vld [vmem:[%s24323_s4 + $0x98] sm:$0xf0]  ;;  %v15206_v41 = vld [vmem:[%s24323_s4 + $0x404] sm:$0xf] }
 0x506   :  { %6225 = vmatpush.bf16.msra.mxu1 %v13072_v51  ;;  %v15272_v51 = vld [vmem:[%s24323_s4 + $0x610] sm:$0xf0] }
 0x507   :  { %6239 = vmatpush.bf16.msra.mxu2 %v12544_v45  ;;  %v15160_v45 = vld [vmem:[%s24323_s4 + $0x290] sm:$0xf0]  ;;  %v4800_v15 = vpop.f32.mrf.mxu3  ;;  %13173 = vmatmul.msk.bf16.vlgmr.msrb.gmra.mxu1 %vm1897_vm2, %v20668_v62 }
 0x508   :  { %v12712_v53 = vor.u32 %v15160_v45, %v12711_v22  ;;  %v4801_v35 = vadd.f32 %v4800_v15, %v4781_v33  ;;  %v15090_v22 = vld [vmem:[%s24323_s4 + $0x60] sm:$0xf0]  ;;  %v15199_v33 = vld [vmem:[%s24323_s4 + $0x3cc] sm:$0xf]  ;;  %v12881_v15 = vld [vmem:[%s24323_s4 + $0x3e4] sm:$0xf0]  ;;  %6169 = vmatmul.bf16.vlgmr.msrb.gmra.mxu2 %v19028_v31 }
 0x509   :  { %6258 = vmatpush.bf16.msra.mxu3 %v12768_v28  ;;  %6353 = vmatpush.bf16.msrb.mxu0 %v12996_v14  ;;  %v15213_v28 = vld [vmem:[%s24323_s4 + $0x43c] sm:$0xf]  ;;  %v4764_v26 = vpop.f32.mrf.mxu1  ;;  %v21040_v5 = vpop.f32.mrf.mxu0  ;;  %v15146_v45 = vld [vmem:[%s24323_s4 + $0x220] sm:$0xf0] }
 0x50a   :  { %v12940_v14 = vor.u32 %v15213_v28, %v12937_v29  ;;  %v21038_v38 = vadd.f32 %v4764_v26, %v20883_v58  ;;  %v21043_v4 = vadd.f32 %v20775_v60, %v4801_v35  ;;  %v12683_v58 = vld [vmem:[%s24323_s4 + $0x240] sm:$0xf]  ;;  %v15153_v60 = vld [vmem:[%s24323_s4 + $0x258] sm:$0xf0]  ;;  %v12432_v28 = vor.u32 %v15090_v22, %v12431_v36  ;;  %6188 = vmatmul.bf16.vlgmr.msrb.gmra.mxu3 %v19032_v43  ;;  %v13159_v36 = vld [vmem:[%s24323_s4 + $0x5f8] sm:$0xf] }
 0x50b   :  { %6240 = vmatpush.bf16.msra.mxu2 %v12516_v44  ;;  %v12459_v44 = vld [vmem:[%s24323_s4 + $0x80] sm:$0xf]  ;;  %v12884_v35 = vor.u32 %v15199_v33, %v12881_v15  ;;  %6283 = vmatmul.bf16.vlgmr.msra.gmra.mxu0 %v19024_v34  ;;  %v13160_v22 = vor.u32 %v15272_v51, %v13159_v36  ;;  %v12825_v33 = vld [vmem:[%s24323_s4 + $0x374] sm:$0xf0]  ;;  %v15238_v36 = vld [vmem:[%s24323_s4 + $0x500] sm:$0xf0] }
 0x50c   :  { %v12460_v10 = vor.u32 %v15097_v1, %v12459_v44  ;;  %v13055_v15 = vld [vmem:[%s24323_s4 + $0x520] sm:$0xf] }
 0x50d   :  { %6259 = vmatpush.bf16.msra.mxu3 %v12740_v3  ;;  %6354 = vmatpush.bf16.msrb.mxu0 %v12968_v16  ;;  %v12909_v3 = vld [vmem:[%s24323_s4 + $0x41c] sm:$0xf0]  ;;  %v12684_v16 = vor.u32 %v15153_v60, %v12683_v58  ;;  %v12403_v60 = vld [vmem:[%s24323_s4 + $0x10] sm:$0xf] }
 0x50e   :  { %v12912_v24 = vor.u32 %v15206_v41, %v12909_v3  ;;  %v15083_v41 = vld [vmem:[%s24323_s4 + $0x28] sm:$0xf0]  ;;  %6298 = vmatpush.bf16.msrb.mxu1 %v13160_v22 }
 0x50f   :  { %6241 = vmatpush.bf16.msra.mxu2 %v12488_v40  ;;  %v12655_v40 = vld [vmem:[%s24323_s4 + $0x208] sm:$0xf]  ;;  %v12404_v3 = vor.u32 %v15083_v41, %v12403_v60 }
 0x510   :  { %v12656_v29 = vor.u32 %v15146_v45, %v12655_v40  ;;  %v15129_v40 = vld [vmem:[%s24323_s4 + $0x19c] sm:$0xf]  ;;  %v12601_v45 = vld [vmem:[%s24323_s4 + $0x1b4] sm:$0xf0] }
 0x511   :  { %6260 = vmatpush.bf16.msra.mxu3 %v12712_v53  ;;  %6355 = vmatpush.bf16.msrb.mxu0 %v12940_v14  ;;  %v4783_v53 = vpop.f32.mrf.mxu2  ;;  %v4802_v14 = vpop.f32.mrf.mxu3 }
 0x512   :  { %v4803_v26 = vadd.f32 %v4802_v14, %v4783_v53  ;;  %v4833_v44 = vpop.f32.mrf.mxu1  ;;  %v21090_v58 = vpop.f32.mrf.mxu0  ;;  %v15245_v53 = vld [vmem:[%s24323_s4 + $0x538] sm:$0xf0] }
 0x513   :  { %6242 = vmatpush.bf16.msra.mxu2 %v12460_v10  ;;  %v21088_v1 = vadd.f32 %v4833_v44, %v20938_v2  ;;  %v12627_v2 = vld [vmem:[%s24323_s4 + $0x1d0] sm:$0xf]  ;;  %v13056_v44 = vor.u32 %v15245_v53, %v13055_v15  ;;  %v15171_v15 = vld [vmem:[%s24323_s4 + $0x2ec] sm:$0xf]  ;;  %v12769_v53 = vld [vmem:[%s24323_s4 + $0x304] sm:$0xf0] }
 0x514   :  { %v21093_v10 = vadd.f32 %v20830_v7, %v4803_v26  ;;  %v15139_v7 = vld [vmem:[%s24323_s4 + $0x1e8] sm:$0xf0] }
 0x515   :  { %6261 = vmatpush.bf16.msra.mxu3 %v12684_v16  ;;  %6356 = vmatpush.bf16.msrb.mxu0 %v12912_v24  ;;  %v15192_v16 = vld [vmem:[%s24323_s4 + $0x394] sm:$0xf]  ;;  %v12853_v24 = vld [vmem:[%s24323_s4 + $0x3ac] sm:$0xf0]  ;;  %v12628_v20 = vor.u32 %v15139_v7, %v12627_v2 }
 0x516   :  { %v12856_v56 = vor.u32 %v15192_v16, %v12853_v24  ;;  %v15122_v16 = vld [vmem:[%s24323_s4 + $0x164] sm:$0xf]  ;;  %v12573_v24 = vld [vmem:[%s24323_s4 + $0x17c] sm:$0xf0] }
 0x517   :  { %6243 = vmatpush.bf16.msra.mxu2 %v12432_v28  ;;  %v15185_v28 = vld [vmem:[%s24323_s4 + $0x35c] sm:$0xf]  ;;  %13174 = vmatmul.msk.bf16.gmra.mxu1 %vm1897_vm2, %v19105_v13 }
 0x518   :  { %v12828_v26 = vor.u32 %v15185_v28, %v12825_v33  ;;  %v15115_v28 = vld [vmem:[%s24323_s4 + $0x12c] sm:$0xf]  ;;  %v12545_v33 = vld [vmem:[%s24323_s4 + $0x144] sm:$0xf0]  ;;  %6174 = vmatmul.bf16.gmra.mxu2 %v19086_v23 }
 0x519   :  { %6262 = vmatpush.bf16.msra.mxu3 %v12656_v29  ;;  %6357 = vmatpush.bf16.msrb.mxu0 %v12884_v35  ;;  %v12604_v29 = vor.u32 %v15129_v40, %v12601_v45  ;;  %v4852_v14 = vpop.f32.mrf.mxu2  ;;  %v4871_v35 = vpop.f32.mrf.mxu3  ;;  %v13131_v40 = vld [vmem:[%s24323_s4 + $0x5c0] sm:$0xf]  ;;  %v15265_v45 = vld [vmem:[%s24323_s4 + $0x5d8] sm:$0xf0] }
 0x51a   :  { %v4872_v60 = vadd.f32 %v4871_v35, %v4852_v14  ;;  %v4835_v41 = vpop.f32.mrf.mxu1  ;;  %v12548_v14 = vor.u32 %v15115_v28, %v12545_v33  ;;  %v12772_v35 = vor.u32 %v15171_v15, %v12769_v53  ;;  %6193 = vmatmul.bf16.gmra.mxu3 %v19090_v21  ;;  %v13103_v33 = vld [vmem:[%s24323_s4 + $0x588] sm:$0xf]  ;;  %v15258_v15 = vld [vmem:[%s24323_s4 + $0x5a0] sm:$0xf0] }
 0x51b   :  { %6244 = vmatpush.bf16.msra.mxu2 %v12404_v3  ;;  %v21143_v2 = vadd.f32 %v4835_v41, %v20988_v11  ;;  %v21145_v3 = vpop.f32.mrf.mxu0  ;;  %v15178_v11 = vld [vmem:[%s24323_s4 + $0x324] sm:$0xf]  ;;  %6288 = vmatmul.bf16.gmra.mxu0 %v19082_v54  ;;  %v13104_v53 = vor.u32 %v15258_v15, %v13103_v33  ;;  %v12915_v15 = vld [vmem:[%s24323_s4 + $0x408] sm:$0xf] }
 0x51c   :  { %v21148_v7 = vadd.f32 %v20880_v59, %v4872_v60  ;;  %v13027_v59 = vld [vmem:[%s24323_s4 + $0x4e8] sm:$0xf] }
 0x51d   :  { %6263 = vmatpush.bf16.msra.mxu3 %v12628_v20  ;;  %6358 = vmatpush.bf16.msrb.mxu0 %v12856_v56  ;;  %v12576_v20 = vor.u32 %v15122_v16, %v12573_v24  ;;  %v12797_v56 = vld [vmem:[%s24323_s4 + $0x33c] sm:$0xf0]  ;;  %v13028_v22 = vor.u32 %v15238_v36, %v13027_v59  ;;  %v15108_v36 = vld [vmem:[%s24323_s4 + $0xf4] sm:$0xf] }
 0x51e   :  { %v12800_v51 = vor.u32 %v15178_v11, %v12797_v56 }
 0x51f   :  { %6313 = vmatpush.bf16.msrb.mxu2 %v12604_v29  ;;  %v13132_v29 = vor.u32 %v15265_v45, %v13131_v40  ;;  %v12971_v40 = vld [vmem:[%s24323_s4 + $0x478] sm:$0xf]  ;;  %v15224_v45 = vld [vmem:[%s24323_s4 + $0x490] sm:$0xf0] }
 0x521   :  { %6332 = vmatpush.bf16.msrb.mxu3 %v12828_v26  ;;  %6427 = vmatpush.bf16.msra.mxu0 %v13056_v44  ;;  %v12999_v26 = vld [vmem:[%s24323_s4 + $0x4b0] sm:$0xf]  ;;  %v15231_v44 = vld [vmem:[%s24323_s4 + $0x4c8] sm:$0xf0]  ;;  %v4854_v60 = vpop.f32.mrf.mxu2  ;;  %v4873_v41 = vpop.f32.mrf.mxu3 }
 0x522   :  { %6299 = vmatpush.bf16.msrb.mxu1 %v13132_v29  ;;  %v13000_v16 = vor.u32 %v15231_v44, %v12999_v26  ;;  %v4874_v24 = vadd.f32 %v4873_v41, %v4854_v60  ;;  %v4838_v11 = vpop.f32.mrf.mxu1  ;;  %v12972_v29 = vor.u32 %v15224_v45, %v12971_v40  ;;  %v15157_v26 = vld [vmem:[%s24323_s4 + $0x27c] sm:$0xf]  ;;  %v12713_v60 = vld [vmem:[%s24323_s4 + $0x294] sm:$0xf0]  ;;  %v12943_v41 = vld [vmem:[%s24323_s4 + $0x440] sm:$0xf] }
 0x523   :  { %6314 = vmatpush.bf16.msrb.mxu2 %v12576_v20  ;;  %v21193_v20 = vadd.f32 %v4838_v11, %v21043_v4  ;;  %v21195_v56 = vpop.f32.mrf.mxu0  ;;  %v15164_v4 = vld [vmem:[%s24323_s4 + $0x2b4] sm:$0xf] }
 0x524   :  { %v21198_v59 = vadd.f32 %v20935_v46, %v4874_v24  ;;  %v12741_v46 = vld [vmem:[%s24323_s4 + $0x2cc] sm:$0xf0] }
 0x525   :  { %6333 = vmatpush.bf16.msrb.mxu3 %v12800_v51  ;;  %6428 = vmatpush.bf16.msra.mxu0 %v13028_v22  ;;  %v12517_v51 = vld [vmem:[%s24323_s4 + $0x10c] sm:$0xf0]  ;;  %v12744_v28 = vor.u32 %v15164_v4, %v12741_v46 }
 0x526   :  { %v12520_v22 = vor.u32 %v15108_v36, %v12517_v51  ;;  %6300 = vmatpush.bf16.msrb.mxu1 %v13104_v53  ;;  %v12716_v36 = vor.u32 %v15157_v26, %v12713_v60  ;;  %v15210_v53 = vld [vmem:[%s24323_s4 + $0x420] sm:$0xf0]  ;;  %v13075_v26 = vld [vmem:[%s24323_s4 + $0x550] sm:$0xf]  ;;  %v15087_v60 = vld [vmem:[%s24323_s4 + $0x4c] sm:$0xf] }
 0x527   :  { %6315 = vmatpush.bf16.msrb.mxu2 %v12548_v14  ;;  %v15101_v14 = vld [vmem:[%s24323_s4 + $0xbc] sm:$0xf]  ;;  %13175 = vmatmul.msk.bf16.vlgmr.msra.gmra.mxu1 %vm1897_vm2, %v20668_v62 }
 0x528   :  { %6245 = vmatmul.bf16.vlgmr.msra.gmra.mxu2 %v19028_v31 }
 0x529   :  { %6334 = vmatpush.bf16.msrb.mxu3 %v12772_v35  ;;  %6429 = vmatpush.bf16.msra.mxu0 %v13000_v16  ;;  %v12489_v35 = vld [vmem:[%s24323_s4 + $0xd4] sm:$0xf0]  ;;  %v15217_v16 = vld [vmem:[%s24323_s4 + $0x458] sm:$0xf0]  ;;  %v4857_v24 = vpop.f32.mrf.mxu2  ;;  %v4876_v11 = vpop.f32.mrf.mxu3 }
 0x52a   :  { %v12492_v44 = vor.u32 %v15101_v14, %v12489_v35  ;;  %v12944_v51 = vor.u32 %v15217_v16, %v12943_v41  ;;  %v4877_v4 = vadd.f32 %v4876_v11, %v4857_v24  ;;  %v12916_v35 = vor.u32 %v15210_v53, %v12915_v15  ;;  %v12433_v16 = vld [vmem:[%s24323_s4 + $0x64] sm:$0xf0]  ;;  %v15143_v24 = vld [vmem:[%s24323_s4 + $0x20c] sm:$0xf]  ;;  %6264 = vmatmul.bf16.vlgmr.msra.gmra.mxu3 %v19032_v43 }
 0x52b   :  { %6316 = vmatpush.bf16.msrb.mxu2 %v12520_v22  ;;  %v4840_v22 = vpop.f32.mrf.mxu1  ;;  %v21250_v40 = vpop.f32.mrf.mxu0  ;;  %v12657_v11 = vld [vmem:[%s24323_s4 + $0x224] sm:$0xf0]  ;;  %6359 = vmatmul.bf16.vlgmr.msrb.gmra.mxu0 %v19024_v34 }
 0x52c   :  { %v21248_v46 = vadd.f32 %v4840_v22, %v21093_v10  ;;  %v21253_v45 = vadd.f32 %v20985_v32, %v4877_v4  ;;  %v15150_v10 = vld [vmem:[%s24323_s4 + $0x244] sm:$0xf]  ;;  %v12685_v32 = vld [vmem:[%s24323_s4 + $0x25c] sm:$0xf0]  ;;  %v12887_v4 = vld [vmem:[%s24323_s4 + $0x3d0] sm:$0xf] }
 0x52d   :  { %6335 = vmatpush.bf16.msrb.mxu3 %v12744_v28  ;;  %6430 = vmatpush.bf16.msra.mxu0 %v12972_v29  ;;  %v15094_v28 = vld [vmem:[%s24323_s4 + $0x84] sm:$0xf]  ;;  %v12461_v29 = vld [vmem:[%s24323_s4 + $0x9c] sm:$0xf0]  ;;  %v12688_v14 = vor.u32 %v15150_v10, %v12685_v32  ;;  %v15203_v22 = vld [vmem:[%s24323_s4 + $0x3e8] sm:$0xf0] }
 0x52e   :  { %v12464_v33 = vor.u32 %v15094_v28, %v12461_v29  ;;  %v12888_v10 = vor.u32 %v15203_v22, %v12887_v4  ;;  %v12607_v4 = vld [vmem:[%s24323_s4 + $0x1a0] sm:$0xf]  ;;  %v15133_v22 = vld [vmem:[%s24323_s4 + $0x1b8] sm:$0xf0] }
 0x52f   :  { %6317 = vmatpush.bf16.msrb.mxu2 %v12492_v44  ;;  %v15251_v44 = vld [vmem:[%s24323_s4 + $0x568] sm:$0xf0] }
 0x530   :  { %v13076_v41 = vor.u32 %v15251_v44, %v13075_v26  ;;  %v12405_v26 = vld [vmem:[%s24323_s4 + $0x2c] sm:$0xf0] }
 0x531   :  { %6336 = vmatpush.bf16.msrb.mxu3 %v12716_v36  ;;  %6431 = vmatpush.bf16.msra.mxu0 %v12944_v51  ;;  %v12436_v36 = vor.u32 %v15087_v60, %v12433_v16  ;;  %v12660_v51 = vor.u32 %v15143_v24, %v12657_v11  ;;  %v4859_v28 = vpop.f32.mrf.mxu2  ;;  %v4878_v29 = vpop.f32.mrf.mxu3  ;;  %v12859_v60 = vld [vmem:[%s24323_s4 + $0x398] sm:$0xf]  ;;  %v15269_v11 = vld [vmem:[%s24323_s4 + $0x5fc] sm:$0xf] }
 0x532   :  { %6301 = vmatpush.bf16.msrb.mxu1 %v13076_v41  ;;  %v15196_v41 = vld [vmem:[%s24323_s4 + $0x3b0] sm:$0xf0] }
 0x533   :  { %6318 = vmatpush.bf16.msrb.mxu2 %v12464_v33  ;;  %v4879_v33 = vadd.f32 %v4878_v29, %v4859_v28  ;;  %v4909_v32 = vpop.f32.mrf.mxu1  ;;  %v21300_v53 = vpop.f32.mrf.mxu0  ;;  %v12860_v24 = vor.u32 %v15196_v41, %v12859_v60  ;;  %v12831_v28 = vld [vmem:[%s24323_s4 + $0x360] sm:$0xf]  ;;  %v12608_v29 = vor.u32 %v15133_v22, %v12607_v4  ;;  %v14025_v4 = vld [vmem:[%s24323_s4 + $0x1110] sm:$0xf]  ;;  %v15627_v22 = vld [vmem:[%s24323_s4 + $0x1128] sm:$0xf0] }
 0x534   :  { %v21298_v15 = vadd.f32 %v4909_v32, %v21148_v7  ;;  %v15136_v7 = vld [vmem:[%s24323_s4 + $0x1d4] sm:$0xf]  ;;  %v15634_v32 = vld [vmem:[%s24323_s4 + $0x1160] sm:$0xf0] }
 0x535   :  { %6337 = vmatpush.bf16.msrb.mxu3 %v12688_v14  ;;  %6432 = vmatpush.bf16.msra.mxu0 %v12916_v35  ;;  %v21303_v14 = vadd.f32 %v21040_v5, %v4879_v33  ;;  %v15080_v35 = vld [vmem:[%s24323_s4 + $0x14] sm:$0xf]  ;;  %v12629_v5 = vld [vmem:[%s24323_s4 + $0x1ec] sm:$0xf0]  ;;  %v14053_v33 = vld [vmem:[%s24323_s4 + $0x1148] sm:$0xf] }
 0x536   :  { %v12408_v44 = vor.u32 %v15080_v35, %v12405_v26  ;;  %v12632_v16 = vor.u32 %v15136_v7, %v12629_v5 }
 0x537   :  { %6319 = vmatpush.bf16.msrb.mxu2 %v12436_v36  ;;  %v13161_v36 = vld [vmem:[%s24323_s4 + $0x614] sm:$0xf0]  ;;  %13176 = vmatmul.msk.bf16.gmra.mxu1 %vm1897_vm2, %v19105_v13 }
 0x538   :  { %6250 = vmatmul.bf16.gmra.mxu2 %v19086_v23 }
 0x539   :  { %6338 = vmatpush.bf16.msrb.mxu3 %v12660_v51  ;;  %6433 = vmatpush.bf16.msra.mxu0 %v12888_v10  ;;  %v13164_v51 = vor.u32 %v15269_v11, %v13161_v36  ;;  %v15189_v10 = vld [vmem:[%s24323_s4 + $0x378] sm:$0xf0]  ;;  %v5942_v35 = vpop.f32.mrf.mxu2  ;;  %v5961_v26 = vpop.f32.mrf.mxu3  ;;  %v12579_v11 = vld [vmem:[%s24323_s4 + $0x168] sm:$0xf]  ;;  %v15126_v36 = vld [vmem:[%s24323_s4 + $0x180] sm:$0xf0] }
 0x53a   :  { %v12832_v7 = vor.u32 %v15189_v10, %v12831_v28  ;;  %v5943_v5 = vadd.f32 %v5942_v35, %v20005_v49  ;;  %v12803_v49 = vld [vmem:[%s24323_s4 + $0x328] sm:$0xf]  ;;  %v14026_v10 = vor.u32 %v15627_v22, %v14025_v4  ;;  %v12551_v35 = vld [vmem:[%s24323_s4 + $0x130] sm:$0xf]  ;;  %6269 = vmatmul.bf16.gmra.mxu3 %v19090_v21 }
 0x53b   :  { %6320 = vmatpush.bf16.msrb.mxu2 %v12408_v44  ;;  %6374 = vmatpush.bf16.msra.mxu1 %v13164_v51  ;;  %v14054_v44 = vor.u32 %v15634_v32, %v14053_v33  ;;  %v4911_v60 = vpop.f32.mrf.mxu1  ;;  %v12580_v51 = vor.u32 %v15126_v36, %v12579_v11  ;;  %v15262_v33 = vld [vmem:[%s24323_s4 + $0x5c4] sm:$0xf]  ;;  %v13133_v32 = vld [vmem:[%s24323_s4 + $0x5dc] sm:$0xf0]  ;;  %v15620_v11 = vld [vmem:[%s24323_s4 + $0x10f0] sm:$0xf0] }
 0x53c   :  { %v21354_v41 = vadd.f32 %v4911_v60, %v21198_v59  ;;  %v15182_v59 = vld [vmem:[%s24323_s4 + $0x340] sm:$0xf0]  ;;  %6364 = vmatmul.bf16.gmra.mxu0 %v19082_v54 }
 0x53d   :  { %6339 = vmatpush.bf16.msrb.mxu3 %v12632_v16  ;;  %6434 = vmatpush.bf16.msra.mxu0 %v12860_v24  ;;  %v5962_v16 = vadd.f32 %v5961_v26, %v5943_v5  ;;  %v21356_v24 = vpop.f32.mrf.mxu0  ;;  %v13136_v26 = vor.u32 %v15262_v33, %v13133_v32  ;;  %v12523_v33 = vld [vmem:[%s24323_s4 + $0xf8] sm:$0xf]  ;;  %v15112_v32 = vld [vmem:[%s24323_s4 + $0x110] sm:$0xf0] }
 0x53f   :  { %6389 = vmatpush.bf16.msra.mxu2 %v12608_v29  ;;  %v21377_v28 = vadd.f32 %v21090_v58, %v5962_v16  ;;  %v12804_v29 = vor.u32 %v15182_v59, %v12803_v49  ;;  %v15119_v58 = vld [vmem:[%s24323_s4 + $0x148] sm:$0xf0]  ;;  %v13997_v16 = vld [vmem:[%s24323_s4 + $0x10d8] sm:$0xf]  ;;  %6375 = vmatpush.bf16.msra.mxu1 %v13136_v26  ;;  %v13969_v26 = vld [vmem:[%s24323_s4 + $0x10a0] sm:$0xf] }
 0x540   :  { %v12552_v5 = vor.u32 %v15119_v58, %v12551_v35  ;;  %v15168_v35 = vld [vmem:[%s24323_s4 + $0x2d0] sm:$0xf0]  ;;  %v15613_v58 = vld [vmem:[%s24323_s4 + $0x10b8] sm:$0xf0] }
 0x541   :  { %6408 = vmatpush.bf16.msra.mxu3 %v12832_v7  ;;  %7872 = vmatpush.bf16.msrb.mxu0 %v14054_v44  ;;  %v12775_v7 = vld [vmem:[%s24323_s4 + $0x2f0] sm:$0xf]  ;;  %v15175_v44 = vld [vmem:[%s24323_s4 + $0x308] sm:$0xf0]  ;;  %v5944_v36 = vpop.f32.mrf.mxu2  ;;  %v5963_v49 = vpop.f32.mrf.mxu3 }
 0x542   :  { %v12776_v60 = vor.u32 %v15175_v44, %v12775_v7  ;;  %v5945_v59 = vadd.f32 %v5944_v36, %v20065_v27  ;;  %v12747_v27 = vld [vmem:[%s24323_s4 + $0x2b8] sm:$0xf]  ;;  %v12495_v36 = vld [vmem:[%s24323_s4 + $0xc0] sm:$0xf] }
 0x543   :  { %6390 = vmatpush.bf16.msra.mxu2 %v12580_v51  ;;  %v13998_v51 = vor.u32 %v15620_v11, %v13997_v16  ;;  %v4914_v4 = vpop.f32.mrf.mxu1  ;;  %v12748_v44 = vor.u32 %v15168_v35, %v12747_v27  ;;  %v13105_v16 = vld [vmem:[%s24323_s4 + $0x5a4] sm:$0xf0] }
 0x544   :  { %v21405_v22 = vadd.f32 %v4914_v4, %v21253_v45  ;;  %v12524_v45 = vor.u32 %v15112_v32, %v12523_v33  ;;  %v13941_v4 = vld [vmem:[%s24323_s4 + $0x1068] sm:$0xf] }
 0x545   :  { %6409 = vmatpush.bf16.msra.mxu3 %v12804_v29  ;;  %7873 = vmatpush.bf16.msrb.mxu0 %v14026_v10  ;;  %v5964_v29 = vadd.f32 %v5963_v49, %v5945_v59  ;;  %v21407_v10 = vpop.f32.mrf.mxu0  ;;  %v12719_v49 = vld [vmem:[%s24323_s4 + $0x280] sm:$0xf]  ;;  %v15161_v59 = vld [vmem:[%s24323_s4 + $0x298] sm:$0xf0] }
 0x546   :  { %v12720_v27 = vor.u32 %v15161_v59, %v12719_v49 }
 0x547   :  { %6391 = vmatpush.bf16.msra.mxu2 %v12552_v5  ;;  %v21432_v7 = vadd.f32 %v21145_v3, %v5964_v29  ;;  %v13970_v5 = vor.u32 %v15613_v58, %v13969_v26  ;;  %v15105_v3 = vld [vmem:[%s24323_s4 + $0xd8] sm:$0xf0]  ;;  %v15606_v29 = vld [vmem:[%s24323_s4 + $0x1080] sm:$0xf0]  ;;  %13177 = vmatmul.msk.bf16.vlgmr.msrb.gmra.mxu1 %vm1897_vm2, %v20668_v62 }
 0x548   :  { %6321 = vmatmul.bf16.vlgmr.msrb.gmra.mxu2 %v19028_v31 }
 0x549   :  { %6410 = vmatpush.bf16.msra.mxu3 %v12776_v60  ;;  %7874 = vmatpush.bf16.msrb.mxu0 %v13998_v51  ;;  %v15255_v60 = vld [vmem:[%s24323_s4 + $0x58c] sm:$0xf]  ;;  %v12496_v51 = vor.u32 %v15105_v3, %v12495_v36  ;;  %v5947_v33 = vpop.f32.mrf.mxu2  ;;  %v5966_v32 = vpop.f32.mrf.mxu3  ;;  %v13913_v36 = vld [vmem:[%s24323_s4 + $0x1030] sm:$0xf] }
 0x54a   :  { %v13108_v11 = vor.u32 %v15255_v60, %v13105_v16  ;;  %v5948_v35 = vadd.f32 %v5947_v33, %v20121_v12  ;;  %v12467_v60 = vld [vmem:[%s24323_s4 + $0x88] sm:$0xf]  ;;  %v15098_v16 = vld [vmem:[%s24323_s4 + $0xa0] sm:$0xf0]  ;;  %v15599_v3 = vld [vmem:[%s24323_s4 + $0x1048] sm:$0xf0]  ;;  %6340 = vmatmul.bf16.vlgmr.msrb.gmra.mxu3 %v19032_v43 }
 0x54b   :  { %6392 = vmatpush.bf16.msra.mxu2 %v12524_v45  ;;  %v13942_v45 = vor.u32 %v15606_v29, %v13941_v4  ;;  %v4916_v26 = vpop.f32.mrf.mxu1  ;;  %v12691_v12 = vld [vmem:[%s24323_s4 + $0x248] sm:$0xf]  ;;  %v13914_v59 = vor.u32 %v15599_v3, %v13913_v36  ;;  %v15248_v4 = vld [vmem:[%s24323_s4 + $0x554] sm:$0xf]  ;;  %v13077_v29 = vld [vmem:[%s24323_s4 + $0x56c] sm:$0xf0] }
 0x54c   :  { %6376 = vmatpush.bf16.msra.mxu1 %v13108_v11  ;;  %v21461_v58 = vadd.f32 %v4916_v26, %v21303_v14  ;;  %v12468_v14 = vor.u32 %v15098_v16, %v12467_v60  ;;  %v15154_v11 = vld [vmem:[%s24323_s4 + $0x260] sm:$0xf0]  ;;  %v12439_v33 = vld [vmem:[%s24323_s4 + $0x50] sm:$0xf]  ;;  %v15592_v60 = vld [vmem:[%s24323_s4 + $0x1010] sm:$0xf0]  ;;  %6435 = vmatmul.bf16.vlgmr.msra.gmra.mxu0 %v19024_v34 }
 0x54d   :  { %6411 = vmatpush.bf16.msra.mxu3 %v12748_v44  ;;  %7875 = vmatpush.bf16.msrb.mxu0 %v13970_v5  ;;  %v5967_v44 = vadd.f32 %v5966_v32, %v5948_v35  ;;  %v21463_v5 = vpop.f32.mrf.mxu0  ;;  %v13080_v32 = vor.u32 %v15248_v4, %v13077_v29  ;;  %v12411_v4 = vld [vmem:[%s24323_s4 + $0x18] sm:$0xf]  ;;  %v15084_v29 = vld [vmem:[%s24323_s4 + $0x30] sm:$0xf0]  ;;  %v15578_v34 = vld [vmem:[%s24323_s4 + $0xfa0] sm:$0xf0] }
 0x54f   :  { %6393 = vmatpush.bf16.msra.mxu2 %v12496_v51  ;;  %v21484_v49 = vadd.f32 %v21195_v56, %v5967_v44  ;;  %v12692_v51 = vor.u32 %v15154_v11, %v12691_v12  ;;  %v15091_v56 = vld [vmem:[%s24323_s4 + $0x68] sm:$0xf0]  ;;  %v13885_v44 = vld [vmem:[%s24323_s4 + $0xff8] sm:$0xf] }
 0x550   :  { %v12440_v35 = vor.u32 %v15091_v56, %v12439_v33  ;;  %6377 = vmatpush.bf16.msra.mxu1 %v13080_v32  ;;  %v15140_v33 = vld [vmem:[%s24323_s4 + $0x1f0] sm:$0xf0]  ;;  %v13857_v32 = vld [vmem:[%s24323_s4 + $0xfc0] sm:$0xf]  ;;  %v15585_v56 = vld [vmem:[%s24323_s4 + $0xfd8] sm:$0xf0] }
 0x551   :  { %6412 = vmatpush.bf16.msra.mxu3 %v12720_v27  ;;  %7876 = vmatpush.bf16.msrb.mxu0 %v13942_v45  ;;  %v12663_v27 = vld [vmem:[%s24323_s4 + $0x210] sm:$0xf]  ;;  %v15147_v45 = vld [vmem:[%s24323_s4 + $0x228] sm:$0xf0]  ;;  %v5949_v16 = vpop.f32.mrf.mxu2  ;;  %v5968_v12 = vpop.f32.mrf.mxu3 }
 0x552   :  { %v12664_v26 = vor.u32 %v15147_v45, %v12663_v27  ;;  %v5950_v11 = vadd.f32 %v5949_v16, %v20176_v0  ;;  %v12635_v0 = vld [vmem:[%s24323_s4 + $0x1d8] sm:$0xf]  ;;  %v13605_v16 = vld [vmem:[%s24323_s4 + $0xdc8] sm:$0xf] }
 0x553   :  { %6394 = vmatpush.bf16.msra.mxu2 %v12468_v14  ;;  %v13886_v14 = vor.u32 %v15592_v60, %v13885_v44  ;;  %v5999_v36 = vpop.f32.mrf.mxu1  ;;  %v12636_v45 = vor.u32 %v15140_v33, %v12635_v0  ;;  %v15273_v44 = vld [vmem:[%s24323_s4 + $0x618] sm:$0xf0] }
 0x554   :  { %v21512_v3 = vadd.f32 %v5999_v36, %v21377_v28  ;;  %v12412_v28 = vor.u32 %v15084_v29, %v12411_v4  ;;  %v14055_v36 = vld [vmem:[%s24323_s4 + $0x1164] sm:$0xf0] }
 0x555   :  { %6413 = vmatpush.bf16.msra.mxu3 %v12692_v51  ;;  %7877 = vmatpush.bf16.msrb.mxu0 %v13914_v59  ;;  %v5969_v51 = vadd.f32 %v5968_v12, %v5950_v11  ;;  %v21514_v59 = vpop.f32.mrf.mxu0  ;;  %v13829_v12 = vld [vmem:[%s24323_s4 + $0xf88] sm:$0xf]  ;;  %v15631_v11 = vld [vmem:[%s24323_s4 + $0x114c] sm:$0xf] }
 0x556   :  { %v13830_v29 = vor.u32 %v15578_v34, %v13829_v12  ;;  %v14058_v0 = vor.u32 %v15631_v11, %v14055_v36  ;;  %v13139_v34 = vld [vmem:[%s24323_s4 + $0x5c8] sm:$0xf]  ;;  %v15266_v11 = vld [vmem:[%s24323_s4 + $0x5e0] sm:$0xf0]  ;;  %v13549_v36 = vld [vmem:[%s24323_s4 + $0xd58] sm:$0xf] }
 0x557   :  { %6395 = vmatpush.bf16.msra.mxu2 %v12440_v35  ;;  %v21539_v27 = vadd.f32 %v21250_v40, %v5969_v51  ;;  %v13858_v35 = vor.u32 %v15585_v56, %v13857_v32  ;;  %v15522_v40 = vld [vmem:[%s24323_s4 + $0xde0] sm:$0xf0]  ;;  %13178 = vmatmul.msk.bf16.gmra.mxu1 %vm1897_vm2, %v19105_v13 }
 0x558   :  { %6326 = vmatmul.bf16.gmra.mxu2 %v19086_v23 }
 0x559   :  { %6414 = vmatpush.bf16.msra.mxu3 %v12664_v26  ;;  %7878 = vmatpush.bf16.msrb.mxu0 %v13886_v14  ;;  %v13167_v26 = vld [vmem:[%s24323_s4 + $0x600] sm:$0xf]  ;;  %v13606_v14 = vor.u32 %v15522_v40, %v13605_v16  ;;  %v6018_v51 = vpop.f32.mrf.mxu2  ;;  %v6037_v4 = vpop.f32.mrf.mxu3  ;;  %v14027_v16 = vld [vmem:[%s24323_s4 + $0x112c] sm:$0xf0] }
 0x55a   :  { %v13168_v60 = vor.u32 %v15273_v44, %v13167_v26  ;;  %v15515_v26 = vld [vmem:[%s24323_s4 + $0xda8] sm:$0xf0]  ;;  %6345 = vmatmul.bf16.gmra.mxu3 %v19090_v21 }
 0x55b   :  { %6396 = vmatpush.bf16.msra.mxu2 %v12412_v28  ;;  %v6019_v28 = vadd.f32 %v6018_v51, %v20226_v52  ;;  %v6001_v33 = vpop.f32.mrf.mxu1  ;;  %v13801_v52 = vld [vmem:[%s24323_s4 + $0xf50] sm:$0xf]  ;;  %v13140_v51 = vor.u32 %v15266_v11, %v13139_v34  ;;  %v15501_v34 = vld [vmem:[%s24323_s4 + $0xd38] sm:$0xf0] }
 0x55c   :  { %6450 = vmatpush.bf16.msrb.mxu1 %v13168_v60  ;;  %v21568_v32 = vadd.f32 %v6001_v33, %v21432_v7  ;;  %v15571_v7 = vld [vmem:[%s24323_s4 + $0xf68] sm:$0xf0]  ;;  %v15624_v60 = vld [vmem:[%s24323_s4 + $0x1114] sm:$0xf]  ;;  %v15617_v33 = vld [vmem:[%s24323_s4 + $0x10dc] sm:$0xf]  ;;  %6440 = vmatmul.bf16.gmra.mxu0 %v19082_v54 }
 0x55d   :  { %6415 = vmatpush.bf16.msra.mxu3 %v12636_v45  ;;  %7879 = vmatpush.bf16.msrb.mxu0 %v13858_v35  ;;  %v6038_v56 = vadd.f32 %v6037_v4, %v6019_v28  ;;  %v21570_v45 = vpop.f32.mrf.mxu0  ;;  %v13577_v35 = vld [vmem:[%s24323_s4 + $0xd90] sm:$0xf]  ;;  %v13802_v12 = vor.u32 %v15571_v7, %v13801_v52  ;;  %v13773_v4 = vld [vmem:[%s24323_s4 + $0xf18] sm:$0xf]  ;;  %v15557_v11 = vld [vmem:[%s24323_s4 + $0xef8] sm:$0xf0] }
 0x55e   :  { %v13578_v44 = vor.u32 %v15515_v26, %v13577_v35  ;;  %v15550_v54 = vld [vmem:[%s24323_s4 + $0xec0] sm:$0xf0] }
 0x55f   :  { %7834 = vmatpush.bf16.msrb.mxu2 %v13606_v14  ;;  %v21591_v40 = vadd.f32 %v21300_v53, %v6038_v56  ;;  %v14030_v14 = vor.u32 %v15624_v60, %v14027_v16  ;;  %v15508_v53 = vld [vmem:[%s24323_s4 + $0xd70] sm:$0xf0]  ;;  %v13999_v56 = vld [vmem:[%s24323_s4 + $0x10f4] sm:$0xf0] }
 0x560   :  { %6451 = vmatpush.bf16.msrb.mxu1 %v13140_v51  ;;  %v14002_v52 = vor.u32 %v15617_v33, %v13999_v56  ;;  %v13971_v51 = vld [vmem:[%s24323_s4 + $0x10bc] sm:$0xf0]  ;;  %v13493_v56 = vld [vmem:[%s24323_s4 + $0xce8] sm:$0xf] }
 0x561   :  { %7853 = vmatpush.bf16.msrb.mxu3 %v13830_v29  ;;  %7948 = vmatpush.bf16.msra.mxu0 %v14058_v0  ;;  %v15564_v29 = vld [vmem:[%s24323_s4 + $0xf30] sm:$0xf0]  ;;  %v13550_v0 = vor.u32 %v15508_v53, %v13549_v36  ;;  %v6020_v35 = vpop.f32.mrf.mxu2  ;;  %v6039_v26 = vpop.f32.mrf.mxu3  ;;  %v15610_v36 = vld [vmem:[%s24323_s4 + $0x10a4] sm:$0xf] }
 0x562   :  { %v13774_v28 = vor.u32 %v15564_v29, %v13773_v4  ;;  %v13974_v29 = vor.u32 %v15610_v36, %v13971_v51 }
 0x563   :  { %7835 = vmatpush.bf16.msrb.mxu2 %v13578_v44  ;;  %v6021_v44 = vadd.f32 %v6020_v35, %v20293_v19  ;;  %v6004_v7 = vpop.f32.mrf.mxu1  ;;  %v13745_v19 = vld [vmem:[%s24323_s4 + $0xee0] sm:$0xf]  ;;  %v13717_v35 = vld [vmem:[%s24323_s4 + $0xea8] sm:$0xf] }
 0x564   :  { %v21619_v60 = vadd.f32 %v6004_v7, %v21484_v49  ;;  %v13746_v4 = vor.u32 %v15557_v11, %v13745_v19 }
 0x565   :  { %7854 = vmatpush.bf16.msrb.mxu3 %v13802_v12  ;;  %7949 = vmatpush.bf16.msra.mxu0 %v14030_v14  ;;  %v6040_v16 = vadd.f32 %v6039_v26, %v6021_v44  ;;  %v21621_v12 = vpop.f32.mrf.mxu0  ;;  %v13521_v14 = vld [vmem:[%s24323_s4 + $0xd20] sm:$0xf]  ;;  %v13943_v44 = vld [vmem:[%s24323_s4 + $0x1084] sm:$0xf0] }
 0x566   :  { %v13522_v49 = vor.u32 %v15501_v34, %v13521_v14  ;;  %v13718_v14 = vor.u32 %v15550_v54, %v13717_v35  ;;  %v15252_v54 = vld [vmem:[%s24323_s4 + $0x570] sm:$0xf0] }
 0x567   :  { %7836 = vmatpush.bf16.msrb.mxu2 %v13550_v0  ;;  %v21646_v53 = vadd.f32 %v21356_v24, %v6040_v16  ;;  %v13111_v0 = vld [vmem:[%s24323_s4 + $0x590] sm:$0xf]  ;;  %v15494_v24 = vld [vmem:[%s24323_s4 + $0xd00] sm:$0xf0]  ;;  %13179 = vmatmul.msk.bf16.vlgmr.msra.gmra.mxu1 %vm1897_vm2, %v20668_v62 }
 0x568   :  { %v13494_v26 = vor.u32 %v15494_v24, %v13493_v56  ;;  %6397 = vmatmul.bf16.vlgmr.msra.gmra.mxu2 %v19028_v31  ;;  %v15519_v31 = vld [vmem:[%s24323_s4 + $0xdcc] sm:$0xf] }
 0x569   :  { %7855 = vmatpush.bf16.msrb.mxu3 %v13774_v28  ;;  %7950 = vmatpush.bf16.msra.mxu0 %v14002_v52  ;;  %v15259_v28 = vld [vmem:[%s24323_s4 + $0x5a8] sm:$0xf0]  ;;  %v6023_v7 = vpop.f32.mrf.mxu2  ;;  %v6042_v16 = vpop.f32.mrf.mxu3 }
 0x56a   :  { %v13112_v33 = vor.u32 %v15259_v28, %v13111_v0  ;;  %v15603_v52 = vld [vmem:[%s24323_s4 + $0x106c] sm:$0xf]  ;;  %v6024_v19 = vadd.f32 %v6023_v7, %v20343_v6  ;;  %v13689_v6 = vld [vmem:[%s24323_s4 + $0xe70] sm:$0xf]  ;;  %v15596_v28 = vld [vmem:[%s24323_s4 + $0x1034] sm:$0xf]  ;;  %6416 = vmatmul.bf16.vlgmr.msra.gmra.mxu3 %v19032_v43 }
 0x56b   :  { %7837 = vmatpush.bf16.msrb.mxu2 %v13522_v49  ;;  %v13946_v34 = vor.u32 %v15603_v52, %v13943_v44  ;;  %v6006_v49 = vpop.f32.mrf.mxu1  ;;  %v15543_v0 = vld [vmem:[%s24323_s4 + $0xe88] sm:$0xf0]  ;;  %v13437_v52 = vld [vmem:[%s24323_s4 + $0xc78] sm:$0xf]  ;;  %v13607_v43 = vld [vmem:[%s24323_s4 + $0xde4] sm:$0xf0] }
 0x56c   :  { %6452 = vmatpush.bf16.msrb.mxu1 %v13112_v33  ;;  %v21675_v11 = vadd.f32 %v6006_v49, %v21539_v27  ;;  %v6043_v36 = vadd.f32 %v6042_v16, %v6024_v19  ;;  %v13915_v33 = vld [vmem:[%s24323_s4 + $0x104c] sm:$0xf0]  ;;  %v13690_v24 = vor.u32 %v15543_v0, %v13689_v6  ;;  %v13661_v7 = vld [vmem:[%s24323_s4 + $0xe38] sm:$0xf]  ;;  %v15536_v16 = vld [vmem:[%s24323_s4 + $0xe50] sm:$0xf0]  ;;  %7880 = vmatmul.bf16.vlgmr.msrb.gmra.mxu0 %v19664_v8 }
 0x56d   :  { %7856 = vmatpush.bf16.msrb.mxu3 %v13746_v4  ;;  %7951 = vmatpush.bf16.msra.mxu0 %v13974_v29  ;;  %v21677_v51 = vpop.f32.mrf.mxu0  ;;  %v13465_v4 = vld [vmem:[%s24323_s4 + $0xcb0] sm:$0xf]  ;;  %v15487_v29 = vld [vmem:[%s24323_s4 + $0xcc8] sm:$0xf0]  ;;  %v13918_v35 = vor.u32 %v15596_v28, %v13915_v33  ;;  %v15589_v19 = vld [vmem:[%s24323_s4 + $0xffc] sm:$0xf] }
 0x56e   :  { %v13466_v27 = vor.u32 %v15487_v29, %v13465_v4  ;;  %v21698_v56 = vadd.f32 %v21407_v10, %v6043_v36  ;;  %v15480_v10 = vld [vmem:[%s24323_s4 + $0xc90] sm:$0xf0]  ;;  %v13887_v49 = vld [vmem:[%s24323_s4 + $0x1014] sm:$0xf0] }
 0x56f   :  { %7838 = vmatpush.bf16.msrb.mxu2 %v13494_v26  ;;  %v13083_v26 = vld [vmem:[%s24323_s4 + $0x558] sm:$0xf]  ;;  %v13890_v29 = vor.u32 %v15589_v19, %v13887_v49  ;;  %v13610_v19 = vor.u32 %v15519_v31, %v13607_v43  ;;  %v13831_v49 = vld [vmem:[%s24323_s4 + $0xfa4] sm:$0xf0]  ;;  %v14137_v43 = vld [vmem:[%s24323_s4 + $0x11f0] sm:$0xf] }
 0x570   :  { %v13084_v44 = vor.u32 %v15252_v54, %v13083_v26  ;;  %v15529_v26 = vld [vmem:[%s24323_s4 + $0xe18] sm:$0xf0]  ;;  %v15582_v54 = vld [vmem:[%s24323_s4 + $0xfc4] sm:$0xf] }
 0x571   :  { %7857 = vmatpush.bf16.msrb.mxu3 %v13718_v14  ;;  %7952 = vmatpush.bf16.msra.mxu0 %v13946_v34  ;;  %v13438_v14 = vor.u32 %v15480_v10, %v13437_v52  ;;  %v13662_v34 = vor.u32 %v15536_v16, %v13661_v7  ;;  %v6025_v36 = vpop.f32.mrf.mxu2  ;;  %v6044_v4 = vpop.f32.mrf.mxu3  ;;  %v13859_v52 = vld [vmem:[%s24323_s4 + $0xfdc] sm:$0xf0]  ;;  %v14165_v16 = vld [vmem:[%s24323_s4 + $0x1228] sm:$0xf] }
 0x572   :  { %6453 = vmatpush.bf16.msrb.mxu1 %v13084_v44  ;;  %v6026_v6 = vadd.f32 %v6025_v36, %v20398_v18  ;;  %v13633_v18 = vld [vmem:[%s24323_s4 + $0xe00] sm:$0xf]  ;;  %v13862_v7 = vor.u32 %v15582_v54, %v13859_v52  ;;  %v14061_v36 = vld [vmem:[%s24323_s4 + $0x1150] sm:$0xf]  ;;  %v15512_v54 = vld [vmem:[%s24323_s4 + $0xd94] sm:$0xf] }
 0x573   :  { %7839 = vmatpush.bf16.msrb.mxu2 %v13466_v27  ;;  %v6075_v27 = vpop.f32.mrf.mxu1  ;;  %v13634_v10 = vor.u32 %v15529_v26, %v13633_v18  ;;  %v13579_v52 = vld [vmem:[%s24323_s4 + $0xdac] sm:$0xf0] }
 0x574   :  { %v21726_v0 = vadd.f32 %v6075_v27, %v21591_v40  ;;  %v6045_v28 = vadd.f32 %v6044_v4, %v6026_v6  ;;  %v15635_v4 = vld [vmem:[%s24323_s4 + $0x1168] sm:$0xf0] }
 0x575   :  { %7858 = vmatpush.bf16.msrb.mxu3 %v13690_v24  ;;  %7953 = vmatpush.bf16.msra.mxu0 %v13918_v35  ;;  %v21728_v33 = vpop.f32.mrf.mxu0  ;;  %v13409_v24 = vld [vmem:[%s24323_s4 + $0xc40] sm:$0xf]  ;;  %v15473_v35 = vld [vmem:[%s24323_s4 + $0xc58] sm:$0xf0] }
 0x576   :  { %v13410_v40 = vor.u32 %v15473_v35, %v13409_v24  ;;  %v21753_v44 = vadd.f32 %v21463_v5, %v6045_v28  ;;  %v15575_v5 = vld [vmem:[%s24323_s4 + $0xf8c] sm:$0xf]  ;;  %v14062_v28 = vor.u32 %v15635_v4, %v14061_v36  ;;  %v15561_v36 = vld [vmem:[%s24323_s4 + $0xf1c] sm:$0xf]  ;;  %v13775_v4 = vld [vmem:[%s24323_s4 + $0xf34] sm:$0xf0] }
 0x577   :  { %7840 = vmatpush.bf16.msrb.mxu2 %v13438_v14  ;;  %v15662_v14 = vld [vmem:[%s24323_s4 + $0x1240] sm:$0xf0]  ;;  %v13834_v27 = vor.u32 %v15575_v5, %v13831_v49  ;;  %v15655_v5 = vld [vmem:[%s24323_s4 + $0x1208] sm:$0xf0]  ;;  %13180 = vmatmul.msk.bf16.gmra.mxu1 %vm1897_vm2, %v19105_v13 }
 0x578   :  { %v14138_v49 = vor.u32 %v15655_v5, %v14137_v43  ;;  %v13747_v5 = vld [vmem:[%s24323_s4 + $0xefc] sm:$0xf0]  ;;  %6402 = vmatmul.bf16.gmra.mxu2 %v19086_v23  ;;  %v15491_v23 = vld [vmem:[%s24323_s4 + $0xcec] sm:$0xf] }
 0x579   :  { %7859 = vmatpush.bf16.msrb.mxu3 %v13662_v34  ;;  %7954 = vmatpush.bf16.msra.mxu0 %v13890_v29  ;;  %v14166_v34 = vor.u32 %v15662_v14, %v14165_v16  ;;  %v6094_v29 = vpop.f32.mrf.mxu2  ;;  %v6113_v6 = vpop.f32.mrf.mxu3  ;;  %v15628_v16 = vld [vmem:[%s24323_s4 + $0x1130] sm:$0xf0] }
 0x57a   :  { %v6095_v24 = vadd.f32 %v6094_v29, %v20448_v17  ;;  %v15568_v17 = vld [vmem:[%s24323_s4 + $0xf54] sm:$0xf]  ;;  %6421 = vmatmul.bf16.gmra.mxu3 %v19090_v21  ;;  %v13495_v21 = vld [vmem:[%s24323_s4 + $0xd04] sm:$0xf0] }
 0x57b   :  { %7841 = vmatpush.bf16.msrb.mxu2 %v13410_v40  ;;  %7895 = vmatpush.bf16.msra.mxu1 %v14166_v34  ;;  %v6077_v35 = vpop.f32.mrf.mxu1 }
 0x57c   :  { %v21782_v18 = vadd.f32 %v6077_v35, %v21646_v53  ;;  %v6114_v40 = vadd.f32 %v6113_v6, %v6095_v24  ;;  %v13803_v53 = vld [vmem:[%s24323_s4 + $0xf6c] sm:$0xf0]  ;;  %v13778_v6 = vor.u32 %v15561_v36, %v13775_v4 }
 0x57d   :  { %7860 = vmatpush.bf16.msrb.mxu3 %v13634_v10  ;;  %7955 = vmatpush.bf16.msra.mxu0 %v13862_v7  ;;  %v21784_v26 = vpop.f32.mrf.mxu0  ;;  %v13582_v10 = vor.u32 %v15512_v54, %v13579_v52  ;;  %v14033_v7 = vld [vmem:[%s24323_s4 + $0x1118] sm:$0xf]  ;;  %v13806_v34 = vor.u32 %v15568_v17, %v13803_v53  ;;  %v6569_v17 = vld.sshfl [vmem:[#allocation1 + $0x30] sm:$0xff pattern:$0x73625140] }
 0x57e   :  { %v21805_v14 = vadd.f32 %v21514_v59, %v6114_v40  ;;  %v14034_v31 = vor.u32 %v15628_v16, %v14033_v7  ;;  %v13551_v59 = vld [vmem:[%s24323_s4 + $0xd74] sm:$0xf0]  ;;  %v6565_v53 = vld.sshfl [vmem:[#allocation1 + $0x10] sm:$0xff pattern:$0x73625140] }
 0x57f   :  { %7910 = vmatpush.bf16.msra.mxu2 %v13610_v19  ;;  %v15505_v19 = vld [vmem:[%s24323_s4 + $0xd5c] sm:$0xf]  ;;  %7896 = vmatpush.bf16.msra.mxu1 %v14138_v49  ;;  %v15614_v49 = vld [vmem:[%s24323_s4 + $0x10c0] sm:$0xf0] }
 0x580   :  { %v13554_v29 = vor.u32 %v15505_v19, %v13551_v59  ;;  %v13977_v19 = vld [vmem:[%s24323_s4 + $0x10a8] sm:$0xf] }
 0x581   :  { %7929 = vmatpush.bf16.msra.mxu3 %v13834_v27  ;;  %8024 = vmatpush.bf16.msrb.mxu0 %v14062_v28  ;;  %v14005_v27 = vld [vmem:[%s24323_s4 + $0x10e0] sm:$0xf]  ;;  %v15621_v28 = vld [vmem:[%s24323_s4 + $0x10f8] sm:$0xf0]  ;;  %v6096_v24 = vpop.f32.mrf.mxu2  ;;  %v6115_v35 = vpop.f32.mrf.mxu3  ;;  %v13978_v4 = vor.u32 %v15614_v49, %v13977_v19  ;;  %v13467_v19 = vld [vmem:[%s24323_s4 + $0xccc] sm:$0xf0] }
 0x582   :  { %v14006_v40 = vor.u32 %v15621_v28, %v14005_v27  ;;  %v6097_v54 = vadd.f32 %v6096_v24, %v20509_v37  ;;  %v13523_v37 = vld [vmem:[%s24323_s4 + $0xd3c] sm:$0xf0]  ;;  %v13498_v28 = vor.u32 %v15491_v23, %v13495_v21  ;;  %v13719_v24 = vld [vmem:[%s24323_s4 + $0xec4] sm:$0xf0]  ;;  %v13691_v49 = vld [vmem:[%s24323_s4 + $0xe8c] sm:$0xf0] }
 0x583   :  { %7911 = vmatpush.bf16.msra.mxu2 %v13582_v10  ;;  %v6080_v52 = vpop.f32.mrf.mxu1  ;;  %v14081_v23 = vld [vmem:[%s24323_s4 + $0x1180] sm:$0xf]  ;;  %v15641_v21 = vld [vmem:[%s24323_s4 + $0x1198] sm:$0xf0] }
 0x584   :  { %v21833_v10 = vadd.f32 %v6080_v52, %v21698_v56  ;;  %v6116_v7 = vadd.f32 %v6115_v35, %v6097_v54  ;;  %v15554_v56 = vld [vmem:[%s24323_s4 + $0xee4] sm:$0xf]  ;;  %v13949_v35 = vld [vmem:[%s24323_s4 + $0x1070] sm:$0xf] }
 0x585   :  { %7930 = vmatpush.bf16.msra.mxu3 %v13806_v34  ;;  %8025 = vmatpush.bf16.msrb.mxu0 %v14034_v31  ;;  %v21835_v16 = vpop.f32.mrf.mxu0  ;;  %v15498_v34 = vld [vmem:[%s24323_s4 + $0xd24] sm:$0xf]  ;;  %v21848_v31 = vpack.c.bf16 %v6569_v17, %v6565_v53  ;;  %v13750_v36 = vor.u32 %v15554_v56, %v13747_v5  ;;  %v15484_v5 = vld [vmem:[%s24323_s4 + $0xcb4] sm:$0xf] }
 0x586   :  { %v13526_v43 = vor.u32 %v15498_v34, %v13523_v37  ;;  %v21862_v59 = vadd.f32 %v21570_v45, %v6116_v7  ;;  %v15547_v45 = vld [vmem:[%s24323_s4 + $0xeac] sm:$0xf] }
 0x587   :  { %7912 = vmatpush.bf16.msra.mxu2 %v13554_v29  ;;  %v14109_v29 = vld [vmem:[%s24323_s4 + $0x11b8] sm:$0xf]  ;;  %7885 = vmatmul.bf16.gmra.mxu0 %v21848_v31  ;;  %v13722_v17 = vor.u32 %v15547_v45, %v13719_v24  ;;  %v15477_v45 = vld [vmem:[%s24323_s4 + $0xc7c] sm:$0xf] }
 0x588   :  { %v15533_v24 = vld [vmem:[%s24323_s4 + $0xe3c] sm:$0xf]  ;;  %13181 = vmatmul.msk.bf16.vlgmr.msrb.gmra.mxu1 %vm1897_vm2, %v20668_v62  ;;  %7842 = vmatmul.bf16.vlgmr.msrb.gmra.mxu2 %v19659_v30 }
 0x589   :  { %7931 = vmatpush.bf16.msra.mxu3 %v13778_v6  ;;  %8026 = vmatpush.bf16.msrb.mxu0 %v14006_v40  ;;  %v15648_v6 = vld [vmem:[%s24323_s4 + $0x11d0] sm:$0xf0]  ;;  %v15607_v40 = vld [vmem:[%s24323_s4 + $0x1088] sm:$0xf0]  ;;  %v6099_v54 = vpop.f32.mrf.mxu2  ;;  %v6118_v52 = vpop.f32.mrf.mxu3 }
 0x58a   :  { %v14110_v27 = vor.u32 %v15648_v6, %v14109_v29  ;;  %v13950_v53 = vor.u32 %v15607_v40, %v13949_v35  ;;  %v6100_v7 = vadd.f32 %v6099_v54, %v20559_v25  ;;  %v15540_v25 = vld [vmem:[%s24323_s4 + $0xe74] sm:$0xf]  ;;  %v13663_v35 = vld [vmem:[%s24323_s4 + $0xe54] sm:$0xf0]  ;;  %7861 = vmatmul.bf16.vlgmr.msrb.gmra.mxu3 %v19661_v47 }
 0x58b   :  { %7913 = vmatpush.bf16.msra.mxu2 %v13526_v43  ;;  %v6082_v34 = vpop.f32.mrf.mxu1  ;;  %v13694_v6 = vor.u32 %v15540_v25, %v13691_v49  ;;  %v13666_v54 = vor.u32 %v15533_v24, %v13663_v35  ;;  %v15470_v49 = vld [vmem:[%s24323_s4 + $0xc44] sm:$0xf]  ;;  %v13613_v24 = vld [vmem:[%s24323_s4 + $0xdd0] sm:$0xf] }
 0x58c   :  { %7897 = vmatpush.bf16.msra.mxu1 %v14110_v27  ;;  %v21891_v37 = vadd.f32 %v6082_v34, %v21753_v44  ;;  %v6119_v56 = vadd.f32 %v6118_v52, %v6100_v7  ;;  %v13470_v44 = vor.u32 %v15484_v5, %v13467_v19  ;;  %v13893_v52 = vld [vmem:[%s24323_s4 + $0x1000] sm:$0xf]  ;;  %v13837_v35 = vld [vmem:[%s24323_s4 + $0xf90] sm:$0xf] }
 0x58d   :  { %7932 = vmatpush.bf16.msra.mxu3 %v13750_v36  ;;  %8027 = vmatpush.bf16.msrb.mxu0 %v13978_v4  ;;  %v21893_v43 = vpop.f32.mrf.mxu0  ;;  %v13921_v36 = vld [vmem:[%s24323_s4 + $0x1038] sm:$0xf]  ;;  %v15600_v4 = vld [vmem:[%s24323_s4 + $0x1050] sm:$0xf0] }
 0x58e   :  { %v21914_v29 = vadd.f32 %v21621_v12, %v6119_v56  ;;  %v13922_v27 = vor.u32 %v15600_v4, %v13921_v36  ;;  %v13439_v12 = vld [vmem:[%s24323_s4 + $0xc94] sm:$0xf0]  ;;  %v13411_v36 = vld [vmem:[%s24323_s4 + $0xc5c] sm:$0xf0] }
 0x58f   :  { %7914 = vmatpush.bf16.msra.mxu2 %v13498_v28  ;;  %v14082_v28 = vor.u32 %v15641_v21, %v14081_v23  ;;  %v13442_v40 = vor.u32 %v15477_v45, %v13439_v12  ;;  %v13635_v4 = vld [vmem:[%s24323_s4 + $0xe1c] sm:$0xf0]  ;;  %v15659_v45 = vld [vmem:[%s24323_s4 + $0x122c] sm:$0xf] }
 0x591   :  { %7933 = vmatpush.bf16.msra.mxu3 %v13722_v17  ;;  %8028 = vmatpush.bf16.msrb.mxu0 %v13950_v53  ;;  %v15593_v17 = vld [vmem:[%s24323_s4 + $0x1018] sm:$0xf0]  ;;  %v6101_v53 = vpop.f32.mrf.mxu2  ;;  %v6120_v7 = vpop.f32.mrf.mxu3 }
 0x592   :  { %7898 = vmatpush.bf16.msra.mxu1 %v14082_v28  ;;  %v13894_v34 = vor.u32 %v15593_v17, %v13893_v52  ;;  %v6102_v56 = vadd.f32 %v6101_v53, %v20614_v61  ;;  %v15526_v61 = vld [vmem:[%s24323_s4 + $0xe04] sm:$0xf]  ;;  %v14167_v28 = vld [vmem:[%s24323_s4 + $0x1244] sm:$0xf0]  ;;  %v15632_v52 = vld [vmem:[%s24323_s4 + $0x1154] sm:$0xf] }
 0x593   :  { %7915 = vmatpush.bf16.msra.mxu2 %v13470_v44  ;;  %v6151_v5 = vpop.f32.mrf.mxu1  ;;  %v13638_v62 = vor.u32 %v15526_v61, %v13635_v4  ;;  %v14170_v12 = vor.u32 %v15659_v45, %v14167_v28  ;;  %v14063_v17 = vld [vmem:[%s24323_s4 + $0x116c] sm:$0xf0]  ;;  %v15516_v4 = vld [vmem:[%s24323_s4 + $0xdb0] sm:$0xf0] }
 0x594   :  { %v21942_v19 = vadd.f32 %v6151_v5, %v21805_v14  ;;  %v6121_v25 = vadd.f32 %v6120_v7, %v6102_v56  ;;  %v13414_v14 = vor.u32 %v15470_v49, %v13411_v36  ;;  %v14066_v56 = vor.u32 %v15632_v52, %v14063_v17 }
 0x595   :  { %7934 = vmatpush.bf16.msra.mxu3 %v13694_v6  ;;  %8029 = vmatpush.bf16.msrb.mxu0 %v13922_v27  ;;  %v21944_v44 = vpop.f32.mrf.mxu0  ;;  %v13865_v6 = vld [vmem:[%s24323_s4 + $0xfc8] sm:$0xf]  ;;  %v15586_v27 = vld [vmem:[%s24323_s4 + $0xfe0] sm:$0xf0] }
 0x596   :  { %v21969_v23 = vadd.f32 %v21677_v51, %v6121_v25  ;;  %v13866_v21 = vor.u32 %v15586_v27, %v13865_v6  ;;  %v15523_v51 = vld [vmem:[%s24323_s4 + $0xde8] sm:$0xf0]  ;;  %7971 = vmatpush.bf16.msrb.mxu1 %v14170_v12  ;;  %v15625_v27 = vld [vmem:[%s24323_s4 + $0x111c] sm:$0xf]  ;;  %v15652_v12 = vld [vmem:[%s24323_s4 + $0x11f4] sm:$0xf] }
 0x597   :  { %7916 = vmatpush.bf16.msra.mxu2 %v13442_v40  ;;  %7956 = vmatmul.bf16.vlgmr.msra.gmra.mxu0 %v19664_v8  ;;  %v13614_v40 = vor.u32 %v15523_v51, %v13613_v24  ;;  %v14139_v24 = vld [vmem:[%s24323_s4 + $0x120c] sm:$0xf0]  ;;  %v13557_v51 = vld [vmem:[%s24323_s4 + $0xd60] sm:$0xf] }
 0x598   :  { %13182 = vmatmul.msk.bf16.gmra.mxu1 %vm1897_vm2, %v19105_v13 }
 0x599   :  { %7935 = vmatpush.bf16.msra.mxu3 %v13666_v54  ;;  %8030 = vmatpush.bf16.msrb.mxu0 %v13894_v34  ;;  %v15579_v54 = vld [vmem:[%s24323_s4 + $0xfa8] sm:$0xf0]  ;;  %v6170_v53 = vpop.f32.mrf.mxu2  ;;  %v6189_v7 = vpop.f32.mrf.mxu3 }
 0x59a   :  { %v13838_v34 = vor.u32 %v15579_v54, %v13837_v35  ;;  %v6171_v5 = vadd.f32 %v6170_v53, %v20664_v9  ;;  %v13809_v9 = vld [vmem:[%s24323_s4 + $0xf58] sm:$0xf]  ;;  %v14142_v35 = vor.u32 %v15652_v12, %v14139_v24  ;;  %v15565_v54 = vld [vmem:[%s24323_s4 + $0xf38] sm:$0xf0]  ;;  %v15618_v53 = vld [vmem:[%s24323_s4 + $0x10e4] sm:$0xf] }
 0x59b   :  { %7917 = vmatpush.bf16.msra.mxu2 %v13414_v14  ;;  %v6153_v25 = vpop.f32.mrf.mxu1  ;;  %v13585_v14 = vld [vmem:[%s24323_s4 + $0xd98] sm:$0xf]  ;;  %v13753_v12 = vld [vmem:[%s24323_s4 + $0xee8] sm:$0xf] }
 0x59c   :  { %v21998_v49 = vadd.f32 %v6153_v25, %v21862_v59  ;;  %v6190_v36 = vadd.f32 %v6189_v7, %v6171_v5  ;;  %v13586_v6 = vor.u32 %v15516_v4, %v13585_v14  ;;  %v15572_v59 = vld [vmem:[%s24323_s4 + $0xf70] sm:$0xf0]  ;;  %v14007_v7 = vld [vmem:[%s24323_s4 + $0x10fc] sm:$0xf0]  ;;  %7972 = vmatpush.bf16.msrb.mxu1 %v14142_v35  ;;  %v15611_v35 = vld [vmem:[%s24323_s4 + $0x10ac] sm:$0xf] }
 0x59d   :  { %7936 = vmatpush.bf16.msra.mxu3 %v13638_v62  ;;  %8031 = vmatpush.bf16.msrb.mxu0 %v13866_v21  ;;  %v22000_v61 = vpop.f32.mrf.mxu0  ;;  %v14035_v62 = vld [vmem:[%s24323_s4 + $0x1134] sm:$0xf0]  ;;  %v13810_v45 = vor.u32 %v15572_v59, %v13809_v9  ;;  %v6567_v5 = vld.sshfl [vmem:[#allocation1 + $0x20] sm:$0xff pattern:$0x73625140] }
 0x59e   :  { %v22021_v21 = vadd.f32 %v21728_v33, %v6190_v36  ;;  %v14038_v28 = vor.u32 %v15625_v27, %v14035_v62  ;;  %v15509_v33 = vld [vmem:[%s24323_s4 + $0xd78] sm:$0xf0]  ;;  %v6568_v25 = vld.sshfl [vmem:[#allocation1 + $0x28] sm:$0xff pattern:$0x73625140]  ;;  %v14010_v36 = vor.u32 %v15618_v53, %v14007_v7 }
 0x59f   :  { %7986 = vmatpush.bf16.msrb.mxu2 %v13614_v40  ;;  %v13781_v40 = vld [vmem:[%s24323_s4 + $0xf20] sm:$0xf]  ;;  %v13558_v52 = vor.u32 %v15509_v33, %v13557_v51  ;;  %v6564_v59 = vld.sshfl [vmem:[#allocation1 + $0x8] sm:$0xff pattern:$0x73625140] }
 0x5a0   :  { %v13782_v17 = vor.u32 %v15565_v54, %v13781_v40  ;;  %v15558_v51 = vld [vmem:[%s24323_s4 + $0xf00] sm:$0xf0]  ;;  %v13979_v33 = vld [vmem:[%s24323_s4 + $0x10c4] sm:$0xf0]  ;;  %v13501_v7 = vld [vmem:[%s24323_s4 + $0xcf0] sm:$0xf] }
 0x5a1   :  { %8005 = vmatpush.bf16.msrb.mxu3 %v13838_v34  ;;  %8100 = vmatpush.bf16.msra.mxu0 %v14066_v56  ;;  %v6172_v34 = vpop.f32.mrf.mxu2  ;;  %v6191_v56 = vpop.f32.mrf.mxu3  ;;  %v13754_v13 = vor.u32 %v15558_v51, %v13753_v12  ;;  %v13982_v54 = vor.u32 %v15611_v35, %v13979_v33  ;;  %v13473_v51 = vld [vmem:[%s24323_s4 + $0xcb8] sm:$0xf]  ;;  %v15488_v35 = vld [vmem:[%s24323_s4 + $0xcd0] sm:$0xf0] }
 0x5a2   :  { %v6173_v14 = vadd.f32 %v6172_v34, %v20723_v39  ;;  %v13529_v39 = vld [vmem:[%s24323_s4 + $0xd28] sm:$0xf]  ;;  %v13725_v34 = vld [vmem:[%s24323_s4 + $0xeb0] sm:$0xf]  ;;  %v15544_v33 = vld [vmem:[%s24323_s4 + $0xe90] sm:$0xf0] }
 0x5a3   :  { %7987 = vmatpush.bf16.msrb.mxu2 %v13586_v6  ;;  %v6156_v4 = vpop.f32.mrf.mxu1  ;;  %v6563_v6 = vld.sshfl [vmem:[#allocation1] sm:$0xff pattern:$0x73625140] }
 0x5a4   :  { %v22049_v9 = vadd.f32 %v6156_v4, %v21914_v29  ;;  %v6192_v27 = vadd.f32 %v6191_v56, %v6173_v14  ;;  %v15502_v29 = vld [vmem:[%s24323_s4 + $0xd40] sm:$0xf0] }
 0x5a5   :  { %8006 = vmatpush.bf16.msrb.mxu3 %v13810_v45  ;;  %8101 = vmatpush.bf16.msra.mxu0 %v14038_v28  ;;  %v22051_v62 = vpop.f32.mrf.mxu0  ;;  %v22053_v45 = vpack.c.bf16 %v6567_v5, %v6563_v6  ;;  %v22055_v28 = vpack.c.bf16 %v6568_v25, %v6564_v59  ;;  %v13530_v24 = vor.u32 %v15502_v29, %v13529_v39  ;;  %v15551_v5 = vld [vmem:[%s24323_s4 + $0xec8] sm:$0xf0]  ;;  %v15604_v25 = vld [vmem:[%s24323_s4 + $0x1074] sm:$0xf] }
 0x5a6   :  { %v22080_v40 = vadd.f32 %v21784_v26, %v6192_v27  ;;  %v15495_v26 = vld [vmem:[%s24323_s4 + $0xd08] sm:$0xf0]  ;;  %v13726_v6 = vor.u32 %v15551_v5, %v13725_v34  ;;  %v13445_v34 = vld [vmem:[%s24323_s4 + $0xc80] sm:$0xf] }
 0x5a7   :  { %7988 = vmatpush.bf16.msrb.mxu2 %v13558_v52  ;;  %7866 = vmatmul.bf16.gmra.mxu3 %v22055_v28  ;;  %v15645_v52 = vld [vmem:[%s24323_s4 + $0x11bc] sm:$0xf]  ;;  %v13502_v56 = vor.u32 %v15495_v26, %v13501_v7  ;;  %v15638_v7 = vld [vmem:[%s24323_s4 + $0x1184] sm:$0xf]  ;;  %v14083_v26 = vld [vmem:[%s24323_s4 + $0x119c] sm:$0xf0] }
 0x5a8   :  { %7847 = vmatmul.bf16.gmra.mxu2 %v22053_v45  ;;  %7961 = vmatmul.bf16.gmra.mxu0 %v21848_v31  ;;  %v13669_v5 = vld [vmem:[%s24323_s4 + $0xe40] sm:$0xf] }
 0x5a9   :  { %8007 = vmatpush.bf16.msrb.mxu3 %v13782_v17  ;;  %8102 = vmatpush.bf16.msra.mxu0 %v14010_v36  ;;  %v14111_v17 = vld [vmem:[%s24323_s4 + $0x11d4] sm:$0xf0]  ;;  %v13951_v36 = vld [vmem:[%s24323_s4 + $0x108c] sm:$0xf0]  ;;  %v6175_v14 = vpop.f32.mrf.mxu2  ;;  %v6194_v4 = vpop.f32.mrf.mxu3 }
 0x5aa   :  { %v14114_v53 = vor.u32 %v15645_v52, %v14111_v17  ;;  %v13954_v59 = vor.u32 %v15604_v25, %v13951_v36  ;;  %v6176_v27 = vadd.f32 %v6175_v14, %v20773_v63  ;;  %v13697_v63 = vld [vmem:[%s24323_s4 + $0xe78] sm:$0xf]  ;;  %v15537_v25 = vld [vmem:[%s24323_s4 + $0xe58] sm:$0xf0]  ;;  %14191 = vmatmul.msk.bf16.vlgmr.msra.gmra.mxu1 %vm1897_vm2, %v19666_v55 }
 0x5ab   :  { %7989 = vmatpush.bf16.msrb.mxu2 %v13530_v24  ;;  %v6158_v39 = vpop.f32.mrf.mxu1  ;;  %v13698_v17 = vor.u32 %v15544_v33, %v13697_v63  ;;  %v13670_v14 = vor.u32 %v15537_v25, %v13669_v5  ;;  %v13417_v33 = vld [vmem:[%s24323_s4 + $0xc48] sm:$0xf]  ;;  %v15520_v25 = vld [vmem:[%s24323_s4 + $0xdd4] sm:$0xf] }
 0x5ac   :  { %7973 = vmatpush.bf16.msrb.mxu1 %v14114_v53  ;;  %v22109_v29 = vadd.f32 %v6158_v39, %v21969_v23  ;;  %v6195_v12 = vadd.f32 %v6194_v4, %v6176_v27  ;;  %v13474_v23 = vor.u32 %v15488_v35, %v13473_v51  ;;  %v15590_v4 = vld [vmem:[%s24323_s4 + $0x1004] sm:$0xf] }
 0x5ad   :  { %8008 = vmatpush.bf16.msrb.mxu3 %v13754_v13  ;;  %8103 = vmatpush.bf16.msra.mxu0 %v13982_v54  ;;  %v22111_v24 = vpop.f32.mrf.mxu0  ;;  %v15597_v13 = vld [vmem:[%s24323_s4 + $0x103c] sm:$0xf]  ;;  %v13923_v54 = vld [vmem:[%s24323_s4 + $0x1054] sm:$0xf0] }
 0x5ae   :  { %v22132_v52 = vadd.f32 %v21835_v16, %v6195_v12  ;;  %v13926_v53 = vor.u32 %v15597_v13, %v13923_v54  ;;  %v15481_v16 = vld [vmem:[%s24323_s4 + $0xc98] sm:$0xf0]  ;;  %v15474_v13 = vld [vmem:[%s24323_s4 + $0xc60] sm:$0xf0] }
 0x5af   :  { %7990 = vmatpush.bf16.msrb.mxu2 %v13502_v56  ;;  %v14086_v56 = vor.u32 %v15638_v7, %v14083_v26  ;;  %v13446_v36 = vor.u32 %v15481_v16, %v13445_v34  ;;  %v15530_v54 = vld [vmem:[%s24323_s4 + $0xe20] sm:$0xf0]  ;;  %v15663_v16 = vld [vmem:[%s24323_s4 + $0x1248] sm:$0xf0] }
 0x5b1   :  { %8009 = vmatpush.bf16.msrb.mxu3 %v13726_v6  ;;  %8104 = vmatpush.bf16.msra.mxu0 %v13954_v59  ;;  %v13895_v6 = vld [vmem:[%s24323_s4 + $0x101c] sm:$0xf0]  ;;  %v6177_v59 = vpop.f32.mrf.mxu2  ;;  %v6196_v27 = vpop.f32.mrf.mxu3 }
 0x5b2   :  { %7974 = vmatpush.bf16.msrb.mxu1 %v14086_v56  ;;  %v13898_v39 = vor.u32 %v15590_v4, %v13895_v6  ;;  %v6178_v12 = vadd.f32 %v6177_v59, %v20828_v48  ;;  %v13641_v48 = vld [vmem:[%s24323_s4 + $0xe08] sm:$0xf]  ;;  %v14173_v56 = vld [vmem:[%s24323_s4 + $0x1230] sm:$0xf]  ;;  %v14069_v6 = vld [vmem:[%s24323_s4 + $0x1158] sm:$0xf] }
 0x5b3   :  { %7991 = vmatpush.bf16.msrb.mxu2 %v13474_v23  ;;  %v6227_v51 = vpop.f32.mrf.mxu1  ;;  %v13642_v26 = vor.u32 %v15530_v54, %v13641_v48  ;;  %v14174_v5 = vor.u32 %v15663_v16, %v14173_v56  ;;  %v13839_v4 = vld [vmem:[%s24323_s4 + $0xfac] sm:$0xf0]  ;;  %v15636_v59 = vld [vmem:[%s24323_s4 + $0x1170] sm:$0xf0]  ;;  %v15513_v54 = vld [vmem:[%s24323_s4 + $0xd9c] sm:$0xf] }
 0x5b4   :  { %v22160_v35 = vadd.f32 %v6227_v51, %v22021_v21  ;;  %v6197_v63 = vadd.f32 %v6196_v27, %v6178_v12  ;;  %v13418_v21 = vor.u32 %v15474_v13, %v13417_v33  ;;  %v14070_v51 = vor.u32 %v15636_v59, %v14069_v6  ;;  %v6570_v56 = vld.sshfl [vmem:[#allocation1 + $0x38] sm:$0xff pattern:$0x73625140]  ;;  %v15562_v6 = vld [vmem:[%s24323_s4 + $0xf24] sm:$0xf] }
 0x5b5   :  { %8010 = vmatpush.bf16.msrb.mxu3 %v13698_v17  ;;  %8105 = vmatpush.bf16.msra.mxu0 %v13926_v53  ;;  %v22162_v23 = vpop.f32.mrf.mxu0  ;;  %v15583_v17 = vld [vmem:[%s24323_s4 + $0xfcc] sm:$0xf]  ;;  %v13867_v53 = vld [vmem:[%s24323_s4 + $0xfe4] sm:$0xf0]  ;;  %v13783_v59 = vld [vmem:[%s24323_s4 + $0xf3c] sm:$0xf0] }
 0x5b6   :  { %v22187_v7 = vadd.f32 %v21893_v43, %v6197_v63  ;;  %v13870_v34 = vor.u32 %v15583_v17, %v13867_v53  ;;  %v13615_v43 = vld [vmem:[%s24323_s4 + $0xdec] sm:$0xf0]  ;;  %8047 = vmatpush.bf16.msra.mxu1 %v14174_v5  ;;  %v13587_v17 = vld [vmem:[%s24323_s4 + $0xdb4] sm:$0xf0] }
 0x5b7   :  { %7992 = vmatpush.bf16.msrb.mxu2 %v13446_v36  ;;  %7937 = vmatmul.bf16.vlgmr.msra.gmra.mxu3 %v19661_v47  ;;  %v15576_v36 = vld [vmem:[%s24323_s4 + $0xf94] sm:$0xf]  ;;  %v13590_v53 = vor.u32 %v15513_v54, %v13587_v17 }
 0x5b8   :  { %7918 = vmatmul.bf16.vlgmr.msra.gmra.mxu2 %v19659_v30  ;;  %8032 = vmatmul.bf16.vlgmr.msrb.gmra.mxu0 %v19664_v8  ;;  %v13842_v12 = vor.u32 %v15576_v36, %v13839_v4  ;;  %v15656_v36 = vld [vmem:[%s24323_s4 + $0x1210] sm:$0xf0] }
 0x5b9   :  { %8011 = vmatpush.bf16.msrb.mxu3 %v13670_v14  ;;  %8106 = vmatpush.bf16.msra.mxu0 %v13898_v39  ;;  %v13618_v14 = vor.u32 %v15520_v25, %v13615_v43  ;;  %v6246_v27 = vpop.f32.mrf.mxu2  ;;  %v6265_v39 = vpop.f32.mrf.mxu3  ;;  %v14145_v43 = vld [vmem:[%s24323_s4 + $0x11f8] sm:$0xf] }
 0x5ba   :  { %v6247_v63 = vadd.f32 %v6246_v27, %v20878_v50  ;;  %v15569_v50 = vld [vmem:[%s24323_s4 + $0xf5c] sm:$0xf]  ;;  %v14146_v4 = vor.u32 %v15656_v36, %v14145_v43  ;;  %v13985_v43 = vld [vmem:[%s24323_s4 + $0x10b0] sm:$0xf]  ;;  %v15615_v36 = vld [vmem:[%s24323_s4 + $0x10c8] sm:$0xf0] }
 0x5bb   :  { %7993 = vmatpush.bf16.msrb.mxu2 %v13418_v21  ;;  %v6229_v33 = vpop.f32.mrf.mxu1 }
 0x5bc   :  { %v22216_v13 = vadd.f32 %v6229_v33, %v22080_v40  ;;  %v6266_v48 = vadd.f32 %v6265_v39, %v6247_v63  ;;  %v13811_v40 = vld [vmem:[%s24323_s4 + $0xf74] sm:$0xf0]  ;;  %v13786_v39 = vor.u32 %v15562_v6, %v13783_v59  ;;  %8048 = vmatpush.bf16.msra.mxu1 %v14146_v4  ;;  %v14117_v6 = vld [vmem:[%s24323_s4 + $0x11c0] sm:$0xf]  ;;  %v15649_v59 = vld [vmem:[%s24323_s4 + $0x11d8] sm:$0xf0] }
 0x5bd   :  { %8012 = vmatpush.bf16.msrb.mxu3 %v13642_v26  ;;  %8107 = vmatpush.bf16.msra.mxu0 %v13870_v34  ;;  %v22218_v21 = vpop.f32.mrf.mxu0  ;;  %v14041_v26 = vld [vmem:[%s24323_s4 + $0x1120] sm:$0xf]  ;;  %v15629_v34 = vld [vmem:[%s24323_s4 + $0x1138] sm:$0xf0]  ;;  %v13814_v5 = vor.u32 %v15569_v50, %v13811_v40 }
 0x5be   :  { %v22239_v16 = vadd.f32 %v21944_v44, %v6266_v48  ;;  %v14042_v25 = vor.u32 %v15629_v34, %v14041_v26  ;;  %v13559_v44 = vld [vmem:[%s24323_s4 + $0xd7c] sm:$0xf0]  ;;  %v6566_v50 = vld.sshfl [vmem:[#allocation1 + $0x18] sm:$0xff pattern:$0x73625140] }
 0x5bf   :  { %8062 = vmatpush.bf16.msra.mxu2 %v13618_v14  ;;  %v15506_v14 = vld [vmem:[%s24323_s4 + $0xd64] sm:$0xf]  ;;  %v22269_v40 = vpack.c.bf16 %v6570_v56, %v6566_v50 }
 0x5c0   :  { %v13562_v27 = vor.u32 %v15506_v14, %v13559_v44  ;;  %v13986_v44 = vor.u32 %v15615_v36, %v13985_v43  ;;  %v15485_v43 = vld [vmem:[%s24323_s4 + $0xcbc] sm:$0xf]  ;;  %v13475_v36 = vld [vmem:[%s24323_s4 + $0xcd4] sm:$0xf0] }
 0x5c1   :  { %8081 = vmatpush.bf16.msra.mxu3 %v13842_v12  ;;  %8176 = vmatpush.bf16.msrb.mxu0 %v14070_v51  ;;  %v14013_v12 = vld [vmem:[%s24323_s4 + $0x10e8] sm:$0xf]  ;;  %v15622_v51 = vld [vmem:[%s24323_s4 + $0x1100] sm:$0xf0]  ;;  %v6248_v63 = vpop.f32.mrf.mxu2  ;;  %v6267_v33 = vpop.f32.mrf.mxu3 }
 0x5c2   :  { %v14014_v48 = vor.u32 %v15622_v51, %v14013_v12  ;;  %v6249_v54 = vadd.f32 %v6248_v63, %v20933_v42  ;;  %v13531_v42 = vld [vmem:[%s24323_s4 + $0xd44] sm:$0xf0]  ;;  %14192 = vmatmul.msk.bf16.gmra.mxu1 %vm1897_vm2, %v22269_v40  ;;  %v15548_v12 = vld [vmem:[%s24323_s4 + $0xeb4] sm:$0xf]  ;;  %v13727_v63 = vld [vmem:[%s24323_s4 + $0xecc] sm:$0xf0] }
 0x5c3   :  { %8063 = vmatpush.bf16.msra.mxu2 %v13590_v53  ;;  %v6232_v17 = vpop.f32.mrf.mxu1  ;;  %v13730_v50 = vor.u32 %v15548_v12, %v13727_v63  ;;  %v15642_v12 = vld [vmem:[%s24323_s4 + $0x11a0] sm:$0xf0] }
 0x5c4   :  { %v22267_v53 = vadd.f32 %v6232_v17, %v22132_v52  ;;  %v6268_v26 = vadd.f32 %v6267_v33, %v6249_v54  ;;  %v15555_v52 = vld [vmem:[%s24323_s4 + $0xeec] sm:$0xf]  ;;  %v13957_v33 = vld [vmem:[%s24323_s4 + $0x1078] sm:$0xf] }
 0x5c5   :  { %8082 = vmatpush.bf16.msra.mxu3 %v13814_v5  ;;  %8177 = vmatpush.bf16.msrb.mxu0 %v14042_v25  ;;  %v22271_v34 = vpop.f32.mrf.mxu0  ;;  %v15499_v5 = vld [vmem:[%s24323_s4 + $0xd2c] sm:$0xf]  ;;  %v13755_v25 = vld [vmem:[%s24323_s4 + $0xf04] sm:$0xf0] }
 0x5c6   :  { %v13534_v56 = vor.u32 %v15499_v5, %v13531_v42  ;;  %v22296_v14 = vadd.f32 %v22000_v61, %v6268_v26  ;;  %v13758_v4 = vor.u32 %v15555_v52, %v13755_v25  ;;  %v13503_v61 = vld [vmem:[%s24323_s4 + $0xd0c] sm:$0xf0] }
 0x5c7   :  { %8064 = vmatpush.bf16.msra.mxu2 %v13562_v27  ;;  %7942 = vmatmul.bf16.gmra.mxu3 %v22055_v28  ;;  %v14118_v27 = vor.u32 %v15649_v59, %v14117_v6  ;;  %v15601_v6 = vld [vmem:[%s24323_s4 + $0x1058] sm:$0xf0] }
 0x5c8   :  { %7923 = vmatmul.bf16.gmra.mxu2 %v22053_v45  ;;  %8037 = vmatmul.bf16.gmra.mxu0 %v21848_v31 }
 0x5c9   :  { %8083 = vmatpush.bf16.msra.mxu3 %v13786_v39  ;;  %8178 = vmatpush.bf16.msrb.mxu0 %v14014_v48  ;;  %v15492_v39 = vld [vmem:[%s24323_s4 + $0xcf4] sm:$0xf]  ;;  %v6251_v54 = vpop.f32.mrf.mxu2  ;;  %v6270_v17 = vpop.f32.mrf.mxu3 }
 0x5ca   :  { %v13506_v51 = vor.u32 %v15492_v39, %v13503_v61  ;;  %v15608_v48 = vld [vmem:[%s24323_s4 + $0x1090] sm:$0xf0]  ;;  %8049 = vmatpush.bf16.msra.mxu1 %v14118_v27  ;;  %v6252_v5 = vadd.f32 %v6251_v54, %v20983_v57  ;;  %v15541_v57 = vld [vmem:[%s24323_s4 + $0xe7c] sm:$0xf]  ;;  %v14089_v61 = vld [vmem:[%s24323_s4 + $0x1188] sm:$0xf] }
 0x5cb   :  { %8065 = vmatpush.bf16.msra.mxu2 %v13534_v56  ;;  %v13958_v26 = vor.u32 %v15608_v48, %v13957_v33  ;;  %v6234_v42 = vpop.f32.mrf.mxu1  ;;  %v14090_v63 = vor.u32 %v15642_v12, %v14089_v61  ;;  %v15534_v33 = vld [vmem:[%s24323_s4 + $0xe44] sm:$0xf]  ;;  %v13671_v48 = vld [vmem:[%s24323_s4 + $0xe5c] sm:$0xf0]  ;;  %v15587_v61 = vld [vmem:[%s24323_s4 + $0xfe8] sm:$0xf0] }
 0x5cc   :  { %v22325_v52 = vadd.f32 %v6234_v42, %v22187_v7  ;;  %v6271_v56 = vadd.f32 %v6270_v17, %v6252_v5  ;;  %v13478_v7 = vor.u32 %v15485_v43, %v13475_v36  ;;  %v13674_v17 = vor.u32 %v15534_v33, %v13671_v48  ;;  %v14175_v33 = vld [vmem:[%s24323_s4 + $0x124c] sm:$0xf0] }
 0x5cd   :  { %8084 = vmatpush.bf16.msra.mxu3 %v13758_v4  ;;  %8179 = vmatpush.bf16.msrb.mxu0 %v13986_v44  ;;  %v22327_v25 = vpop.f32.mrf.mxu0  ;;  %v13699_v4 = vld [vmem:[%s24323_s4 + $0xe94] sm:$0xf0]  ;;  %v13929_v44 = vld [vmem:[%s24323_s4 + $0x1040] sm:$0xf] }
 0x5ce   :  { %v22348_v59 = vadd.f32 %v22051_v62, %v6271_v56  ;;  %v13702_v27 = vor.u32 %v15541_v57, %v13699_v4  ;;  %v13930_v39 = vor.u32 %v15601_v6, %v13929_v44  ;;  %v13447_v62 = vld [vmem:[%s24323_s4 + $0xc9c] sm:$0xf0]  ;;  %8050 = vmatpush.bf16.msra.mxu1 %v14090_v63  ;;  %v15471_v44 = vld [vmem:[%s24323_s4 + $0xc4c] sm:$0xf]  ;;  %v13419_v6 = vld [vmem:[%s24323_s4 + $0xc64] sm:$0xf0] }
 0x5cf   :  { %8066 = vmatpush.bf16.msra.mxu2 %v13506_v51  ;;  %v15478_v51 = vld [vmem:[%s24323_s4 + $0xc84] sm:$0xf] }
 0x5d0   :  { %v13450_v54 = vor.u32 %v15478_v51, %v13447_v62  ;;  %v15660_v62 = vld [vmem:[%s24323_s4 + $0x1234] sm:$0xf] }
 0x5d1   :  { %8085 = vmatpush.bf16.msra.mxu3 %v13730_v50  ;;  %8180 = vmatpush.bf16.msrb.mxu0 %v13958_v26  ;;  %v13901_v50 = vld [vmem:[%s24323_s4 + $0x1008] sm:$0xf]  ;;  %v15594_v26 = vld [vmem:[%s24323_s4 + $0x1020] sm:$0xf0]  ;;  %v6253_v5 = vpop.f32.mrf.mxu2  ;;  %v6272_v42 = vpop.f32.mrf.mxu3  ;;  %v14178_v48 = vor.u32 %v15660_v62, %v14175_v33  ;;  %v14043_v62 = vld [vmem:[%s24323_s4 + $0x113c] sm:$0xf0] }
 0x5d2   :  { %v13902_v56 = vor.u32 %v15594_v26, %v13901_v50  ;;  %v6254_v43 = vadd.f32 %v6253_v5, %v21038_v38  ;;  %v15527_v38 = vld [vmem:[%s24323_s4 + $0xe0c] sm:$0xf]  ;;  %14193 = vmatmul.msk.bf16.vlgmr.msrb.gmra.mxu1 %vm1897_vm2, %v19666_v55  ;;  %v15580_v26 = vld [vmem:[%s24323_s4 + $0xfb0] sm:$0xf0]  ;;  %v15633_v5 = vld [vmem:[%s24323_s4 + $0x115c] sm:$0xf] }
 0x5d3   :  { %8067 = vmatpush.bf16.msra.mxu2 %v13478_v7  ;;  %v6303_v36 = vpop.f32.mrf.mxu1  ;;  %8123 = vmatpush.bf16.msrb.mxu1 %v14178_v48 }
 0x5d4   :  { %v22376_v57 = vadd.f32 %v6303_v36, %v22239_v16  ;;  %v6273_v7 = vadd.f32 %v6272_v42, %v6254_v43  ;;  %v13422_v16 = vor.u32 %v15471_v44, %v13419_v6  ;;  %v14071_v42 = vld [vmem:[%s24323_s4 + $0x1174] sm:$0xf0] }
 0x5d5   :  { %8086 = vmatpush.bf16.msra.mxu3 %v13702_v27  ;;  %8181 = vmatpush.bf16.msrb.mxu0 %v13930_v39  ;;  %v22378_v4 = vpop.f32.mrf.mxu0  ;;  %v13643_v27 = vld [vmem:[%s24323_s4 + $0xe24] sm:$0xf0]  ;;  %v13873_v39 = vld [vmem:[%s24323_s4 + $0xfd0] sm:$0xf] }
 0x5d6   :  { %v22403_v12 = vadd.f32 %v22111_v24, %v6273_v7  ;;  %v13646_v51 = vor.u32 %v15527_v38, %v13643_v27  ;;  %v13874_v63 = vor.u32 %v15587_v61, %v13873_v39  ;;  %v15524_v24 = vld [vmem:[%s24323_s4 + $0xdf0] sm:$0xf0]  ;;  %v14074_v7 = vor.u32 %v15633_v5, %v14071_v42  ;;  %v13593_v39 = vld [vmem:[%s24323_s4 + $0xda0] sm:$0xf]  ;;  %v15517_v61 = vld [vmem:[%s24323_s4 + $0xdb8] sm:$0xf0] }
 0x5d7   :  { %8068 = vmatpush.bf16.msra.mxu2 %v13450_v54  ;;  %8013 = vmatmul.bf16.vlgmr.msrb.gmra.mxu3 %v19661_v47  ;;  %v13621_v54 = vld [vmem:[%s24323_s4 + $0xdd8] sm:$0xf]  ;;  %v13789_v5 = vld [vmem:[%s24323_s4 + $0xf28] sm:$0xf]  ;;  %v15566_v42 = vld [vmem:[%s24323_s4 + $0xf40] sm:$0xf0] }
 0x5d8   :  { %7994 = vmatmul.bf16.vlgmr.msrb.gmra.mxu2 %v19659_v30  ;;  %8108 = vmatmul.bf16.vlgmr.msra.gmra.mxu0 %v19664_v8  ;;  %v13622_v50 = vor.u32 %v15524_v24, %v13621_v54  ;;  %v15653_v24 = vld [vmem:[%s24323_s4 + $0x11fc] sm:$0xf] }
 0x5d9   :  { %8087 = vmatpush.bf16.msra.mxu3 %v13674_v17  ;;  %8182 = vmatpush.bf16.msrb.mxu0 %v13902_v56  ;;  %v13845_v17 = vld [vmem:[%s24323_s4 + $0xf98] sm:$0xf]  ;;  %v6322_v56 = vpop.f32.mrf.mxu2  ;;  %v6341_v43 = vpop.f32.mrf.mxu3 }
 0x5da   :  { %v13846_v36 = vor.u32 %v15580_v26, %v13845_v17  ;;  %v6323_v44 = vadd.f32 %v6322_v56, %v21088_v1  ;;  %v13817_v1 = vld [vmem:[%s24323_s4 + $0xf60] sm:$0xf]  ;;  %v14147_v17 = vld [vmem:[%s24323_s4 + $0x1214] sm:$0xf0] }
 0x5db   :  { %8069 = vmatpush.bf16.msra.mxu2 %v13422_v16  ;;  %v6305_v6 = vpop.f32.mrf.mxu1  ;;  %v14150_v26 = vor.u32 %v15653_v24, %v14147_v17  ;;  %v13987_v24 = vld [vmem:[%s24323_s4 + $0x10cc] sm:$0xf0] }
 0x5dc   :  { %v22432_v38 = vadd.f32 %v6305_v6, %v22296_v14  ;;  %v6342_v16 = vadd.f32 %v6341_v43, %v6323_v44  ;;  %v15573_v14 = vld [vmem:[%s24323_s4 + $0xf78] sm:$0xf0]  ;;  %v13790_v43 = vor.u32 %v15566_v42, %v13789_v5  ;;  %v14119_v5 = vld [vmem:[%s24323_s4 + $0x11dc] sm:$0xf0] }
 0x5dd   :  { %8088 = vmatpush.bf16.msra.mxu3 %v13646_v51  ;;  %8183 = vmatpush.bf16.msrb.mxu0 %v13874_v63  ;;  %v22434_v27 = vpop.f32.mrf.mxu0  ;;  %v13594_v51 = vor.u32 %v15517_v61, %v13593_v39  ;;  %v15626_v63 = vld [vmem:[%s24323_s4 + $0x1124] sm:$0xf]  ;;  %v13818_v48 = vor.u32 %v15573_v14, %v13817_v1 }
 0x5de   :  { %v22455_v33 = vadd.f32 %v22162_v23, %v6342_v16  ;;  %v14046_v54 = vor.u32 %v15626_v63, %v14043_v62  ;;  %v15510_v23 = vld [vmem:[%s24323_s4 + $0xd80] sm:$0xf0]  ;;  %8124 = vmatpush.bf16.msrb.mxu1 %v14150_v26  ;;  %v13537_v63 = vld [vmem:[%s24323_s4 + $0xd30] sm:$0xf]  ;;  %v15503_v62 = vld [vmem:[%s24323_s4 + $0xd48] sm:$0xf0] }
 0x5df   :  { %8138 = vmatpush.bf16.msrb.mxu2 %v13622_v50  ;;  %v13565_v50 = vld [vmem:[%s24323_s4 + $0xd68] sm:$0xf] }
 0x5e0   :  { %v13566_v56 = vor.u32 %v15510_v23, %v13565_v50  ;;  %v15646_v23 = vld [vmem:[%s24323_s4 + $0x11c4] sm:$0xf] }
 0x5e1   :  { %8157 = vmatpush.bf16.msrb.mxu3 %v13846_v36  ;;  %8252 = vmatpush.bf16.msra.mxu0 %v14074_v7  ;;  %v15619_v36 = vld [vmem:[%s24323_s4 + $0x10ec] sm:$0xf]  ;;  %v14015_v7 = vld [vmem:[%s24323_s4 + $0x1104] sm:$0xf0]  ;;  %v6324_v44 = vpop.f32.mrf.mxu2  ;;  %v6343_v6 = vpop.f32.mrf.mxu3  ;;  %v14122_v42 = vor.u32 %v15646_v23, %v14119_v5  ;;  %v13931_v23 = vld [vmem:[%s24323_s4 + $0x105c] sm:$0xf0] }
 0x5e2   :  { %v14018_v16 = vor.u32 %v15619_v36, %v14015_v7  ;;  %v6325_v39 = vadd.f32 %v6324_v44, %v21143_v2  ;;  %v13761_v2 = vld [vmem:[%s24323_s4 + $0xef0] sm:$0xf]  ;;  %14194 = vmatmul.msk.bf16.gmra.mxu1 %vm1897_vm2, %v22269_v40  ;;  %v15552_v7 = vld [vmem:[%s24323_s4 + $0xed0] sm:$0xf0]  ;;  %v15605_v44 = vld [vmem:[%s24323_s4 + $0x107c] sm:$0xf] }
 0x5e3   :  { %8139 = vmatpush.bf16.msrb.mxu2 %v13594_v51  ;;  %v6308_v61 = vpop.f32.mrf.mxu1  ;;  %8125 = vmatpush.bf16.msrb.mxu1 %v14122_v42 }
 0x5e4   :  { %v22483_v1 = vadd.f32 %v6308_v61, %v22348_v59  ;;  %v6344_v51 = vadd.f32 %v6343_v6, %v6325_v39  ;;  %v13538_v59 = vor.u32 %v15503_v62, %v13537_v63  ;;  %v13959_v6 = vld [vmem:[%s24323_s4 + $0x1094] sm:$0xf0] }
 0x5e5   :  { %8158 = vmatpush.bf16.msrb.mxu3 %v13818_v48  ;;  %8253 = vmatpush.bf16.msra.mxu0 %v14046_v54  ;;  %v22485_v14 = vpop.f32.mrf.mxu0  ;;  %v15559_v48 = vld [vmem:[%s24323_s4 + $0xf08] sm:$0xf0]  ;;  %v15612_v54 = vld [vmem:[%s24323_s4 + $0x10b4] sm:$0xf] }
 0x5e6   :  { %v22510_v17 = vadd.f32 %v22218_v21, %v6344_v51  ;;  %v13762_v50 = vor.u32 %v15559_v48, %v13761_v2  ;;  %v13990_v26 = vor.u32 %v15612_v54, %v13987_v24  ;;  %v15496_v21 = vld [vmem:[%s24323_s4 + $0xd10] sm:$0xf0]  ;;  %v13962_v51 = vor.u32 %v15605_v44, %v13959_v6  ;;  %v13481_v54 = vld [vmem:[%s24323_s4 + $0xcc0] sm:$0xf]  ;;  %v15489_v24 = vld [vmem:[%s24323_s4 + $0xcd8] sm:$0xf0] }
 0x5e7   :  { %8140 = vmatpush.bf16.msrb.mxu2 %v13566_v56  ;;  %8018 = vmatmul.bf16.gmra.mxu3 %v22055_v28  ;;  %v13509_v56 = vld [vmem:[%s24323_s4 + $0xcf8] sm:$0xf]  ;;  %v13677_v44 = vld [vmem:[%s24323_s4 + $0xe48] sm:$0xf]  ;;  %v15538_v6 = vld [vmem:[%s24323_s4 + $0xe60] sm:$0xf0] }
 0x5e8   :  { %7999 = vmatmul.bf16.gmra.mxu2 %v22053_v45  ;;  %8113 = vmatmul.bf16.gmra.mxu0 %v21848_v31  ;;  %v13510_v36 = vor.u32 %v15496_v21, %v13509_v56  ;;  %v15639_v21 = vld [vmem:[%s24323_s4 + $0x118c] sm:$0xf] }
 0x5e9   :  { %8159 = vmatpush.bf16.msrb.mxu3 %v13790_v43  ;;  %8254 = vmatpush.bf16.msra.mxu0 %v14018_v16  ;;  %v13733_v43 = vld [vmem:[%s24323_s4 + $0xeb8] sm:$0xf]  ;;  %v6327_v16 = vpop.f32.mrf.mxu2  ;;  %v6346_v39 = vpop.f32.mrf.mxu3 }
 0x5ea   :  { %v13734_v61 = vor.u32 %v15552_v7, %v13733_v43  ;;  %v6328_v63 = vadd.f32 %v6327_v16, %v21193_v20  ;;  %v13705_v20 = vld [vmem:[%s24323_s4 + $0xe80] sm:$0xf]  ;;  %v14091_v43 = vld [vmem:[%s24323_s4 + $0x11a4] sm:$0xf0] }
 0x5eb   :  { %8141 = vmatpush.bf16.msrb.mxu2 %v13538_v59  ;;  %v6310_v62 = vpop.f32.mrf.mxu1  ;;  %v14094_v7 = vor.u32 %v15639_v21, %v14091_v43  ;;  %v13875_v21 = vld [vmem:[%s24323_s4 + $0xfec] sm:$0xf0] }
 0x5ec   :  { %v22539_v2 = vadd.f32 %v6310_v62, %v22403_v12  ;;  %v6347_v59 = vadd.f32 %v6346_v39, %v6328_v63  ;;  %v13482_v12 = vor.u32 %v15489_v24, %v13481_v54  ;;  %v13678_v39 = vor.u32 %v15538_v6, %v13677_v44  ;;  %v15664_v44 = vld [vmem:[%s24323_s4 + $0x1250] sm:$0xf0] }
 0x5ed   :  { %8160 = vmatpush.bf16.msrb.mxu3 %v13762_v50  ;;  %8255 = vmatpush.bf16.msra.mxu0 %v13990_v26  ;;  %v22541_v48 = vpop.f32.mrf.mxu0  ;;  %v15545_v50 = vld [vmem:[%s24323_s4 + $0xe98] sm:$0xf0]  ;;  %v15598_v26 = vld [vmem:[%s24323_s4 + $0x1044] sm:$0xf] }
 0x5ee   :  { %v22562_v5 = vadd.f32 %v22271_v34, %v6347_v59  ;;  %v13706_v42 = vor.u32 %v15545_v50, %v13705_v20  ;;  %v13934_v56 = vor.u32 %v15598_v26, %v13931_v23  ;;  %v15482_v34 = vld [vmem:[%s24323_s4 + $0xca0] sm:$0xf0]  ;;  %8126 = vmatpush.bf16.msrb.mxu1 %v14094_v7  ;;  %v13425_v26 = vld [vmem:[%s24323_s4 + $0xc50] sm:$0xf]  ;;  %v15475_v23 = vld [vmem:[%s24323_s4 + $0xc68] sm:$0xf0] }
 0x5ef   :  { %8142 = vmatpush.bf16.msrb.mxu2 %v13510_v36  ;;  %v13453_v36 = vld [vmem:[%s24323_s4 + $0xc88] sm:$0xf] }
 0x5f0   :  { %v13454_v16 = vor.u32 %v15482_v34, %v13453_v36  ;;  %v14181_v34 = vld [vmem:[%s24323_s4 + $0x1238] sm:$0xf] }
 0x5f1   :  { %8161 = vmatpush.bf16.msrb.mxu3 %v13734_v61  ;;  %8256 = vmatpush.bf16.msra.mxu0 %v13962_v51  ;;  %v15591_v61 = vld [vmem:[%s24323_s4 + $0x100c] sm:$0xf]  ;;  %v13903_v51 = vld [vmem:[%s24323_s4 + $0x1024] sm:$0xf0]  ;;  %v6329_v63 = vpop.f32.mrf.mxu2  ;;  %v6348_v62 = vpop.f32.mrf.mxu3  ;;  %v14182_v6 = vor.u32 %v15664_v44, %v14181_v34 }
 0x5f2   :  { %v13906_v59 = vor.u32 %v15591_v61, %v13903_v51  ;;  %v6330_v54 = vadd.f32 %v6329_v63, %v21248_v46  ;;  %v13649_v46 = vld [vmem:[%s24323_s4 + $0xe10] sm:$0xf]  ;;  %14195 = vmatmul.msk.bf16.vlgmr.msra.gmra.mxu1 %vm1897_vm2, %v19666_v55  ;;  %v13847_v51 = vld [vmem:[%s24323_s4 + $0xfb4] sm:$0xf0]  ;;  %v14077_v63 = vld [vmem:[%s24323_s4 + $0x1160] sm:$0xf] }
 0x5f3   :  { %8143 = vmatpush.bf16.msrb.mxu2 %v13482_v12  ;;  %v6379_v24 = vpop.f32.mrf.mxu1  ;;  %8199 = vmatpush.bf16.msra.mxu1 %v14182_v6 }
 0x5f4   :  { %v22590_v20 = vadd.f32 %v6379_v24, %v22455_v33  ;;  %v6349_v12 = vadd.f32 %v6348_v62, %v6330_v54  ;;  %v13426_v33 = vor.u32 %v15475_v23, %v13425_v26  ;;  %v15637_v62 = vld [vmem:[%s24323_s4 + $0x1178] sm:$0xf0] }
 0x5f5   :  { %8162 = vmatpush.bf16.msrb.mxu3 %v13706_v42  ;;  %8257 = vmatpush.bf16.msra.mxu0 %v13934_v56  ;;  %v22592_v50 = vpop.f32.mrf.mxu0  ;;  %v15531_v42 = vld [vmem:[%s24323_s4 + $0xe28] sm:$0xf0]  ;;  %v15584_v56 = vld [vmem:[%s24323_s4 + $0xfd4] sm:$0xf] }
 0x5f6   :  { %v22617_v43 = vadd.f32 %v22327_v25, %v6349_v12  ;;  %v13650_v36 = vor.u32 %v15531_v42, %v13649_v46  ;;  %v13878_v7 = vor.u32 %v15584_v56, %v13875_v21  ;;  %v13623_v25 = vld [vmem:[%s24323_s4 + $0xdf4] sm:$0xf0]  ;;  %v14078_v12 = vor.u32 %v15637_v62, %v14077_v63  ;;  %v15514_v42 = vld [vmem:[%s24323_s4 + $0xda4] sm:$0xf]  ;;  %v13595_v56 = vld [vmem:[%s24323_s4 + $0xdbc] sm:$0xf0] }
 0x5f7   :  { %8144 = vmatpush.bf16.msrb.mxu2 %v13454_v16  ;;  %8089 = vmatmul.bf16.vlgmr.msra.gmra.mxu3 %v19661_v47  ;;  %v15521_v16 = vld [vmem:[%s24323_s4 + $0xddc] sm:$0xf]  ;;  %v13598_v21 = vor.u32 %v15514_v42, %v13595_v56  ;;  %v15563_v63 = vld [vmem:[%s24323_s4 + $0xf2c] sm:$0xf]  ;;  %v13791_v62 = vld [vmem:[%s24323_s4 + $0xf44] sm:$0xf0] }
 0x5f8   :  { %8070 = vmatmul.bf16.vlgmr.msra.gmra.mxu2 %v19659_v30  ;;  %8184 = vmatmul.bf16.vlgmr.msrb.gmra.mxu0 %v19664_v8  ;;  %v13626_v61 = vor.u32 %v15521_v16, %v13623_v25  ;;  %v14153_v25 = vld [vmem:[%s24323_s4 + $0x1200] sm:$0xf] }
 0x5f9   :  { %8163 = vmatpush.bf16.msrb.mxu3 %v13678_v39  ;;  %8258 = vmatpush.bf16.msra.mxu0 %v13906_v59  ;;  %v15577_v39 = vld [vmem:[%s24323_s4 + $0xf9c] sm:$0xf]  ;;  %v6398_v59 = vpop.f32.mrf.mxu2  ;;  %v6417_v54 = vpop.f32.mrf.mxu3 }
 0x5fa   :  { %v13850_v24 = vor.u32 %v15577_v39, %v13847_v51  ;;  %v6399_v26 = vadd.f32 %v6398_v59, %v21298_v15  ;;  %v15570_v15 = vld [vmem:[%s24323_s4 + $0xf64] sm:$0xf]  ;;  %v15657_v39 = vld [vmem:[%s24323_s4 + $0x1218] sm:$0xf0] }
 0x5fb   :  { %8145 = vmatpush.bf16.msrb.mxu2 %v13426_v33  ;;  %v6381_v23 = vpop.f32.mrf.mxu1  ;;  %v14154_v51 = vor.u32 %v15657_v39, %v14153_v25 }
 0x5fc   :  { %v22646_v46 = vadd.f32 %v6381_v23, %v22510_v17  ;;  %v6418_v33 = vadd.f32 %v6417_v54, %v6399_v26  ;;  %v13819_v17 = vld [vmem:[%s24323_s4 + $0xf7c] sm:$0xf0]  ;;  %v13794_v54 = vor.u32 %v15563_v63, %v13791_v62  ;;  %v15493_v62 = vld [vmem:[%s24323_s4 + $0xcfc] sm:$0xf] }
 0x5fd   :  { %8164 = vmatpush.bf16.msrb.mxu3 %v13650_v36  ;;  %8259 = vmatpush.bf16.msra.mxu0 %v13878_v7  ;;  %v14049_v36 = vld [vmem:[%s24323_s4 + $0x1128] sm:$0xf]  ;;  %v15630_v7 = vld [vmem:[%s24323_s4 + $0x1140] sm:$0xf0]  ;;  %v22666_v34 = vpop.f32.mrf.mxu0  ;;  %v13822_v6 = vor.u32 %v15570_v15, %v13819_v17  ;;  %v15500_v17 = vld [vmem:[%s24323_s4 + $0xd34] sm:$0xf] }
 0x5fe   :  { %v22669_v44 = vadd.f32 %v22378_v4, %v6418_v33  ;;  %v14050_v16 = vor.u32 %v15630_v7, %v14049_v36  ;;  %v13567_v4 = vld [vmem:[%s24323_s4 + $0xd84] sm:$0xf0]  ;;  %8200 = vmatpush.bf16.msra.mxu1 %v14154_v51  ;;  %v13539_v36 = vld [vmem:[%s24323_s4 + $0xd4c] sm:$0xf0] }
 0x5ff   :  { %8214 = vmatpush.bf16.msra.mxu2 %v13626_v61  ;;  %v15507_v61 = vld [vmem:[%s24323_s4 + $0xd6c] sm:$0xf]  ;;  %v13763_v7 = vld [vmem:[%s24323_s4 + $0xf0c] sm:$0xf0]  ;;  %v14125_v51 = vld [vmem:[%s24323_s4 + $0x11c8] sm:$0xf] }
 0x600   :  { %v13570_v59 = vor.u32 %v15507_v61, %v13567_v4  ;;  %v15650_v4 = vld [vmem:[%s24323_s4 + $0x11e0] sm:$0xf0] }
 0x601   :  { %8233 = vmatpush.bf16.msra.mxu3 %v13850_v24  ;;  %8328 = vmatpush.bf16.msrb.mxu0 %v14078_v12  ;;  %v14021_v24 = vld [vmem:[%s24323_s4 + $0x10f0] sm:$0xf]  ;;  %v15623_v12 = vld [vmem:[%s24323_s4 + $0x1108] sm:$0xf0]  ;;  %v6400_v26 = vpop.f32.mrf.mxu2  ;;  %v6419_v23 = vpop.f32.mrf.mxu3  ;;  %v14126_v63 = vor.u32 %v15650_v4, %v14125_v51 }
 0x602   :  { %v14022_v33 = vor.u32 %v15623_v12, %v14021_v24  ;;  %v6401_v42 = vadd.f32 %v6400_v26, %v21354_v41  ;;  %v15556_v41 = vld [vmem:[%s24323_s4 + $0xef4] sm:$0xf]  ;;  %14196 = vmatmul.msk.bf16.gmra.mxu1 %vm1897_vm2, %v22269_v40  ;;  %v13735_v12 = vld [vmem:[%s24323_s4 + $0xed4] sm:$0xf0]  ;;  %v13965_v26 = vld [vmem:[%s24323_s4 + $0x1080] sm:$0xf] }
 0x603   :  { %8215 = vmatpush.bf16.msra.mxu2 %v13598_v21  ;;  %v6384_v56 = vpop.f32.mrf.mxu1  ;;  %v13766_v39 = vor.u32 %v15556_v41, %v13763_v7  ;;  %8201 = vmatpush.bf16.msra.mxu1 %v14126_v63  ;;  %v15486_v7 = vld [vmem:[%s24323_s4 + $0xcc4] sm:$0xf] }
 0x604   :  { %v22697_v15 = vadd.f32 %v6384_v56, %v22562_v5  ;;  %v6420_v21 = vadd.f32 %v6419_v23, %v6401_v42  ;;  %v13542_v5 = vor.u32 %v15500_v17, %v13539_v36  ;;  %v15609_v23 = vld [vmem:[%s24323_s4 + $0x1098] sm:$0xf0] }
 0x605   :  { %8234 = vmatpush.bf16.msra.mxu3 %v13822_v6  ;;  %8329 = vmatpush.bf16.msrb.mxu0 %v14050_v16  ;;  %v13993_v6 = vld [vmem:[%s24323_s4 + $0x10b8] sm:$0xf]  ;;  %v15616_v16 = vld [vmem:[%s24323_s4 + $0x10d0] sm:$0xf0] }
 0x606   :  { %v22722_v25 = vadd.f32 %v22434_v27, %v6420_v21  ;;  %v13994_v61 = vor.u32 %v15616_v16, %v13993_v6  ;;  %v13511_v27 = vld [vmem:[%s24323_s4 + $0xd14] sm:$0xf0]  ;;  %v13966_v21 = vor.u32 %v15609_v23, %v13965_v26  ;;  %v13483_v6 = vld [vmem:[%s24323_s4 + $0xcdc] sm:$0xf0]  ;;  %v13679_v26 = vld [vmem:[%s24323_s4 + $0xe64] sm:$0xf0] }
 0x607   :  { %8216 = vmatpush.bf16.msra.mxu2 %v13570_v59  ;;  %8094 = vmatmul.bf16.gmra.mxu3 %v22055_v28  ;;  %v15549_v59 = vld [vmem:[%s24323_s4 + $0xebc] sm:$0xf]  ;;  %v13514_v24 = vor.u32 %v15493_v62, %v13511_v27  ;;  %v13486_v16 = vor.u32 %v15486_v7, %v13483_v6  ;;  %v14097_v62 = vld [vmem:[%s24323_s4 + $0x1190] sm:$0xf]  ;;  %v15643_v27 = vld [vmem:[%s24323_s4 + $0x11a8] sm:$0xf0] }
 0x608   :  { %8075 = vmatmul.bf16.gmra.mxu2 %v22053_v45  ;;  %8189 = vmatmul.bf16.gmra.mxu0 %v21848_v31  ;;  %v13738_v56 = vor.u32 %v15549_v59, %v13735_v12  ;;  %v15479_v59 = vld [vmem:[%s24323_s4 + $0xc8c] sm:$0xf] }
 0x609   :  { %8235 = vmatpush.bf16.msra.mxu3 %v13794_v54  ;;  %8330 = vmatpush.bf16.msrb.mxu0 %v14022_v33  ;;  %v22740_v54 = vpop.f32.mrf.mxu0  ;;  %v6403_v33 = vpop.f32.mrf.mxu2  ;;  %v15535_v12 = vld [vmem:[%s24323_s4 + $0xe4c] sm:$0xf] }
 0x60a   :  { %v6422_v42 = vpop.f32.mrf.mxu3  ;;  %v6404_v17 = vadd.f32 %v6403_v33, %v21405_v22  ;;  %v15542_v22 = vld [vmem:[%s24323_s4 + $0xe84] sm:$0xf]  ;;  %v13682_v33 = vor.u32 %v15535_v12, %v13679_v26  ;;  %v14183_v12 = vld [vmem:[%s24323_s4 + $0x1254] sm:$0xf0]  ;;  %v13629_v26 = vld [vmem:[%s24323_s4 + $0xde0] sm:$0xf] }
 0x60b   :  { %8217 = vmatpush.bf16.msra.mxu2 %v13542_v5  ;;  %v6386_v36 = vpop.f32.mrf.mxu1 }
 0x60c   :  { %v22753_v41 = vadd.f32 %v6386_v36, %v22617_v43  ;;  %v6423_v5 = vadd.f32 %v6422_v42, %v6404_v17  ;;  %v13707_v43 = vld [vmem:[%s24323_s4 + $0xe9c] sm:$0xf0]  ;;  %v13909_v42 = vld [vmem:[%s24323_s4 + $0x1010] sm:$0xf] }
 0x60d   :  { %8236 = vmatpush.bf16.msra.mxu3 %v13766_v39  ;;  %8331 = vmatpush.bf16.msrb.mxu0 %v13994_v61  ;;  %v13937_v39 = vld [vmem:[%s24323_s4 + $0x1048] sm:$0xf]  ;;  %v15602_v61 = vld [vmem:[%s24323_s4 + $0x1060] sm:$0xf0]  ;;  %v13710_v4 = vor.u32 %v15542_v22, %v13707_v43 }
 0x60e   :  { %v22774_v51 = vadd.f32 %v22485_v14, %v6423_v5  ;;  %v13938_v63 = vor.u32 %v15602_v61, %v13937_v39  ;;  %v13455_v14 = vld [vmem:[%s24323_s4 + $0xca4] sm:$0xf0]  ;;  %v15528_v39 = vld [vmem:[%s24323_s4 + $0xe14] sm:$0xf] }
 0x60f   :  { %8218 = vmatpush.bf16.msra.mxu2 %v13514_v24  ;;  %v14098_v24 = vor.u32 %v15643_v27, %v14097_v62  ;;  %v13458_v23 = vor.u32 %v15479_v59, %v13455_v14  ;;  %v15661_v14 = vld [vmem:[%s24323_s4 + $0x123c] sm:$0xf] }
 0x611   :  { %8237 = vmatpush.bf16.msra.mxu3 %v13738_v56  ;;  %8332 = vmatpush.bf16.msrb.mxu0 %v13966_v21  ;;  %v15595_v56 = vld [vmem:[%s24323_s4 + $0x1028] sm:$0xf0]  ;;  %v6405_v21 = vpop.f32.mrf.mxu2  ;;  %v22800_v5 = vpop.f32.mrf.mxu0 }
 0x612   :  { %v6424_v17 = vpop.f32.mrf.mxu3  ;;  %8202 = vmatpush.bf16.msra.mxu1 %v14098_v24  ;;  %v13910_v36 = vor.u32 %v15595_v56, %v13909_v42  ;;  %v6406_v7 = vadd.f32 %v6405_v21, %v21461_v58  ;;  %v15472_v58 = vld [vmem:[%s24323_s4 + $0xc54] sm:$0xf]  ;;  %v14186_v42 = vor.u32 %v15661_v14, %v14183_v12  ;;  %v15525_v56 = vld [vmem:[%s24323_s4 + $0xdf8] sm:$0xf0]  ;;  %v13853_v21 = vld [vmem:[%s24323_s4 + $0xfa0] sm:$0xf] }
 0x613   :  { %8219 = vmatpush.bf16.msra.mxu2 %v13486_v16  ;;  %v6455_v6 = vpop.f32.mrf.mxu1  ;;  %14197 = vmatmul.msk.bf16.vlgmr.msrb.gmra.mxu1 %vm1897_vm2, %v19666_v55  ;;  %v15511_v14 = vld [vmem:[%s24323_s4 + $0xd88] sm:$0xf0]  ;;  %v13797_v12 = vld [vmem:[%s24323_s4 + $0xf30] sm:$0xf] }
 0x614   :  { %v22804_v22 = vadd.f32 %v6455_v6, %v22669_v44  ;;  %v6425_v16 = vadd.f32 %v6424_v17, %v6406_v7  ;;  %v13427_v44 = vld [vmem:[%s24323_s4 + $0xc6c] sm:$0xf0]  ;;  %v15581_v17 = vld [vmem:[%s24323_s4 + $0xfb8] sm:$0xf0]  ;;  %v13630_v7 = vor.u32 %v15525_v56, %v13629_v26 }
 0x615   :  { %8238 = vmatpush.bf16.msra.mxu3 %v13710_v4  ;;  %8333 = vmatpush.bf16.msrb.mxu0 %v13938_v63  ;;  %v13430_v61 = vor.u32 %v15472_v58, %v13427_v44  ;;  %v13881_v4 = vld [vmem:[%s24323_s4 + $0xfd8] sm:$0xf]  ;;  %v15588_v63 = vld [vmem:[%s24323_s4 + $0xff0] sm:$0xf0]  ;;  %v13854_v6 = vor.u32 %v15581_v17, %v13853_v21  ;;  %v13601_v44 = vld [vmem:[%s24323_s4 + $0xda8] sm:$0xf] }
 0x616   :  { %v22811_v43 = vadd.f32 %v22541_v48, %v6425_v16  ;;  %v13651_v48 = vld [vmem:[%s24323_s4 + $0xe2c] sm:$0xf0]  ;;  %v13882_v24 = vor.u32 %v15588_v63, %v13881_v4  ;;  %8275 = vmatpush.bf16.msrb.mxu1 %v14186_v42  ;;  %v14155_v4 = vld [vmem:[%s24323_s4 + $0x121c] sm:$0xf0] }
 0x617   :  { %8220 = vmatpush.bf16.msra.mxu2 %v13458_v23  ;;  %8165 = vmatmul.bf16.vlgmr.msrb.gmra.mxu3 %v19661_v47  ;;  %v13654_v59 = vor.u32 %v15528_v39, %v13651_v48  ;;  %v13825_v39 = vld [vmem:[%s24323_s4 + $0xf68] sm:$0xf]  ;;  %v15654_v48 = vld [vmem:[%s24323_s4 + $0x1204] sm:$0xf] }
 0x618   :  { %8146 = vmatmul.bf16.vlgmr.msrb.gmra.mxu2 %v19659_v30  ;;  %8260 = vmatmul.bf16.vlgmr.msra.gmra.mxu0 %v19664_v8 }
 0x619   :  { %8239 = vmatpush.bf16.msra.mxu3 %v13682_v33  ;;  %8334 = vmatpush.bf16.msrb.mxu0 %v13910_v36  ;;  %v7843_v62 = vpop.f32.mrf.mxu2  ;;  %v22853_v16 = vpop.f32.mrf.mxu0 }
 0x61a   :  { %v7862_v27 = vpop.f32.mrf.mxu3 }
 0x61b   :  { %v7863_v23 = vadd.f32 %v7862_v27, %v7843_v62  ;;  %v6457_v33 = vpop.f32.mrf.mxu1  ;;  %8221 = vmatpush.bf16.msra.mxu2 %v13430_v61 }
 0x61c   :  { %v22851_v36 = vadd.f32 %v6457_v33, %v22722_v25  ;;  %v15518_v25 = vld [vmem:[%s24323_s4 + $0xdc0] sm:$0xf0]  ;;  %v15567_v33 = vld [vmem:[%s24323_s4 + $0xf48] sm:$0xf0] }
 0x61d   :  { %8240 = vmatpush.bf16.msra.mxu3 %v13654_v59  ;;  %8335 = vmatpush.bf16.msrb.mxu0 %v13882_v24  ;;  %v22856_v58 = vadd.f32 %v22592_v50, %v7863_v23  ;;  %v13602_v61 = vor.u32 %v15518_v25, %v13601_v44  ;;  %v15574_v50 = vld [vmem:[%s24323_s4 + $0xf80] sm:$0xf0]  ;;  %v14158_v59 = vor.u32 %v15654_v48, %v14155_v4  ;;  %v13573_v24 = vld [vmem:[%s24323_s4 + $0xd70] sm:$0xf]  ;;  %v15560_v25 = vld [vmem:[%s24323_s4 + $0xf10] sm:$0xf0] }
 0x61e   :  { %v13826_v27 = vor.u32 %v15574_v50, %v13825_v39  ;;  %v13574_v56 = vor.u32 %v15511_v14, %v13573_v24  ;;  %v13798_v17 = vor.u32 %v15567_v33, %v13797_v12  ;;  %v15647_v39 = vld [vmem:[%s24323_s4 + $0x11cc] sm:$0xf]  ;;  %v15553_v12 = vld [vmem:[%s24323_s4 + $0xed8] sm:$0xf0] }
 0x61f   :  { %8290 = vmatpush.bf16.msrb.mxu2 %v13630_v7  ;;  %8276 = vmatpush.bf16.msrb.mxu1 %v14158_v59  ;;  %v13741_v59 = vld [vmem:[%s24323_s4 + $0xec0] sm:$0xf] }
 0x621   :  { %8309 = vmatpush.bf16.msrb.mxu3 %v13854_v6  ;;  %v7845_v63 = vpop.f32.mrf.mxu2  ;;  %v22896_v7 = vpop.f32.mrf.mxu0  ;;  %v13769_v6 = vld [vmem:[%s24323_s4 + $0xef8] sm:$0xf] }
 0x622   :  { %v7864_v62 = vpop.f32.mrf.mxu3  ;;  %v13770_v4 = vor.u32 %v15560_v25, %v13769_v6  ;;  %v14099_v25 = vld [vmem:[%s24323_s4 + $0x11ac] sm:$0xf0] }
 0x623   :  { %v7865_v26 = vadd.f32 %v7864_v62, %v7845_v63  ;;  %v6460_v23 = vpop.f32.mrf.mxu1  ;;  %8291 = vmatpush.bf16.msrb.mxu2 %v13602_v61  ;;  %14198 = vmatmul.msk.bf16.gmra.mxu1 %vm1897_vm2, %v22269_v40  ;;  %v14127_v61 = vld [vmem:[%s24323_s4 + $0x11e4] sm:$0xf0]  ;;  %v13517_v62 = vld [vmem:[%s24323_s4 + $0xd00] sm:$0xf] }
 0x624   :  { %v22889_v42 = vadd.f32 %v6460_v23, %v22774_v51  ;;  %v13545_v51 = vld [vmem:[%s24323_s4 + $0xd38] sm:$0xf]  ;;  %v14130_v63 = vor.u32 %v15647_v39, %v14127_v61 }
 0x625   :  { %8310 = vmatpush.bf16.msrb.mxu3 %v13826_v27  ;;  %v22892_v21 = vadd.f32 %v22666_v34, %v7865_v26  ;;  %v15504_v34 = vld [vmem:[%s24323_s4 + $0xd50] sm:$0xf0]  ;;  %v15497_v27 = vld [vmem:[%s24323_s4 + $0xd18] sm:$0xf0] }
 0x626   :  { %v13546_v44 = vor.u32 %v15504_v34, %v13545_v51  ;;  %8277 = vmatpush.bf16.msrb.mxu1 %v14130_v63  ;;  %v13518_v23 = vor.u32 %v15497_v27, %v13517_v62  ;;  %v15490_v51 = vld [vmem:[%s24323_s4 + $0xce0] sm:$0xf0]  ;;  %v15483_v63 = vld [vmem:[%s24323_s4 + $0xca8] sm:$0xf0]  ;;  %v13685_v62 = vld [vmem:[%s24323_s4 + $0xe50] sm:$0xf] }
 0x627   :  { %8170 = vmatmul.bf16.gmra.mxu3 %v22055_v28  ;;  %8292 = vmatpush.bf16.msrb.mxu2 %v13574_v56  ;;  %v13742_v56 = vor.u32 %v15553_v12, %v13741_v59 }
 0x628   :  { %8151 = vmatmul.bf16.gmra.mxu2 %v22053_v45  ;;  %8265 = vmatmul.bf16.gmra.mxu0 %v21848_v31 }
 0x629   :  { %8311 = vmatpush.bf16.msrb.mxu3 %v13798_v17  ;;  %v13489_v17 = vld [vmem:[%s24323_s4 + $0xcc8] sm:$0xf]  ;;  %v22944_v34 = vpop.f32.mrf.mxu0 }
 0x62a   :  { %v7867_v48 = vpop.f32.mrf.mxu3  ;;  %v13490_v6 = vor.u32 %v15490_v51, %v13489_v17 }
 0x62b   :  { %v7848_v50 = vpop.f32.mrf.mxu2  ;;  %v6462_v14 = vpop.f32.mrf.mxu1  ;;  %8293 = vmatpush.bf16.msrb.mxu2 %v13546_v44  ;;  %v15640_v44 = vld [vmem:[%s24323_s4 + $0x1194] sm:$0xf] }
 0x62c   :  { %v7868_v24 = vadd.f32 %v7867_v48, %v7848_v50  ;;  %v22932_v26 = vadd.f32 %v6462_v14, %v22811_v43  ;;  %v13713_v43 = vld [vmem:[%s24323_s4 + $0xe88] sm:$0xf]  ;;  %v14102_v48 = vor.u32 %v15640_v44, %v14099_v25  ;;  %v22994_v25 = vld [vmem:[%s24324_s5] sm:$0xff] }
 0x62d   :  { %8312 = vmatpush.bf16.msrb.mxu3 %v13770_v4  ;;  %v13461_v4 = vld [vmem:[%s24323_s4 + $0xc90] sm:$0xf] }
 0x62e   :  { %24537 = vst [vmem:[#allocation29_spill] sm:$0xff] %v22932_v26  ;;  %v7887_v33 = vadd.f32 %v22740_v54, %v7868_v24  ;;  %v15546_v54 = vld [vmem:[%s24323_s4 + $0xea0] sm:$0xf0]  ;;  %v15539_v24 = vld [vmem:[%s24323_s4 + $0xe68] sm:$0xf0]  ;;  %8278 = vmatpush.bf16.msrb.mxu1 %v14102_v48  ;;  %v13462_v12 = vor.u32 %v15483_v63, %v13461_v4  ;;  %v22999_v4 = vperm.slane %v22994_v25, 0 }
 0x62f   :  { %8294 = vmatpush.bf16.msrb.mxu2 %v13518_v23  ;;  %v13714_v50 = vor.u32 %v15546_v54, %v13713_v43  ;;  %v15532_v43 = vld [vmem:[%s24323_s4 + $0xe30] sm:$0xf0] }
 0x631   :  { %8313 = vmatpush.bf16.msrb.mxu3 %v13742_v56  ;;  %v13686_v56 = vor.u32 %v15539_v24, %v13685_v62  ;;  %v22989_v44 = vpop.f32.mrf.mxu0 }
 0x632   :  { %v7869_v61 = vpop.f32.mrf.mxu3 }
 0x633   :  { %v7850_v39 = vpop.f32.mrf.mxu2  ;;  %v7900_v59 = vpop.f32.mrf.mxu1  ;;  %8295 = vmatpush.bf16.msrb.mxu2 %v13490_v6  ;;  %14199 = vmatmul.msk.bf16.vlgmr.msra.gmra.mxu1 %vm1897_vm2, %v19666_v55 }
 0x634   :  { %v7870_v27 = vadd.f32 %v7869_v61, %v7850_v39  ;;  %v7901_v14 = vadd.f32 %v7900_v59, %v22856_v58  ;;  %v13433_v58 = vld [vmem:[%s24323_s4 + $0xc58] sm:$0xf] }
 0x635   :  { %8314 = vmatpush.bf16.msrb.mxu3 %v13714_v50 }
 0x636   :  { %v7889_v23 = vadd.f32 %v22800_v5, %v7870_v27  ;;  %v22970_v17 = vadd.f32 %v7901_v14, %v21512_v3  ;;  %v15476_v5 = vld [vmem:[%s24323_s4 + $0xc70] sm:$0xf0]  ;;  %v13657_v3 = vld [vmem:[%s24323_s4 + $0xe18] sm:$0xf] }
 0x637   :  { %8241 = vmatmul.bf16.vlgmr.msra.gmra.mxu3 %v19661_v47  ;;  %8296 = vmatpush.bf16.msrb.mxu2 %v13462_v12  ;;  %v13434_v51 = vor.u32 %v15476_v5, %v13433_v58  ;;  %v13658_v54 = vor.u32 %v15532_v43, %v13657_v3 }
 0x638   :  { %8222 = vmatmul.bf16.vlgmr.msra.gmra.mxu2 %v19659_v30  ;;  %8336 = vmatmul.bf16.vlgmr.msrb.gmra.mxu0 %v19664_v8 }
 0x639   :  { %8315 = vmatpush.bf16.msrb.mxu3 %v13686_v56  ;;  %v23009_v12 = vpop.f32.mrf.mxu0 }
 0x63a   :  { %v7938_v6 = vpop.f32.mrf.mxu3 }
 0x63b   :  { %v7919_v8 = vpop.f32.mrf.mxu2  ;;  %v7902_v61 = vpop.f32.mrf.mxu1  ;;  %8297 = vmatpush.bf16.msrb.mxu2 %v13434_v51 }
 0x63c   :  { %v7939_v39 = vadd.f32 %v7938_v6, %v7919_v8  ;;  %v7903_v50 = vadd.f32 %v7902_v61, %v22892_v21  ;;  %v14161_v6 = vld [vmem:[%s24323_s4 + $0x1208] sm:$0xf] }
 0x63d   :  { %8316 = vmatpush.bf16.msrb.mxu3 %v13658_v54  ;;  %v15658_v54 = vld [vmem:[%s24323_s4 + $0x1220] sm:$0xf0] }
 0x63e   :  { %v7958_v48 = vadd.f32 %v22853_v16, %v7939_v39  ;;  %v8373_v63 = vadd.f32 %v7903_v50, %v21568_v32  ;;  %v14189_v32 = vld [vmem:[%s24323_s4 + $0x1240] sm:$0xf]  ;;  %v15665_v16 = vld [vmem:[%s24323_s4 + $0x1258] sm:$0xf0]  ;;  %v14162_v39 = vor.u32 %v15658_v54, %v14161_v6  ;;  %v23062_v6 = vperm.slane %v22994_v25, 1 }
 0x640   :  { %v23003_v62 = vmul.f32 %v22999_v4, %v8373_v63 }
 0x642   :  { %v23007_v59 = vpop.f32.mrf.mxu3 }
 0x643   :  { %v23005_v27 = vpop.f32.mrf.mxu2  ;;  %v7905_v24 = vpop.f32.mrf.mxu1  ;;  %14200 = vmatmul.msk.bf16.gmra.mxu1 %vm1897_vm2, %v22269_v40 }
 0x644   :  { %v7906_v14 = vadd.f32 %v7905_v24, %v7887_v33  ;;  %v14190_v33 = vor.u32 %v15665_v16, %v14189_v32  ;;  %v14105_v32 = vld [vmem:[%s24323_s4 + $0x1198] sm:$0xf] }
 0x646   :  { %v23012_v21 = vadd.f32 %v7906_v14, %v21619_v60  ;;  %8351 = vmatpush.bf16.msra.mxu1 %v14190_v33 }
 0x647   :  { %8246 = vmatmul.bf16.gmra.mxu3 %v22055_v28 }
 0x648   :  { %24538 = vst [vmem:[#allocation18_spill] sm:$0xff] %v23012_v21  ;;  %8227 = vmatmul.bf16.gmra.mxu2 %v22053_v45  ;;  %8341 = vmatmul.bf16.gmra.mxu0 %v21848_v31  ;;  %v8035_v31 = vpop.f32.mrf.mxu0 }
 0x64a   :  { %v7943_v56 = vpop.f32.mrf.mxu3  ;;  %8352 = vmatpush.bf16.msra.mxu1 %v14162_v39 }
 0x64b   :  { %v7924_v60 = vpop.f32.mrf.mxu2  ;;  %v7907_v5 = vpop.f32.mrf.mxu1 }
 0x64c   :  { %v7944_v58 = vadd.f32 %v7943_v56, %v7924_v60  ;;  %v7908_v3 = vadd.f32 %v7907_v5, %v7889_v23  ;;  %v14133_v23 = vld [vmem:[%s24323_s4 + $0x11d0] sm:$0xf] }
 0x64e   :  { %v7963_v51 = vadd.f32 %v22944_v34, %v7944_v58  ;;  %v8387_v43 = vadd.f32 %v7908_v3, %v21675_v11  ;;  %v15651_v11 = vld [vmem:[%s24323_s4 + $0x11e8] sm:$0xf0] }
 0x64f   :  { %v14134_v24 = vor.u32 %v15651_v11, %v14133_v23 }
 0x650   :  { %v23028_v8 = vmul.f32 %v22999_v4, %v8387_v43  ;;  %v8038_v16 = vpop.f32.mrf.mxu0 }
 0x651   :  { %8353 = vmatpush.bf16.msra.mxu1 %v14134_v24 }
 0x652   :  { %v7945_v61 = vpop.f32.mrf.mxu3 }
 0x653   :  { %v7926_v34 = vpop.f32.mrf.mxu2  ;;  %v7976_v50 = vpop.f32.mrf.mxu1  ;;  %14201 = vmatmul.msk.bf16.vlgmr.msrb.gmra.mxu1 %vm1897_vm2, %v19666_v55 }
 0x654   :  { %v7977_v63 = vadd.f32 %v7976_v50, %v7958_v48  ;;  %v15644_v48 = vld [vmem:[%s24323_s4 + $0x11b0] sm:$0xf0]  ;;  %v7946_v43 = vadd.f32 %v7945_v61, %v7926_v34 }
 0x655   :  { %v14106_v33 = vor.u32 %v15644_v48, %v14105_v32 }
 0x656   :  { %v23043_v14 = vadd.f32 %v7977_v63, %v21726_v0  ;;  %v7965_v50 = vadd.f32 %v22989_v44, %v7946_v43 }
 0x657   :  { %8317 = vmatmul.bf16.vlgmr.msrb.gmra.mxu3 %v19661_v47  ;;  %8354 = vmatpush.bf16.msra.mxu1 %v14106_v33 }
 0x658   :  { %8298 = vmatmul.bf16.vlgmr.msrb.gmra.mxu2 %v19659_v30  ;;  %v8040_v58 = vpop.f32.mrf.mxu0 }
 0x65a   :  { %v23057_v60 = vpop.f32.mrf.mxu3 }
 0x65b   :  { %v23055_v0 = vpop.f32.mrf.mxu2  ;;  %v23059_v56 = vpop.f32.mrf.mxu1 }
 0x660   :  { %v8109_v63 = vpop.f32.mrf.mxu0 }
 0x662   :  { %v8016_v47 = vpop.f32.mrf.mxu3 }
 0x663   :  { %v7997_v30 = vpop.f32.mrf.mxu2  ;;  %v7981_v5 = vpop.f32.mrf.mxu1  ;;  %14202 = vmatmul.msk.bf16.gmra.mxu1 %vm1897_vm2, %v22269_v40 }
 0x664   :  { %v7982_v3 = vadd.f32 %v7981_v5, %v7963_v51 }
 0x666   :  { %v8381_v54 = vadd.f32 %v7982_v3, %v21833_v10  ;;  %v23074_v10 = vld [vmem:[%s24325_s6] sm:$0xff]  ;;  %s11038_s6 = sshll.u32 %s24330_s11, 4  ;;  %s11039_s6 = int_to_ptr.hbm [resolvable:$true] %s11038_s6 }
 0x667   :  { %8322 = vmatmul.bf16.gmra.mxu3 %v22055_v28  ;;  %v23079_v32 = vperm.slane %v23074_v10, 0 }
 0x668   :  { %8303 = vmatmul.bf16.gmra.mxu2 %v22053_v45  ;;  %v8425_v39 = vmul.f32 %v23062_v6, %v8381_v54  ;;  %v23087_v3 = vpop.f32.mrf.mxu0 }
 0x669   :  { %v23083_v44 = vadd.f32 %v23079_v32, %v23003_v62 }
 0x66a   :  { %v8019_v11 = vpop.f32.mrf.mxu3 }
 0x66b   :  { %v8000_v23 = vpop.f32.mrf.mxu2  ;;  %v7983_v34 = vpop.f32.mrf.mxu1  ;;  %24539 = vst [vmem:[#allocation7_spill] sm:$0xff] %v23083_v44 }
 0x66c   :  { %v8020_v51 = vadd.f32 %v8019_v11, %v8000_v23  ;;  %v7984_v61 = vadd.f32 %v7983_v34, %v7965_v50  ;;  %v23090_v34 = vperm.slane %v22994_v25, 2 }
 0x66e   :  { %v8039_v24 = vadd.f32 %v8038_v16, %v8020_v51  ;;  %v8388_v45 = vadd.f32 %v7984_v61, %v21891_v37  ;;  %v8017_v16 = vadd.f32 %v8016_v47, %v7997_v30 }
 0x670   :  { %v8432_v28 = vmul.f32 %v23062_v6, %v8388_v45  ;;  %v8036_v54 = vadd.f32 %v8035_v31, %v8017_v16  ;;  %v8114_v30 = vpop.f32.mrf.mxu0  ;;  %v23102_v31 = vadd.f32 %v23079_v32, %v23028_v8 }
 0x672   :  { %v8021_v33 = vpop.f32.mrf.mxu3  ;;  %24540 = vst [vmem:[#allocation26_spill] sm:$0xff] %v23102_v31 }
 0x673   :  { %v8002_v48 = vpop.f32.mrf.mxu2  ;;  %v8052_v5 = vpop.f32.mrf.mxu1  ;;  %14203 = vmatmul.msk.bf16.vlgmr.msra.gmra.mxu1 %vm1897_vm2, %v19666_v55 }
 0x67a   :  { %v8090_v37 = vpop.f32.mrf.mxu3 }
 0x67b   :  { %v8071_v43 = vpop.f32.mrf.mxu2  ;;  %v8054_v11 = vpop.f32.mrf.mxu1 }
 0x67c   :  { %v8091_v23 = vadd.f32 %v8090_v37, %v8071_v43  ;;  %v8055_v50 = vadd.f32 %v8054_v11, %v8036_v54 }
 0x67e   :  { %v8110_v51 = vadd.f32 %v8109_v63, %v8091_v23  ;;  %v8375_v62 = vadd.f32 %v8055_v50, %v21998_v49  ;;  %v8022_v63 = vadd.f32 %v8021_v33, %v8002_v48  ;;  %v8116_v23 = vpop.f32.mrf.mxu0 }
 0x680   :  { %v23094_v61 = vmul.f32 %v23090_v34, %v8375_v62  ;;  %v8041_v54 = vadd.f32 %v8040_v58, %v8022_v63 }
 0x682   :  { %v23098_v55 = vpop.f32.mrf.mxu3 }
 0x683   :  { %v23096_v47 = vpop.f32.mrf.mxu2  ;;  %v8057_v45 = vpop.f32.mrf.mxu1  ;;  %14204 = vmatmul.msk.bf16.gmra.mxu1 %vm1897_vm2, %v22269_v40  ;;  %v8441_v40 = vperm.slane %v23074_v10, 1 }
 0x684   :  { %v8058_v16 = vadd.f32 %v8057_v45, %v8039_v24 }
 0x685   :  { %v23117_v63 = vadd.f32 %v8441_v40, %v8425_v39 }
 0x686   :  { %v23105_v43 = vadd.f32 %v8058_v16, %v22049_v9  ;;  %v8185_v9 = vpop.f32.mrf.mxu0 }
 0x68a   :  { %v8095_v37 = vpop.f32.mrf.mxu3 }
 0x68b   :  { %v8076_v49 = vpop.f32.mrf.mxu2  ;;  %v8059_v11 = vpop.f32.mrf.mxu1 }
 0x68c   :  { %v8060_v50 = vadd.f32 %v8059_v11, %v8041_v54 }
 0x68e   :  { %v8389_v62 = vadd.f32 %v8060_v50, %v22109_v29  ;;  %v8015_v29 = vadd.f32 %v23057_v60, %v23055_v0  ;;  %v8411_v0 = vmul.f32 %v23062_v6, %v23043_v14 }
 0x690   :  { %v23111_v8 = vmul.f32 %v23090_v34, %v8389_v62  ;;  %v8096_v62 = vadd.f32 %v8095_v37, %v8076_v49  ;;  %v23142_v49 = vadd.f32 %v8441_v40, %v8411_v0 }
 0x692   :  { %v8097_v24 = vpop.f32.mrf.mxu3  ;;  %v8115_v26 = vadd.f32 %v8114_v30, %v8096_v62  ;;  %v23140_v30 = vperm.slane %v23074_v10, 3 }
 0x693   :  { %v8078_v31 = vpop.f32.mrf.mxu2  ;;  %v8128_v48 = vpop.f32.mrf.mxu1 }
 0x694   :  { %v8129_v33 = vadd.f32 %v8128_v48, %v8110_v51  ;;  %v7941_v51 = vadd.f32 %v23007_v59, %v23005_v27  ;;  %v8187_v48 = vpop.f32.mrf.mxu0  ;;  %v8098_v59 = vadd.f32 %v8097_v24, %v8078_v31 }
 0x696   :  { %v23114_v45 = vadd.f32 %v8129_v33, %v22160_v35  ;;  %v8034_v35 = vadd.f32 %v23009_v12, %v8015_v29  ;;  %v7960_v33 = vadd.f32 %v22896_v7, %v7941_v51  ;;  %v23134_v12 = vperm.slane %v22994_v25, 3 }
 0x697   :  { %v8483_v29 = vmax.f32 %v23142_v49, 0.0 }
 0x698   :  { %v8053_v44 = vadd.f32 %v8052_v5, %v8034_v35  ;;  %v7979_v60 = vadd.f32 %v23059_v56, %v7960_v33 }
 0x69a   :  { %v8166_v58 = vpop.f32.mrf.mxu3  ;;  %v8368_v27 = vadd.f32 %v8053_v44, %v21942_v19  ;;  %v8374_v5 = vadd.f32 %v7979_v60, %v21782_v18  ;;  %v8117_v44 = vadd.f32 %v8116_v23, %v8098_v59 }
 0x69b   :  { %v8147_v16 = vpop.f32.mrf.mxu2  ;;  %v23119_v11 = vpop.f32.mrf.mxu1 }
 0x69c   :  { %v8167_v54 = vadd.f32 %v8166_v58, %v8147_v16  ;;  %v23127_v16 = vadd.f32 %v8441_v40, %v8432_v28  ;;  %v8190_v14 = vpop.f32.mrf.mxu0  ;;  %v8418_v24 = vmul.f32 %v23062_v6, %v8374_v5 }
 0x69e   :  { %v8186_v50 = vadd.f32 %v8185_v9, %v8167_v54  ;;  %v23166_v6 = vadd.f32 %v8441_v40, %v8418_v24 }
 0x6a2   :  { %v8168_v39 = vpop.f32.mrf.mxu3 }
 0x6a3   :  { %v8149_v21 = vpop.f32.mrf.mxu2  ;;  %v8133_v58 = vpop.f32.mrf.mxu1 }
 0x6a4   :  { %v8134_v9 = vadd.f32 %v8133_v58, %v8115_v26  ;;  %v8412_v26 = vmul.f32 %v23090_v34, %v8368_v27 }
 0x6a6   :  { %v8383_v7 = vadd.f32 %v8134_v9, %v22267_v53  ;;  %v23149_v53 = vperm.slane %v23074_v10, 2 }
 0x6a8   :  { %v8427_v28 = vmul.f32 %v23134_v12, %v8383_v7  ;;  %v23160_v33 = vadd.f32 %v23149_v53, %v8412_v26  ;;  %v8192_v7 = vpop.f32.mrf.mxu0  ;;  %v8169_v26 = vadd.f32 %v8168_v39, %v8149_v21  ;;  %v23191_v39 = vadd.f32 %v23149_v53, %v23111_v8 }
 0x6aa   :  { %v8171_v19 = vpop.f32.mrf.mxu3  ;;  %v23146_v31 = vadd.f32 %v23140_v30, %v8427_v28  ;;  %v8484_v9 = vmax.f32 %v23160_v33, 0.0  ;;  %v8490_v28 = vmax.f32 %v23166_v6, 0.0  ;;  %v15673_v6 = vld [vmem:[%s24326_s7 + $0x38] sm:$0xff] }
 0x6ab   :  { %v8152_v56 = vpop.f32.mrf.mxu2  ;;  %v8135_v37 = vpop.f32.mrf.mxu1  ;;  %10622 = vmatpush.bf16.msra.mxu2 %v15673_v6  ;;  %v15670_v6 = vld [vmem:[%s24326_s7 + $0x20] sm:$0xff] }
 0x6ac   :  { %v8172_v18 = vadd.f32 %v8171_v19, %v8152_v56  ;;  %v8136_v54 = vadd.f32 %v8135_v37, %v8117_v44  ;;  %v8499_v51 = vmax.f32 %v23146_v31, 0.0  ;;  %v15895_v40 = vpack.i.bf16 %v8484_v9, %v8490_v28 }
 0x6ae   :  { %v8191_v62 = vadd.f32 %v8190_v14, %v8172_v18  ;;  %v8390_v35 = vadd.f32 %v8136_v54, %v22325_v52  ;;  %v15880_v23 = vpack.i.bf16 %v8499_v51, %v8483_v29  ;;  %v23171_v52 = vadd.f32 %v23149_v53, %v23094_v61 }
 0x6af   :  { %v8188_v61 = vadd.f32 %v8187_v48, %v8169_v26 }
 0x6b0   :  { %v23163_v58 = vmul.f32 %v23134_v12, %v8390_v35  ;;  %15881 = vrot.lane.b32.xlu0 %v15880_v23, %s16024_s3  ;;  %v8261_v24 = vpop.f32.mrf.mxu0 }
 0x6b2   :  { %v8173_v60 = vpop.f32.mrf.mxu3 }
 0x6b3   :  { %v8154_v0 = vpop.f32.mrf.mxu2  ;;  %v8204_v59 = vpop.f32.mrf.mxu1 }
 0x6b4   :  { %v8174_v27 = vadd.f32 %v8173_v60, %v8154_v0  ;;  %v8205_v5 = vadd.f32 %v8204_v59, %v8186_v50  ;;  %v23183_v50 = vperm.slane %v22994_v25, 4 }
 0x6b6   :  { %v8193_v14 = vadd.f32 %v8192_v7, %v8174_v27  ;;  %v23175_v56 = vadd.f32 %v8205_v5, %v22376_v57  ;;  %v8093_v7 = vadd.f32 %v23098_v55, %v23096_v47  ;;  %v8401_v47 = vperm.slane %v22994_v25, 5 }
 0x6b8   :  { %15896 = vrot.lane.b32.xlu0 %v15895_v40, %s16024_s3 }
 0x6ba   :  { %v8242_v37 = vpop.f32.mrf.mxu3 }
 0x6bb   :  { %v8206_v19 = vpop.f32.mrf.mxu1  ;;  %v8223_v44 = vpop.f32.mrf.mxu2 }
 0x6bc   :  { %v8207_v18 = vadd.f32 %v8206_v19, %v8188_v61  ;;  %v8243_v5 = vadd.f32 %v8242_v37, %v8223_v44  ;;  %v23210_v44 = vperm.slane %v23074_v10, 5 }
 0x6be   :  { %v8377_v21 = vadd.f32 %v8207_v18, %v22432_v38  ;;  %v8263_v38 = vpop.f32.mrf.mxu0  ;;  %v8262_v61 = vadd.f32 %v8261_v24, %v8243_v5  ;;  %v8413_v18 = vmul.f32 %v23134_v12, %v23114_v45 }
 0x6c0   :  { %v23187_v57 = vmul.f32 %v23183_v50, %v8377_v21  ;;  %v23214_v24 = vadd.f32 %v23140_v30, %v8413_v18 }
 0x6c2   :  { %v8244_v0 = vpop.f32.mrf.mxu3 }
 0x6c3   :  { %v8209_v54 = vpop.f32.mrf.mxu1  ;;  %v8225_v48 = vpop.f32.mrf.mxu2 }
 0x6c4   :  { %v8210_v35 = vadd.f32 %v8209_v54, %v8191_v62  ;;  %v8245_v55 = vadd.f32 %v8244_v0, %v8225_v48  ;;  %v8485_v0 = vmax.f32 %v23214_v24, 0.0 }
 0x6c6   :  { %v8384_v23 = vadd.f32 %v8210_v35, %v22483_v1  ;;  %v8112_v1 = vadd.f32 %v23087_v3, %v8093_v7  ;;  %v8266_v37 = vpop.f32.mrf.mxu0  ;;  %v8264_v45 = vadd.f32 %v8263_v38, %v8245_v55 }
 0x6c8   :  { %v23195_v60 = vmul.f32 %v23183_v50, %v8384_v23 }
 0x6ca   :  { %v8247_v62 = vpop.f32.mrf.mxu3 }
 0x6cb   :  { %v8211_v27 = vpop.f32.mrf.mxu1  ;;  %v8228_v26 = vpop.f32.mrf.mxu2 }
 0x6cc   :  { %v8212_v59 = vadd.f32 %v8211_v27, %v8193_v14  ;;  %v8131_v14 = vadd.f32 %v23119_v11, %v8112_v1  ;;  %v8248_v7 = vadd.f32 %v8247_v62, %v8228_v26  ;;  %v8426_v1 = vmul.f32 %v23090_v34, %v23105_v43 }
 0x6ce   :  { %v8391_v8 = vadd.f32 %v8212_v59, %v22539_v2  ;;  %v8376_v54 = vadd.f32 %v8131_v14, %v22216_v13 }
 0x6d0   :  { %v23201_v40 = vmul.f32 %v23183_v50, %v8391_v8  ;;  %v8420_v48 = vmul.f32 %v23134_v12, %v8376_v54  ;;  %v8268_v12 = vpop.f32.mrf.mxu0 }
 0x6d2   :  { %v8249_v23 = vpop.f32.mrf.mxu3  ;;  %v23229_v8 = vadd.f32 %v23140_v30, %v8420_v48 }
 0x6d3   :  { %v8280_v19 = vpop.f32.mrf.mxu1  ;;  %v8230_v35 = vpop.f32.mrf.mxu2 }
 0x6d4   :  { %v8281_v21 = vadd.f32 %v8280_v19, %v8262_v61  ;;  %v8267_v61 = vadd.f32 %v8266_v37, %v8248_v7  ;;  %v8410_v19 = vmul.f32 %v22999_v4, %v22970_v17  ;;  %v8250_v34 = vadd.f32 %v8249_v23, %v8230_v35 }
 0x6d6   :  { %v8371_v2 = vadd.f32 %v8281_v21, %v22590_v20  ;;  %v8492_v21 = vmax.f32 %v23229_v8, 0.0  ;;  %v23254_v17 = vadd.f32 %v23079_v32, %v8410_v19  ;;  %v8269_v54 = vadd.f32 %v8268_v12, %v8250_v34 }
 0x6d8   :  { %v8415_v3 = vmul.f32 %v8401_v47, %v8371_v2 }
 0x6da   :  { %v23217_v11 = vadd.f32 %v23210_v44, %v8415_v3  ;;  %v8318_v2 = vpop.f32.mrf.mxu3 }
 0x6db   :  { %v8282_v27 = vpop.f32.mrf.mxu1  ;;  %v8299_v18 = vpop.f32.mrf.mxu2 }
 0x6dc   :  { %v8283_v20 = vadd.f32 %v8282_v27, %v8264_v45  ;;  %v8487_v59 = vmax.f32 %v23217_v11, 0.0  ;;  %v8482_v27 = vmax.f32 %v23254_v17, 0.0  ;;  %v15680_v17 = vld [vmem:[%s24326_s7 + $0x70] sm:$0xff] }
 0x6de   :  { %v8378_v13 = vadd.f32 %v8283_v20, %v22646_v46  ;;  %v15875_v38 = vpack.i.bf16 %v8487_v59, %v8485_v0  ;;  %v23238_v46 = vadd.f32 %v23140_v30, %v23163_v58  ;;  %v23250_v58 = vadd.f32 %v23149_v53, %v8426_v1 }
 0x6df   :  { %v8497_v53 = vmax.f32 %v23117_v63, 0.0  ;;  %v8319_v20 = vadd.f32 %v8318_v2, %v8299_v18  ;;  %v8414_v18 = vmul.f32 %v23183_v50, %v23175_v56  ;;  %v8402_v2 = vperm.slane %v22994_v25, 6 }
 0x6e0   :  { %v8422_v5 = vmul.f32 %v8401_v47, %v8378_v13  ;;  %15876 = vrot.lane.b32.xlu2 %v15875_v38, %s16024_s3  ;;  %v8498_v3 = vmax.f32 %v23250_v58, 0.0 }
 0x6e2   :  { %v23234_v26 = vadd.f32 %v23210_v44, %v8422_v5  ;;  %v15900_v38 = vpack.i.bf16 %v8498_v3, %v8482_v27  ;;  %v8320_v12 = vpop.f32.mrf.mxu3 }
 0x6e3   :  { %v8285_v62 = vpop.f32.mrf.mxu1  ;;  %v8301_v7 = vpop.f32.mrf.mxu2 }
 0x6e4   :  { %v8286_v14 = vadd.f32 %v8285_v62, %v8267_v61  ;;  %v8494_v55 = vmax.f32 %v23234_v26, 0.0  ;;  %v8444_v61 = vperm.slane %v23074_v10, 4 }
 0x6e6   :  { %v8385_v43 = vadd.f32 %v8286_v14, %v22697_v15  ;;  %v15890_v30 = vpack.i.bf16 %v8494_v55, %v8492_v21  ;;  %v8337_v15 = vpop.f32.mrf.mxu0  ;;  %v23291_v56 = vadd.f32 %v8444_v61, %v23195_v60 }
 0x6e7   :  { %v8338_v62 = vadd.f32 %v8337_v15, %v8319_v20  ;;  %v23285_v15 = vadd.f32 %v8444_v61, %v8414_v18 }
 0x6e8   :  { %v8429_v37 = vmul.f32 %v8401_v47, %v8385_v43  ;;  %15891 = vrot.lane.b32.xlu2 %v15890_v30, %s16024_s3  ;;  %v8321_v43 = vadd.f32 %v8320_v12, %v8301_v7  ;;  %v23283_v30 = vperm.slane %v23074_v10, 6 }
 0x6e9   :  { %v8486_v20 = vmax.f32 %v23285_v15, 0.0 }
 0x6ea   :  { %v23258_v35 = vadd.f32 %v23210_v44, %v8429_v37 }
 0x6eb   :  { %v8287_v45 = vpop.f32.mrf.mxu1  ;;  %v8304_v37 = vpop.f32.mrf.mxu2 }
 0x6ec   :  { %v8288_v23 = vadd.f32 %v8287_v45, %v8269_v54  ;;  %v8501_v48 = vmax.f32 %v23258_v35, 0.0 }
 0x6ee   :  { %v8392_v13 = vadd.f32 %v8288_v23, %v22753_v41  ;;  %v15885_v5 = vpack.i.bf16 %v8497_v53, %v8501_v48  ;;  %v23276_v41 = vadd.f32 %v8444_v61, %v23187_v57  ;;  %v8339_v34 = vpop.f32.mrf.mxu0  ;;  %v8323_v57 = vpop.f32.mrf.mxu3 }
 0x6ef   :  { %v8340_v45 = vadd.f32 %v8339_v34, %v8321_v43  ;;  %v8324_v10 = vadd.f32 %v8323_v57, %v8304_v37 }
 0x6f0   :  { %v8436_v1 = vmul.f32 %v8401_v47, %v8392_v13  ;;  %15901 = vrot.lane.b32.xlu2 %v15900_v38, %s16024_s3  ;;  %15886 = vrot.lane.b32.xlu1 %v15885_v5, %s16024_s3  ;;  %v8493_v31 = vmax.f32 %v23276_v41, 0.0 }
 0x6f3   :  { %v8356_v19 = vpop.f32.mrf.mxu1  ;;  %v8306_v60 = vpop.f32.mrf.mxu2 }
 0x6f4   :  { %v8357_v14 = vadd.f32 %v8356_v19, %v8338_v62  ;;  %v23304_v62 = vadd.f32 %v8444_v61, %v23201_v40 }
 0x6f6   :  { %v8372_v47 = vadd.f32 %v8357_v14, %v22804_v22  ;;  %v8342_v38 = vpop.f32.mrf.mxu0  ;;  %v8325_v19 = vpop.f32.mrf.mxu3 }
 0x6f7   :  { %v8343_v12 = vadd.f32 %v8342_v38, %v8324_v10  ;;  %v8326_v34 = vadd.f32 %v8325_v19, %v8306_v60 }
 0x6f8   :  { %v8416_v54 = vmul.f32 %v8402_v2, %v8372_v47 }
 0x6fa   :  { %v23288_v23 = vadd.f32 %v23283_v30, %v8416_v54 }
 0x6fb   :  { %v8358_v25 = vpop.f32.mrf.mxu1 }
 0x6fc   :  { %v8359_v50 = vadd.f32 %v8358_v25, %v8340_v45  ;;  %v8488_v22 = vmax.f32 %v23288_v23, 0.0  ;;  %v23308_v45 = vadd.f32 %v23210_v44, %v8436_v1  ;;  %v24541_v25 = vld [vmem:[#allocation29_spill] sm:$0xff] }
 0x6fe   :  { %v8379_v7 = vadd.f32 %v8359_v50, %v22851_v36  ;;  %v15910_v13 = vpack.i.bf16 %v8488_v22, %v8486_v20  ;;  %v8344_v47 = vpop.f32.mrf.mxu0  ;;  %v8508_v1 = vmax.f32 %v23308_v45, 0.0  ;;  %v15692_v45 = vld [vmem:[%s24326_s7 + $0xd0] sm:$0xff] }
 0x6ff   :  { %v8345_v37 = vadd.f32 %v8344_v47, %v8326_v34  ;;  %v8500_v34 = vmax.f32 %v23291_v56, 0.0 }
 0x700   :  { %v23300_v5 = vmul.f32 %v8402_v2, %v8379_v7  ;;  %15911 = vrot.lane.b32.xlu1 %v15910_v13, %s16024_s3  ;;  %v24542_v7 = vld [vmem:[#allocation18_spill] sm:$0xff] }
 0x701   :  { %v8424_v40 = vmul.f32 %v22999_v4, %v24542_v7 }
 0x703   :  { %v8361_v18 = vpop.f32.mrf.mxu1  ;;  %v23314_v61 = vadd.f32 %v23079_v32, %v8424_v40 }
 0x704   :  { %v8362_v14 = vadd.f32 %v8361_v18, %v8343_v12 }
 0x705   :  { %v8496_v60 = vmax.f32 %v23314_v61, 0.0 }
 0x706   :  { %v8386_v36 = vadd.f32 %v8362_v14, %v22889_v42 }
 0x708   :  { %v8430_v43 = vmul.f32 %v8402_v2, %v8386_v36 }
 0x70a   :  { %v23330_v32 = vadd.f32 %v23283_v30, %v8430_v43 }
 0x70b   :  { %v8363_v54 = vpop.f32.mrf.mxu1 }
 0x70c   :  { %v8364_v57 = vadd.f32 %v8363_v54, %v8345_v37  ;;  %v8502_v14 = vmax.f32 %v23330_v32, 0.0  ;;  %v8507_v54 = vmax.f32 %v23304_v62, 0.0 }
 0x70e   :  { %v8393_v50 = vadd.f32 %v8364_v57, %v24541_v25  ;;  %v8505_v57 = vmax.f32 %v23191_v39, 0.0 }
 0x710   :  { %v8437_v10 = vmul.f32 %v8402_v2, %v8393_v50  ;;  %v8504_v2 = vmax.f32 %v23127_v16, 0.0  ;;  %v15955_v25 = vpack.i.bf16 %v8507_v54, %v8505_v57  ;;  %v15674_v16 = vld [vmem:[%s24326_s7 + $0x40] sm:$0xff] }
 0x712   :  { %v15935_v4 = vpack.i.bf16 %v8504_v2, %v8508_v1 }
 0x722   :  { %v15882_v13 = vpop.permute.xlu0 %15881 }
 0x723   :  { %v15883_v38 = vunpack.i.l.bf16 %v15882_v13  ;;  %v15884_v50 = vunpack.i.h.bf16 %v15882_v13  ;;  %v23367_v13 = vadd.f32 %v23283_v30, %v23300_v5 }
 0x725   :  { %v8546_v42 = vmax.f32 %v8483_v29, %v15883_v38  ;;  %v8588_v8 = vmax.f32 %v8499_v51, %v15884_v50  ;;  %v8506_v38 = vmax.f32 %v23238_v46, 0.0  ;;  %v8495_v63 = vmax.f32 %v23367_v13, 0.0  ;;  %v24543_v51 = vld [vmem:[#allocation7_spill] sm:$0xff] }
 0x726   :  { %v8489_v35 = vmax.f32 %v24543_v51, 0.0  ;;  %v15703_v51 = vld [vmem:[%s24326_s7 + $0x128] sm:$0xff]  ;;  %v15716_v46 = vld [vmem:[%s24326_s7 + $0x190] sm:$0xff] }
 0x727   :  { %v15905_v44 = vpack.i.bf16 %v8546_v42, %v8496_v60 }
 0x729   :  { %15906 = vrot.lane.b32.xlu2 %v15905_v44, %s16024_s3 }
 0x731   :  { %15936 = vrot.lane.b32.xlu2 %v15935_v4, %s16024_s3  ;;  %v15897_v4 = vpop.permute.xlu0 %15896 }
 0x73a   :  { %v15877_v49 = vpop.permute.xlu2 %15876 }
 0x73b   :  { %v15879_v29 = vunpack.i.h.bf16 %v15877_v49  ;;  %v15878_v12 = vunpack.i.l.bf16 %v15877_v49  ;;  %v15898_v49 = vunpack.i.l.bf16 %v15897_v4 }
 0x73d   :  { %v8626_v19 = vmax.f32 %v8487_v59, %v15879_v29  ;;  %v8586_v18 = vmax.f32 %v8485_v0, %v15878_v12  ;;  %v8547_v29 = vmax.f32 %v8490_v28, %v15898_v49  ;;  %v23388_v12 = vadd.f32 %v23283_v30, %v8437_v10  ;;  %v15681_v28 = vld [vmem:[%s24326_s7 + $0x78] sm:$0xff]  ;;  %v15671_v49 = vld [vmem:[%s24326_s7 + $0x28] sm:$0xff] }
 0x73e   :  { %v15689_v30 = vld [vmem:[%s24326_s7 + $0xb8] sm:$0xff]  ;;  %10635 = vmatpush.bf16.msra.mxu3 %v15681_v28  ;;  %v15678_v28 = vld [vmem:[%s24326_s7 + $0x60] sm:$0xff] }
 0x73f   :  { %v15920_v36 = vpack.i.bf16 %v8502_v14, %v8626_v19  ;;  %v15915_v43 = vpack.i.bf16 %v8586_v18, %v8500_v34  ;;  %v8509_v19 = vmax.f32 %v23388_v12, 0.0  ;;  %v24544_v18 = vld [vmem:[#allocation26_spill] sm:$0xff]  ;;  %10648 = vmatpush.bf16.msra.mxu0 %v15689_v30  ;;  %v15686_v30 = vld [vmem:[%s24326_s7 + $0xa0] sm:$0xff] }
 0x740   :  { %v15782_v12 = vld [vmem:[%s24326_s7 + $0x3a0] sm:$0xff] }
 0x741   :  { %15921 = vrot.lane.b32.xlu1 %v15920_v36, %s16024_s3  ;;  %15916 = vrot.lane.b32.xlu0 %v15915_v43, %s16024_s3  ;;  %v8503_v36 = vmax.f32 %v24544_v18, 0.0  ;;  %v15767_v18 = vld [vmem:[%s24326_s7 + $0x328] sm:$0xff] }
 0x742   :  { %v15892_v47 = vpop.permute.xlu2 %15891  ;;  %10636 = vmatpush.bf16.msra.mxu3 %v15680_v17 }
 0x743   :  { %v15894_v11 = vunpack.i.h.bf16 %v15892_v47  ;;  %v15893_v59 = vunpack.i.l.bf16 %v15892_v47  ;;  %v15960_v43 = vpack.i.bf16 %v8503_v36, %v8509_v19 }
 0x745   :  { %v8627_v24 = vmax.f32 %v8494_v55, %v15894_v11  ;;  %v8587_v0 = vmax.f32 %v8492_v21, %v15893_v59  ;;  %v15899_v59 = vunpack.i.h.bf16 %v15897_v4  ;;  %v15672_v4 = vld [vmem:[%s24326_s7 + $0x30] sm:$0xff] }
 0x746   :  { %10623 = vmatpush.bf16.msra.mxu2 %v15672_v4 }
 0x747   :  { %v15950_v37 = vpack.i.bf16 %v8627_v24, %v8587_v0 }
 0x749   :  { %15951 = vrot.lane.b32.xlu2 %v15950_v37, %s16024_s3 }
 0x74a   :  { %v23407_v10 = vpop.permute.xlu2 %15901  ;;  %10624 = vmatpush.bf16.msra.mxu2 %v15671_v49 }
 0x74b   :  { %v15903_v37 = vunpack.i.l.bf16 %v23407_v10 }
 0x74d   :  { %v8526_v23 = vmax.f32 %v8482_v27, %v15903_v37  ;;  %v15688_v27 = vld [vmem:[%s24326_s7 + $0xb0] sm:$0xff]  ;;  %v15685_v37 = vld [vmem:[%s24326_s7 + $0x98] sm:$0xff] }
 0x74e   :  { %10649 = vmatpush.bf16.msra.mxu0 %v15688_v27  ;;  %10625 = vmatpush.bf16.msra.mxu2 %v15670_v6 }
 0x751   :  { %15956 = vrot.lane.b32.xlu2 %v15955_v25, %s16024_s3 }
 0x762   :  { %v15887_v26 = vpop.permute.xlu1 %15886 }
 0x763   :  { %v15889_v55 = vunpack.i.h.bf16 %v15887_v26  ;;  %v15888_v7 = vunpack.i.l.bf16 %v15887_v26 }
 0x765   :  { %v8548_v21 = vmax.f32 %v8497_v53, %v15889_v55  ;;  %v8628_v40 = vmax.f32 %v8501_v48, %v15888_v7  ;;  %v8491_v53 = vmax.f32 %v23171_v52, 0.0  ;;  %v15945_v48 = vpack.i.bf16 %v8489_v35, %v8495_v63  ;;  %v15719_v52 = vld [vmem:[%s24326_s7 + $0x1a8] sm:$0xff] }
 0x766   :  { %v8566_v55 = vmax.f32 %v8484_v9, %v15899_v59  ;;  %v15669_v59 = vld [vmem:[%s24326_s7 + $0x18] sm:$0xff] }
 0x767   :  { %v15930_v42 = vpack.i.bf16 %v8506_v38, %v8548_v21  ;;  %v15925_v44 = vpack.i.bf16 %v8628_v40, %v8588_v8  ;;  %v15940_v5 = vpack.i.bf16 %v8493_v31, %v8491_v53  ;;  %10626 = vmatpush.bf16.msra.mxu2 %v15669_v59 }
 0x769   :  { %15931 = vrot.lane.b32.xlu1 %v15930_v42, %s16024_s3  ;;  %15926 = vrot.lane.b32.xlu0 %v15925_v44, %s16024_s3 }
 0x771   :  { %15946 = vrot.lane.b32.xlu1 %v15945_v48, %s16024_s3  ;;  %15941 = vrot.lane.b32.xlu0 %v15940_v5, %s16024_s3 }
 0x772   :  { %v15912_v47 = vpop.permute.xlu1 %15911 }
 0x773   :  { %v15914_v11 = vunpack.i.h.bf16 %v15912_v47  ;;  %v15913_v24 = vunpack.i.l.bf16 %v15912_v47 }
 0x775   :  { %v8646_v25 = vmax.f32 %v8488_v22, %v15914_v11  ;;  %v8606_v7 = vmax.f32 %v8486_v20, %v15913_v24  ;;  %v15677_v24 = vld [vmem:[%s24326_s7 + $0x58] sm:$0xff] }
 0x777   :  { %v23423_v22 = vrot.slane %v8646_v25, 2 }
 0x779   :  { %8656 = vrot.lane.b32.xlu0 %v8547_v29, %s16024_s3  ;;  %v15679_v29 = vld [vmem:[%s24326_s7 + $0x68] sm:$0xff] }
 0x77a   :  { %10637 = vmatpush.bf16.msra.mxu3 %v15679_v29  ;;  %v15675_v29 = vld [vmem:[%s24326_s7 + $0x48] sm:$0xff] }
 0x77e   :  { %10638 = vmatpush.bf16.msra.mxu3 %v15678_v28 }
 0x781   :  { %15961 = vrot.lane.b32.xlu0 %v15960_v43, %s16024_s3  ;;  %v15687_v43 = vld [vmem:[%s24326_s7 + $0xa8] sm:$0xff] }
 0x782   :  { %10650 = vmatpush.bf16.msra.mxu0 %v15687_v43  ;;  %10639 = vmatpush.bf16.msra.mxu3 %v15677_v24  ;;  %v15683_v43 = vld [vmem:[%s24326_s7 + $0x88] sm:$0xff] }
 0x783   :  { %v23409_v0 = vpop.permute.xlu2 %15906 }
 0x784   :  { %v15909_v40 = vunpack.i.h.bf16 %v23409_v0 }
 0x786   :  { %v8698_v33 = vsel %vm1897_vm2, %v8526_v23, %v15909_v40  ;;  %10651 = vmatpush.bf16.msra.mxu0 %v15686_v30 }
 0x78a   :  { %10652 = vmatpush.bf16.msra.mxu0 %v15685_v37 }
 0x78b   :  { %v23471_v25 = vpop.permute.xlu2 %15936 }
 0x7a3   :  { %v23506_v58 = vpop.permute.xlu2 %15951 }
 0x7b3   :  { %v15922_v50 = vpop.permute.xlu1 %15921  ;;  %v15917_v26 = vpop.permute.xlu0 %15916 }
 0x7b4   :  { %v15923_v8 = vunpack.i.l.bf16 %v15922_v50  ;;  %v15919_v21 = vunpack.i.h.bf16 %v15917_v26  ;;  %v15924_v40 = vunpack.i.h.bf16 %v15922_v50 }
 0x7b6   :  { %v8706_v42 = vsel %vm1897_vm2, %v8606_v7, %v15923_v8  ;;  %v8702_v44 = vsel %vm1897_vm2, %v8566_v55, %v15919_v21  ;;  %v15668_v7 = vld [vmem:[%s24326_s7 + $0x10] sm:$0xff]  ;;  %v15904_v21 = vunpack.i.h.bf16 %v23407_v10  ;;  %v15667_v10 = vld [vmem:[%s24326_s7 + $0x8] sm:$0xff] }
 0x7b7   :  { %v8727_v48 = vrot.slane %v8706_v42, 4  ;;  %v8726_v5 = vrot.slane %v8702_v44, 6  ;;  %v15676_v8 = vld [vmem:[%s24326_s7 + $0x50] sm:$0xff]  ;;  %v15918_v42 = vunpack.i.l.bf16 %v15917_v26  ;;  %10627 = vmatpush.bf16.msra.mxu2 %v15668_v7  ;;  %v8648_v26 = vmax.f32 %v8502_v14, %v15924_v40 }
 0x7b8   :  { %v15684_v44 = vld [vmem:[%s24326_s7 + $0x90] sm:$0xff]  ;;  %10640 = vmatpush.bf16.msra.mxu3 %v15676_v8  ;;  %v8568_v50 = vmax.f32 %v8498_v3, %v15904_v21 }
 0x7b9   :  { %v8746_v9 = vsel %vm2011_vm5, %v8727_v48, %v23423_v22  ;;  %v8745_v15 = vsel %vm2013_vm6, %v8698_v33, %v8726_v5  ;;  %v8742_v47 = vsel %vm273_vm0, %v23423_v22, %v8727_v48  ;;  %v8741_v11 = vsel %vm2017_vm7, %v8698_v33, %v8726_v5  ;;  %10653 = vmatpush.bf16.msra.mxu0 %v15684_v44 }
 0x7ba   :  { %v23430_v20 = vsel %vm2015_vm8, %v8746_v9, %v8745_v15  ;;  %v8743_v55 = vsel %vm2020_vm9, %v8741_v11, %v8742_v47  ;;  %v15908_v9 = vunpack.i.l.bf16 %v23409_v0  ;;  %v15939_v15 = vunpack.i.h.bf16 %v23471_v25 }
 0x7bb   :  { %v8744_v23 = vrot.slane %v8743_v55, 2  ;;  %v8750_v4 = vsel %vm2017_vm7, %v8727_v48, %v23423_v22  ;;  %v8749_v17 = vsel %vm273_vm0, %v8726_v5, %v8698_v33  ;;  %v8608_v0 = vmax.f32 %v8500_v34, %v15918_v42  ;;  %10628 = vmatpush.bf16.msra.mxu2 %v15667_v10  ;;  %v15682_v55 = vld [vmem:[%s24326_s7 + $0x80] sm:$0xff] }
 0x7bc   :  { %v8739_v34 = vsel %vm2013_vm6, %v8727_v48, %v23423_v22  ;;  %v8738_v6 = vsel %vm2011_vm5, %v8698_v33, %v8726_v5  ;;  %v23513_v28 = vsel %vm2020_vm9, %v8750_v4, %v8749_v17  ;;  %v8528_v30 = vmax.f32 %v8496_v60, %v15908_v9  ;;  %v15666_v22 = vld [vmem:[%s24326_s7] sm:$0xff]  ;;  %10641 = vmatpush.bf16.msra.mxu3 %v15675_v29  ;;  %v15705_v29 = vld [vmem:[%s24326_s7 + $0x138] sm:$0xff] }
 0x7bd   :  { %v14206_v56 = vrot.slane %v8744_v23, 9  ;;  %v23519_v47 = vmax.f32 %v8504_v2, %v15939_v15  ;;  %v15954_v48 = vunpack.i.h.bf16 %v23506_v58  ;;  %v8734_v5 = vrot.slane %v8648_v26, 2  ;;  %10654 = vmatpush.bf16.msra.mxu0 %v15683_v43 }
 0x7be   :  { %v23531_v61 = vsel %vm2015_vm8, %v8738_v6, %v8739_v34  ;;  %v8752_v37 = vrot.slane %v23513_v28, 6  ;;  %v15953_v43 = vunpack.i.l.bf16 %v23506_v58  ;;  %v15695_v58 = vld [vmem:[%s24326_s7 + $0xe8] sm:$0xff] }
 0x7bf   :  { %v23534_v2 = vmax.f32 %v8744_v23, %v14206_v56  ;;  %10629 = vmatpush.bf16.msra.mxu2 %v15666_v22  ;;  %v15713_v56 = vld [vmem:[%s24326_s7 + $0x178] sm:$0xff] }
 0x7c0   :  { %10642 = vmatpush.bf16.msra.mxu3 %v15674_v16  ;;  %v15704_v16 = vld [vmem:[%s24326_s7 + $0x130] sm:$0xff] }
 0x7c1   :  { %10655 = vmatpush.bf16.msra.mxu0 %v15682_v55 }
 0x7c3   :  { %10674 = vmatpush.bf16.msrb.mxu2 %v15705_v29 }
 0x7c4   :  { %10687 = vmatpush.bf16.msrb.mxu3 %v15713_v56 }
 0x7c7   :  { %10675 = vmatpush.bf16.msrb.mxu2 %v15704_v16 }
 0x7cb   :  { %10676 = vmatpush.bf16.msrb.mxu2 %v15703_v51 }
 0x7db   :  { %v23498_v27 = vpop.permute.xlu1 %15931  ;;  %v15927_v49 = vpop.permute.xlu0 %15926 }
 0x7dc   :  { %v15933_v3 = vunpack.i.l.bf16 %v23498_v27  ;;  %v15929_v32 = vunpack.i.h.bf16 %v15927_v49  ;;  %v15928_v14 = vunpack.i.l.bf16 %v15927_v49  ;;  %v15697_v49 = vld [vmem:[%s24326_s7 + $0xf8] sm:$0xff] }
 0x7dd   :  { %10661 = vmatpush.bf16.msrb.mxu1 %v15697_v49 }
 0x7de   :  { %v8708_v11 = vsel %vm1897_vm2, %v8608_v0, %v15929_v32  ;;  %v8704_v59 = vsel %vm1897_vm2, %v8568_v50, %v15928_v14  ;;  %v8700_v60 = vsel %vm1897_vm2, %v8528_v30, %v15933_v3  ;;  %v15721_v0 = vld [vmem:[%s24326_s7 + $0x1b8] sm:$0xff]  ;;  %v14205_v3 = vrot.slane %v23531_v61, 9 }
 0x7df   :  { %v8733_v33 = vrot.slane %v8708_v11, 4  ;;  %v8732_v24 = vrot.slane %v8704_v59, 6  ;;  %v14208_v14 = vrot.slane %v8752_v37, 9  ;;  %10700 = vmatpush.bf16.msrb.mxu0 %v15721_v0  ;;  %v15720_v11 = vld [vmem:[%s24326_s7 + $0x1b0] sm:$0xff] }
 0x7e0   :  { %v15696_v59 = vld [vmem:[%s24326_s7 + $0xf0] sm:$0xff] }
 0x7e1   :  { %v8769_v7 = vsel %vm2013_vm6, %v8733_v33, %v8734_v5  ;;  %v8772_v8 = vsel %vm273_vm0, %v8734_v5, %v8733_v33  ;;  %v8776_v21 = vsel %vm2011_vm5, %v8733_v33, %v8734_v5  ;;  %v8780_v40 = vsel %vm2017_vm7, %v8733_v33, %v8734_v5  ;;  %10662 = vmatpush.bf16.msrb.mxu1 %v15696_v59 }
 0x7e2   :  { %v8768_v42 = vsel %vm2011_vm5, %v8700_v60, %v8732_v24  ;;  %v8771_v44 = vsel %vm2017_vm7, %v8700_v60, %v8732_v24  ;;  %v8775_v23 = vsel %vm2013_vm6, %v8700_v60, %v8732_v24  ;;  %v8779_v9 = vsel %vm273_vm0, %v8732_v24, %v8700_v60  ;;  %v15712_v60 = vld [vmem:[%s24326_s7 + $0x170] sm:$0xff] }
 0x7e3   :  { %v23549_v15 = vsel %vm2020_vm9, %v8771_v44, %v8772_v8  ;;  %v23552_v4 = vsel %vm2020_vm9, %v8780_v40, %v8779_v9  ;;  %v15947_v17 = vpop.permute.xlu1 %15946  ;;  %v15942_v10 = vpop.permute.xlu0 %15941  ;;  %v8770_v50 = vsel %vm2015_vm8, %v8768_v42, %v8769_v7  ;;  %v8777_v26 = vsel %vm2015_vm8, %v8776_v21, %v8775_v23  ;;  %10701 = vmatpush.bf16.msrb.mxu0 %v15720_v11 }
 0x7e4   :  { %v15948_v32 = vunpack.i.l.bf16 %v15947_v17  ;;  %v15944_v34 = vunpack.i.h.bf16 %v15942_v10  ;;  %v15943_v6 = vunpack.i.l.bf16 %v15942_v10  ;;  %v14213_v28 = vrot.slane %v8770_v50, 9  ;;  %10688 = vmatpush.bf16.msrb.mxu3 %v15712_v60 }
 0x7e5   :  { %v8778_v30 = vrot.slane %v8777_v26, 4  ;;  %v15949_v22 = vunpack.i.h.bf16 %v15947_v17  ;;  %v8883_v33 = vperm.slane %v23534_v2, 6  ;;  %v8882_v24 = vperm.slane %v23534_v2, 4  ;;  %10663 = vmatpush.bf16.msrb.mxu1 %v15695_v58 }
 0x7e6   :  { %v8647_v5 = vmax.f32 %v8495_v63, %v15948_v32  ;;  %v8607_v55 = vmax.f32 %v8493_v31, %v15944_v34  ;;  %v8567_v13 = vmax.f32 %v8491_v53, %v15943_v6  ;;  %v8854_v63 = vmax.f32 %v8770_v50, %v14213_v28  ;;  %v15718_v6 = vld [vmem:[%s24326_s7 + $0x1a0] sm:$0xff] }
 0x7e7   :  { %v14215_v7 = vrot.slane %v8778_v30, 9  ;;  %v8880_v21 = vperm.slane %v23534_v2, 0  ;;  %v8881_v40 = vperm.slane %v23534_v2, 2  ;;  %v23592_v42 = vmax.f32 %v8752_v37, %v14208_v14  ;;  %10702 = vmatpush.bf16.msrb.mxu0 %v15719_v52 }
 0x7e8   :  { %v8731_v8 = vrot.slane %v8647_v5, 2  ;;  %v8703_v44 = vsel %vm1897_vm2, %v8567_v13, %v15953_v43  ;;  %v8707_v23 = vsel %vm1897_vm2, %v8607_v55, %v15954_v48  ;;  %v8887_v41 = vperm.slane %v8854_v63, 6 }
 0x7e9   :  { %v8886_v31 = vperm.slane %v8854_v63, 4  ;;  %v8527_v53 = vmax.f32 %v8489_v35, %v15949_v22  ;;  %v8729_v2 = vrot.slane %v8703_v44, 6  ;;  %v8730_v37 = vrot.slane %v8707_v23, 4  ;;  %v15711_v35 = vld [vmem:[%s24326_s7 + $0x168] sm:$0xff]  ;;  %v15694_v22 = vld [vmem:[%s24326_s7 + $0xe0] sm:$0xff] }
 0x7ea   :  { %v8884_v9 = vperm.slane %v8854_v63, 0  ;;  %v8891_v48 = vsel %vm2447_vm1, %v8887_v41, %v8883_v33  ;;  %v8885_v50 = vperm.slane %v8854_v63, 2  ;;  %v23608_v26 = vmax.f32 %v8778_v30, %v14215_v7  ;;  %10689 = vmatpush.bf16.msrb.mxu3 %v15711_v35  ;;  %v15710_v63 = vld [vmem:[%s24326_s7 + $0x160] sm:$0xff]  ;;  %10664 = vmatpush.bf16.msrb.mxu1 %v15694_v22 }
 0x7eb   :  { %v8657_v17 = vpop.permute.xlu0 %8656  ;;  %v8890_v10 = vsel %vm2447_vm1, %v8886_v31, %v8882_v24  ;;  %8898 = vrot.lane.b32.xlu0 %v8891_v48, %s16024_s3  ;;  %v8754_v49 = vsel %vm2013_vm6, %v8730_v37, %v8731_v8  ;;  %v8757_v29 = vsel %vm273_vm0, %v8731_v8, %v8730_v37  ;;  %v8761_v43 = vsel %vm2011_vm5, %v8730_v37, %v8731_v8  ;;  %v15702_v24 = vld [vmem:[%s24326_s7 + $0x120] sm:$0xff]  ;;  %v15709_v31 = vld [vmem:[%s24326_s7 + $0x158] sm:$0xff] }
 0x7ec   :  { %v8699_v0 = vsel %vm1897_vm2, %v8527_v53, %v8657_v17  ;;  %v8765_v59 = vsel %vm2017_vm7, %v8730_v37, %v8731_v8  ;;  %v15934_v5 = vunpack.i.h.bf16 %v23498_v27  ;;  %v15975_v60 = vpack.i.bf16 %v8890_v10, %v23519_v47  ;;  %10703 = vmatpush.bf16.msrb.mxu0 %v15718_v6  ;;  %v15717_v8 = vld [vmem:[%s24326_s7 + $0x198] sm:$0xff]  ;;  %10677 = vmatpush.bf16.msrb.mxu2 %v15702_v24  ;;  %v15691_v6 = vld [vmem:[%s24326_s7 + $0xc8] sm:$0xff] }
 0x7ed   :  { %v8753_v32 = vsel %vm2011_vm5, %v8699_v0, %v8729_v2  ;;  %v8756_v14 = vsel %vm2017_vm7, %v8699_v0, %v8729_v2  ;;  %v8760_v56 = vsel %vm2013_vm6, %v8699_v0, %v8729_v2  ;;  %v8764_v34 = vsel %vm273_vm0, %v8729_v2, %v8699_v0 }
 0x7ee   :  { %v23629_v28 = vsel %vm2015_vm8, %v8753_v32, %v8754_v49  ;;  %v23632_v30 = vsel %vm2020_vm9, %v8756_v14, %v8757_v29  ;;  %v23635_v11 = vsel %vm2015_vm8, %v8761_v43, %v8760_v56  ;;  %v8766_v33 = vsel %vm2020_vm9, %v8765_v59, %v8764_v34  ;;  %15976 = vrot.lane.b32.xlu2 %v15975_v60, %s16024_s3  ;;  %v15700_v29 = vld [vmem:[%s24326_s7 + $0x110] sm:$0xff]  ;;  %v15715_v34 = vld [vmem:[%s24326_s7 + $0x188] sm:$0xff]  ;;  %v15753_v60 = vld [vmem:[%s24326_s7 + $0x2b8] sm:$0xff] }
 0x7ef   :  { %v8767_v16 = vrot.slane %v8766_v33, 6  ;;  %v8888_v55 = vsel %vm2447_vm1, %v8884_v9, %v8880_v21  ;;  %v8889_v13 = vsel %vm2447_vm1, %v8885_v50, %v8881_v40  ;;  %v15938_v27 = vunpack.i.l.bf16 %v23471_v25  ;;  %v15693_v25 = vld [vmem:[%s24326_s7 + $0xd8] sm:$0xff]  ;;  %10690 = vmatpush.bf16.msrb.mxu3 %v15710_v63  ;;  %v15708_v43 = vld [vmem:[%s24326_s7 + $0x150] sm:$0xff] }
 0x7f0   :  { %v15965_v7 = vpack.i.bf16 %v8889_v13, %v8888_v55  ;;  %v23659_v47 = vmax.f32 %v23531_v61, %v14205_v3  ;;  %v8930_v40 = vperm.slane %v23592_v42, 6  ;;  %v8934_v44 = vperm.slane %v23608_v26, 6  ;;  %v15701_v61 = vld [vmem:[%s24326_s7 + $0x118] sm:$0xff]  ;;  %10704 = vmatpush.bf16.msrb.mxu0 %v15717_v8  ;;  %10665 = vmatpush.bf16.msrb.mxu1 %v15693_v25  ;;  %v15698_v13 = vld [vmem:[%s24326_s7 + $0x100] sm:$0xff] }
 0x7f1   :  { %v14212_v21 = vrot.slane %v8767_v16, 9  ;;  %v8589_v3 = vmax.f32 %v8506_v38, %v15934_v5  ;;  %v8629_v52 = vmax.f32 %v8508_v1, %v15938_v27  ;;  %v8931_v53 = vperm.slane %v23608_v26, 0  ;;  %10678 = vmatpush.bf16.msrb.mxu2 %v15701_v61  ;;  %v15707_v5 = vld [vmem:[%s24326_s7 + $0x148] sm:$0xff] }
 0x7f2   :  { %15966 = vrot.lane.b32.xlu1 %v15965_v7, %s16024_s3  ;;  %v8938_v41 = vsel %vm2447_vm1, %v8934_v44, %v8930_v40  ;;  %v8862_v38 = vperm.slane %v23659_v47, 0  ;;  %v8863_v37 = vperm.slane %v23659_v47, 2  ;;  %v8927_v1 = vperm.slane %v23592_v42, 0 }
 0x7f3   :  { %v23673_v23 = vmax.f32 %v8767_v16, %v14212_v21  ;;  %8945 = vrot.lane.b32.xlu0 %v8938_v41, %s16024_s3  ;;  %v8864_v58 = vperm.slane %v23659_v47, 4  ;;  %v15970_v17 = vpack.i.bf16 %v8629_v52, %v8589_v3  ;;  %10691 = vmatpush.bf16.msrb.mxu3 %v15709_v31  ;;  %v8932_v14 = vperm.slane %v23608_v26, 2  ;;  %v15690_v16 = vld [vmem:[%s24326_s7 + $0xc0] sm:$0xff] }
 0x7f4   :  { %v8935_v51 = vsel %vm2447_vm1, %v8931_v53, %v8927_v1  ;;  %10705 = vmatpush.bf16.msrb.mxu0 %v15716_v46  ;;  %v8933_v56 = vperm.slane %v23608_v26, 4  ;;  %10666 = vmatpush.bf16.msrb.mxu1 %v15692_v45  ;;  %v8928_v59 = vperm.slane %v23592_v42, 2  ;;  %v8929_v22 = vperm.slane %v23592_v42, 4  ;;  %v15699_v26 = vld [vmem:[%s24326_s7 + $0x108] sm:$0xff]  ;;  %v15714_v42 = vld [vmem:[%s24326_s7 + $0x180] sm:$0xff] }
 0x7f5   :  { %v8866_v2 = vperm.slane %v23673_v23, 0  ;;  %v8867_v9 = vperm.slane %v23673_v23, 2  ;;  %v8868_v48 = vperm.slane %v23673_v23, 4  ;;  %10679 = vmatpush.bf16.msrb.mxu2 %v15700_v29  ;;  %v8748_v63 = vrot.slane %v23430_v20, 4 }
 0x7f6   :  { %8939 = vrot.lane.b32.xlu2 %v8935_v51, %s16024_s3  ;;  %v8936_v33 = vsel %vm2447_vm1, %v8932_v14, %v8928_v59  ;;  %v8937_v24 = vsel %vm2447_vm1, %v8933_v56, %v8929_v22  ;;  %v8774_v7 = vrot.slane %v23549_v15, 2  ;;  %v8782_v40 = vrot.slane %v23552_v4, 6  ;;  %v15737_v56 = vld [vmem:[%s24326_s7 + $0x238] sm:$0xff]  ;;  %v15728_v59 = vld [vmem:[%s24326_s7 + $0x1f0] sm:$0xff] }
 0x7f7   :  { %v8870_v10 = vsel %vm2447_vm1, %v8866_v2, %v8862_v38  ;;  %v8871_v50 = vsel %vm2447_vm1, %v8867_v9, %v8863_v37  ;;  %v8872_v49 = vsel %vm2447_vm1, %v8868_v48, %v8864_v58  ;;  %10692 = vmatpush.bf16.msrb.mxu3 %v15708_v43  ;;  %v15980_v55 = vpack.i.bf16 %v8937_v24, %v8936_v33  ;;  %v15736_v22 = vld [vmem:[%s24326_s7 + $0x230] sm:$0xff]  ;;  %v15727_v33 = vld [vmem:[%s24326_s7 + $0x1e8] sm:$0xff] }
 0x7f8   :  { %v9022_v35 = vpack.c.bf16 %v8870_v10, %v8870_v10  ;;  %v9023_v0 = vpack.c.bf16 %v8871_v50, %v8871_v50  ;;  %v9024_v32 = vpack.c.bf16 %v8872_v49, %v8872_v49  ;;  %10706 = vmatpush.bf16.msrb.mxu0 %v15715_v34  ;;  %10667 = vmatpush.bf16.msrb.mxu1 %v15691_v6  ;;  %v14207_v27 = vrot.slane %v8748_v63, 9  ;;  %v15745_v34 = vld [vmem:[%s24326_s7 + $0x278] sm:$0xff]  ;;  %v15752_v6 = vld [vmem:[%s24326_s7 + $0x2b0] sm:$0xff]  ;;  %v15735_v24 = vld [vmem:[%s24326_s7 + $0x228] sm:$0xff] }
 0x7f9   :  { %10680 = vmatpush.bf16.msrb.mxu2 %v15699_v26  ;;  %v14214_v21 = vrot.slane %v8774_v7, 9  ;;  %v14209_v38 = vrot.slane %v23629_v28, 9  ;;  %v14216_v37 = vrot.slane %v8782_v40, 9  ;;  %v15744_v26 = vld [vmem:[%s24326_s7 + $0x270] sm:$0xff] }
 0x7fa   :  { %15971 = vrot.lane.b32.xlu1 %v15970_v17, %s16024_s3  ;;  %10630 = vmatmul.bf16.vlgmr.msra.gmra.mxu2 %v9022_v35  ;;  %v8848_v8 = vmax.f32 %v8748_v63, %v14207_v27  ;;  %v8865_v35 = vperm.slane %v23659_v47, 6  ;;  %v15706_v47 = vld [vmem:[%s24326_s7 + $0x140] sm:$0xff]  ;;  %v15749_v63 = vld [vmem:[%s24326_s7 + $0x298] sm:$0xff] }
 0x7fb   :  { %10643 = vmatmul.bf16.vlgmr.msra.gmra.mxu3 %v9023_v0  ;;  %10656 = vmatmul.bf16.vlgmr.msra.gmra.mxu0 %v9024_v32  ;;  %v8855_v44 = vmax.f32 %v8774_v7, %v14214_v21  ;;  %v8850_v9 = vmax.f32 %v23629_v28, %v14209_v38  ;;  %v8857_v45 = vmax.f32 %v8782_v40, %v14216_v37  ;;  %v8869_v0 = vperm.slane %v23673_v23, 6  ;;  %v15729_v23 = vld [vmem:[%s24326_s7 + $0x1f8] sm:$0xff]  ;;  %v15748_v21 = vld [vmem:[%s24326_s7 + $0x290] sm:$0xff]  ;;  %v15738_v38 = vld [vmem:[%s24326_s7 + $0x240] sm:$0xff]  ;;  %v15957_v37 = vpop.permute.xlu2 %15956 }
 0x7fc   :  { %10693 = vmatpush.bf16.msrb.mxu3 %v15707_v5  ;;  %10707 = vmatpush.bf16.msrb.mxu0 %v15714_v42  ;;  %v8912_v25 = vperm.slane %v8848_v8, 6  ;;  %v8909_v61 = vperm.slane %v8848_v8, 0  ;;  %v8910_v3 = vperm.slane %v8848_v8, 2  ;;  %v8911_v41 = vperm.slane %v8848_v8, 4  ;;  %v15751_v5 = vld [vmem:[%s24326_s7 + $0x2a8] sm:$0xff]  ;;  %v15725_v27 = vld [vmem:[%s24326_s7 + $0x1d8] sm:$0xff] }
 0x7fd   :  { %10668 = vmatpush.bf16.msrb.mxu1 %v15690_v16  ;;  %10681 = vmatpush.bf16.msrb.mxu2 %v15698_v13  ;;  %v8916_v31 = vperm.slane %v8855_v44, 6  ;;  %v8913_v52 = vperm.slane %v8855_v44, 0  ;;  %v8914_v53 = vperm.slane %v8855_v44, 2  ;;  %v8915_v46 = vperm.slane %v8855_v44, 4  ;;  %v15743_v42 = vld [vmem:[%s24326_s7 + $0x268] sm:$0xff]  ;;  %v15750_v16 = vld [vmem:[%s24326_s7 + $0x2a0] sm:$0xff] }
 0x7fe   :  { %v8956_v1 = vperm.slane %v8850_v9, 0  ;;  %v8957_v58 = vperm.slane %v8850_v9, 2  ;;  %v8958_v48 = vperm.slane %v8850_v9, 4  ;;  %v8960_v17 = vperm.slane %v8857_v45, 0  ;;  %v15742_v13 = vld [vmem:[%s24326_s7 + $0x260] sm:$0xff]  ;;  %v15733_v7 = vld [vmem:[%s24326_s7 + $0x218] sm:$0xff] }
 0x7ff   :  { %v23744_v20 = vsel %vm2447_vm1, %v8916_v31, %v8912_v25  ;;  %v23747_v15 = vsel %vm2447_vm1, %v8913_v52, %v8909_v61  ;;  %v23750_v2 = vsel %vm2447_vm1, %v8914_v53, %v8910_v3  ;;  %v23753_v4 = vsel %vm2447_vm1, %v8915_v46, %v8911_v41  ;;  %v15741_v8 = vld [vmem:[%s24326_s7 + $0x258] sm:$0xff]  ;;  %v15724_v40 = vld [vmem:[%s24326_s7 + $0x1d0] sm:$0xff]  ;;  %v15747_v61 = vld [vmem:[%s24326_s7 + $0x288] sm:$0xff] }
 0x800   :  { %10752 = vmatpush.bf16.msra.mxu0 %v15753_v60  ;;  %v8961_v10 = vperm.slane %v8857_v45, 2  ;;  %v8962_v50 = vperm.slane %v8857_v45, 4  ;;  %v8959_v51 = vperm.slane %v8850_v9, 6  ;;  %v23759_v49 = vsel %vm2447_vm1, %v8960_v17, %v8956_v1  ;;  %10694 = vmatpush.bf16.msrb.mxu3 %v15706_v47  ;;  %v15726_v60 = vld [vmem:[%s24326_s7 + $0x1e0] sm:$0xff]  ;;  %v15732_v44 = vld [vmem:[%s24326_s7 + $0x210] sm:$0xff]  ;;  %v15723_v3 = vld [vmem:[%s24326_s7 + $0x1c8] sm:$0xff]  ;;  %v15962_v9 = vpop.permute.xlu0 %15961 }
 0x801   :  { %v8963_v43 = vperm.slane %v8857_v45, 6  ;;  %v23768_v32 = vsel %vm2447_vm1, %v8869_v0, %v8865_v35  ;;  %10713 = vmatpush.bf16.msra.mxu1 %v15729_v23  ;;  %10726 = vmatpush.bf16.msra.mxu2 %v15737_v56  ;;  %v15740_v25 = vld [vmem:[%s24326_s7 + $0x250] sm:$0xff]  ;;  %v15731_v41 = vld [vmem:[%s24326_s7 + $0x208] sm:$0xff]  ;;  %v15746_v52 = vld [vmem:[%s24326_s7 + $0x280] sm:$0xff]  ;;  %v15958_v47 = vunpack.i.l.bf16 %v15957_v37 }
 0x802   :  { %15981 = vrot.lane.b32.xlu1 %v15980_v55, %s16024_s3  ;;  %v23762_v29 = vsel %vm2447_vm1, %v8961_v10, %v8957_v58  ;;  %v23765_v28 = vsel %vm2447_vm1, %v8962_v50, %v8958_v48  ;;  %v15734_v55 = vld [vmem:[%s24326_s7 + $0x220] sm:$0xff]  ;;  %v15739_v31 = vld [vmem:[%s24326_s7 + $0x248] sm:$0xff]  ;;  %v15785_v17 = vld [vmem:[%s24326_s7 + $0x3b8] sm:$0xff] }
 0x803   :  { %v23771_v14 = vsel %vm2447_vm1, %v8963_v43, %v8959_v51  ;;  %v15722_v53 = vld [vmem:[%s24326_s7 + $0x1c0] sm:$0xff]  ;;  %v15784_v50 = vld [vmem:[%s24326_s7 + $0x3b0] sm:$0xff]  ;;  %v15959_v43 = vunpack.i.h.bf16 %v15957_v37 }
 0x804   :  { %10739 = vmatpush.bf16.msra.mxu3 %v15745_v34  ;;  %10753 = vmatpush.bf16.msra.mxu0 %v15752_v6  ;;  %v15730_v46 = vld [vmem:[%s24326_s7 + $0x200] sm:$0xff]  ;;  %v15761_v6 = vld [vmem:[%s24326_s7 + $0x2f8] sm:$0xff] }
 0x805   :  { %10714 = vmatpush.bf16.msra.mxu1 %v15728_v59  ;;  %10727 = vmatpush.bf16.msra.mxu2 %v15736_v22  ;;  %v15963_v59 = vunpack.i.l.bf16 %v15962_v9 }
 0x808   :  { %10740 = vmatpush.bf16.msra.mxu3 %v15744_v26  ;;  %10754 = vmatpush.bf16.msra.mxu0 %v15751_v5 }
 0x809   :  { %10715 = vmatpush.bf16.msra.mxu1 %v15727_v33  ;;  %10728 = vmatpush.bf16.msra.mxu2 %v15735_v24  ;;  %v15769_v33 = vld [vmem:[%s24326_s7 + $0x338] sm:$0xff] }
 0x80a   :  { %v15777_v24 = vld [vmem:[%s24326_s7 + $0x378] sm:$0xff] }
 0x80c   :  { %10741 = vmatpush.bf16.msra.mxu3 %v15743_v42  ;;  %10755 = vmatpush.bf16.msra.mxu0 %v15750_v16  ;;  %v8759_v16 = vrot.slane %v23632_v30, 2  ;;  %v15768_v30 = vld [vmem:[%s24326_s7 + $0x330] sm:$0xff] }
 0x80d   :  { %10716 = vmatpush.bf16.msra.mxu1 %v15726_v60  ;;  %10729 = vmatpush.bf16.msra.mxu2 %v15734_v55  ;;  %v15964_v60 = vunpack.i.h.bf16 %v15962_v9  ;;  %v15760_v55 = vld [vmem:[%s24326_s7 + $0x2f0] sm:$0xff] }
 0x810   :  { %10742 = vmatpush.bf16.msra.mxu3 %v15742_v13  ;;  %10756 = vmatpush.bf16.msra.mxu0 %v15749_v63  ;;  %v8609_v13 = vmax.f32 %v8507_v54, %v15959_v43  ;;  %v8569_v63 = vmax.f32 %v8505_v57, %v15958_v47  ;;  %v15757_v43 = vld [vmem:[%s24326_s7 + $0x2d8] sm:$0xff]  ;;  %v9031_v47 = vpack.c.bf16 %v23753_v4, %v23753_v4  ;;  %v15779_v4 = vld [vmem:[%s24326_s7 + $0x388] sm:$0xff] }
 0x811   :  { %10717 = vmatpush.bf16.msra.mxu1 %v15725_v27  ;;  %10730 = vmatpush.bf16.msra.mxu2 %v15733_v7  ;;  %v8649_v27 = vmax.f32 %v8509_v19, %v15963_v59  ;;  %v14210_v19 = vrot.slane %v8759_v16, 9 }
 0x814   :  { %10743 = vmatpush.bf16.msra.mxu3 %v15741_v8  ;;  %10757 = vmatpush.bf16.msra.mxu0 %v15748_v21  ;;  %v15776_v8 = vld [vmem:[%s24326_s7 + $0x370] sm:$0xff]  ;;  %v8529_v21 = vmax.f32 %v8503_v36, %v15964_v60  ;;  %v15775_v36 = vld [vmem:[%s24326_s7 + $0x368] sm:$0xff] }
 0x815   :  { %10718 = vmatpush.bf16.msra.mxu1 %v15724_v40  ;;  %10731 = vmatpush.bf16.msra.mxu2 %v15732_v44 }
 0x818   :  { %10744 = vmatpush.bf16.msra.mxu3 %v15740_v25  ;;  %10758 = vmatpush.bf16.msra.mxu0 %v15747_v61  ;;  %v8737_v25 = vrot.slane %v8649_v27, 2  ;;  %v15764_v27 = vld [vmem:[%s24326_s7 + $0x310] sm:$0xff] }
 0x819   :  { %10719 = vmatpush.bf16.msra.mxu1 %v15723_v3  ;;  %10732 = vmatpush.bf16.msra.mxu2 %v15731_v41 }
 0x81c   :  { %10745 = vmatpush.bf16.msra.mxu3 %v15739_v31  ;;  %10759 = vmatpush.bf16.msra.mxu0 %v15746_v52  ;;  %v15781_v52 = vld [vmem:[%s24326_s7 + $0x398] sm:$0xff] }
 0x81d   :  { %10720 = vmatpush.bf16.msra.mxu1 %v15722_v53  ;;  %10733 = vmatpush.bf16.msra.mxu2 %v15730_v46 }
 0x820   :  { %10746 = vmatpush.bf16.msra.mxu3 %v15738_v38 }
 0x848   :  { %v23869_v45 = vpop.permute.xlu2 %15976 }
 0x849   :  { %v15979_v1 = vunpack.i.h.bf16 %v23869_v45  ;;  %v15978_v62 = vunpack.i.l.bf16 %v23869_v45 }
 0x84b   :  { %v8701_v31 = vsel %vm1897_vm2, %v8529_v21, %v15978_v62  ;;  %v15778_v62 = vld [vmem:[%s24326_s7 + $0x380] sm:$0xff] }
 0x850   :  { %v23895_v42 = vpop.permute.xlu2 %8939 }
 0x851   :  { %v9020_v39 = vsel %vm1897_vm2, %v23744_v20, %v23895_v42  ;;  %v15759_v20 = vld [vmem:[%s24326_s7 + $0x2e8] sm:$0xff] }
 0x852   :  { %v9032_v61 = vpack.c.bf16 %v9020_v39, %v9020_v39 }
 0x85d   :  { %v8899_v58 = vpop.permute.xlu0 %8898 }
 0x85e   :  { %v8902_v48 = vsel %vm1897_vm2, %v15979_v1, %v8899_v58  ;;  %v8851_v58 = vmax.f32 %v8759_v16, %v14210_v19  ;;  %v15763_v19 = vld [vmem:[%s24326_s7 + $0x308] sm:$0xff] }
 0x85f   :  { %v9028_v10 = vpack.c.bf16 %v8902_v48, %v8902_v48 }
 0x861   :  { %10708 = vmatmul.bf16.vlgmr.msrb.gmra.mxu0 %v9028_v10  ;;  %v15774_v10 = vld [vmem:[%s24326_s7 + $0x360] sm:$0xff] }
 0x862   :  { %10804 = vmatpush.bf16.msrb.mxu0 %v15785_v17  ;;  %v15766_v17 = vld [vmem:[%s24326_s7 + $0x320] sm:$0xff] }
 0x864   :  { %v15967_v51 = vpop.permute.xlu1 %15966 }
 0x865   :  { %v15969_v35 = vunpack.i.h.bf16 %v15967_v51  ;;  %v15968_v0 = vunpack.i.l.bf16 %v15967_v51 }
 0x866   :  { %10805 = vmatpush.bf16.msrb.mxu0 %v15784_v50  ;;  %v15780_v50 = vld [vmem:[%s24326_s7 + $0x390] sm:$0xff] }
 0x867   :  { %v8901_v23 = vsel %vm1897_vm2, %v15969_v35, %v15979_v1  ;;  %v8900_v56 = vsel %vm1897_vm2, %v15968_v0, %v15969_v35  ;;  %v9019_v34 = vsel %vm1897_vm2, %v23768_v32, %v15968_v0  ;;  %v15783_v32 = vld [vmem:[%s24326_s7 + $0x3a8] sm:$0xff]  ;;  %v15758_v1 = vld [vmem:[%s24326_s7 + $0x2e0] sm:$0xff]  ;;  %v9029_v35 = vpack.c.bf16 %v23747_v15, %v23747_v15 }
 0x868   :  { %v9027_v22 = vpack.c.bf16 %v8901_v23, %v8901_v23  ;;  %v9025_v26 = vpack.c.bf16 %v9019_v34, %v9019_v34  ;;  %v9026_v5 = vpack.c.bf16 %v8900_v56, %v8900_v56  ;;  %v9030_v0 = vpack.c.bf16 %v23750_v2, %v23750_v2  ;;  %v15765_v23 = vld [vmem:[%s24326_s7 + $0x318] sm:$0xff] }
 0x869   :  { %v8975_v34 = vperm.slane %v8851_v58, 2  ;;  %v8974_v15 = vperm.slane %v8851_v58, 0  ;;  %v15773_v2 = vld [vmem:[%s24326_s7 + $0x358] sm:$0xff] }
 0x86a   :  { %10669 = vmatmul.bf16.vlgmr.msrb.gmra.mxu1 %v9025_v26  ;;  %10682 = vmatmul.bf16.vlgmr.msrb.gmra.mxu2 %v9026_v5 }
 0x86b   :  { %10695 = vmatmul.bf16.vlgmr.msrb.gmra.mxu3 %v9027_v22  ;;  %10765 = vmatpush.bf16.msrb.mxu1 %v15761_v6  ;;  %v8977_v6 = vperm.slane %v8851_v58, 6 }
 0x86c   :  { %10778 = vmatpush.bf16.msrb.mxu2 %v15769_v33  ;;  %10791 = vmatpush.bf16.msrb.mxu3 %v15777_v24  ;;  %v15972_v7 = vpop.permute.xlu1 %15971  ;;  %v8976_v33 = vperm.slane %v8851_v58, 4  ;;  %v15995_v24 = vld [vmem:[%s24327_s8] ss:$0 sm:$0xff]  ;;  %v15817_v58 = vld [vmem:[%s24326_s7 + $0x4b8] sm:$0xff] }
 0x86d   :  { %v15974_v54 = vunpack.i.h.bf16 %v15972_v7  ;;  %v15973_v57 = vunpack.i.l.bf16 %v15972_v7  ;;  %10806 = vmatpush.bf16.msrb.mxu0 %v15783_v32 }
 0x86f   :  { %v8709_v40 = vsel %vm1897_vm2, %v8609_v13, %v15974_v54  ;;  %v8705_v44 = vsel %vm1897_vm2, %v8569_v63, %v15973_v57  ;;  %10766 = vmatpush.bf16.msrb.mxu1 %v15760_v55  ;;  %v15756_v55 = vld [vmem:[%s24326_s7 + $0x2d0] sm:$0xff] }
 0x870   :  { %v8736_v3 = vrot.slane %v8709_v40, 4  ;;  %v8735_v41 = vrot.slane %v8705_v44, 6  ;;  %10779 = vmatpush.bf16.msrb.mxu2 %v15768_v30  ;;  %10792 = vmatpush.bf16.msrb.mxu3 %v15776_v8  ;;  %v15772_v30 = vld [vmem:[%s24326_s7 + $0x350] sm:$0xff] }
 0x871   :  { %10807 = vmatpush.bf16.msrb.mxu0 %v15782_v12  ;;  %v15755_v12 = vld [vmem:[%s24326_s7 + $0x2c8] sm:$0xff] }
 0x872   :  { %v8784_v53 = vsel %vm2013_vm6, %v8736_v3, %v8737_v25  ;;  %v8787_v46 = vsel %vm273_vm0, %v8737_v25, %v8736_v3  ;;  %v8783_v38 = vsel %vm2011_vm5, %v8701_v31, %v8735_v41  ;;  %v8786_v37 = vsel %vm2017_vm7, %v8701_v31, %v8735_v41  ;;  %10760 = vmatmul.bf16.vlgmr.msra.gmra.mxu0 %v9032_v61  ;;  %v15754_v3 = vld [vmem:[%s24326_s7 + $0x2c0] sm:$0xff]  ;;  %v15801_v31 = vld [vmem:[%s24326_s7 + $0x438] sm:$0xff] }
 0x873   :  { %v8785_v9 = vsel %vm2015_vm8, %v8783_v38, %v8784_v53  ;;  %v23943_v45 = vsel %vm2020_vm9, %v8786_v37, %v8787_v46  ;;  %10767 = vmatpush.bf16.msrb.mxu1 %v15759_v20  ;;  %v15771_v20 = vld [vmem:[%s24326_s7 + $0x348] sm:$0xff]  ;;  %v9036_v61 = vpack.c.bf16 %v23759_v49, %v23759_v49  ;;  %v15762_v41 = vld [vmem:[%s24326_s7 + $0x300] sm:$0xff]  ;;  %v8946_v53 = vpop.permute.xlu0 %8945 }
 0x874   :  { %v14217_v48 = vrot.slane %v8785_v9, 9  ;;  %10780 = vmatpush.bf16.msrb.mxu2 %v15767_v18  ;;  %10793 = vmatpush.bf16.msrb.mxu3 %v15775_v36  ;;  %v15982_v39 = vpop.permute.xlu1 %15981  ;;  %v15793_v18 = vld [vmem:[%s24326_s7 + $0x3f8] sm:$0xff]  ;;  %v15770_v49 = vld [vmem:[%s24326_s7 + $0x340] sm:$0xff] }
 0x875   :  { %10808 = vmatpush.bf16.msrb.mxu0 %v15781_v52  ;;  %v15983_v44 = vunpack.i.l.bf16 %v15982_v39  ;;  %v15984_v25 = vunpack.i.h.bf16 %v15982_v39 }
 0x876   :  { %v8858_v51 = vmax.f32 %v8785_v9, %v14217_v48 }
 0x877   :  { %10768 = vmatpush.bf16.msrb.mxu1 %v15758_v1  ;;  %v8947_v36 = vsel %vm1897_vm2, %v23895_v42, %v15983_v44  ;;  %v8948_v46 = vsel %vm1897_vm2, %v15983_v44, %v15984_v25  ;;  %v8949_v37 = vsel %vm1897_vm2, %v15984_v25, %v8946_v53  ;;  %v15792_v42 = vld [vmem:[%s24326_s7 + $0x3f0] sm:$0xff]  ;;  %v15809_v1 = vld [vmem:[%s24326_s7 + $0x478] sm:$0xff]  ;;  %v9038_v25 = vpack.c.bf16 %v23765_v28, %v23765_v28  ;;  %v15803_v53 = vld [vmem:[%s24326_s7 + $0x448] sm:$0xff] }
 0x878   :  { %10781 = vmatpush.bf16.msrb.mxu2 %v15766_v17  ;;  %v23969_v56 = vpop.f32.mrf.mxu0  ;;  %10794 = vmatpush.bf16.msrb.mxu3 %v15774_v10  ;;  %v8979_v59 = vperm.slane %v8858_v51, 2  ;;  %v8981_v22 = vperm.slane %v8858_v51, 6  ;;  %v8978_v26 = vperm.slane %v8858_v51, 0  ;;  %v8980_v5 = vperm.slane %v8858_v51, 4  ;;  %v15800_v17 = vld [vmem:[%s24326_s7 + $0x430] sm:$0xff] }
 0x879   :  { %10809 = vmatpush.bf16.msrb.mxu0 %v15780_v50  ;;  %v9033_v9 = vpack.c.bf16 %v8947_v36, %v8947_v36  ;;  %v9034_v48 = vpack.c.bf16 %v8948_v46, %v8948_v46  ;;  %v9035_v10 = vpack.c.bf16 %v8949_v37, %v8949_v37  ;;  %v15808_v50 = vld [vmem:[%s24326_s7 + $0x470] sm:$0xff]  ;;  %v15821_v36 = vld [vmem:[%s24326_s7 + $0x4d8] sm:$0xff]  ;;  %v15811_v46 = vld [vmem:[%s24326_s7 + $0x488] sm:$0xff] }
 0x87a   :  { %10721 = vmatmul.bf16.vlgmr.msra.gmra.mxu1 %v9029_v35  ;;  %10734 = vmatmul.bf16.vlgmr.msra.gmra.mxu2 %v9030_v0  ;;  %v8983_v32 = vsel %vm2447_vm1, %v8979_v59, %v8975_v34  ;;  %v8985_v16 = vsel %vm2447_vm1, %v8981_v22, %v8977_v6  ;;  %v8982_v60 = vsel %vm2447_vm1, %v8978_v26, %v8974_v15  ;;  %v15816_v51 = vld [vmem:[%s24326_s7 + $0x4b0] sm:$0xff]  ;;  %v15791_v35 = vld [vmem:[%s24326_s7 + $0x3e8] sm:$0xff]  ;;  %v15798_v34 = vld [vmem:[%s24326_s7 + $0x420] sm:$0xff]  ;;  %v8763_v22 = vrot.slane %v23635_v11, 4 }
 0x87b   :  { %10747 = vmatmul.bf16.vlgmr.msra.gmra.mxu3 %v9031_v47  ;;  %10769 = vmatpush.bf16.msrb.mxu1 %v15757_v43  ;;  %v15990_v13 = vpack.i.bf16 %v8983_v32, %v8985_v16  ;;  %v8984_v63 = vsel %vm2447_vm1, %v8980_v5, %v8976_v33  ;;  %v15799_v0 = vld [vmem:[%s24326_s7 + $0x428] sm:$0xff]  ;;  %v15806_v6 = vld [vmem:[%s24326_s7 + $0x460] sm:$0xff]  ;;  %v15797_v59 = vld [vmem:[%s24326_s7 + $0x418] sm:$0xff]  ;;  %v8789_v26 = vrot.slane %v23943_v45, 2 }
 0x87c   :  { %10782 = vmatpush.bf16.msrb.mxu2 %v15765_v23  ;;  %10795 = vmatpush.bf16.msrb.mxu3 %v15773_v2  ;;  %v15985_v7 = vpack.i.bf16 %v8984_v63, %v8982_v60  ;;  %v15807_v43 = vld [vmem:[%s24326_s7 + $0x468] sm:$0xff]  ;;  %v15790_v23 = vld [vmem:[%s24326_s7 + $0x3e0] sm:$0xff]  ;;  %v15789_v2 = vld [vmem:[%s24326_s7 + $0x3d8] sm:$0xff]  ;;  %v14211_v33 = vrot.slane %v8763_v22, 9 }
 0x87d   :  { %10810 = vmatpush.bf16.msrb.mxu0 %v15779_v4  ;;  %v10631_v8 = vpop.f32.mrf.mxu2  ;;  %15991 = vrot.lane.b32.xlu2 %v15990_v13, %s16024_s3  ;;  %v15815_v47 = vld [vmem:[%s24326_s7 + $0x4a8] sm:$0xff]  ;;  %v15814_v15 = vld [vmem:[%s24326_s7 + $0x4a0] sm:$0xff]  ;;  %v15788_v5 = vld [vmem:[%s24326_s7 + $0x3d0] sm:$0xff] }
 0x87e   :  { %v10632_v54 = vadd.f32 %v15995_v24, %v10631_v8  ;;  %v10644_v57 = vpop.f32.mrf.mxu3  ;;  %15986 = vrot.lane.b32.xlu1 %v15985_v7, %s16024_s3  ;;  %v15796_v4 = vld [vmem:[%s24326_s7 + $0x410] sm:$0xff]  ;;  %v14218_v24 = vrot.slane %v8789_v26, 9  ;;  %v15787_v11 = vld [vmem:[%s24326_s7 + $0x3c8] sm:$0xff]  ;;  %v8852_v32 = vmax.f32 %v8763_v22, %v14211_v33  ;;  %v15786_v60 = vld [vmem:[%s24326_s7 + $0x3c0] sm:$0xff] }
 0x87f   :  { %10770 = vmatpush.bf16.msrb.mxu1 %v15756_v55  ;;  %v15795_v45 = vld [vmem:[%s24326_s7 + $0x408] sm:$0xff]  ;;  %v15794_v55 = vld [vmem:[%s24326_s7 + $0x400] sm:$0xff]  ;;  %v15825_v13 = vld [vmem:[%s24326_s7 + $0x4f8] sm:$0xff] }
 0x880   :  { %10783 = vmatpush.bf16.msrb.mxu2 %v15764_v27  ;;  %v24004_v21 = vadd.f32 %v10644_v57, %v10632_v54  ;;  %v10659_v40 = vpop.f32.mrf.mxu0  ;;  %10796 = vmatpush.bf16.msrb.mxu3 %v15772_v30  ;;  %v8859_v16 = vmax.f32 %v8789_v26, %v14218_v24  ;;  %v15833_v63 = vld [vmem:[%s24326_s7 + $0x538] sm:$0xff]  ;;  %v9003_v27 = vperm.slane %v8852_v32, 0  ;;  %v9004_v7 = vperm.slane %v8852_v32, 2  ;;  %v15830_v37 = vld [vmem:[%s24326_s7 + $0x520] sm:$0xff]  ;;  %v15836_v33 = vld [vmem:[%s24326_s7 + $0x550] sm:$0xff] }
 0x881   :  { %10811 = vmatpush.bf16.msrb.mxu0 %v15778_v62  ;;  %v9005_v30 = vperm.slane %v8852_v32, 4  ;;  %v9006_v57 = vperm.slane %v8852_v32, 6  ;;  %v15837_v22 = vld [vmem:[%s24326_s7 + $0x558] sm:$0xff]  ;;  %v15860_v24 = vld [vmem:[%s24326_s7 + $0x610] sm:$0xff] }
 0x882   :  { %v9007_v8 = vperm.slane %v8859_v16, 0  ;;  %v9008_v62 = vperm.slane %v8859_v16, 2  ;;  %v9009_v39 = vperm.slane %v8859_v16, 4  ;;  %v9010_v54 = vperm.slane %v8859_v16, 6  ;;  %v15845_v26 = vld [vmem:[%s24326_s7 + $0x598] sm:$0xff]  ;;  %v15835_v16 = vld [vmem:[%s24326_s7 + $0x548] sm:$0xff] }
 0x883   :  { %10771 = vmatpush.bf16.msrb.mxu1 %v15755_v12  ;;  %v9037_v12 = vpack.c.bf16 %v23762_v29, %v23762_v29  ;;  %v24131_v28 = vadd.f32 %v23969_v56, %v24004_v21  ;;  %v15804_v56 = vld [vmem:[%s24326_s7 + $0x450] sm:$0xff] }
 0x884   :  { %10784 = vmatpush.bf16.msrb.mxu2 %v15763_v19  ;;  %10812 = vmatmul.bf16.vlgmr.msrb.gmra.mxu0 %v9036_v61  ;;  %v15824_v19 = vld [vmem:[%s24326_s7 + $0x4f0] sm:$0xff]  ;;  %v24110_v40 = vsel %vm2447_vm1, %v9007_v8, %v9003_v27  ;;  %v24113_v44 = vsel %vm2447_vm1, %v9008_v62, %v9004_v7  ;;  %v24121_v29 = vsel %vm2447_vm1, %v9010_v54, %v9006_v57  ;;  %v15823_v61 = vld [vmem:[%s24326_s7 + $0x4e8] sm:$0xff]  ;;  %v15858_v27 = vld [vmem:[%s24326_s7 + $0x600] sm:$0xff] }
 0x885   :  { %10797 = vmatpush.bf16.msrb.mxu3 %v15771_v20  ;;  %v10633_v52 = vpop.f32.mrf.mxu2  ;;  %10856 = vmatpush.bf16.msra.mxu0 %v15817_v58  ;;  %v24116_v20 = vsel %vm2447_vm1, %v9009_v39, %v9005_v30  ;;  %v15812_v21 = vld [vmem:[%s24326_s7 + $0x490] sm:$0xff]  ;;  %v15829_v58 = vld [vmem:[%s24326_s7 + $0x518] sm:$0xff]  ;;  %v15842_v7 = vld [vmem:[%s24326_s7 + $0x580] sm:$0xff] }
 0x886   :  { %v10646_v38 = vpop.f32.mrf.mxu3  ;;  %v15831_v52 = vld [vmem:[%s24326_s7 + $0x528] sm:$0xff]  ;;  %v15850_v30 = vld [vmem:[%s24326_s7 + $0x5c0] sm:$0xff] }
 0x887   :  { %10772 = vmatpush.bf16.msrb.mxu1 %v15754_v3  ;;  %v15822_v3 = vld [vmem:[%s24326_s7 + $0x4e0] sm:$0xff]  ;;  %v15819_v38 = vld [vmem:[%s24326_s7 + $0x4c8] sm:$0xff] }
 0x888   :  { %10785 = vmatpush.bf16.msrb.mxu2 %v15762_v41  ;;  %v15805_v41 = vld [vmem:[%s24326_s7 + $0x458] sm:$0xff] }
 0x889   :  { %10798 = vmatpush.bf16.msrb.mxu3 %v15770_v49  ;;  %10857 = vmatpush.bf16.msra.mxu0 %v15816_v51  ;;  %v15832_v49 = vld [vmem:[%s24326_s7 + $0x530] sm:$0xff] }
 0x88a   :  { %10773 = vmatmul.bf16.vlgmr.msrb.gmra.mxu1 %v9033_v9  ;;  %v15802_v9 = vld [vmem:[%s24326_s7 + $0x440] sm:$0xff]  ;;  %v15840_v51 = vld [vmem:[%s24326_s7 + $0x570] sm:$0xff] }
 0x88b   :  { %10817 = vmatpush.bf16.msra.mxu1 %v15793_v18  ;;  %10786 = vmatmul.bf16.vlgmr.msrb.gmra.mxu2 %v9034_v48  ;;  %v15813_v18 = vld [vmem:[%s24326_s7 + $0x498] sm:$0xff] }
 0x88c   :  { %10830 = vmatpush.bf16.msra.mxu2 %v15801_v31  ;;  %10799 = vmatmul.bf16.vlgmr.msrb.gmra.mxu3 %v9035_v10  ;;  %v15820_v31 = vld [vmem:[%s24326_s7 + $0x4d0] sm:$0xff]  ;;  %v15841_v48 = vld [vmem:[%s24326_s7 + $0x578] sm:$0xff] }
 0x88d   :  { %10843 = vmatpush.bf16.msra.mxu3 %v15809_v1  ;;  %10858 = vmatpush.bf16.msra.mxu0 %v15815_v47  ;;  %v15818_v1 = vld [vmem:[%s24326_s7 + $0x4c0] sm:$0xff]  ;;  %v15857_v10 = vld [vmem:[%s24326_s7 + $0x5f8] sm:$0xff]  ;;  %v15839_v47 = vld [vmem:[%s24326_s7 + $0x568] sm:$0xff] }
 0x88f   :  { %10818 = vmatpush.bf16.msra.mxu1 %v15792_v42  ;;  %v15810_v42 = vld [vmem:[%s24326_s7 + $0x480] sm:$0xff] }
 0x890   :  { %10831 = vmatpush.bf16.msra.mxu2 %v15800_v17  ;;  %v15849_v17 = vld [vmem:[%s24326_s7 + $0x5b8] sm:$0xff] }
 0x891   :  { %10844 = vmatpush.bf16.msra.mxu3 %v15808_v50  ;;  %10859 = vmatpush.bf16.msra.mxu0 %v15814_v15  ;;  %v15828_v50 = vld [vmem:[%s24326_s7 + $0x510] sm:$0xff]  ;;  %v15838_v15 = vld [vmem:[%s24326_s7 + $0x560] sm:$0xff] }
 0x893   :  { %10819 = vmatpush.bf16.msra.mxu1 %v15791_v35  ;;  %v15848_v35 = vld [vmem:[%s24326_s7 + $0x5b0] sm:$0xff] }
 0x894   :  { %10832 = vmatpush.bf16.msra.mxu2 %v15799_v0  ;;  %v15856_v0 = vld [vmem:[%s24326_s7 + $0x5f0] sm:$0xff] }
 0x895   :  { %10845 = vmatpush.bf16.msra.mxu3 %v15807_v43  ;;  %10860 = vmatpush.bf16.msra.mxu0 %v15813_v18  ;;  %v15827_v43 = vld [vmem:[%s24326_s7 + $0x508] sm:$0xff] }
 0x897   :  { %10820 = vmatpush.bf16.msra.mxu1 %v15790_v23  ;;  %v15847_v23 = vld [vmem:[%s24326_s7 + $0x5a8] sm:$0xff] }
 0x898   :  { %10833 = vmatpush.bf16.msra.mxu2 %v15798_v34  ;;  %v15855_v34 = vld [vmem:[%s24326_s7 + $0x5e8] sm:$0xff] }
 0x899   :  { %10846 = vmatpush.bf16.msra.mxu3 %v15806_v6  ;;  %10861 = vmatpush.bf16.msra.mxu0 %v15812_v21  ;;  %v15826_v6 = vld [vmem:[%s24326_s7 + $0x500] sm:$0xff] }
 0x89b   :  { %10821 = vmatpush.bf16.msra.mxu1 %v15789_v2  ;;  %v15846_v2 = vld [vmem:[%s24326_s7 + $0x5a0] sm:$0xff] }
 0x89c   :  { %10834 = vmatpush.bf16.msra.mxu2 %v15797_v59  ;;  %v15854_v59 = vld [vmem:[%s24326_s7 + $0x5e0] sm:$0xff] }
 0x89d   :  { %10847 = vmatpush.bf16.msra.mxu3 %v15805_v41  ;;  %10862 = vmatpush.bf16.msra.mxu0 %v15811_v46 }
 0x89f   :  { %10822 = vmatpush.bf16.msra.mxu1 %v15788_v5  ;;  %v15853_v5 = vld [vmem:[%s24326_s7 + $0x5d8] sm:$0xff] }
 0x8a0   :  { %10835 = vmatpush.bf16.msra.mxu2 %v15796_v4  ;;  %v15861_v4 = vld [vmem:[%s24326_s7 + $0x618] sm:$0xff] }
 0x8a1   :  { %10848 = vmatpush.bf16.msra.mxu3 %v15804_v56  ;;  %10863 = vmatpush.bf16.msra.mxu0 %v15810_v42 }
 0x8a3   :  { %10823 = vmatpush.bf16.msra.mxu1 %v15787_v11  ;;  %v15844_v11 = vld [vmem:[%s24326_s7 + $0x590] sm:$0xff] }
 0x8a4   :  { %10836 = vmatpush.bf16.msra.mxu2 %v15795_v45  ;;  %v15852_v45 = vld [vmem:[%s24326_s7 + $0x5d0] sm:$0xff] }
 0x8a5   :  { %10849 = vmatpush.bf16.msra.mxu3 %v15803_v53  ;;  %10908 = vmatpush.bf16.msrb.mxu0 %v15849_v17 }
 0x8a7   :  { %10824 = vmatpush.bf16.msra.mxu1 %v15786_v60  ;;  %v15843_v60 = vld [vmem:[%s24326_s7 + $0x588] sm:$0xff] }
 0x8a8   :  { %10837 = vmatpush.bf16.msra.mxu2 %v15794_v55  ;;  %v15851_v55 = vld [vmem:[%s24326_s7 + $0x5c8] sm:$0xff] }
 0x8a9   :  { %10850 = vmatpush.bf16.msra.mxu3 %v15802_v9  ;;  %10909 = vmatpush.bf16.msrb.mxu0 %v15848_v35 }
 0x8aa   :  { %10825 = vmatmul.bf16.vlgmr.msra.gmra.mxu1 %v9037_v12 }
 0x8ab   :  { %10869 = vmatpush.bf16.msrb.mxu1 %v15825_v13  ;;  %10838 = vmatmul.bf16.vlgmr.msra.gmra.mxu2 %v9038_v25  ;;  %v15859_v13 = vld [vmem:[%s24326_s7 + $0x608] sm:$0xff] }
 0x8ac   :  { %10882 = vmatpush.bf16.msrb.mxu2 %v15833_v63  ;;  %v15834_v63 = vld [vmem:[%s24326_s7 + $0x540] sm:$0xff] }
 0x8ad   :  { %10895 = vmatpush.bf16.msrb.mxu3 %v15841_v48  ;;  %10910 = vmatpush.bf16.msrb.mxu0 %v15847_v23  ;;  %v9043_v23 = vpack.c.bf16 %v24110_v40, %v24110_v40 }
 0x8af   :  { %10870 = vmatpush.bf16.msrb.mxu1 %v15824_v19 }
 0x8b0   :  { %10883 = vmatpush.bf16.msrb.mxu2 %v15832_v49 }
 0x8b1   :  { %10896 = vmatpush.bf16.msrb.mxu3 %v15840_v51  ;;  %10911 = vmatpush.bf16.msrb.mxu0 %v15846_v2  ;;  %v9046_v2 = vpack.c.bf16 %v24121_v29, %v24121_v29 }
 0x8b3   :  { %10871 = vmatpush.bf16.msrb.mxu1 %v15823_v61 }
 0x8b4   :  { %10884 = vmatpush.bf16.msrb.mxu2 %v15831_v52 }
 0x8b5   :  { %10897 = vmatpush.bf16.msrb.mxu3 %v15839_v47  ;;  %10912 = vmatpush.bf16.msrb.mxu0 %v15845_v26 }
 0x8b7   :  { %10872 = vmatpush.bf16.msrb.mxu1 %v15822_v3 }
 0x8b8   :  { %10885 = vmatpush.bf16.msrb.mxu2 %v15830_v37 }
 0x8b9   :  { %10898 = vmatpush.bf16.msrb.mxu3 %v15838_v15  ;;  %10913 = vmatpush.bf16.msrb.mxu0 %v15844_v11  ;;  %v9045_v15 = vpack.c.bf16 %v24116_v20, %v24116_v20 }
 0x8bb   :  { %10873 = vmatpush.bf16.msrb.mxu1 %v15821_v36 }
 0x8bc   :  { %10886 = vmatpush.bf16.msrb.mxu2 %v15829_v58 }
 0x8bd   :  { %10899 = vmatpush.bf16.msrb.mxu3 %v15837_v22  ;;  %10914 = vmatpush.bf16.msrb.mxu0 %v15843_v60 }
 0x8bf   :  { %10874 = vmatpush.bf16.msrb.mxu1 %v15820_v31 }
 0x8c0   :  { %10887 = vmatpush.bf16.msrb.mxu2 %v15828_v50 }
 0x8c1   :  { %10900 = vmatpush.bf16.msrb.mxu3 %v15836_v33  ;;  %10915 = vmatpush.bf16.msrb.mxu0 %v15842_v7  ;;  %v15866_v7 = vld [vmem:[%s24328_s9 + $0x20] sm:$0xff] }
 0x8c3   :  { %10875 = vmatpush.bf16.msrb.mxu1 %v15819_v38 }
 0x8c4   :  { %10888 = vmatpush.bf16.msrb.mxu2 %v15827_v43 }
 0x8c5   :  { %10901 = vmatpush.bf16.msrb.mxu3 %v15835_v16 }
 0x8c7   :  { %10876 = vmatpush.bf16.msrb.mxu1 %v15818_v1 }
 0x8c8   :  { %10889 = vmatpush.bf16.msrb.mxu2 %v15826_v6 }
 0x8c9   :  { %10902 = vmatpush.bf16.msrb.mxu3 %v15834_v63  ;;  %v15868_v63 = vld [vmem:[%s24328_s9 + $0x30] sm:$0xff] }
 0x8cb   :  { %10921 = vmatpush.bf16.msra.mxu1 %v15857_v10 }
 0x8cc   :  { %10938 = vmatpush.bf16.msra.mxu2 %v15861_v4 }
 0x8cf   :  { %10922 = vmatpush.bf16.msra.mxu1 %v15856_v0 }
 0x8d0   :  { %10939 = vmatpush.bf16.msra.mxu2 %v15860_v24 }
 0x8d3   :  { %10923 = vmatpush.bf16.msra.mxu1 %v15855_v34  ;;  %v9044_v34 = vpack.c.bf16 %v24113_v44, %v24113_v44 }
 0x8d4   :  { %10940 = vmatpush.bf16.msra.mxu2 %v15859_v13  ;;  %v15869_v13 = vld [vmem:[%s24328_s9 + $0x38] sm:$0xff] }
 0x8d7   :  { %10924 = vmatpush.bf16.msra.mxu1 %v15854_v59  ;;  %v15992_v57 = vpop.permute.xlu2 %15991 }
 0x8d8   :  { %10941 = vmatpush.bf16.msra.mxu2 %v15858_v27  ;;  %v15994_v41 = vunpack.i.h.bf16 %v15992_v57  ;;  %v15993_v36 = vunpack.i.l.bf16 %v15992_v57  ;;  %v15867_v27 = vld [vmem:[%s24328_s9 + $0x28] sm:$0xff] }
 0x8db   :  { %10925 = vmatpush.bf16.msra.mxu1 %v15853_v5 }
 0x8de   :  { %v10709_v32 = vpop.f32.mrf.mxu0 }
 0x8df   :  { %10926 = vmatpush.bf16.msra.mxu1 %v15852_v45 }
 0x8e3   :  { %10927 = vmatpush.bf16.msra.mxu1 %v15851_v55 }
 0x8e6   :  { %v10711_v8 = vpop.f32.mrf.mxu0 }
 0x8e7   :  { %v10670_v62 = vpop.f32.mrf.mxu1  ;;  %10928 = vmatpush.bf16.msra.mxu1 %v15850_v30  ;;  %v15865_v30 = vld [vmem:[%s24328_s9 + $0x18] sm:$0xff] }
 0x8e8   :  { %v10671_v39 = vadd.f32 %v10670_v62, %v24131_v28 }
 0x8ed   :  { %v10683_v54 = vpop.f32.mrf.mxu2 }
 0x8ee   :  { %v10684_v12 = vadd.f32 %v10683_v54, %v10671_v39  ;;  %v10696_v19 = vpop.f32.mrf.mxu3  ;;  %v15864_v39 = vld [vmem:[%s24328_s9 + $0x10] sm:$0xff]  ;;  %v15863_v54 = vld [vmem:[%s24328_s9 + $0x8] sm:$0xff] }
 0x8ef   :  { %v10672_v25 = vpop.f32.mrf.mxu1  ;;  %v10761_v61 = vpop.f32.mrf.mxu0 }
 0x8f0   :  { %v10697_v3 = vadd.f32 %v10696_v19, %v10684_v12  ;;  %v15987_v18 = vpop.permute.xlu1 %15986  ;;  %v15862_v19 = vld [vmem:[%s24328_s9] sm:$0xff] }
 0x8f1   :  { %v15989_v49 = vunpack.i.h.bf16 %v15987_v18  ;;  %v15988_v56 = vunpack.i.l.bf16 %v15987_v18 }
 0x8f2   :  { %v10710_v21 = vadd.f32 %v10709_v32, %v10697_v3 }
 0x8f3   :  { %v8995_v31 = vsel %vm1897_vm2, %v15994_v41, %v15989_v49  ;;  %v8996_v52 = vsel %vm1897_vm2, %v15989_v49, %v15993_v36  ;;  %v8994_v28 = vsel %vm1897_vm2, %v15988_v56, %v15994_v41  ;;  %v9021_v53 = vsel %vm1897_vm2, %v23771_v14, %v15988_v56 }
 0x8f4   :  { %v9041_v46 = vpack.c.bf16 %v8995_v31, %v8995_v31  ;;  %v9042_v38 = vpack.c.bf16 %v8996_v52, %v8996_v52  ;;  %v9039_v37 = vpack.c.bf16 %v9021_v53, %v9021_v53  ;;  %v9040_v9 = vpack.c.bf16 %v8994_v28, %v8994_v28 }
 0x8f5   :  { %v10685_v42 = vpop.f32.mrf.mxu2 }
 0x8f6   :  { %v10698_v1 = vpop.f32.mrf.mxu3  ;;  %10851 = vmatmul.bf16.vlgmr.msra.gmra.mxu3 %v9039_v37  ;;  %10864 = vmatmul.bf16.vlgmr.msra.gmra.mxu0 %v9040_v9 }
 0x8f7   :  { %v10722_v58 = vpop.f32.mrf.mxu1  ;;  %v10763_v48 = vpop.f32.mrf.mxu0  ;;  %10877 = vmatmul.bf16.vlgmr.msrb.gmra.mxu1 %v9041_v46  ;;  %10890 = vmatmul.bf16.vlgmr.msrb.gmra.mxu2 %v9042_v38 }
 0x8f8   :  { %v10723_v17 = vadd.f32 %v10722_v58, %v10710_v21  ;;  %11017 = vmatpush.bf16.msra.mxu3 %v15869_v13 }
 0x8fc   :  { %11018 = vmatpush.bf16.msra.mxu3 %v15868_v63 }
 0x8fd   :  { %v10735_v10 = vpop.f32.mrf.mxu2 }
 0x8fe   :  { %v10736_v50 = vadd.f32 %v10735_v10, %v10723_v17  ;;  %v10748_v51 = vpop.f32.mrf.mxu3  ;;  %v15996_v10 = vld [vmem:[%s24329_s10] ss:$0 sm:$0xff] }
 0x8ff   :  { %v10724_v35 = vpop.f32.mrf.mxu1 }
 0x900   :  { %v10749_v0 = vadd.f32 %v10748_v51, %v10736_v50  ;;  %11019 = vmatpush.bf16.msra.mxu3 %v15867_v27 }
 0x901   :  { %v10813_v43 = vpop.f32.mrf.mxu0 }
 0x902   :  { %v10762_v14 = vadd.f32 %v10761_v61, %v10749_v0 }
 0x904   :  { %11020 = vmatpush.bf16.msra.mxu3 %v15866_v7 }
 0x905   :  { %v10737_v47 = vpop.f32.mrf.mxu2 }
 0x906   :  { %v10750_v6 = vpop.f32.mrf.mxu3  ;;  %10903 = vmatmul.bf16.vlgmr.msrb.gmra.mxu3 %v9043_v23  ;;  %10916 = vmatmul.bf16.vlgmr.msrb.gmra.mxu0 %v9044_v34 }
 0x907   :  { %v10774_v59 = vpop.f32.mrf.mxu1  ;;  %10929 = vmatmul.bf16.vlgmr.msra.gmra.mxu1 %v9045_v15  ;;  %15003 = vmatmul.msk.bf16.vlgmr.msra.gmra.mxu2 %vm1897_vm2, %v9046_v2 }
 0x908   :  { %v10775_v22 = vadd.f32 %v10774_v59, %v10762_v14  ;;  %11021 = vmatpush.bf16.msra.mxu3 %v15865_v30 }
 0x909   :  { %v10815_v26 = vpop.f32.mrf.mxu0 }
 0x90c   :  { %11022 = vmatpush.bf16.msra.mxu3 %v15864_v39 }
 0x90e   :  { %v10787_v5 = vpop.f32.mrf.mxu2 }
 0x90f   :  { %v10788_v40 = vadd.f32 %v10787_v5, %v10775_v22  ;;  %v10800_v4 = vpop.f32.mrf.mxu3  ;;  %v10776_v33 = vpop.f32.mrf.mxu1 }
 0x910   :  { %11023 = vmatpush.bf16.msra.mxu3 %v15863_v54 }
 0x911   :  { %v10801_v44 = vadd.f32 %v10800_v4, %v10788_v40 }
 0x913   :  { %v10814_v24 = vadd.f32 %v10813_v43, %v10801_v44 }
 0x914   :  { %11024 = vmatpush.bf16.msra.mxu3 %v15862_v19 }
 0x916   :  { %v10789_v11 = vpop.f32.mrf.mxu2 }
 0x917   :  { %v10802_v45 = vpop.f32.mrf.mxu3 }
 0x927   :  { %v10826_v20 = vpop.f32.mrf.mxu1 }
 0x928   :  { %v10827_v32 = vadd.f32 %v10826_v20, %v10814_v24 }
 0x92e   :  { %v10839_v16 = vpop.f32.mrf.mxu2 }
 0x92f   :  { %v10840_v29 = vadd.f32 %v10839_v16, %v10827_v32  ;;  %v10828_v60 = vpop.f32.mrf.mxu1 }
 0x936   :  { %v10841_v55 = vpop.f32.mrf.mxu2 }
 0x973   :  { %v10865_v8 = vpop.f32.mrf.mxu0 }
 0x974   :  { %v10878_v62 = vpop.f32.mrf.mxu1 }
 0x979   :  { %v10852_v57 = vpop.f32.mrf.mxu3 }
 0x97a   :  { %v10891_v12 = vpop.f32.mrf.mxu2  ;;  %v10853_v61 = vadd.f32 %v10852_v57, %v10840_v29 }
 0x97b   :  { %v10867_v25 = vpop.f32.mrf.mxu0 }
 0x97c   :  { %v10880_v3 = vpop.f32.mrf.mxu1  ;;  %v10866_v41 = vadd.f32 %v10865_v8, %v10853_v61 }
 0x97e   :  { %v10879_v56 = vadd.f32 %v10878_v62, %v10866_v41 }
 0x980   :  { %v10892_v31 = vadd.f32 %v10891_v12, %v10879_v56 }
 0x981   :  { %v10854_v18 = vpop.f32.mrf.mxu3 }
 0x982   :  { %v10893_v36 = vpop.f32.mrf.mxu2 }
 0x983   :  { %v10917_v49 = vpop.f32.mrf.mxu0 }
 0x984   :  { %v10930_v21 = vpop.f32.mrf.mxu1 }
 0x989   :  { %v10904_v52 = vpop.f32.mrf.mxu3 }
 0x98a   :  { %v10905_v28 = vadd.f32 %v10904_v52, %v10892_v31  ;;  %v10943_v53 = vpop.f32.mrf.mxu2 }
 0x98b   :  { %v10919_v46 = vpop.f32.mrf.mxu0 }
 0x98c   :  { %v10918_v38 = vadd.f32 %v10917_v49, %v10905_v28  ;;  %v10932_v37 = vpop.f32.mrf.mxu1 }
 0x98e   :  { %v10931_v9 = vadd.f32 %v10930_v21, %v10918_v38 }
 0x990   :  { %v10944_v42 = vadd.f32 %v10943_v53, %v10931_v9 }
 0x991   :  { %v10906_v1 = vpop.f32.mrf.mxu3 }
 0x992   :  { %v10947_v58 = vmax.f32 %v10944_v42, 0.0  ;;  %v10945_v48 = vpop.f32.mrf.mxu2 }
 0x994   :  { %v10948_v17 = vpack.c.bf16 %v10947_v58, %v10947_v58 }
 0x996   :  { %11025 = vmatmul.bf16.vlgmr.msra.gmra.mxu3 %v10948_v17 }
 0xa19   :  { %v11026_v50 = vpop.f32.mrf.mxu3 }
 0xa1a   :  { %v11027_v51 = vadd.f32 %v15996_v10, %v11026_v50 }
 0xa1c   :  { %11030 = vst [vmem:[#allocation3] sm:$0x3] %v11027_v51 }
 0xa1d   :  { %11041 = dma.vmem_to_hbm [thread:$0]  %s11037_s2, 32, %s11039_s6, [#allocation4]  }
 0xa21   :  { %v11028_v35 = vpop.f32.mrf.mxu3 }
 0xa22   :  { %16021 = dma.done.wait [#allocation4], 32  }
 0xa23   :  { %16022 = vsyncadd [#allocation4], 4294967264 }
 0xa24   :  { %11046 = vsyncpa [#allocation4], 1 }

</bundles_post_ra>
